<compile_context>
chip_gen: v5e
topology: v5e:2x2
jax: 0.10.0
libtpu: 0.0.40
codegen_flags: <defaults>
</compile_context>

<pallas_src>
import functools

import jax
import jax.numpy as jnp
from jax import lax
from jax.experimental import pallas as pl
from jax.experimental.pallas import tpu as pltpu

# ---- small config consistent with the module (in_channels must be divisible by 32) ----
B = 2
IN_CHANNELS = 32          # GroupNorm(num_groups=32) requires a multiple of 32
N_HEADS = 4
D_HEAD = 8
INNER = N_HEADS * D_HEAD  # 32
FRAMES = 8
H = W = 4
DFF = 4 * INNER           # FeedForward mult=4 (GEGLU inner dim)
GN_GROUPS = 32
GN_EPS = 1e-6
LN_EPS = 1e-5

# rows of the packed 1-D parameter table (lane-padded to 2*DFF)
VEC_ROWS = {'pi_b': 0, 'n1_w': 1, 'n1_b': 2, 'a1_ob': 3,
            'n2_w': 4, 'n2_b': 5, 'a2_ob': 6,
            'n3_w': 7, 'n3_b': 8, 'ff_b1': 9, 'ff_b2': 10, 'po_b': 11}
VEC_NROWS = 16            # sublane-tile padded


def _w32_layout(c_in, inner, dff):
    """Column layout of the packed matrix slab; every matrix starts on a 128-lane
    boundary so the in-kernel static slices are tile-aligned (no lane shifts)."""
    def up128(n):
        return ((n + 127) // 128) * 128
    names_widths = [('pi', inner), ('qkv1', 3 * inner), ('ao1', inner),
                    ('qkv2', 3 * inner), ('ao2', inner),
                    ('ff1', 2 * dff), ('po', c_in)]
    cols, off = {}, 0
    for name, wdt in names_widths:
        cols[name] = (off, wdt)
        off += up128(wdt)
    return cols, off


def pack_params(p, c_in=IN_CHANNELS, inner=INNER, dff=DFF, dh=D_HEAD):
    """One-time parameter prep (hoisted out of the forward): fold the GroupNorm affine
    into proj_in, fold the attention scale into the Q columns, fuse Q|K|V, and pack
    everything into three dense slabs (3 weight DMAs instead of 22)."""
    scale = dh ** (-0.5)
    pi_w = p['gn_w'][:, None] * p['pi_w']                 # GN scale folded into proj_in
    pi_b = p['gn_b'] @ p['pi_w'] + p['pi_b']              # GN bias folded into proj_in
    wqkv1 = jnp.concatenate([p['a1_q'] * scale, p['a1_k'], p['a1_v']], axis=1)
    wqkv2 = jnp.concatenate([p['a2_q'] * scale, p['a2_k'], p['a2_v']], axis=1)

    cols, total = _w32_layout(c_in, inner, dff)
    rows = max(c_in, inner)
    w32 = jnp.zeros((rows, total), jnp.float32)
    for name, mat in [('pi', pi_w), ('qkv1', wqkv1), ('ao1', p['a1_ow']),
                      ('qkv2', wqkv2), ('ao2', p['a2_ow']),
                      ('ff1', p['ff_w1']), ('po', p['po_w'])]:
        off, _ = cols[name]
        w32 = w32.at[:mat.shape[0], off:off + mat.shape[1]].set(mat)

    vec = jnp.zeros((VEC_NROWS, 2 * dff), jnp.float32)
    vec = vec.at[VEC_ROWS['pi_b'], :inner].set(pi_b)
    for name in ['n1_w', 'n1_b', 'a1_ob', 'n2_w', 'n2_b', 'a2_ob',
                 'n3_w', 'n3_b', 'ff_b1', 'ff_b2', 'po_b']:
        vec = vec.at[VEC_ROWS[name], :p[name].shape[0]].set(p[name])

    return {'w32': w32, 'ffw2': p['ff_w2'], 'vec': vec, 'cols': cols}


# ---------------------------------------------------------------------------
# in-kernel math helpers (pure jnp, traced inside the Pallas kernel)
# ---------------------------------------------------------------------------
def _erf(x):
    # Abramowitz & Stegun 7.1.26 polynomial, |err| < 1.5e-7 (elementwise, exp-only).
    a1, a2, a3, a4, a5 = 0.254829592, -0.284496736, 1.421413741, -1.453152027, 1.061405429
    pc = 0.3275911
    sgn = jnp.where(x >= 0.0, 1.0, -1.0)
    ax = jnp.abs(x)
    tt = 1.0 / (1.0 + pc * ax)
    poly = ((((a5 * tt + a4) * tt + a3) * tt + a2) * tt + a1) * tt
    return sgn * (1.0 - poly * jnp.exp(-ax * ax))


def _gelu_exact(x):
    # TODO(synk): PyTorch F.gelu is exact erf-based; we use a 1.5e-7-accurate erf
    # polynomial to guarantee Mosaic lowering (no dependence on lax.erf support).
    return 0.5 * x * (1.0 + _erf(x * 0.7071067811865476))


def _layer_norm(x, w, b):
    mu = jnp.mean(x, axis=-1, keepdims=True)
    var = jnp.mean(jnp.square(x - mu), axis=-1, keepdims=True)
    return (x - mu) * lax.rsqrt(var + LN_EPS) * w + b


def _self_attention(y, wqkv, wo, bo, neg_mask, heads, dh):
    """y: (t, c) token-major.  Lane-dense block-diagonal attention: per head one
    (t,dh)x(dh,t) MXU matmul for scores, additive -1e30 mask for cross-sequence pairs,
    softmax over all t keys (lane-dense), then one (t,t)x(t,dh) matmul.  The dh**-0.5
    scale is pre-folded into the Q weight columns."""
    t, c = y.shape
    qkv = jnp.dot(y, wqkv, preferred_element_type=jnp.float32)     # (t, 3c) fused Q|K|V
    outs = []
    for hh in range(heads):                                        # static, heads=4
        q = qkv[:, hh * dh:(hh + 1) * dh]
        k = qkv[:, c + hh * dh:c + (hh + 1) * dh]
        v = qkv[:, 2 * c + hh * dh:2 * c + (hh + 1) * dh]
        s = lax.dot_general(q, k, (((1,), (1,)), ((), ())),
                            preferred_element_type=jnp.float32)    # (t, t) = Q @ K^T
        s = s + neg_mask
        s = s - jnp.max(s, axis=-1, keepdims=True)
        pe = jnp.exp(s)
        pe = pe * pl.reciprocal(jnp.sum(pe, axis=-1, keepdims=True), approx=True)
        outs.append(jnp.dot(pe, v, preferred_element_type=jnp.float32))   # (t, dh)
    o = jnp.concatenate(outs, axis=-1)                              # (t, c)
    return jnp.dot(o, wo, preferred_element_type=jnp.float32) + bo


# ---------------------------------------------------------------------------
# Fused kernel: GroupNorm + proj_in + BasicTransformerBlock (attn1 + attn2 + GEGLU FF)
#               + proj_out + residual.  Grid over batch; channel-major (c, t) I/O.
# ---------------------------------------------------------------------------
def _temporal_transformer_kernel(x_ref, w32_ref, ffw2_ref, vec_ref, out_ref,
                                 *, c_in, inner, heads, dh, dff, groups, n_seq, cols):
    t = x_ref.shape[-1]
    x_cm = x_ref[...]                                  # (c_in, t) channel-major, lane-dense

    # ---- GroupNorm standardization (eps=1e-6); the affine is folded into proj_in ----
    cpg = c_in // groups
    if cpg == 1:
        mu = jnp.mean(x_cm, axis=1, keepdims=True)     # per-channel stats over all tokens
        xc = x_cm - mu
        var = jnp.mean(xc * xc, axis=1, keepdims=True)
        xn_cm = xc * lax.rsqrt(var + GN_EPS)
    else:                                              # general path (unused at c_in=32)
        xg = x_cm.reshape(groups, cpg, t)
        mu = jnp.mean(xg, axis=(1, 2), keepdims=True)
        xcg = xg - mu
        var = jnp.mean(xcg * xcg, axis=(1, 2), keepdims=True)
        xn_cm = (xcg * lax.rsqrt(var + GN_EPS)).reshape(c_in, t)

    xn = xn_cm.T                                       # (t, c_in) token-major for the MXU path

    def w(name, nrows):                                # tile-aligned static slab slices
        off, wdt = cols[name]
        return w32_ref[0:nrows, off:off + wdt]

    def vrow(name, n):                                 # (1, n) bias/scale rows
        r = VEC_ROWS[name]
        return vec_ref[r:r + 1, 0:n]

    # block-diagonal self-attention mask: token j = frame*(h*w) + hw; sequences share hw
    ti = lax.broadcasted_iota(jnp.int32, (t, t), 0)
    tj = lax.broadcasted_iota(jnp.int32, (t, t), 1)
    if (n_seq & (n_seq - 1)) == 0:                     # power-of-two fast path
        si, sj = jnp.bitwise_and(ti, n_seq - 1), jnp.bitwise_and(tj, n_seq - 1)
    else:
        si, sj = ti % n_seq, tj % n_seq
    neg_mask = jnp.where(si == sj, 0.0, -1e30).astype(jnp.float32)

    # ---- proj_in: Conv1d(kernel_size=1) == per-token linear (GN affine pre-folded) ----
    h0 = jnp.dot(xn, w('pi', c_in), preferred_element_type=jnp.float32) + vrow('pi_b', inner)

    # ---- BasicTransformerBlock (self-attention only: context is None) ----
    h1 = h0 + _self_attention(_layer_norm(h0, vrow('n1_w', inner), vrow('n1_b', inner)),
                              w('qkv1', inner), w('ao1', inner), vrow('a1_ob', inner),
                              neg_mask, heads, dh)
    h2 = h1 + _self_attention(_layer_norm(h1, vrow('n2_w', inner), vrow('n2_b', inner)),
                              w('qkv2', inner), w('ao2', inner), vrow('a2_ob', inner),
                              neg_mask, heads, dh)
    y = _layer_norm(h2, vrow('n3_w', inner), vrow('n3_b', inner))
    pj = jnp.dot(y, w('ff1', inner), preferred_element_type=jnp.float32) + vrow('ff_b1', 2 * dff)
    val, gate = pj[:, :dff], pj[:, dff:]               # GEGLU: lane-tile aligned split
    h3 = h2 + (jnp.dot(val * _gelu_exact(gate), ffw2_ref[...],
                       preferred_element_type=jnp.float32) + vrow('ff_b2', inner))

    # ---- proj_out (zero-initialized per zero_module) + residual with original input ----
    out_tm = jnp.dot(h3, w('po', inner), preferred_element_type=jnp.float32) + vrow('po_b', c_in)
    out_ref[...] = out_tm.T + x_cm                     # (c_in, t) lane-dense store


def temporal_transformer_forward(x, packed):
    """x: (b, c, f, h, w) float32 — same axis convention as the PyTorch module.
    `packed` comes from pack_params (one-time weight prep)."""
    b, c, f, h, w = x.shape
    t = f * h * w
    n_seq = h * w

    x_cm = x.reshape(b, c, t)                          # pure reshape, no HBM transpose
    w32, ffw2, vec, cols = packed['w32'], packed['ffw2'], packed['vec'], packed['cols']

    kernel = functools.partial(
        _temporal_transformer_kernel,
        c_in=c, inner=INNER, heads=N_HEADS, dh=D_HEAD, dff=DFF,
        groups=GN_GROUPS, n_seq=n_seq, cols=cols)

    act_spec = pl.BlockSpec((pl.Squeezed(), c, t), lambda i: (i, 0, 0))
    wspec = lambda a: pl.BlockSpec(a.shape, lambda i: (0, 0))

    flops_pb = (2 * t * c * INNER
                + 2 * (2 * t * INNER * 3 * INNER + N_HEADS * 4 * t * t * D_HEAD
                       + 2 * t * INNER * INNER)
                + 2 * t * INNER * 2 * DFF + 2 * t * DFF * INNER
                + 2 * t * INNER * c)
    cost = pl.CostEstimate(
        flops=b * flops_pb,
        transcendentals=b * (2 * N_HEADS * t * t + t * DFF),
        bytes_accessed=(2 * x_cm.size + w32.size + ffw2.size + vec.size) * 4)

    out_cm = pl.pallas_call(
        kernel,
        out_shape=jax.ShapeDtypeStruct((b, c, t), jnp.float32),
        grid=(b,),
        in_specs=[act_spec, wspec(w32), wspec(ffw2), wspec(vec)],
        out_specs=act_spec,
        compiler_params=pltpu.CompilerParams(dimension_semantics=("parallel",)),
        cost_estimate=cost,
    )(x_cm, w32, ffw2, vec)

    return out_cm.reshape(b, c, f, h, w)               # pure reshape, no HBM transpose


# ---------------------------------------------------------------------------
# deterministic synthetic parameters (shapes follow the module's __init__)
# ---------------------------------------------------------------------------
def init_params(key):
    ks = jax.random.split(key, 24)

    def lin(k, shape, scale=0.02):
        return (scale * jax.random.normal(k, shape)).astype(jnp.float32)

    def affine_w(k, d):
        return (1.0 + 0.1 * jax.random.normal(k, (d,))).astype(jnp.float32)

    def affine_b(k, d):
        return (0.05 * jax.random.normal(k, (d,))).astype(jnp.float32)

    return {
        'gn_w': affine_w(ks[16], IN_CHANNELS), 'gn_b': affine_b(ks[17], IN_CHANNELS),
        # proj_in: Conv1d(in_channels, inner, 1) stored pre-transposed as (in, out)
        'pi_w': lin(ks[0], (IN_CHANNELS, INNER)), 'pi_b': lin(ks[1], (INNER,)),
        'n1_w': affine_w(ks[18], INNER), 'n1_b': affine_b(ks[19], INNER),
        'a1_q': lin(ks[2], (INNER, INNER)), 'a1_k': lin(ks[3], (INNER, INNER)),
        'a1_v': lin(ks[4], (INNER, INNER)),
        'a1_ow': lin(ks[5], (INNER, INNER)), 'a1_ob': lin(ks[6], (INNER,)),
        'n2_w': affine_w(ks[20], INNER), 'n2_b': affine_b(ks[21], INNER),
        'a2_q': lin(ks[7], (INNER, INNER)), 'a2_k': lin(ks[8], (INNER, INNER)),
        'a2_v': lin(ks[9], (INNER, INNER)),
        'a2_ow': lin(ks[10], (INNER, INNER)), 'a2_ob': lin(ks[11], (INNER,)),
        'n3_w': affine_w(ks[22], INNER), 'n3_b': affine_b(ks[23], INNER),
        # GEGLU: Linear(inner, 2*DFF); first DFF cols = value, last DFF cols = gate
        'ff_w1': lin(ks[12], (INNER, 2 * DFF)), 'ff_b1': lin(ks[13], (2 * DFF,)),
        'ff_w2': lin(ks[14], (DFF, INNER)), 'ff_b2': lin(ks[15], (INNER,)),
        # proj_out: zero_module(Conv1d(inner, in_channels, 1)) -> zeros, faithful
        'po_w': jnp.zeros((INNER, IN_CHANNELS), jnp.float32),
        'po_b': jnp.zeros((IN_CHANNELS,), jnp.float32),
    }


# ---------------------------------------------------------------------------
# pure-JAX reference of the same forward (for validation of the kernel)
# ---------------------------------------------------------------------------
def temporal_transformer_ref(x, p):
    b, c, f, h, w = x.shape
    cpg = c // GN_GROUPS
    xr = x.reshape(b, GN_GROUPS, cpg, f, h, w)
    mu = xr.mean(axis=(2, 3, 4, 5), keepdims=True)
    var = ((xr - mu) ** 2).mean(axis=(2, 3, 4, 5), keepdims=True)
    xn = (xr - mu) / jnp.sqrt(var + GN_EPS)
    xn = xn.reshape(b, c, f, h, w) * p['gn_w'].reshape(1, c, 1, 1, 1) \
        + p['gn_b'].reshape(1, c, 1, 1, 1)
    t = jnp.transpose(xn, (0, 3, 4, 2, 1)).reshape(b * h * w, f, c)
    t = t @ p['pi_w'] + p['pi_b']

    def ln(y, wt, bt):
        m = y.mean(-1, keepdims=True)
        v = ((y - m) ** 2).mean(-1, keepdims=True)
        return (y - m) / jnp.sqrt(v + LN_EPS) * wt + bt

    def attn(y, wq, wk, wv, wo, bo):
        n_, f_, c_ = y.shape
        q = (y @ wq).reshape(n_, f_, N_HEADS, D_HEAD).transpose(0, 2, 1, 3)
        k = (y @ wk).reshape(n_, f_, N_HEADS, D_HEAD).transpose(0, 2, 1, 3)
        v = (y @ wv).reshape(n_, f_, N_HEADS, D_HEAD).transpose(0, 2, 1, 3)
        sim = jnp.einsum('bhid,bhjd->bhij', q, k) * (D_HEAD ** -0.5)
        a = jax.nn.softmax(sim, axis=-1)
        o = jnp.einsum('bhij,bhjd->bhid', a, v).transpose(0, 2, 1, 3).reshape(n_, f_, c_)
        return o @ wo + bo

    t = t + attn(ln(t, p['n1_w'], p['n1_b']),
                 p['a1_q'], p['a1_k'], p['a1_v'], p['a1_ow'], p['a1_ob'])
    t = t + attn(ln(t, p['n2_w'], p['n2_b']),
                 p['a2_q'], p['a2_k'], p['a2_v'], p['a2_ow'], p['a2_ob'])
    y = ln(t, p['n3_w'], p['n3_b'])
    pj = y @ p['ff_w1'] + p['ff_b1']
    val, gate = pj[..., :DFF], pj[..., DFF:]
    t = t + ((val * jax.nn.gelu(gate, approximate=False)) @ p['ff_w2'] + p['ff_b2'])
    t = t @ p['po_w'] + p['po_b']
    out = t.reshape(b, h, w, f, c).transpose(0, 4, 3, 1, 2)
    return out + x


if __name__ == "__main__":
    key = jax.random.PRNGKey(0)
    kx, kp, kz1, kz2 = jax.random.split(key, 4)
    x = jax.random.normal(kx, (B, IN_CHANNELS, FRAMES, H, W), dtype=jnp.float32)
    params = init_params(kp)

    packed = pack_params(params)
    out = jax.block_until_ready(temporal_transformer_forward(x, packed))
    ref = temporal_transformer_ref(x, params)
    assert out.shape == x.shape
    # zero-initialized proj_out (zero_module) => output must equal the residual input
    assert bool(jnp.allclose(out, x, atol=1e-5)), "faithful (zeroed proj_out) mismatch"
    assert bool(jnp.allclose(out, ref, atol=1e-4, rtol=1e-4))

    # extra validation: non-zero proj_out exercises the full kernel pipeline numerically
    params_nz = dict(params)
    params_nz['po_w'] = 0.02 * jax.random.normal(kz1, (INNER, IN_CHANNELS), dtype=jnp.float32)
    params_nz['po_b'] = 0.02 * jax.random.normal(kz2, (IN_CHANNELS,), dtype=jnp.float32)
    packed_nz = pack_params(params_nz)
    out2 = jax.block_until_ready(temporal_transformer_forward(x, packed_nz))
    ref2 = temporal_transformer_ref(x, params_nz)
    assert bool(jnp.allclose(out2, ref2, atol=1e-3, rtol=1e-3)), \
        float(jnp.max(jnp.abs(out2 - ref2)))

    print("KERNEL_OK")
</pallas_src>

<mosaic_0001>
module attributes {stable_mosaic.version = 11 : i64} {
  func.func @_temporal_transformer_kernel(%arg0: i32, %arg1: memref<1x32x128xf32, #tpu.memory_space<vmem>>, %arg2: memref<32x1024xf32, #tpu.memory_space<vmem>>, %arg3: memref<128x32xf32, #tpu.memory_space<vmem>>, %arg4: memref<16x256xf32, #tpu.memory_space<vmem>>, %arg5: memref<1x32x128xf32, #tpu.memory_space<vmem>>) attributes {dimension_semantics = [#tpu.dimension_semantics<parallel>], iteration_bounds = array<i64: 2>, scalar_prefetch = 0 : i64, scratch_operands = 0 : i64, tpu.core_type = #tpu.core_type<tc>, window_params = [{transform_indices = @transform_0, window_bounds = array<i64: 1, 32, 128>}, {pipeline_mode = #tpu.pipeline_mode<synchronous>, transform_indices = @transform_1, window_bounds = array<i64: 32, 1024>}, {pipeline_mode = #tpu.pipeline_mode<synchronous>, transform_indices = @transform_2, window_bounds = array<i64: 128, 32>}, {pipeline_mode = #tpu.pipeline_mode<synchronous>, transform_indices = @transform_3, window_bounds = array<i64: 16, 256>}, {transform_indices = @transform_4, window_bounds = array<i64: 1, 32, 128>}]} {
    %c0 = arith.constant 0 : index
    %c0_0 = arith.constant 0 : index
    %c0_1 = arith.constant 0 : index
    %0 = vector.load %arg1[%c0, %c0_0, %c0_1] : memref<1x32x128xf32, #tpu.memory_space<vmem>>, vector<1x32x128xf32>
    %1 = vector.shape_cast %0 : vector<1x32x128xf32> to vector<32x128xf32>
    %cst = arith.constant dense<0.000000e+00> : vector<32xf32>
    %2 = vector.multi_reduction <add>, %1, %cst [1] : vector<32x128xf32> to vector<32xf32>
    %3 = vector.shape_cast %2 : vector<32xf32> to vector<32x1xf32>
    %cst_2 = arith.constant 1.280000e+02 : f32
    %4 = vector.broadcast %cst_2 : f32 to vector<32x1xf32>
    %5 = arith.divf %3, %4 : vector<32x1xf32>
    %6 = vector.broadcast %5 : vector<32x1xf32> to vector<32x128xf32>
    %7 = arith.subf %1, %6 : vector<32x128xf32>
    %8 = arith.mulf %7, %7 : vector<32x128xf32>
    %cst_3 = arith.constant dense<0.000000e+00> : vector<32xf32>
    %9 = vector.multi_reduction <add>, %8, %cst_3 [1] : vector<32x128xf32> to vector<32xf32>
    %10 = vector.shape_cast %9 : vector<32xf32> to vector<32x1xf32>
    %cst_4 = arith.constant 1.280000e+02 : f32
    %11 = vector.broadcast %cst_4 : f32 to vector<32x1xf32>
    %12 = arith.divf %10, %11 : vector<32x1xf32>
    %cst_5 = arith.constant 9.99999997E-7 : f32
    %13 = vector.broadcast %cst_5 : f32 to vector<32x1xf32>
    %14 = arith.addf %12, %13 : vector<32x1xf32>
    %15 = math.rsqrt %14 : vector<32x1xf32>
    %16 = vector.broadcast %15 : vector<32x1xf32> to vector<32x128xf32>
    %17 = arith.mulf %7, %16 : vector<32x128xf32>
    %18 = tpu.transpose %17, [1, 0] : vector<32x128xf32> -> vector<128x32xf32>
    %19 = tpu.iota {dimensions = array<i32: 0>} : vector<128x128xi32>
    %20 = tpu.iota {dimensions = array<i32: 1>} : vector<128x128xi32>
    %c15_i32 = arith.constant 15 : i32
    %21 = vector.broadcast %c15_i32 : i32 to vector<128x128xi32>
    %22 = arith.andi %19, %21 : vector<128x128xi32>
    %c15_i32_6 = arith.constant 15 : i32
    %23 = vector.broadcast %c15_i32_6 : i32 to vector<128x128xi32>
    %24 = arith.andi %20, %23 : vector<128x128xi32>
    %25 = arith.cmpi eq, %22, %24 : vector<128x128xi32>
    %cst_7 = arith.constant 0.000000e+00 : f32
    %cst_8 = arith.constant -1.000000e+30 : f32
    %26 = vector.broadcast %cst_7 : f32 to vector<128x128xf32>
    %27 = vector.broadcast %cst_8 : f32 to vector<128x128xf32>
    %28 = arith.select %25, %26, %27 : vector<128x128xi1>, vector<128x128xf32>
    %c0_9 = arith.constant 0 : index
    %c0_10 = arith.constant 0 : index
    %29 = vector.load %arg2[%c0_9, %c0_10] : memref<32x1024xf32, #tpu.memory_space<vmem>>, vector<32x32xf32>
    %cst_11 = arith.constant dense<0.000000e+00> : vector<128x32xf32>
    %30 = tpu.matmul %18, %29, %cst_11 {dimension_numbers = #tpu.dot_dimension_numbers<[1], [0], [0], [1], [0, 0, 1, 1], [], []>} : vector<128x32xf32>, vector<32x32xf32>, vector<128x32xf32> -> vector<128x32xf32>
    %c0_12 = arith.constant 0 : index
    %c0_13 = arith.constant 0 : index
    %31 = vector.load %arg4[%c0_12, %c0_13] : memref<16x256xf32, #tpu.memory_space<vmem>>, vector<1x32xf32>
    %32 = vector.broadcast %31 : vector<1x32xf32> to vector<128x32xf32>
    %33 = arith.addf %30, %32 : vector<128x32xf32>
    %c1 = arith.constant 1 : index
    %c0_14 = arith.constant 0 : index
    %34 = vector.load %arg4[%c1, %c0_14] : memref<16x256xf32, #tpu.memory_space<vmem>>, vector<1x32xf32>
    %c2 = arith.constant 2 : index
    %c0_15 = arith.constant 0 : index
    %35 = vector.load %arg4[%c2, %c0_15] : memref<16x256xf32, #tpu.memory_space<vmem>>, vector<1x32xf32>
    %cst_16 = arith.constant dense<0.000000e+00> : vector<128xf32>
    %36 = vector.multi_reduction <add>, %33, %cst_16 [1] : vector<128x32xf32> to vector<128xf32>
    %37 = vector.shape_cast %36 : vector<128xf32> to vector<128x1xf32>
    %cst_17 = arith.constant 3.200000e+01 : f32
    %38 = vector.broadcast %cst_17 : f32 to vector<128x1xf32>
    %39 = arith.divf %37, %38 : vector<128x1xf32>
    %40 = vector.broadcast %39 : vector<128x1xf32> to vector<128x32xf32>
    %41 = arith.subf %33, %40 : vector<128x32xf32>
    %42 = arith.mulf %41, %41 : vector<128x32xf32>
    %cst_18 = arith.constant dense<0.000000e+00> : vector<128xf32>
    %43 = vector.multi_reduction <add>, %42, %cst_18 [1] : vector<128x32xf32> to vector<128xf32>
    %44 = vector.shape_cast %43 : vector<128xf32> to vector<128x1xf32>
    %cst_19 = arith.constant 3.200000e+01 : f32
    %45 = vector.broadcast %cst_19 : f32 to vector<128x1xf32>
    %46 = arith.divf %44, %45 : vector<128x1xf32>
    %47 = vector.broadcast %39 : vector<128x1xf32> to vector<128x32xf32>
    %48 = arith.subf %33, %47 : vector<128x32xf32>
    %cst_20 = arith.constant 9.99999974E-6 : f32
    %49 = vector.broadcast %cst_20 : f32 to vector<128x1xf32>
    %50 = arith.addf %46, %49 : vector<128x1xf32>
    %51 = math.rsqrt %50 : vector<128x1xf32>
    %52 = vector.broadcast %51 : vector<128x1xf32> to vector<128x32xf32>
    %53 = arith.mulf %48, %52 : vector<128x32xf32>
    %54 = vector.broadcast %34 : vector<1x32xf32> to vector<128x32xf32>
    %55 = arith.mulf %53, %54 : vector<128x32xf32>
    %56 = vector.broadcast %35 : vector<1x32xf32> to vector<128x32xf32>
    %57 = arith.addf %55, %56 : vector<128x32xf32>
    %c0_21 = arith.constant 0 : index
    %c128 = arith.constant 128 : index
    %58 = vector.load %arg2[%c0_21, %c128] : memref<32x1024xf32, #tpu.memory_space<vmem>>, vector<32x96xf32>
    %c0_22 = arith.constant 0 : index
    %c256 = arith.constant 256 : index
    %59 = vector.load %arg2[%c0_22, %c256] : memref<32x1024xf32, #tpu.memory_space<vmem>>, vector<32x32xf32>
    %c3 = arith.constant 3 : index
    %c0_23 = arith.constant 0 : index
    %60 = vector.load %arg4[%c3, %c0_23] : memref<16x256xf32, #tpu.memory_space<vmem>>, vector<1x32xf32>
    %cst_24 = arith.constant dense<0.000000e+00> : vector<128x96xf32>
    %61 = tpu.matmul %57, %58, %cst_24 {dimension_numbers = #tpu.dot_dimension_numbers<[1], [0], [0], [1], [0, 0, 1, 1], [], []>} : vector<128x32xf32>, vector<32x96xf32>, vector<128x96xf32> -> vector<128x96xf32>
    %62 = vector.extract_strided_slice %61 {offsets = [0, 0], sizes = [128, 8], strides = [1, 1]} : vector<128x96xf32> to vector<128x8xf32>
    %63 = vector.extract_strided_slice %61 {offsets = [0, 32], sizes = [128, 8], strides = [1, 1]} : vector<128x96xf32> to vector<128x8xf32>
    %64 = vector.extract_strided_slice %61 {offsets = [0, 64], sizes = [128, 8], strides = [1, 1]} : vector<128x96xf32> to vector<128x8xf32>
    %cst_25 = arith.constant dense<0.000000e+00> : vector<128x128xf32>
    %65 = tpu.matmul %62, %63, %cst_25 {dimension_numbers = #tpu.dot_dimension_numbers<[1], [1], [0], [0], [0, 0, 1, 0], [], []>} : vector<128x8xf32>, vector<128x8xf32>, vector<128x128xf32> -> vector<128x128xf32>
    %66 = arith.addf %65, %28 : vector<128x128xf32>
    %cst_26 = arith.constant dense<0xFF800000> : vector<128xf32>
    %67 = vector.multi_reduction <maximumf>, %66, %cst_26 [1] : vector<128x128xf32> to vector<128xf32>
    %68 = vector.shape_cast %67 : vector<128xf32> to vector<128x1xf32>
    %69 = vector.broadcast %68 : vector<128x1xf32> to vector<128x128xf32>
    %70 = arith.subf %66, %69 : vector<128x128xf32>
    %71 = math.exp %70 : vector<128x128xf32>
    %cst_27 = arith.constant dense<0.000000e+00> : vector<128xf32>
    %72 = vector.multi_reduction <add>, %71, %cst_27 [1] : vector<128x128xf32> to vector<128xf32>
    %73 = vector.shape_cast %72 : vector<128xf32> to vector<128x1xf32>
    %74 = tpu.reciprocal %73 {approx = true} : vector<128x1xf32> -> vector<128x1xf32>
    %75 = vector.broadcast %74 : vector<128x1xf32> to vector<128x128xf32>
    %76 = arith.mulf %71, %75 : vector<128x128xf32>
    %cst_28 = arith.constant dense<0.000000e+00> : vector<128x8xf32>
    %77 = tpu.matmul %76, %64, %cst_28 {dimension_numbers = #tpu.dot_dimension_numbers<[1], [0], [0], [1], [0, 0, 1, 1], [], []>} : vector<128x128xf32>, vector<128x8xf32>, vector<128x8xf32> -> vector<128x8xf32>
    %78 = vector.extract_strided_slice %61 {offsets = [0, 8], sizes = [128, 8], strides = [1, 1]} : vector<128x96xf32> to vector<128x8xf32>
    %79 = vector.extract_strided_slice %61 {offsets = [0, 40], sizes = [128, 8], strides = [1, 1]} : vector<128x96xf32> to vector<128x8xf32>
    %80 = vector.extract_strided_slice %61 {offsets = [0, 72], sizes = [128, 8], strides = [1, 1]} : vector<128x96xf32> to vector<128x8xf32>
    %cst_29 = arith.constant dense<0.000000e+00> : vector<128x128xf32>
    %81 = tpu.matmul %78, %79, %cst_29 {dimension_numbers = #tpu.dot_dimension_numbers<[1], [1], [0], [0], [0, 0, 1, 0], [], []>} : vector<128x8xf32>, vector<128x8xf32>, vector<128x128xf32> -> vector<128x128xf32>
    %82 = arith.addf %81, %28 : vector<128x128xf32>
    %cst_30 = arith.constant dense<0xFF800000> : vector<128xf32>
    %83 = vector.multi_reduction <maximumf>, %82, %cst_30 [1] : vector<128x128xf32> to vector<128xf32>
    %84 = vector.shape_cast %83 : vector<128xf32> to vector<128x1xf32>
    %85 = vector.broadcast %84 : vector<128x1xf32> to vector<128x128xf32>
    %86 = arith.subf %82, %85 : vector<128x128xf32>
    %87 = math.exp %86 : vector<128x128xf32>
    %cst_31 = arith.constant dense<0.000000e+00> : vector<128xf32>
    %88 = vector.multi_reduction <add>, %87, %cst_31 [1] : vector<128x128xf32> to vector<128xf32>
    %89 = vector.shape_cast %88 : vector<128xf32> to vector<128x1xf32>
    %90 = tpu.reciprocal %89 {approx = true} : vector<128x1xf32> -> vector<128x1xf32>
    %91 = vector.broadcast %90 : vector<128x1xf32> to vector<128x128xf32>
    %92 = arith.mulf %87, %91 : vector<128x128xf32>
    %cst_32 = arith.constant dense<0.000000e+00> : vector<128x8xf32>
    %93 = tpu.matmul %92, %80, %cst_32 {dimension_numbers = #tpu.dot_dimension_numbers<[1], [0], [0], [1], [0, 0, 1, 1], [], []>} : vector<128x128xf32>, vector<128x8xf32>, vector<128x8xf32> -> vector<128x8xf32>
    %94 = vector.extract_strided_slice %61 {offsets = [0, 16], sizes = [128, 8], strides = [1, 1]} : vector<128x96xf32> to vector<128x8xf32>
    %95 = vector.extract_strided_slice %61 {offsets = [0, 48], sizes = [128, 8], strides = [1, 1]} : vector<128x96xf32> to vector<128x8xf32>
    %96 = vector.extract_strided_slice %61 {offsets = [0, 80], sizes = [128, 8], strides = [1, 1]} : vector<128x96xf32> to vector<128x8xf32>
    %cst_33 = arith.constant dense<0.000000e+00> : vector<128x128xf32>
    %97 = tpu.matmul %94, %95, %cst_33 {dimension_numbers = #tpu.dot_dimension_numbers<[1], [1], [0], [0], [0, 0, 1, 0], [], []>} : vector<128x8xf32>, vector<128x8xf32>, vector<128x128xf32> -> vector<128x128xf32>
    %98 = arith.addf %97, %28 : vector<128x128xf32>
    %cst_34 = arith.constant dense<0xFF800000> : vector<128xf32>
    %99 = vector.multi_reduction <maximumf>, %98, %cst_34 [1] : vector<128x128xf32> to vector<128xf32>
    %100 = vector.shape_cast %99 : vector<128xf32> to vector<128x1xf32>
    %101 = vector.broadcast %100 : vector<128x1xf32> to vector<128x128xf32>
    %102 = arith.subf %98, %101 : vector<128x128xf32>
    %103 = math.exp %102 : vector<128x128xf32>
    %cst_35 = arith.constant dense<0.000000e+00> : vector<128xf32>
    %104 = vector.multi_reduction <add>, %103, %cst_35 [1] : vector<128x128xf32> to vector<128xf32>
    %105 = vector.shape_cast %104 : vector<128xf32> to vector<128x1xf32>
    %106 = tpu.reciprocal %105 {approx = true} : vector<128x1xf32> -> vector<128x1xf32>
    %107 = vector.broadcast %106 : vector<128x1xf32> to vector<128x128xf32>
    %108 = arith.mulf %103, %107 : vector<128x128xf32>
    %cst_36 = arith.constant dense<0.000000e+00> : vector<128x8xf32>
    %109 = tpu.matmul %108, %96, %cst_36 {dimension_numbers = #tpu.dot_dimension_numbers<[1], [0], [0], [1], [0, 0, 1, 1], [], []>} : vector<128x128xf32>, vector<128x8xf32>, vector<128x8xf32> -> vector<128x8xf32>
    %110 = vector.extract_strided_slice %61 {offsets = [0, 24], sizes = [128, 8], strides = [1, 1]} : vector<128x96xf32> to vector<128x8xf32>
    %111 = vector.extract_strided_slice %61 {offsets = [0, 56], sizes = [128, 8], strides = [1, 1]} : vector<128x96xf32> to vector<128x8xf32>
    %112 = vector.extract_strided_slice %61 {offsets = [0, 88], sizes = [128, 8], strides = [1, 1]} : vector<128x96xf32> to vector<128x8xf32>
    %cst_37 = arith.constant dense<0.000000e+00> : vector<128x128xf32>
    %113 = tpu.matmul %110, %111, %cst_37 {dimension_numbers = #tpu.dot_dimension_numbers<[1], [1], [0], [0], [0, 0, 1, 0], [], []>} : vector<128x8xf32>, vector<128x8xf32>, vector<128x128xf32> -> vector<128x128xf32>
    %114 = arith.addf %113, %28 : vector<128x128xf32>
    %cst_38 = arith.constant dense<0xFF800000> : vector<128xf32>
    %115 = vector.multi_reduction <maximumf>, %114, %cst_38 [1] : vector<128x128xf32> to vector<128xf32>
    %116 = vector.shape_cast %115 : vector<128xf32> to vector<128x1xf32>
    %117 = vector.broadcast %116 : vector<128x1xf32> to vector<128x128xf32>
    %118 = arith.subf %114, %117 : vector<128x128xf32>
    %119 = math.exp %118 : vector<128x128xf32>
    %cst_39 = arith.constant dense<0.000000e+00> : vector<128xf32>
    %120 = vector.multi_reduction <add>, %119, %cst_39 [1] : vector<128x128xf32> to vector<128xf32>
    %121 = vector.shape_cast %120 : vector<128xf32> to vector<128x1xf32>
    %122 = tpu.reciprocal %121 {approx = true} : vector<128x1xf32> -> vector<128x1xf32>
    %123 = vector.broadcast %122 : vector<128x1xf32> to vector<128x128xf32>
    %124 = arith.mulf %119, %123 : vector<128x128xf32>
    %cst_40 = arith.constant dense<0.000000e+00> : vector<128x8xf32>
    %125 = tpu.matmul %124, %112, %cst_40 {dimension_numbers = #tpu.dot_dimension_numbers<[1], [0], [0], [1], [0, 0, 1, 1], [], []>} : vector<128x128xf32>, vector<128x8xf32>, vector<128x8xf32> -> vector<128x8xf32>
    %126 = tpu.concatenate %77, %93, %109, %125 in 1 : vector<128x8xf32>, vector<128x8xf32>, vector<128x8xf32>, vector<128x8xf32> -> vector<128x32xf32>
    %cst_41 = arith.constant dense<0.000000e+00> : vector<128x32xf32>
    %127 = tpu.matmul %126, %59, %cst_41 {dimension_numbers = #tpu.dot_dimension_numbers<[1], [0], [0], [1], [0, 0, 1, 1], [], []>} : vector<128x32xf32>, vector<32x32xf32>, vector<128x32xf32> -> vector<128x32xf32>
    %128 = vector.broadcast %60 : vector<1x32xf32> to vector<128x32xf32>
    %129 = arith.addf %127, %128 : vector<128x32xf32>
    %130 = arith.addf %33, %129 : vector<128x32xf32>
    %c4 = arith.constant 4 : index
    %c0_42 = arith.constant 0 : index
    %131 = vector.load %arg4[%c4, %c0_42] : memref<16x256xf32, #tpu.memory_space<vmem>>, vector<1x32xf32>
    %c5 = arith.constant 5 : index
    %c0_43 = arith.constant 0 : index
    %132 = vector.load %arg4[%c5, %c0_43] : memref<16x256xf32, #tpu.memory_space<vmem>>, vector<1x32xf32>
    %cst_44 = arith.constant dense<0.000000e+00> : vector<128xf32>
    %133 = vector.multi_reduction <add>, %130, %cst_44 [1] : vector<128x32xf32> to vector<128xf32>
    %134 = vector.shape_cast %133 : vector<128xf32> to vector<128x1xf32>
    %cst_45 = arith.constant 3.200000e+01 : f32
    %135 = vector.broadcast %cst_45 : f32 to vector<128x1xf32>
    %136 = arith.divf %134, %135 : vector<128x1xf32>
    %137 = vector.broadcast %136 : vector<128x1xf32> to vector<128x32xf32>
    %138 = arith.subf %130, %137 : vector<128x32xf32>
    %139 = arith.mulf %138, %138 : vector<128x32xf32>
    %cst_46 = arith.constant dense<0.000000e+00> : vector<128xf32>
    %140 = vector.multi_reduction <add>, %139, %cst_46 [1] : vector<128x32xf32> to vector<128xf32>
    %141 = vector.shape_cast %140 : vector<128xf32> to vector<128x1xf32>
    %cst_47 = arith.constant 3.200000e+01 : f32
    %142 = vector.broadcast %cst_47 : f32 to vector<128x1xf32>
    %143 = arith.divf %141, %142 : vector<128x1xf32>
    %144 = vector.broadcast %136 : vector<128x1xf32> to vector<128x32xf32>
    %145 = arith.subf %130, %144 : vector<128x32xf32>
    %cst_48 = arith.constant 9.99999974E-6 : f32
    %146 = vector.broadcast %cst_48 : f32 to vector<128x1xf32>
    %147 = arith.addf %143, %146 : vector<128x1xf32>
    %148 = math.rsqrt %147 : vector<128x1xf32>
    %149 = vector.broadcast %148 : vector<128x1xf32> to vector<128x32xf32>
    %150 = arith.mulf %145, %149 : vector<128x32xf32>
    %151 = vector.broadcast %131 : vector<1x32xf32> to vector<128x32xf32>
    %152 = arith.mulf %150, %151 : vector<128x32xf32>
    %153 = vector.broadcast %132 : vector<1x32xf32> to vector<128x32xf32>
    %154 = arith.addf %152, %153 : vector<128x32xf32>
    %c0_49 = arith.constant 0 : index
    %c384 = arith.constant 384 : index
    %155 = vector.load %arg2[%c0_49, %c384] : memref<32x1024xf32, #tpu.memory_space<vmem>>, vector<32x96xf32>
    %c0_50 = arith.constant 0 : index
    %c512 = arith.constant 512 : index
    %156 = vector.load %arg2[%c0_50, %c512] : memref<32x1024xf32, #tpu.memory_space<vmem>>, vector<32x32xf32>
    %c6 = arith.constant 6 : index
    %c0_51 = arith.constant 0 : index
    %157 = vector.load %arg4[%c6, %c0_51] : memref<16x256xf32, #tpu.memory_space<vmem>>, vector<1x32xf32>
    %cst_52 = arith.constant dense<0.000000e+00> : vector<128x96xf32>
    %158 = tpu.matmul %154, %155, %cst_52 {dimension_numbers = #tpu.dot_dimension_numbers<[1], [0], [0], [1], [0, 0, 1, 1], [], []>} : vector<128x32xf32>, vector<32x96xf32>, vector<128x96xf32> -> vector<128x96xf32>
    %159 = vector.extract_strided_slice %158 {offsets = [0, 0], sizes = [128, 8], strides = [1, 1]} : vector<128x96xf32> to vector<128x8xf32>
    %160 = vector.extract_strided_slice %158 {offsets = [0, 32], sizes = [128, 8], strides = [1, 1]} : vector<128x96xf32> to vector<128x8xf32>
    %161 = vector.extract_strided_slice %158 {offsets = [0, 64], sizes = [128, 8], strides = [1, 1]} : vector<128x96xf32> to vector<128x8xf32>
    %cst_53 = arith.constant dense<0.000000e+00> : vector<128x128xf32>
    %162 = tpu.matmul %159, %160, %cst_53 {dimension_numbers = #tpu.dot_dimension_numbers<[1], [1], [0], [0], [0, 0, 1, 0], [], []>} : vector<128x8xf32>, vector<128x8xf32>, vector<128x128xf32> -> vector<128x128xf32>
    %163 = arith.addf %162, %28 : vector<128x128xf32>
    %cst_54 = arith.constant dense<0xFF800000> : vector<128xf32>
    %164 = vector.multi_reduction <maximumf>, %163, %cst_54 [1] : vector<128x128xf32> to vector<128xf32>
    %165 = vector.shape_cast %164 : vector<128xf32> to vector<128x1xf32>
    %166 = vector.broadcast %165 : vector<128x1xf32> to vector<128x128xf32>
    %167 = arith.subf %163, %166 : vector<128x128xf32>
    %168 = math.exp %167 : vector<128x128xf32>
    %cst_55 = arith.constant dense<0.000000e+00> : vector<128xf32>
    %169 = vector.multi_reduction <add>, %168, %cst_55 [1] : vector<128x128xf32> to vector<128xf32>
    %170 = vector.shape_cast %169 : vector<128xf32> to vector<128x1xf32>
    %171 = tpu.reciprocal %170 {approx = true} : vector<128x1xf32> -> vector<128x1xf32>
    %172 = vector.broadcast %171 : vector<128x1xf32> to vector<128x128xf32>
    %173 = arith.mulf %168, %172 : vector<128x128xf32>
    %cst_56 = arith.constant dense<0.000000e+00> : vector<128x8xf32>
    %174 = tpu.matmul %173, %161, %cst_56 {dimension_numbers = #tpu.dot_dimension_numbers<[1], [0], [0], [1], [0, 0, 1, 1], [], []>} : vector<128x128xf32>, vector<128x8xf32>, vector<128x8xf32> -> vector<128x8xf32>
    %175 = vector.extract_strided_slice %158 {offsets = [0, 8], sizes = [128, 8], strides = [1, 1]} : vector<128x96xf32> to vector<128x8xf32>
    %176 = vector.extract_strided_slice %158 {offsets = [0, 40], sizes = [128, 8], strides = [1, 1]} : vector<128x96xf32> to vector<128x8xf32>
    %177 = vector.extract_strided_slice %158 {offsets = [0, 72], sizes = [128, 8], strides = [1, 1]} : vector<128x96xf32> to vector<128x8xf32>
    %cst_57 = arith.constant dense<0.000000e+00> : vector<128x128xf32>
    %178 = tpu.matmul %175, %176, %cst_57 {dimension_numbers = #tpu.dot_dimension_numbers<[1], [1], [0], [0], [0, 0, 1, 0], [], []>} : vector<128x8xf32>, vector<128x8xf32>, vector<128x128xf32> -> vector<128x128xf32>
    %179 = arith.addf %178, %28 : vector<128x128xf32>
    %cst_58 = arith.constant dense<0xFF800000> : vector<128xf32>
    %180 = vector.multi_reduction <maximumf>, %179, %cst_58 [1] : vector<128x128xf32> to vector<128xf32>
    %181 = vector.shape_cast %180 : vector<128xf32> to vector<128x1xf32>
    %182 = vector.broadcast %181 : vector<128x1xf32> to vector<128x128xf32>
    %183 = arith.subf %179, %182 : vector<128x128xf32>
    %184 = math.exp %183 : vector<128x128xf32>
    %cst_59 = arith.constant dense<0.000000e+00> : vector<128xf32>
    %185 = vector.multi_reduction <add>, %184, %cst_59 [1] : vector<128x128xf32> to vector<128xf32>
    %186 = vector.shape_cast %185 : vector<128xf32> to vector<128x1xf32>
    %187 = tpu.reciprocal %186 {approx = true} : vector<128x1xf32> -> vector<128x1xf32>
    %188 = vector.broadcast %187 : vector<128x1xf32> to vector<128x128xf32>
    %189 = arith.mulf %184, %188 : vector<128x128xf32>
    %cst_60 = arith.constant dense<0.000000e+00> : vector<128x8xf32>
    %190 = tpu.matmul %189, %177, %cst_60 {dimension_numbers = #tpu.dot_dimension_numbers<[1], [0], [0], [1], [0, 0, 1, 1], [], []>} : vector<128x128xf32>, vector<128x8xf32>, vector<128x8xf32> -> vector<128x8xf32>
    %191 = vector.extract_strided_slice %158 {offsets = [0, 16], sizes = [128, 8], strides = [1, 1]} : vector<128x96xf32> to vector<128x8xf32>
    %192 = vector.extract_strided_slice %158 {offsets = [0, 48], sizes = [128, 8], strides = [1, 1]} : vector<128x96xf32> to vector<128x8xf32>
    %193 = vector.extract_strided_slice %158 {offsets = [0, 80], sizes = [128, 8], strides = [1, 1]} : vector<128x96xf32> to vector<128x8xf32>
    %cst_61 = arith.constant dense<0.000000e+00> : vector<128x128xf32>
    %194 = tpu.matmul %191, %192, %cst_61 {dimension_numbers = #tpu.dot_dimension_numbers<[1], [1], [0], [0], [0, 0, 1, 0], [], []>} : vector<128x8xf32>, vector<128x8xf32>, vector<128x128xf32> -> vector<128x128xf32>
    %195 = arith.addf %194, %28 : vector<128x128xf32>
    %cst_62 = arith.constant dense<0xFF800000> : vector<128xf32>
    %196 = vector.multi_reduction <maximumf>, %195, %cst_62 [1] : vector<128x128xf32> to vector<128xf32>
    %197 = vector.shape_cast %196 : vector<128xf32> to vector<128x1xf32>
    %198 = vector.broadcast %197 : vector<128x1xf32> to vector<128x128xf32>
    %199 = arith.subf %195, %198 : vector<128x128xf32>
    %200 = math.exp %199 : vector<128x128xf32>
    %cst_63 = arith.constant dense<0.000000e+00> : vector<128xf32>
    %201 = vector.multi_reduction <add>, %200, %cst_63 [1] : vector<128x128xf32> to vector<128xf32>
    %202 = vector.shape_cast %201 : vector<128xf32> to vector<128x1xf32>
    %203 = tpu.reciprocal %202 {approx = true} : vector<128x1xf32> -> vector<128x1xf32>
    %204 = vector.broadcast %203 : vector<128x1xf32> to vector<128x128xf32>
    %205 = arith.mulf %200, %204 : vector<128x128xf32>
    %cst_64 = arith.constant dense<0.000000e+00> : vector<128x8xf32>
    %206 = tpu.matmul %205, %193, %cst_64 {dimension_numbers = #tpu.dot_dimension_numbers<[1], [0], [0], [1], [0, 0, 1, 1], [], []>} : vector<128x128xf32>, vector<128x8xf32>, vector<128x8xf32> -> vector<128x8xf32>
    %207 = vector.extract_strided_slice %158 {offsets = [0, 24], sizes = [128, 8], strides = [1, 1]} : vector<128x96xf32> to vector<128x8xf32>
    %208 = vector.extract_strided_slice %158 {offsets = [0, 56], sizes = [128, 8], strides = [1, 1]} : vector<128x96xf32> to vector<128x8xf32>
    %209 = vector.extract_strided_slice %158 {offsets = [0, 88], sizes = [128, 8], strides = [1, 1]} : vector<128x96xf32> to vector<128x8xf32>
    %cst_65 = arith.constant dense<0.000000e+00> : vector<128x128xf32>
    %210 = tpu.matmul %207, %208, %cst_65 {dimension_numbers = #tpu.dot_dimension_numbers<[1], [1], [0], [0], [0, 0, 1, 0], [], []>} : vector<128x8xf32>, vector<128x8xf32>, vector<128x128xf32> -> vector<128x128xf32>
    %211 = arith.addf %210, %28 : vector<128x128xf32>
    %cst_66 = arith.constant dense<0xFF800000> : vector<128xf32>
    %212 = vector.multi_reduction <maximumf>, %211, %cst_66 [1] : vector<128x128xf32> to vector<128xf32>
    %213 = vector.shape_cast %212 : vector<128xf32> to vector<128x1xf32>
    %214 = vector.broadcast %213 : vector<128x1xf32> to vector<128x128xf32>
    %215 = arith.subf %211, %214 : vector<128x128xf32>
    %216 = math.exp %215 : vector<128x128xf32>
    %cst_67 = arith.constant dense<0.000000e+00> : vector<128xf32>
    %217 = vector.multi_reduction <add>, %216, %cst_67 [1] : vector<128x128xf32> to vector<128xf32>
    %218 = vector.shape_cast %217 : vector<128xf32> to vector<128x1xf32>
    %219 = tpu.reciprocal %218 {approx = true} : vector<128x1xf32> -> vector<128x1xf32>
    %220 = vector.broadcast %219 : vector<128x1xf32> to vector<128x128xf32>
    %221 = arith.mulf %216, %220 : vector<128x128xf32>
    %cst_68 = arith.constant dense<0.000000e+00> : vector<128x8xf32>
    %222 = tpu.matmul %221, %209, %cst_68 {dimension_numbers = #tpu.dot_dimension_numbers<[1], [0], [0], [1], [0, 0, 1, 1], [], []>} : vector<128x128xf32>, vector<128x8xf32>, vector<128x8xf32> -> vector<128x8xf32>
    %223 = tpu.concatenate %174, %190, %206, %222 in 1 : vector<128x8xf32>, vector<128x8xf32>, vector<128x8xf32>, vector<128x8xf32> -> vector<128x32xf32>
    %cst_69 = arith.constant dense<0.000000e+00> : vector<128x32xf32>
    %224 = tpu.matmul %223, %156, %cst_69 {dimension_numbers = #tpu.dot_dimension_numbers<[1], [0], [0], [1], [0, 0, 1, 1], [], []>} : vector<128x32xf32>, vector<32x32xf32>, vector<128x32xf32> -> vector<128x32xf32>
    %225 = vector.broadcast %157 : vector<1x32xf32> to vector<128x32xf32>
    %226 = arith.addf %224, %225 : vector<128x32xf32>
    %227 = arith.addf %130, %226 : vector<128x32xf32>
    %c7 = arith.constant 7 : index
    %c0_70 = arith.constant 0 : index
    %228 = vector.load %arg4[%c7, %c0_70] : memref<16x256xf32, #tpu.memory_space<vmem>>, vector<1x32xf32>
    %c8 = arith.constant 8 : index
    %c0_71 = arith.constant 0 : index
    %229 = vector.load %arg4[%c8, %c0_71] : memref<16x256xf32, #tpu.memory_space<vmem>>, vector<1x32xf32>
    %cst_72 = arith.constant dense<0.000000e+00> : vector<128xf32>
    %230 = vector.multi_reduction <add>, %227, %cst_72 [1] : vector<128x32xf32> to vector<128xf32>
    %231 = vector.shape_cast %230 : vector<128xf32> to vector<128x1xf32>
    %cst_73 = arith.constant 3.200000e+01 : f32
    %232 = vector.broadcast %cst_73 : f32 to vector<128x1xf32>
    %233 = arith.divf %231, %232 : vector<128x1xf32>
    %234 = vector.broadcast %233 : vector<128x1xf32> to vector<128x32xf32>
    %235 = arith.subf %227, %234 : vector<128x32xf32>
    %236 = arith.mulf %235, %235 : vector<128x32xf32>
    %cst_74 = arith.constant dense<0.000000e+00> : vector<128xf32>
    %237 = vector.multi_reduction <add>, %236, %cst_74 [1] : vector<128x32xf32> to vector<128xf32>
    %238 = vector.shape_cast %237 : vector<128xf32> to vector<128x1xf32>
    %cst_75 = arith.constant 3.200000e+01 : f32
    %239 = vector.broadcast %cst_75 : f32 to vector<128x1xf32>
    %240 = arith.divf %238, %239 : vector<128x1xf32>
    %241 = vector.broadcast %233 : vector<128x1xf32> to vector<128x32xf32>
    %242 = arith.subf %227, %241 : vector<128x32xf32>
    %cst_76 = arith.constant 9.99999974E-6 : f32
    %243 = vector.broadcast %cst_76 : f32 to vector<128x1xf32>
    %244 = arith.addf %240, %243 : vector<128x1xf32>
    %245 = math.rsqrt %244 : vector<128x1xf32>
    %246 = vector.broadcast %245 : vector<128x1xf32> to vector<128x32xf32>
    %247 = arith.mulf %242, %246 : vector<128x32xf32>
    %248 = vector.broadcast %228 : vector<1x32xf32> to vector<128x32xf32>
    %249 = arith.mulf %247, %248 : vector<128x32xf32>
    %250 = vector.broadcast %229 : vector<1x32xf32> to vector<128x32xf32>
    %251 = arith.addf %249, %250 : vector<128x32xf32>
    %c0_77 = arith.constant 0 : index
    %c640 = arith.constant 640 : index
    %252 = vector.load %arg2[%c0_77, %c640] : memref<32x1024xf32, #tpu.memory_space<vmem>>, vector<32x256xf32>
    %cst_78 = arith.constant dense<0.000000e+00> : vector<128x256xf32>
    %253 = tpu.matmul %251, %252, %cst_78 {dimension_numbers = #tpu.dot_dimension_numbers<[1], [0], [0], [1], [0, 0, 1, 1], [], []>} : vector<128x32xf32>, vector<32x256xf32>, vector<128x256xf32> -> vector<128x256xf32>
    %c9 = arith.constant 9 : index
    %c0_79 = arith.constant 0 : index
    %254 = vector.load %arg4[%c9, %c0_79] : memref<16x256xf32, #tpu.memory_space<vmem>>, vector<1x256xf32>
    %255 = vector.broadcast %254 : vector<1x256xf32> to vector<128x256xf32>
    %256 = arith.addf %253, %255 : vector<128x256xf32>
    %257 = vector.extract_strided_slice %256 {offsets = [0, 0], sizes = [128, 128], strides = [1, 1]} : vector<128x256xf32> to vector<128x128xf32>
    %258 = vector.extract_strided_slice %256 {offsets = [0, 128], sizes = [128, 128], strides = [1, 1]} : vector<128x256xf32> to vector<128x128xf32>
    %cst_80 = arith.constant 5.000000e-01 : f32
    %259 = vector.broadcast %cst_80 : f32 to vector<128x128xf32>
    %260 = arith.mulf %259, %258 : vector<128x128xf32>
    %cst_81 = arith.constant 0.707106769 : f32
    %261 = vector.broadcast %cst_81 : f32 to vector<128x128xf32>
    %262 = arith.mulf %258, %261 : vector<128x128xf32>
    %cst_82 = arith.constant 0.000000e+00 : f32
    %263 = vector.broadcast %cst_82 : f32 to vector<128x128xf32>
    %264 = arith.cmpf oge, %262, %263 : vector<128x128xf32>
    %cst_83 = arith.constant 1.000000e+00 : f32
    %cst_84 = arith.constant -1.000000e+00 : f32
    %265 = vector.broadcast %cst_83 : f32 to vector<128x128xf32>
    %266 = vector.broadcast %cst_84 : f32 to vector<128x128xf32>
    %267 = arith.select %264, %265, %266 : vector<128x128xi1>, vector<128x128xf32>
    %268 = math.absf %262 : vector<128x128xf32>
    %cst_85 = arith.constant 0.327591091 : f32
    %269 = vector.broadcast %cst_85 : f32 to vector<128x128xf32>
    %270 = arith.mulf %269, %268 : vector<128x128xf32>
    %cst_86 = arith.constant 1.000000e+00 : f32
    %271 = vector.broadcast %cst_86 : f32 to vector<128x128xf32>
    %272 = arith.addf %271, %270 : vector<128x128xf32>
    %cst_87 = arith.constant 1.000000e+00 : f32
    %273 = vector.broadcast %cst_87 : f32 to vector<128x128xf32>
    %274 = arith.divf %273, %272 : vector<128x128xf32>
    %cst_88 = arith.constant 1.06140542 : f32
    %275 = vector.broadcast %cst_88 : f32 to vector<128x128xf32>
    %276 = arith.mulf %275, %274 : vector<128x128xf32>
    %cst_89 = arith.constant -1.45315206 : f32
    %277 = vector.broadcast %cst_89 : f32 to vector<128x128xf32>
    %278 = arith.addf %276, %277 : vector<128x128xf32>
    %279 = arith.mulf %278, %274 : vector<128x128xf32>
    %cst_90 = arith.constant 1.42141378 : f32
    %280 = vector.broadcast %cst_90 : f32 to vector<128x128xf32>
    %281 = arith.addf %279, %280 : vector<128x128xf32>
    %282 = arith.mulf %281, %274 : vector<128x128xf32>
    %cst_91 = arith.constant -0.284496725 : f32
    %283 = vector.broadcast %cst_91 : f32 to vector<128x128xf32>
    %284 = arith.addf %282, %283 : vector<128x128xf32>
    %285 = arith.mulf %284, %274 : vector<128x128xf32>
    %cst_92 = arith.constant 0.254829586 : f32
    %286 = vector.broadcast %cst_92 : f32 to vector<128x128xf32>
    %287 = arith.addf %285, %286 : vector<128x128xf32>
    %288 = arith.mulf %287, %274 : vector<128x128xf32>
    %cst_93 = arith.constant 0.000000e+00 : f32
    %289 = vector.broadcast %cst_93 : f32 to vector<128x128xf32>
    %290 = arith.subf %289, %268 : vector<128x128xf32>
    %291 = arith.mulf %290, %268 : vector<128x128xf32>
    %292 = math.exp %291 : vector<128x128xf32>
    %293 = arith.mulf %288, %292 : vector<128x128xf32>
    %cst_94 = arith.constant 1.000000e+00 : f32
    %294 = vector.broadcast %cst_94 : f32 to vector<128x128xf32>
    %295 = arith.subf %294, %293 : vector<128x128xf32>
    %296 = arith.mulf %267, %295 : vector<128x128xf32>
    %cst_95 = arith.constant 1.000000e+00 : f32
    %297 = vector.broadcast %cst_95 : f32 to vector<128x128xf32>
    %298 = arith.addf %297, %296 : vector<128x128xf32>
    %299 = arith.mulf %260, %298 : vector<128x128xf32>
    %300 = arith.mulf %257, %299 : vector<128x128xf32>
    %c0_96 = arith.constant 0 : index
    %c0_97 = arith.constant 0 : index
    %301 = vector.load %arg3[%c0_96, %c0_97] : memref<128x32xf32, #tpu.memory_space<vmem>>, vector<128x32xf32>
    %cst_98 = arith.constant dense<0.000000e+00> : vector<128x32xf32>
    %302 = tpu.matmul %300, %301, %cst_98 {dimension_numbers = #tpu.dot_dimension_numbers<[1], [0], [0], [1], [0, 0, 1, 1], [], []>} : vector<128x128xf32>, vector<128x32xf32>, vector<128x32xf32> -> vector<128x32xf32>
    %c10 = arith.constant 10 : index
    %c0_99 = arith.constant 0 : index
    %303 = vector.load %arg4[%c10, %c0_99] : memref<16x256xf32, #tpu.memory_space<vmem>>, vector<1x32xf32>
    %304 = vector.broadcast %303 : vector<1x32xf32> to vector<128x32xf32>
    %305 = arith.addf %302, %304 : vector<128x32xf32>
    %306 = arith.addf %227, %305 : vector<128x32xf32>
    %c0_100 = arith.constant 0 : index
    %c896 = arith.constant 896 : index
    %307 = vector.load %arg2[%c0_100, %c896] : memref<32x1024xf32, #tpu.memory_space<vmem>>, vector<32x32xf32>
    %cst_101 = arith.constant dense<0.000000e+00> : vector<128x32xf32>
    %308 = tpu.matmul %306, %307, %cst_101 {dimension_numbers = #tpu.dot_dimension_numbers<[1], [0], [0], [1], [0, 0, 1, 1], [], []>} : vector<128x32xf32>, vector<32x32xf32>, vector<128x32xf32> -> vector<128x32xf32>
    %c11 = arith.constant 11 : index
    %c0_102 = arith.constant 0 : index
    %309 = vector.load %arg4[%c11, %c0_102] : memref<16x256xf32, #tpu.memory_space<vmem>>, vector<1x32xf32>
    %310 = vector.broadcast %309 : vector<1x32xf32> to vector<128x32xf32>
    %311 = arith.addf %308, %310 : vector<128x32xf32>
    %312 = tpu.transpose %311, [1, 0] : vector<128x32xf32> -> vector<32x128xf32>
    %313 = arith.addf %312, %1 : vector<32x128xf32>
    %c0_103 = arith.constant 0 : index
    %c0_104 = arith.constant 0 : index
    %c0_105 = arith.constant 0 : index
    %314 = vector.load %arg5[%c0_103, %c0_104, %c0_105] : memref<1x32x128xf32, #tpu.memory_space<vmem>>, vector<1x32x128xf32>
    %315 = vector.shape_cast %314 : vector<1x32x128xf32> to vector<32x128xf32>
    %316 = vector.shape_cast %313 : vector<32x128xf32> to vector<1x32x128xf32>
    tpu.vector_store %arg5[%c0_103, %c0_104, %c0_105], %316 {strides = array<i32>} : memref<1x32x128xf32, #tpu.memory_space<vmem>>, vector<1x32x128xf32>,
    return
  }
  func.func @transform_0(%arg0: i32) -> (i32, i32, i32) {
    %c0_i32 = arith.constant 0 : i32
    %c0_i32_0 = arith.constant 0 : i32
    %c0_i32_1 = arith.constant 0 : i32
    return %arg0, %c0_i32, %c0_i32_0 : i32, i32, i32
  }
  func.func @transform_1(%arg0: i32) -> (i32, i32) {
    %c0_i32 = arith.constant 0 : i32
    %c0_i32_0 = arith.constant 0 : i32
    %c0_i32_1 = arith.constant 0 : i32
    return %c0_i32, %c0_i32_0 : i32, i32
  }
  func.func @transform_2(%arg0: i32) -> (i32, i32) {
    %c0_i32 = arith.constant 0 : i32
    %c0_i32_0 = arith.constant 0 : i32
    %c0_i32_1 = arith.constant 0 : i32
    return %c0_i32, %c0_i32_0 : i32, i32
  }
  func.func @transform_3(%arg0: i32) -> (i32, i32) {
    %c0_i32 = arith.constant 0 : i32
    %c0_i32_0 = arith.constant 0 : i32
    %c0_i32_1 = arith.constant 0 : i32
    return %c0_i32, %c0_i32_0 : i32, i32
  }
  func.func @transform_4(%arg0: i32) -> (i32, i32, i32) {
    %c0_i32 = arith.constant 0 : i32
    %c0_i32_0 = arith.constant 0 : i32
    %c0_i32_1 = arith.constant 0 : i32
    return %arg0, %c0_i32, %c0_i32_0 : i32, i32, i32
  }
}

</mosaic_0001>

<bundles_post_ra>
// kernel: tpu_custom_call.1
= control target key start
LH: loop header
LB: loop body
LE: loop exit
PB: predicated region body
PF: predicated region fallthrough
CT: control target
= control target key end

     0   :  { %9 = vsyncpa [#allocation3], 0  ;;  %s14346_s0 = inlined_call_operand.vmem [shape: f32[2,32,128], index: 0, kind: input, shape index: {}]   ;;  %s14347_s1 = inlined_call_operand.hbm [shape: f32[32,1024], index: 1, kind: input, shape index: {}]   ;;  %s14348_s2 = inlined_call_operand.vmem [shape: f32[128,32], index: 2, kind: input, shape index: {}]   ;;  %s14349_s3 = inlined_call_operand.vmem [shape: f32[16,256], index: 3, kind: input, shape index: {}]   ;;  %s14350_s4 = inlined_call_operand.hbm [shape: f32[2,32,128], index: 4, kind: output, shape index: {}]  }
   0x1   :  { %10 = vsyncpa [#allocation4], 0 }
   0x2   :  { %12 = vsyncpa [#allocation4 + $0x1], 0  ;;  %s9088_s15 = smov 0   ;;  %s9090_s16 = smov 0  }
   0x3   :  { %s9092_s17 = smov 0   ;;  %s9094_s18 = smov 0  }
   0x4 LB: > { %s9109_s19 = sadd.s32 4294967295, %s9039_s18   ;;  %s7436_s20 = sadd.s32 4294967294, %s9039_s18   ;;  %s9039_s18 = sphi %s9094_s18, %s14908_s18   ;;  %s9035_s17 = sphi %s9092_s17, %s14907_s17   ;;  %s9031_s16 = sphi %s9090_s16, %s14906_s16   ;;  %s9027_s15 = sphi %s9088_s15, %s14905_s15  }
   0x5   : > { %s9113_s21 = sadd.s32 1, %s9039_s18   ;;  %s114_s22 = sadd.s32 1, %s9035_s17 }
   0x6   : > { %s111_s23 = ssub.s32 %s9039_s18, %s9113_s21  ;;  %p124_p0 = scmp.ne.s32.totalorder %s9035_s17, %s9031_s16 }
   0x7   : > { %p112_p1 = scmp.eq.s32.totalorder %s111_s23, 0  ;;  %p125_p2 = scmp.eq.s32.totalorder %s9109_s19, 1 }
   0x8   : > { %p130_p3 = scmp.ne.s32.totalorder %s9031_s16, %s9027_s15  ;;  %p131_p4 = scmp.eq.s32.totalorder %s7436_s20, 1 }
   0x9   : > { %s9124_s24 = scalar_select %p112_p1, %s9035_s17, %s114_s22  }
   0xa   : > { %p9126_p5 = por %p125_p2, %p124_p0  ;;  %p9130_p6 = por %p131_p4, %p130_p3 }
   0xb   : > { %p7437_p7 = scmp.ge.s32.totalorder %s9039_s18, 1  ;;  %p138_p8 = scmp.lt.s32.totalorder %s9039_s18, 3 }
   0xc   : > { %p7875_p9 = scmp.eq.s32.totalorder %s9109_s19, 0  ;;  %s149_s29 = sshll.u32 %s14347_s1, 4  ;;  %s150_s29 = int_to_ptr.hbm [resolvable:$true] %s149_s29 }
   0xd   : > { %p139_p10 = pnand %p7437_p7, %p138_p8  ;;  %s9041_s30 = smov [#allocation2]  }
   0xe   : > { %s151_s5 = sshll.u32 %s9041_s30, 4  ;;  %s9042_s6 = smov 1024   ;;  %s152_s5 = int_to_ptr.vmem [resolvable:$true] %s151_s5 }
   0xf   : > { %p7867_p11 = pneg %p139_p10  ;;  %s9043_s7 = smov 64  }
  0x10   : > { %181 = sbr.rel (%p139_p10) target bundleno = 6062 (0x17ae), region = 36 }
  0x11   : > { %p7868_p12 = pnand %p7875_p9, %p7867_p11 }
  0x13   : > { %7870 = dma.hbm_to_vmem [thread:$0]  (!%p7868_p12), %s150_s29, 4096, %s152_s5, [#allocation3], %s9042_s6, %s9042_s6, %s9043_s7  }
  0x15   : > { %9018 = dma.done.wait (%p7875_p9), [#allocation3], 4096  }
  0x16   : > { %9020 = vsyncadd (%p7875_p9), [#allocation3], 4294963200  ;;  %p208_p13 = scmp.lt.s32.totalorder %s9109_s19, 1  ;;  %v9044_v4 = vmov 128.0   ;;  %v407_v46 = vld [vmem:[#allocation2 + $0xc0] sm:$0xff]  ;;  %vm409_vm13 = vcmask 261120  }
  0x17   : > { %8253 = vrcp.f32 %v9044_v4  ;;  %v406_v47 = vld [vmem:[#allocation2 + $0x80] sm:$0xff]  ;;  %470 = vmatpush.msra.mxu0 %v407_v46  ;;  %7837 = vmatpush.msra.mxu1 %v407_v46  ;;  %s9046_s28 = smov 96   ;;  %s9047_s29 = smov 88  }
  0x18   : > { %s209_s8 = scalar_select %p208_p13, %s9109_s19, 1  ;;  %v405_v50 = vld [vmem:[#allocation2 + $0x40] sm:$0xff] }
  0x19   : > { %471 = vmatpush.msra.mxu0 %v406_v47  ;;  %7838 = vmatpush.msra.mxu1 %v406_v47  ;;  %v404_v55 = vld [vmem:[#allocation2] sm:$0xff]  ;;  %s9048_s30 = smov 64   ;;  %s9049_s5 = smov 120  }
  0x1a   : > { %s7835_s9 = sshll.u32 %s209_s8, 5  ;;  %s9050_s6 = smov 72  }
  0x1b   : > { %s9151_s12 = scalar_lea.vmem %s14346_s0, %s7835_s9  ;;  %472 = vmatpush.msra.mxu0 %v405_v50  ;;  %7839 = vmatpush.msra.mxu1 %v405_v50  ;;  %s9051_s7 = smov 80  }
  0x1c   : > { %v215_v0 = vld [vmem:[%s9151_s12 + $0x10] sm:$0xff]  ;;  %v213_v1 = vld [vmem:[%s9151_s12] sm:$0xff]  ;;  %v216_v2 = vld [vmem:[%s9151_s12 + $0x18] sm:$0xff]  ;;  %s9052_s8 = smov 112   ;;  %s9053_s9 = smov 104  }
  0x1d   : > { %221 = vadd.xlane.f32.xlu1 %v215_v0  ;;  %217 = vadd.xlane.f32.xlu0 %v213_v1  ;;  %v214_v3 = vld [vmem:[%s9151_s12 + $0x8] sm:$0xff]  ;;  %v8254_v5 = vpop.eup %8253  ;;  %s9054_s10 = smov 56   ;;  %s9056_s11 = smov 48  }
  0x1e   : > { %v226_v6 = vmul.f32 128.0, %v8254_v5  ;;  %vm230_vm0 = vweird.f32 %v8254_v5  ;;  %473 = vmatpush.msra.mxu0 %v404_v55  ;;  %7840 = vmatpush.msra.mxu1 %v404_v55  ;;  %s9057_s13 = smov 40   ;;  %s14441_s14 = smov 16  }
  0x1f   : > { %s9059_s20 = smov 8   ;;  %s14443_s22 = smov 24  }
  0x20   : > { %v227_v7 = vsub.f32 1.0, %v226_v6 }
  0x22   : > { %v228_v8 = vmul.f32 %v8254_v5, %v227_v7 }
  0x24   : > { %v229_v9 = vadd.f32 %v8254_v5, %v228_v8 }
  0x25   : > { %223 = vadd.xlane.f32.xlu1 %v216_v2  ;;  %219 = vadd.xlane.f32.xlu0 %v214_v3 }
  0x26   : > { %v231_v10 = vsel %vm230_vm0, %v8254_v5, %v229_v9 }
  0x90   : > { %v222_v11 = vpop.xlane.xlu1 %221  ;;  %v218_v12 = vpop.xlane.xlu0 %217 }
  0x91   : > { %v234_v13 = vmul.f32 %v231_v10, %v222_v11  ;;  %v232_v14 = vmul.f32 %v231_v10, %v218_v12 }
  0x93   : > { %v9157_v15 = vsub.f32 %v215_v0, %v234_v13  ;;  %v236_v16 = vsub.f32 %v213_v1, %v232_v14 }
  0x95   : > { %v242_v17 = vmul.f32 %v9157_v15, %v9157_v15  ;;  %v240_v18 = vmul.f32 %v236_v16, %v236_v16 }
  0x97   : > { %248 = vadd.xlane.f32.xlu0 %v242_v17  ;;  %244 = vadd.xlane.f32.xlu2 %v240_v18 }
  0x98   : > { %v224_v19 = vpop.xlane.xlu1 %223  ;;  %v220_v20 = vpop.xlane.xlu0 %219 }
  0x99   : > { %v235_v21 = vmul.f32 %v231_v10, %v224_v19  ;;  %v233_v22 = vmul.f32 %v231_v10, %v220_v20 }
  0x9b   : > { %v9161_v23 = vsub.f32 %v216_v2, %v235_v21  ;;  %v9163_v24 = vsub.f32 %v214_v3, %v233_v22  ;;  %v9186_v22 = vld [vmem:[%s14349_s3] ss:$0 sm:$0xff] }
  0x9d   : > { %v243_v25 = vmul.f32 %v9161_v23, %v9161_v23  ;;  %v241_v26 = vmul.f32 %v9163_v24, %v9163_v24 }
  0x9f   : > { %250 = vadd.xlane.f32.xlu1 %v243_v25  ;;  %246 = vadd.xlane.f32.xlu2 %v241_v26 }
 0x10a   : > { %v245_v27 = vpop.xlane.xlu2 %244  ;;  %v249_v28 = vpop.xlane.xlu0 %248 }
 0x10b   : > { %v252_v29 = vmul.f32 %v245_v27, %v231_v10  ;;  %v254_v30 = vmul.f32 %v249_v28, %v231_v10 }
 0x10d   : > { %v256_v31 = vadd.f32 1e-06, %v252_v29  ;;  %v258_v32 = vadd.f32 1e-06, %v254_v30 }
 0x10f   : > { %8255 = vrsqrt.f32 %v256_v31  ;;  %vm266_vm2 = vweird.f32 %v256_v31  ;;  %vm286_vm7 = vweird.f32 %v258_v32 }
 0x110   : > { %8257 = vrsqrt.f32 %v258_v32 }
 0x112   : > { %v251_v33 = vpop.xlane.xlu1 %250  ;;  %v247_v34 = vpop.xlane.xlu2 %246 }
 0x113   : > { %v255_v35 = vmul.f32 %v251_v33, %v231_v10  ;;  %v253_v36 = vmul.f32 %v247_v34, %v231_v10 }
 0x115   : > { %v8256_v37 = vpop.eup %8255  ;;  %v257_v38 = vadd.f32 1e-06, %v253_v36  ;;  %v259_v40 = vadd.f32 1e-06, %v255_v35 }
 0x116   : > { %v261_v39 = vmul.f32 %v8256_v37, %v256_v31  ;;  %v8258_v41 = vpop.eup %8257  ;;  %vm267_vm1 = vweird.f32 %v8256_v37 }
 0x117   : > { %8259 = vrsqrt.f32 %v257_v38  ;;  %v281_v44 = vmul.f32 %v8258_v41, %v258_v32  ;;  %vm268_vm3 = vmor %vm266_vm2, %vm267_vm1  ;;  %vm276_vm5 = vweird.f32 %v257_v38  ;;  %vm287_vm8 = vweird.f32 %v8258_v41 }
 0x118   : > { %v262_v42 = vmul.f32 %v8256_v37, %v261_v39  ;;  %8261 = vrsqrt.f32 %v259_v40  ;;  %vm288_vm9 = vmor %vm286_vm7, %vm287_vm8  ;;  %vm296_vm10 = vweird.f32 %v259_v40 }
 0x119   : > { %v282_v51 = vmul.f32 %v8258_v41, %v281_v44 }
 0x11a   : > { %v263_v43 = vmul.f32 0.5, %v262_v42 }
 0x11b   : > { %v283_v58 = vmul.f32 0.5, %v282_v51 }
 0x11c   : > { %v264_v45 = vsub.f32 1.5, %v263_v43 }
 0x11d   : > { %v8260_v48 = vpop.eup %8259  ;;  %v284_v62 = vsub.f32 1.5, %v283_v58 }
 0x11e   : > { %v265_v49 = vmul.f32 %v8256_v37, %v264_v45  ;;  %v271_v52 = vmul.f32 %v8260_v48, %v257_v38  ;;  %v8262_v53 = vpop.eup %8261  ;;  %vm277_vm4 = vweird.f32 %v8260_v48 }
 0x11f   : > { %v291_v59 = vmul.f32 %v8262_v53, %v259_v40  ;;  %vm278_vm6 = vmor %vm276_vm5, %vm277_vm4  ;;  %v285_v4 = vmul.f32 %v8258_v41, %v284_v62  ;;  %vm297_vm11 = vweird.f32 %v8262_v53 }
 0x120   : > { %v269_v54 = vsel %vm268_vm3, %v8256_v37, %v265_v49  ;;  %v272_v56 = vmul.f32 %v8260_v48, %v271_v52  ;;  %vm298_vm12 = vmor %vm296_vm10, %vm297_vm11 }
 0x121   : > { %v300_v57 = vmul.f32 %v269_v54, %v236_v16  ;;  %v292_v63 = vmul.f32 %v8262_v53, %v291_v59  ;;  %v289_v6 = vsel %vm288_vm9, %v8258_v41, %v285_v4 }
 0x122   : > { %v273_v60 = vmul.f32 0.5, %v272_v56  ;;  %v302_v7 = vmul.f32 %v289_v6, %v9157_v15 }
 0x123   : > { %304 = vxpose.xlu2.b32.start [1/4] (short) %v300_v57, 128  ;;  %v293_v3 = vmul.f32 0.5, %v292_v63 }
 0x124   : > { %v274_v61 = vsub.f32 1.5, %v273_v60 }
 0x125   : > { %v294_v5 = vsub.f32 1.5, %v293_v3 }
 0x126   : > { %v275_v0 = vmul.f32 %v8260_v48, %v274_v61  ;;  %v9045_v61 = vmov 32.0  }
 0x127   : > { %v295_v8 = vmul.f32 %v8262_v53, %v294_v5  ;;  %8263 = vrcp.f32 %v9045_v61 }
 0x128   : > { %v279_v1 = vsel %vm278_vm6, %v8260_v48, %v275_v0 }
 0x129   : > { %v301_v2 = vmul.f32 %v279_v1, %v9163_v24  ;;  %v299_v9 = vsel %vm298_vm12, %v8262_v53, %v295_v8 }
 0x12a   : > { %v303_v10 = vmul.f32 %v299_v9, %v9161_v23 }
 0x12b   : > { %305 = vxpose.xlu2.b32.cont [2/4] (short) %v301_v2, 128 }
 0x12d   : > { %v8264_v62 = vpop.eup %8263 }
 0x12e   : > { %v574_v63 = vmul.f32 32.0, %v8264_v62  ;;  %vm578_vm14 = vweird.f32 %v8264_v62 }
 0x130   : > { %v575_v0 = vsub.f32 1.0, %v574_v63 }
 0x132   : > { %v576_v1 = vmul.f32 %v8264_v62, %v575_v0 }
 0x133   : > { %306 = vxpose.xlu2.b32.cont [3/4] (short) %v302_v7, 128 }
 0x134   : > { %v577_v2 = vadd.f32 %v8264_v62, %v576_v1 }
 0x136   : > { %v9248_v3 = vsel %vm578_vm14, %v8264_v62, %v577_v2 }
 0x137   : > { %14512 = vst [vmem:[#allocation19_spill] sm:$0xff] %v9248_v3 }
 0x13b   : > { %307 = vxpose.xlu2.b32.end [4/4] (short) %v303_v10, 128 }
 0x1bc   : > { %v320_v11 = vpop.trf.xlu2 }
 0x1bd   : > { %7445 = vmatmul.msk.f32.vlgmr.msra.gmra.mxu0 %vm409_vm13, %v320_v11 }
 0x1c4   : > { %v321_v12 = vpop.trf.xlu2 }
 0x1c5   : > { %7446 = vmatmul.msk.f32.gmra.mxu0 %vm409_vm13, %v321_v12 }
 0x1cc   : > { %v322_v13 = vpop.trf.xlu2 }
 0x1cd   : > { %7447 = vmatmul.msk.f32.gmra.mxu0 %vm409_vm13, %v322_v13 }
 0x1d4   : > { %v323_v14 = vpop.trf.xlu2 }
 0x1d5   : > { %7448 = vmatmul.msk.f32.gmra.mxu0 %vm409_vm13, %v323_v14 }
 0x1dc   : > { %v324_v15 = vpop.trf.xlu2 }
 0x1dd   : > { %7449 = vmatmul.msk.f32.gmra.mxu0 %vm409_vm13, %v324_v15 }
 0x1e4   : > { %v325_v16 = vpop.trf.xlu2 }
 0x1e5   : > { %7450 = vmatmul.msk.f32.gmra.mxu0 %vm409_vm13, %v325_v16 }
 0x1ec   : > { %v326_v17 = vpop.trf.xlu2 }
 0x1ed   : > { %7451 = vmatmul.msk.f32.gmra.mxu0 %vm409_vm13, %v326_v17 }
 0x1f4   : > { %v327_v18 = vpop.trf.xlu2 }
 0x1f5   : > { %7452 = vmatmul.msk.f32.gmra.mxu0 %vm409_vm13, %v327_v18 }
 0x1fc   : > { %v328_v19 = vpop.trf.xlu2 }
 0x1fd   : > { %7453 = vmatmul.msk.f32.vlgmr.msra.gmra.mxu1 %vm409_vm13, %v328_v19 }
 0x204   : > { %v329_v20 = vpop.trf.xlu2 }
 0x205   : > { %7454 = vmatmul.msk.f32.gmra.mxu1 %vm409_vm13, %v329_v20 }
 0x20c   : > { %v330_v21 = vpop.trf.xlu2 }
 0x20d   : > { %7455 = vmatmul.msk.f32.gmra.mxu1 %vm409_vm13, %v330_v21 }
 0x214   : > { %v331_v26 = vpop.trf.xlu2 }
 0x215   : > { %7456 = vmatmul.msk.f32.gmra.mxu1 %vm409_vm13, %v331_v26 }
 0x21c   : > { %v332_v30 = vpop.trf.xlu2 }
 0x21d   : > { %7457 = vmatmul.msk.f32.gmra.mxu1 %vm409_vm13, %v332_v30 }
 0x224   : > { %v333_v34 = vpop.trf.xlu2 }
 0x225   : > { %7458 = vmatmul.msk.f32.gmra.mxu1 %vm409_vm13, %v333_v34 }
 0x22c   : > { %v334_v38 = vpop.trf.xlu2 }
 0x22d   : > { %7459 = vmatmul.msk.f32.gmra.mxu1 %vm409_vm13, %v334_v38 }
 0x234   : > { %v335_v42 = vpop.trf.xlu2 }
 0x235   : > { %7460 = vmatmul.msk.f32.gmra.mxu1 %vm409_vm13, %v335_v42 }
 0x23a   : > { %v475_v23 = vpop.f32.mrf.mxu0 }
 0x23b   : > { %v9189_v24 = vadd.f32 %v475_v23, %v9186_v22 }
 0x23d   : > { %14501 = vst [vmem:[#allocation8_spill] sm:$0xff] %v9189_v24  ;;  %v525_v25 = vsel %vm409_vm13, %v9189_v24, 0.0 }
 0x23e   : > { %526 = vadd.xlane.f32.xlu0 %v525_v25 }
 0x242   : > { %v478_v27 = vpop.f32.mrf.mxu0 }
 0x243   : > { %v9195_v28 = vadd.f32 %v478_v27, %v9186_v22 }
 0x245   : > { %14502 = vst [vmem:[#allocation9_spill] sm:$0xff] %v9195_v28  ;;  %v528_v29 = vsel %vm409_vm13, %v9195_v28, 0.0 }
 0x246   : > { %529 = vadd.xlane.f32.xlu1 %v528_v29 }
 0x24a   : > { %v481_v31 = vpop.f32.mrf.mxu0 }
 0x24b   : > { %v9201_v32 = vadd.f32 %v481_v31, %v9186_v22 }
 0x24d   : > { %14503 = vst [vmem:[#allocation10_spill] sm:$0xff] %v9201_v32  ;;  %v531_v33 = vsel %vm409_vm13, %v9201_v32, 0.0 }
 0x24e   : > { %532 = vadd.xlane.f32.xlu0 %v531_v33 }
 0x252   : > { %v484_v35 = vpop.f32.mrf.mxu0 }
 0x253   : > { %v9207_v36 = vadd.f32 %v484_v35, %v9186_v22 }
 0x255   : > { %14504 = vst [vmem:[#allocation11_spill] sm:$0xff] %v9207_v36  ;;  %v534_v37 = vsel %vm409_vm13, %v9207_v36, 0.0 }
 0x256   : > { %535 = vadd.xlane.f32.xlu1 %v534_v37 }
 0x25a   : > { %v487_v39 = vpop.f32.mrf.mxu0 }
 0x25b   : > { %v9213_v40 = vadd.f32 %v487_v39, %v9186_v22 }
 0x25d   : > { %14505 = vst [vmem:[#allocation12_spill] sm:$0xff] %v9213_v40  ;;  %v537_v41 = vsel %vm409_vm13, %v9213_v40, 0.0 }
 0x25e   : > { %538 = vadd.xlane.f32.xlu0 %v537_v41 }
 0x262   : > { %v490_v43 = vpop.f32.mrf.mxu0 }
 0x263   : > { %v9219_v44 = vadd.f32 %v490_v43, %v9186_v22 }
 0x265   : > { %14506 = vst [vmem:[#allocation13_spill] sm:$0xff] %v9219_v44  ;;  %v540_v45 = vsel %vm409_vm13, %v9219_v44, 0.0 }
 0x266   : > { %541 = vadd.xlane.f32.xlu1 %v540_v45 }
 0x26a   : > { %v493_v46 = vpop.f32.mrf.mxu0 }
 0x26b   : > { %v9224_v47 = vadd.f32 %v493_v46, %v9186_v22 }
 0x26d   : > { %14507 = vst [vmem:[#allocation14_spill] sm:$0xff] %v9224_v47  ;;  %v543_v48 = vsel %vm409_vm13, %v9224_v47, 0.0 }
 0x26e   : > { %544 = vadd.xlane.f32.xlu1 %v543_v48 }
 0x272   : > { %v496_v49 = vpop.f32.mrf.mxu0 }
 0x273   : > { %v9229_v50 = vadd.f32 %v496_v49, %v9186_v22 }
 0x275   : > { %14508 = vst [vmem:[#allocation15_spill] sm:$0xff] %v9229_v50  ;;  %v546_v51 = vsel %vm409_vm13, %v9229_v50, 0.0 }
 0x276   : > { %547 = vadd.xlane.f32.xlu1 %v546_v51 }
 0x27a   : > { %v499_v52 = vpop.f32.mrf.mxu1 }
 0x27b   : > { %v9234_v53 = vadd.f32 %v499_v52, %v9186_v22 }
 0x27d   : > { %14509 = vst [vmem:[#allocation16_spill] sm:$0xff] %v9234_v53  ;;  %v549_v54 = vsel %vm409_vm13, %v9234_v53, 0.0 }
 0x27e   : > { %550 = vadd.xlane.f32.xlu1 %v549_v54 }
 0x282   : > { %v502_v55 = vpop.f32.mrf.mxu1 }
 0x283   : > { %v9239_v56 = vadd.f32 %v502_v55, %v9186_v22 }
 0x285   : > { %14510 = vst [vmem:[#allocation17_spill] sm:$0xff] %v9239_v56  ;;  %v552_v57 = vsel %vm409_vm13, %v9239_v56, 0.0 }
 0x286   : > { %553 = vadd.xlane.f32.xlu1 %v552_v57 }
 0x28a   : > { %v505_v58 = vpop.f32.mrf.mxu1 }
 0x28b   : > { %v9244_v59 = vadd.f32 %v505_v58, %v9186_v22 }
 0x28d   : > { %14511 = vst [vmem:[#allocation18_spill] sm:$0xff] %v9244_v59  ;;  %v555_v60 = vsel %vm409_vm13, %v9244_v59, 0.0 }
 0x28e   : > { %556 = vadd.xlane.f32.xlu1 %v555_v60 }
 0x292   : > { %v508_v25 = vpop.f32.mrf.mxu1 }
 0x293   : > { %v9287_v38 = vadd.f32 %v508_v25, %v9186_v22 }
 0x295   : > { %14513 = vst [vmem:[#allocation20_spill] sm:$0xff] %v9287_v38  ;;  %v558_v42 = vsel %vm409_vm13, %v9287_v38, 0.0 }
 0x29a   : > { %v511_v35 = vpop.f32.mrf.mxu1 }
 0x29b   : > { %v9299_v48 = vadd.f32 %v511_v35, %v9186_v22 }
 0x29d   : > { %14514 = vst [vmem:[#allocation21_spill] sm:$0xff] %v9299_v48  ;;  %v561_v54 = vsel %vm409_vm13, %v9299_v48, 0.0 }
 0x2a2   : > { %v514_v49 = vpop.f32.mrf.mxu1 }
 0x2a3   : > { %v9311_v60 = vadd.f32 %v514_v49, %v9186_v22 }
 0x2a5   : > { %14515 = vst [vmem:[#allocation22_spill] sm:$0xff] %v9311_v60  ;;  %v564_v0 = vsel %vm409_vm13, %v9311_v60, 0.0 }
 0x2aa   : > { %v517_v62 = vpop.f32.mrf.mxu1 }
 0x2b1   : > { %v527_v4 = vpop.xlane.xlu0 %526 }
 0x2b2   : > { %v580_v5 = vmul.f32 %v9248_v3, %v527_v4 }
 0x2b4   : > { %v9252_v6 = vsub.f32 %v9189_v24, %v580_v5  ;;  %v9323_v5 = vadd.f32 %v517_v62, %v9186_v22 }
 0x2b6   : > { %v612_v7 = vmul.f32 %v9252_v6, %v9252_v6  ;;  %14516 = vst [vmem:[#allocation23_spill] sm:$0xff] %v9323_v5 }
 0x2b8   : > { %v628_v8 = vsel %vm409_vm13, %v612_v7, 0.0 }
 0x2b9   : > { %v530_v9 = vpop.xlane.xlu1 %529  ;;  %629 = vadd.xlane.f32.xlu0 %v628_v8 }
 0x2ba   : > { %v581_v10 = vmul.f32 %v9248_v3, %v530_v9  ;;  %v567_v9 = vsel %vm409_vm13, %v9323_v5, 0.0 }
 0x2bc   : > { %v9259_v11 = vsub.f32 %v9195_v28, %v581_v10  ;;  %v520_v10 = vpop.f32.mrf.mxu1 }
 0x2be   : > { %v613_v12 = vmul.f32 %v9259_v11, %v9259_v11 }
 0x2c0   : > { %v631_v13 = vsel %vm409_vm13, %v613_v12, 0.0 }
 0x2c1   : > { %v533_v14 = vpop.xlane.xlu0 %532  ;;  %632 = vadd.xlane.f32.xlu0 %v631_v13 }
 0x2c2   : > { %v582_v15 = vmul.f32 %v9248_v3, %v533_v14 }
 0x2c4   : > { %v9266_v16 = vsub.f32 %v9201_v32, %v582_v15  ;;  %v9335_v15 = vadd.f32 %v520_v10, %v9186_v22 }
 0x2c6   : > { %v614_v17 = vmul.f32 %v9266_v16, %v9266_v16  ;;  %14517 = vst [vmem:[#allocation24_spill] sm:$0xff] %v9335_v15 }
 0x2c8   : > { %v634_v18 = vsel %vm409_vm13, %v614_v17, 0.0 }
 0x2c9   : > { %v536_v19 = vpop.xlane.xlu1 %535  ;;  %635 = vadd.xlane.f32.xlu0 %v634_v18 }
 0x2ca   : > { %v583_v20 = vmul.f32 %v9248_v3, %v536_v19  ;;  %v570_v19 = vsel %vm409_vm13, %v9335_v15, 0.0 }
 0x2cc   : > { %v9273_v21 = vsub.f32 %v9207_v36, %v583_v20 }
 0x2ce   : > { %v615_v23 = vmul.f32 %v9273_v21, %v9273_v21 }
 0x2d0   : > { %v637_v26 = vsel %vm409_vm13, %v615_v23, 0.0 }
 0x2d1   : > { %638 = vadd.xlane.f32.xlu0 %v637_v26  ;;  %v539_v27 = vpop.xlane.xlu0 %538 }
 0x2d2   : > { %v584_v29 = vmul.f32 %v9248_v3, %v539_v27 }
 0x2d4   : > { %v9280_v30 = vsub.f32 %v9213_v40, %v584_v29  ;;  %v919_v29 = vld [vmem:[#allocation2 + $0xc8] sm:$0xff] }
 0x2d5   : > { %985 = vmatpush.msrb.mxu1 %v919_v29 }
 0x2d6   : > { %v616_v31 = vmul.f32 %v9280_v30, %v9280_v30 }
 0x2d8   : > { %v640_v33 = vsel %vm409_vm13, %v616_v31, 0.0  ;;  %v918_v31 = vld [vmem:[#allocation2 + $0x88] sm:$0xff] }
 0x2d9   : > { %641 = vadd.xlane.f32.xlu0 %v640_v33  ;;  %v542_v34 = vpop.xlane.xlu1 %541  ;;  %986 = vmatpush.msrb.mxu1 %v918_v31  ;;  %v917_v33 = vld [vmem:[#allocation2 + $0x48] sm:$0xff] }
 0x2da   : > { %v585_v37 = vmul.f32 %v9248_v3, %v542_v34  ;;  %v916_v34 = vld [vmem:[#allocation2 + $0x8] sm:$0xff] }
 0x2db   : > { %987 = vmatpush.msrb.mxu1 %v917_v33 }
 0x2dc   : > { %v9290_v39 = vsub.f32 %v9219_v44, %v585_v37 }
 0x2dd   : > { %988 = vmatpush.msrb.mxu1 %v916_v34 }
 0x2de   : > { %v617_v41 = vmul.f32 %v9290_v39, %v9290_v39 }
 0x2e0   : > { %v643_v43 = vsel %vm409_vm13, %v617_v41, 0.0 }
 0x2e1   : > { %644 = vadd.xlane.f32.xlu2 %v643_v43  ;;  %v545_v45 = vpop.xlane.xlu1 %544  ;;  %559 = vadd.xlane.f32.xlu0 %v558_v42 }
 0x2e2   : > { %v586_v46 = vmul.f32 %v9248_v3, %v545_v45 }
 0x2e4   : > { %v9302_v51 = vsub.f32 %v9224_v47, %v586_v46 }
 0x2e6   : > { %v618_v52 = vmul.f32 %v9302_v51, %v9302_v51 }
 0x2e8   : > { %v646_v55 = vsel %vm409_vm13, %v618_v52, 0.0 }
 0x2e9   : > { %v548_v57 = vpop.xlane.xlu1 %547  ;;  %647 = vadd.xlane.f32.xlu1 %v646_v55  ;;  %562 = vadd.xlane.f32.xlu0 %v561_v54 }
 0x2ea   : > { %v587_v58 = vmul.f32 %v9248_v3, %v548_v57 }
 0x2ec   : > { %v9314_v61 = vsub.f32 %v9229_v50, %v587_v58 }
 0x2ee   : > { %v619_v63 = vmul.f32 %v9314_v61, %v9314_v61 }
 0x2f0   : > { %v649_v1 = vsel %vm409_vm13, %v619_v63, 0.0 }
 0x2f1   : > { %v551_v2 = vpop.xlane.xlu1 %550  ;;  %650 = vadd.xlane.f32.xlu1 %v649_v1  ;;  %565 = vadd.xlane.f32.xlu0 %v564_v0 }
 0x2f2   : > { %v588_v4 = vmul.f32 %v9248_v3, %v551_v2 }
 0x2f4   : > { %v9326_v7 = vsub.f32 %v9234_v53, %v588_v4 }
 0x2f6   : > { %v620_v8 = vmul.f32 %v9326_v7, %v9326_v7 }
 0x2f8   : > { %v652_v12 = vsel %vm409_vm13, %v620_v8, 0.0  ;;  %v9358_v8 = vld [vmem:[%s14349_s3 + $0x1] ss:$0 sm:$0xff] }
 0x2f9   : > { %v554_v13 = vpop.xlane.xlu1 %553  ;;  %653 = vadd.xlane.f32.xlu1 %v652_v12  ;;  %568 = vadd.xlane.f32.xlu0 %v567_v9 }
 0x2fa   : > { %v589_v14 = vmul.f32 %v9248_v3, %v554_v13  ;;  %v9364_v13 = vld [vmem:[%s14349_s3 + $0x2] ss:$0 sm:$0xff] }
 0x2fc   : > { %v9338_v17 = vsub.f32 %v9239_v56, %v589_v14 }
 0x2fe   : > { %v621_v18 = vmul.f32 %v9338_v17, %v9338_v17 }
 0x300   : > { %v655_v20 = vsel %vm409_vm13, %v621_v18, 0.0 }
 0x301   : > { %656 = vadd.xlane.f32.xlu1 %v655_v20  ;;  %v557_v23 = vpop.xlane.xlu1 %556  ;;  %571 = vadd.xlane.f32.xlu0 %v570_v19 }
 0x302   : > { %v590_v25 = vmul.f32 %v9248_v3, %v557_v23 }
 0x304   : > { %v9347_v26 = vsub.f32 %v9244_v59, %v590_v25 }
 0x306   : > { %v622_v22 = vmul.f32 %v9347_v26, %v9347_v26 }
 0x308   : > { %v658_v27 = vsel %vm409_vm13, %v622_v22, 0.0 }
 0x309   : > { %659 = vadd.xlane.f32.xlu1 %v658_v27 }
 0x32c   : > { %v630_v35 = vpop.xlane.xlu0 %629 }
 0x32d   : > { %v676_v37 = vmul.f32 %v630_v35, %v9248_v3 }
 0x32f   : > { %v692_v41 = vadd.f32 1e-05, %v676_v37 }
 0x331   : > { %8265 = vrsqrt.f32 %v692_v41  ;;  %vm714_vm0 = vweird.f32 %v692_v41 }
 0x334   : > { %v633_v42 = vpop.xlane.xlu0 %632 }
 0x335   : > { %v677_v43 = vmul.f32 %v633_v42, %v9248_v3 }
 0x337   : > { %v8266_v45 = vpop.eup %8265  ;;  %v693_v46 = vadd.f32 1e-05, %v677_v43 }
 0x338   : > { %v709_v49 = vmul.f32 %v8266_v45, %v692_v41  ;;  %vm715_vm15 = vweird.f32 %v8266_v45 }
 0x339   : > { %8267 = vrsqrt.f32 %v693_v46  ;;  %vm716_vm1 = vmor %vm714_vm0, %vm715_vm15  ;;  %vm724_vm3 = vweird.f32 %v693_v46 }
 0x33a   : > { %v710_v52 = vmul.f32 %v8266_v45, %v709_v49 }
 0x33c   : > { %v711_v54 = vmul.f32 0.5, %v710_v52  ;;  %v636_v55 = vpop.xlane.xlu0 %635 }
 0x33d   : > { %v678_v57 = vmul.f32 %v636_v55, %v9248_v3 }
 0x33e   : > { %v712_v58 = vsub.f32 1.5, %v711_v54 }
 0x33f   : > { %v8268_v62 = vpop.eup %8267  ;;  %v694_v63 = vadd.f32 1e-05, %v678_v57 }
 0x340   : > { %v713_v0 = vmul.f32 %v8266_v45, %v712_v58  ;;  %v719_v1 = vmul.f32 %v8268_v62, %v693_v46  ;;  %vm725_vm2 = vweird.f32 %v8268_v62 }
 0x341   : > { %8269 = vrsqrt.f32 %v694_v63  ;;  %vm726_vm4 = vmor %vm724_vm3, %vm725_vm2  ;;  %vm734_vm6 = vweird.f32 %v694_v63 }
 0x342   : > { %v717_v2 = vsel %vm716_vm1, %v8266_v45, %v713_v0  ;;  %v720_v4 = vmul.f32 %v8268_v62, %v719_v1 }
 0x343   : > { %v868_v9 = vmul.f32 %v717_v2, %v9252_v6 }
 0x344   : > { %v721_v10 = vmul.f32 0.5, %v720_v4  ;;  %v639_v12 = vpop.xlane.xlu0 %638 }
 0x345   : > { %v679_v14 = vmul.f32 %v639_v12, %v9248_v3  ;;  %v884_v18 = vmul.f32 %v868_v9, %v9358_v8 }
 0x346   : > { %v722_v19 = vsub.f32 1.5, %v721_v10 }
 0x347   : > { %v8270_v20 = vpop.eup %8269  ;;  %v695_v23 = vadd.f32 1e-05, %v679_v14  ;;  %v900_v25 = vadd.f32 %v884_v18, %v9364_v13 }
 0x348   : > { %v723_v22 = vmul.f32 %v8268_v62, %v722_v19  ;;  %v729_v6 = vmul.f32 %v8270_v20, %v694_v63  ;;  %vm735_vm5 = vweird.f32 %v8270_v20 }
 0x349   : > { %8271 = vrsqrt.f32 %v695_v23  ;;  %7461 = vmatmul.msk.f32.vlgmr.msrb.gmra.mxu1 %vm409_vm13, %v900_v25  ;;  %vm736_vm7 = vmor %vm734_vm6, %vm735_vm5  ;;  %vm744_vm9 = vweird.f32 %v695_v23 }
 0x34a   : > { %v730_v27 = vmul.f32 %v8270_v20, %v729_v6  ;;  %v727_v29 = vsel %vm726_vm4, %v8268_v62, %v723_v22 }
 0x34b   : > { %v869_v31 = vmul.f32 %v727_v29, %v9259_v11 }
 0x34c   : > { %v731_v33 = vmul.f32 0.5, %v730_v27  ;;  %v642_v34 = vpop.xlane.xlu0 %641 }
 0x34d   : > { %v680_v35 = vmul.f32 %v642_v34, %v9248_v3  ;;  %v885_v37 = vmul.f32 %v869_v31, %v9358_v8 }
 0x34e   : > { %v732_v41 = vsub.f32 1.5, %v731_v33 }
 0x34f   : > { %v8272_v42 = vpop.eup %8271  ;;  %v696_v43 = vadd.f32 1e-05, %v680_v35  ;;  %v901_v45 = vadd.f32 %v885_v37, %v9364_v13 }
 0x350   : > { %v733_v46 = vmul.f32 %v8270_v20, %v732_v41  ;;  %v739_v49 = vmul.f32 %v8272_v42, %v695_v23  ;;  %vm745_vm8 = vweird.f32 %v8272_v42 }
 0x351   : > { %8273 = vrsqrt.f32 %v696_v43  ;;  %7462 = vmatmul.msk.f32.gmra.mxu1 %vm409_vm13, %v901_v45  ;;  %vm746_vm10 = vmor %vm744_vm9, %vm745_vm8  ;;  %vm754_vm12 = vweird.f32 %v696_v43 }
 0x352   : > { %v740_v11 = vmul.f32 %v8272_v42, %v739_v49  ;;  %v737_v52 = vsel %vm736_vm7, %v8270_v20, %v733_v46 }
 0x353   : > { %v870_v54 = vmul.f32 %v737_v52, %v9266_v16 }
 0x354   : > { %v741_v55 = vmul.f32 0.5, %v740_v11  ;;  %v560_v57 = vpop.xlane.xlu0 %559  ;;  %v645_v58 = vpop.xlane.xlu2 %644 }
 0x355   : > { %v591_v62 = vmul.f32 %v9248_v3, %v560_v57  ;;  %v681_v0 = vmul.f32 %v645_v58, %v9248_v3  ;;  %v886_v1 = vmul.f32 %v870_v54, %v9358_v8 }
 0x356   : > { %v742_v2 = vsub.f32 1.5, %v741_v55 }
 0x357   : > { %v8274_v63 = vpop.eup %8273  ;;  %v9380_v4 = vsub.f32 %v9287_v38, %v591_v62  ;;  %v697_v9 = vadd.f32 1e-05, %v681_v0  ;;  %v902_v10 = vadd.f32 %v886_v1, %v9364_v13 }
 0x358   : > { %v743_v12 = vmul.f32 %v8272_v42, %v742_v2  ;;  %v749_v16 = vmul.f32 %v8274_v63, %v696_v43  ;;  %vm755_vm11 = vweird.f32 %v8274_v63 }
 0x359   : > { %8275 = vrsqrt.f32 %v697_v9  ;;  %7463 = vmatmul.msk.f32.gmra.mxu1 %vm409_vm13, %v902_v10  ;;  %v623_v14 = vmul.f32 %v9380_v4, %v9380_v4  ;;  %vm756_vm14 = vmor %vm754_vm12, %vm755_vm11  ;;  %vm764_vm0 = vweird.f32 %v697_v9 }
 0x35a   : > { %v750_v18 = vmul.f32 %v8274_v63, %v749_v16  ;;  %v747_v19 = vsel %vm746_vm10, %v8272_v42, %v743_v12 }
 0x35b   : > { %v661_v20 = vsel %vm409_vm13, %v623_v14, 0.0  ;;  %v871_v25 = vmul.f32 %v747_v19, %v9273_v21 }
 0x35c   : > { %v751_v22 = vmul.f32 0.5, %v750_v18  ;;  %v648_v6 = vpop.xlane.xlu1 %647  ;;  %v563_v27 = vpop.xlane.xlu0 %562  ;;  %662 = vadd.xlane.f32.xlu0 %v661_v20 }
 0x35d   : > { %v682_v23 = vmul.f32 %v648_v6, %v9248_v3  ;;  %v592_v29 = vmul.f32 %v9248_v3, %v563_v27  ;;  %v887_v31 = vmul.f32 %v871_v25, %v9358_v8 }
 0x35e   : > { %v752_v33 = vsub.f32 1.5, %v751_v22 }
 0x35f   : > { %v8276_v34 = vpop.eup %8275  ;;  %v698_v35 = vadd.f32 1e-05, %v682_v23  ;;  %v9392_v37 = vsub.f32 %v9299_v48, %v592_v29  ;;  %v903_v41 = vadd.f32 %v887_v31, %v9364_v13 }
 0x360   : > { %v753_v21 = vmul.f32 %v8274_v63, %v752_v33  ;;  %v759_v42 = vmul.f32 %v8276_v34, %v697_v9  ;;  %vm765_vm15 = vweird.f32 %v8276_v34 }
 0x361   : > { %8277 = vrsqrt.f32 %v698_v35  ;;  %7464 = vmatmul.msk.f32.gmra.mxu1 %vm409_vm13, %v903_v41  ;;  %v624_v45 = vmul.f32 %v9392_v37, %v9392_v37  ;;  %vm766_vm1 = vmor %vm764_vm0, %vm765_vm15  ;;  %vm774_vm3 = vweird.f32 %v698_v35 }
 0x362   : > { %v760_v46 = vmul.f32 %v8276_v34, %v759_v42  ;;  %v757_v49 = vsel %vm756_vm14, %v8274_v63, %v753_v21 }
 0x363   : > { %v664_v11 = vsel %vm409_vm13, %v624_v45, 0.0  ;;  %v872_v52 = vmul.f32 %v757_v49, %v9280_v30 }
 0x364   : > { %v761_v54 = vmul.f32 0.5, %v760_v46  ;;  %v651_v55 = vpop.xlane.xlu1 %650  ;;  %665 = vadd.xlane.f32.xlu1 %v664_v11  ;;  %v566_v57 = vpop.xlane.xlu0 %565 }
 0x365   : > { %v683_v43 = vmul.f32 %v651_v55, %v9248_v3  ;;  %v593_v58 = vmul.f32 %v9248_v3, %v566_v57  ;;  %v888_v62 = vmul.f32 %v872_v52, %v9358_v8 }
 0x366   : > { %v762_v0 = vsub.f32 1.5, %v761_v54 }
 0x367   : > { %v8278_v1 = vpop.eup %8277  ;;  %v699_v2 = vadd.f32 1e-05, %v683_v43  ;;  %v9404_v63 = vsub.f32 %v9311_v60, %v593_v58  ;;  %v904_v10 = vadd.f32 %v888_v62, %v9364_v13 }
 0x368   : > { %v763_v30 = vmul.f32 %v8276_v34, %v762_v0  ;;  %v769_v12 = vmul.f32 %v8278_v1, %v698_v35  ;;  %vm775_vm2 = vweird.f32 %v8278_v1 }
 0x369   : > { %8279 = vrsqrt.f32 %v699_v2  ;;  %7465 = vmatmul.msk.f32.gmra.mxu1 %vm409_vm13, %v904_v10  ;;  %v625_v16 = vmul.f32 %v9404_v63, %v9404_v63  ;;  %vm776_vm4 = vmor %vm774_vm3, %vm775_vm2  ;;  %vm784_vm6 = vweird.f32 %v699_v2 }
 0x36a   : > { %v770_v14 = vmul.f32 %v8278_v1, %v769_v12  ;;  %v767_v18 = vsel %vm766_vm1, %v8276_v34, %v763_v30 }
 0x36b   : > { %v667_v19 = vsel %vm409_vm13, %v625_v16, 0.0  ;;  %v873_v20 = vmul.f32 %v767_v18, %v9290_v39 }
 0x36c   : > { %v771_v25 = vmul.f32 0.5, %v770_v14  ;;  %v654_v22 = vpop.xlane.xlu1 %653  ;;  %v569_v6 = vpop.xlane.xlu0 %568  ;;  %668 = vadd.xlane.f32.xlu0 %v667_v19 }
 0x36d   : > { %v684_v9 = vmul.f32 %v654_v22, %v9248_v3  ;;  %v594_v27 = vmul.f32 %v9248_v3, %v569_v6  ;;  %v889_v23 = vmul.f32 %v873_v20, %v9358_v8 }
 0x36e   : > { %v772_v29 = vsub.f32 1.5, %v771_v25 }
 0x36f   : > { %v8280_v31 = vpop.eup %8279  ;;  %v700_v33 = vadd.f32 1e-05, %v684_v9  ;;  %v9416_v34 = vsub.f32 %v9323_v5, %v594_v27  ;;  %v905_v41 = vadd.f32 %v889_v23, %v9364_v13 }
 0x370   : > { %v773_v39 = vmul.f32 %v8278_v1, %v772_v29  ;;  %v779_v21 = vmul.f32 %v8280_v31, %v699_v2  ;;  %vm785_vm5 = vweird.f32 %v8280_v31 }
 0x371   : > { %8281 = vrsqrt.f32 %v700_v33  ;;  %7466 = vmatmul.msk.f32.gmra.mxu1 %vm409_vm13, %v905_v41  ;;  %v626_v42 = vmul.f32 %v9416_v34, %v9416_v34  ;;  %vm786_vm7 = vmor %vm784_vm6, %vm785_vm5  ;;  %vm794_vm9 = vweird.f32 %v700_v33 }
 0x372   : > { %v780_v45 = vmul.f32 %v8280_v31, %v779_v21  ;;  %v777_v46 = vsel %vm776_vm4, %v8278_v1, %v773_v39 }
 0x373   : > { %v670_v49 = vsel %vm409_vm13, %v626_v42, 0.0  ;;  %v874_v11 = vmul.f32 %v777_v46, %v9302_v51 }
 0x374   : > { %v781_v52 = vmul.f32 0.5, %v780_v45  ;;  %v657_v54 = vpop.xlane.xlu1 %656  ;;  %671 = vadd.xlane.f32.xlu1 %v670_v49  ;;  %v572_v55 = vpop.xlane.xlu0 %571 }
 0x375   : > { %v685_v35 = vmul.f32 %v657_v54, %v9248_v3  ;;  %v595_v57 = vmul.f32 %v9248_v3, %v572_v55  ;;  %v890_v43 = vmul.f32 %v874_v11, %v9358_v8 }
 0x376   : > { %v782_v58 = vsub.f32 1.5, %v781_v52 }
 0x377   : > { %v8282_v62 = vpop.eup %8281  ;;  %v701_v0 = vadd.f32 1e-05, %v685_v35  ;;  %v9428_v1 = vsub.f32 %v9335_v15, %v595_v57  ;;  %v906_v10 = vadd.f32 %v890_v43, %v9364_v13 }
 0x378   : > { %v783_v51 = vmul.f32 %v8280_v31, %v782_v58  ;;  %v789_v30 = vmul.f32 %v8282_v62, %v700_v33  ;;  %vm795_vm8 = vweird.f32 %v8282_v62 }
 0x379   : > { %8283 = vrsqrt.f32 %v701_v0  ;;  %7467 = vmatmul.msk.f32.gmra.mxu1 %vm409_vm13, %v906_v10  ;;  %v627_v12 = vmul.f32 %v9428_v1, %v9428_v1  ;;  %vm796_vm10 = vmor %vm794_vm9, %vm795_vm8  ;;  %vm804_vm12 = vweird.f32 %v701_v0 }
 0x37a   : > { %v790_v16 = vmul.f32 %v8282_v62, %v789_v30  ;;  %v787_v14 = vsel %vm786_vm7, %v8280_v31, %v783_v51 }
 0x37b   : > { %v673_v18 = vsel %vm409_vm13, %v627_v12, 0.0  ;;  %v875_v19 = vmul.f32 %v787_v14, %v9314_v61 }
 0x37c   : > { %v791_v20 = vmul.f32 0.5, %v790_v16  ;;  %v660_v25 = vpop.xlane.xlu1 %659  ;;  %674 = vadd.xlane.f32.xlu0 %v673_v18 }
 0x37d   : > { %v686_v22 = vmul.f32 %v660_v25, %v9248_v3  ;;  %v891_v2 = vmul.f32 %v875_v19, %v9358_v8 }
 0x37e   : > { %v792_v6 = vsub.f32 1.5, %v791_v20 }
 0x37f   : > { %v8284_v9 = vpop.eup %8283  ;;  %v702_v27 = vadd.f32 1e-05, %v686_v22  ;;  %v907_v23 = vadd.f32 %v891_v2, %v9364_v13 }
 0x380   : > { %v793_v29 = vmul.f32 %v8282_v62, %v792_v6  ;;  %v799_v31 = vmul.f32 %v8284_v9, %v701_v0  ;;  %vm805_vm11 = vweird.f32 %v8284_v9 }
 0x381   : > { %8285 = vrsqrt.f32 %v702_v27  ;;  %7468 = vmatmul.msk.f32.gmra.mxu1 %vm409_vm13, %v907_v23  ;;  %vm806_vm14 = vmor %vm804_vm12, %vm805_vm11  ;;  %vm814_vm0 = vweird.f32 %v702_v27 }
 0x382   : > { %v800_v61 = vmul.f32 %v8284_v9, %v799_v31  ;;  %v797_v41 = vsel %vm796_vm10, %v8282_v62, %v793_v29 }
 0x383   : > { %v876_v39 = vmul.f32 %v797_v41, %v9326_v7 }
 0x384   : > { %v801_v21 = vmul.f32 0.5, %v800_v61 }
 0x385   : > { %v892_v42 = vmul.f32 %v876_v39, %v9358_v8 }
 0x386   : > { %v802_v45 = vsub.f32 1.5, %v801_v21 }
 0x387   : > { %v8286_v46 = vpop.eup %8285  ;;  %v908_v49 = vadd.f32 %v892_v42, %v9364_v13 }
 0x388   : > { %v803_v11 = vmul.f32 %v8284_v9, %v802_v45  ;;  %v809_v33 = vmul.f32 %v8286_v46, %v702_v27  ;;  %vm815_vm15 = vweird.f32 %v8286_v46 }
 0x389   : > { %7469 = vmatmul.msk.f32.gmra.mxu1 %vm409_vm13, %v908_v49  ;;  %vm816_vm1 = vmor %vm814_vm0, %vm815_vm15 }
 0x38a   : > { %v810_v52 = vmul.f32 %v8286_v46, %v809_v33  ;;  %v807_v54 = vsel %vm806_vm14, %v8284_v9, %v803_v11 }
 0x38b   : > { %v877_v55 = vmul.f32 %v807_v54, %v9338_v17 }
 0x38c   : > { %v811_v35 = vmul.f32 0.5, %v810_v52 }
 0x38d   : > { %v893_v7 = vmul.f32 %v877_v55, %v9358_v8 }
 0x38e   : > { %v812_v57 = vsub.f32 1.5, %v811_v35 }
 0x38f   : > { %v909_v43 = vadd.f32 %v893_v7, %v9364_v13 }
 0x390   : > { %v813_v58 = vmul.f32 %v8286_v46, %v812_v57 }
 0x391   : > { %7470 = vmatmul.msk.f32.gmra.mxu1 %vm409_vm13, %v909_v43 }
 0x392   : > { %v817_v62 = vsel %vm816_vm1, %v8286_v46, %v813_v58 }
 0x393   : > { %v878_v0 = vmul.f32 %v817_v62, %v9347_v26 }
 0x395   : > { %v894_v10 = vmul.f32 %v878_v0, %v9358_v8 }
 0x397   : > { %v910_v51 = vadd.f32 %v894_v10, %v9364_v13 }
 0x399   : > { %7471 = vmatmul.msk.f32.gmra.mxu1 %vm409_vm13, %v910_v51 }
 0x3c6   : > { %v9452_v17 = vpop.f32.mrf.mxu1 }
 0x3c7   : > { %1054 = vrot.lane.b32.xlu0 %v9452_v17, %s9046_s28 }
 0x3ce   : > { %v9456_v30 = vpop.f32.mrf.mxu1 }
 0x3cf   : > { %1056 = vrot.lane.b32.xlu1 %v9456_v30, %s9046_s28  ;;  %1505 = vrot.lane.b32.xlu0 %v9452_v17, %s9047_s29  ;;  %v663_v26 = vpop.xlane.xlu0 %662  ;;  %v9464_v12 = vpack.i.bf16 %v9452_v17, %v9456_v30 }
 0x3d0   : > { %v687_v16 = vmul.f32 %v663_v26, %v9248_v3 }
 0x3d1   : > { %14518 = vst [vmem:[#allocation25_spill] sm:$0xff] %v9464_v12  ;;  %7934 = vrot.lane.b32.xlu2 %v9464_v12, %s9048_s30 }
 0x3d2   : > { %v703_v14 = vadd.f32 1e-05, %v687_v16 }
 0x3d4   : > { %8287 = vrsqrt.f32 %v703_v14  ;;  %vm824_vm3 = vweird.f32 %v703_v14 }
 0x3d6   : > { %v9469_v18 = vpop.f32.mrf.mxu1 }
 0x3d7   : > { %v666_v19 = vpop.xlane.xlu1 %665  ;;  %1509 = vrot.lane.b32.xlu1 %v9469_v18, %s9047_s29  ;;  %1473 = vrot.lane.b32.xlu0 %v9452_v17, %s9049_s5 }
 0x3d8   : > { %v688_v20 = vmul.f32 %v666_v19, %v9248_v3 }
 0x3da   : > { %v8288_v25 = vpop.eup %8287  ;;  %v704_v22 = vadd.f32 1e-05, %v688_v20 }
 0x3db   : > { %v819_v2 = vmul.f32 %v8288_v25, %v703_v14  ;;  %vm825_vm2 = vweird.f32 %v8288_v25 }
 0x3dc   : > { %8289 = vrsqrt.f32 %v704_v22  ;;  %vm826_vm4 = vmor %vm824_vm3, %vm825_vm2  ;;  %vm834_vm6 = vweird.f32 %v704_v22  ;;  %vm1086_vm2 = vcmask 64512  }
 0x3dd   : > { %v820_v6 = vmul.f32 %v8288_v25, %v819_v2 }
 0x3de   : > { %v9476_v9 = vpop.f32.mrf.mxu1 }
 0x3df   : > { %v821_v27 = vmul.f32 0.5, %v820_v6  ;;  %1060 = vrot.lane.b32.xlu1 %v9476_v9, %s9046_s28  ;;  %1507 = vrot.lane.b32.xlu0 %v9456_v30, %s9047_s29  ;;  %v669_v23 = vpop.xlane.xlu0 %668 }
 0x3e0   : > { %v689_v29 = vmul.f32 %v669_v23, %v9248_v3 }
 0x3e1   : > { %v822_v31 = vsub.f32 1.5, %v821_v27 }
 0x3e2   : > { %v8290_v61 = vpop.eup %8289  ;;  %v705_v41 = vadd.f32 1e-05, %v689_v29 }
 0x3e3   : > { %v823_v39 = vmul.f32 %v8288_v25, %v822_v31  ;;  %v829_v21 = vmul.f32 %v8290_v61, %v704_v22  ;;  %vm835_vm5 = vweird.f32 %v8290_v61 }
 0x3e4   : > { %8291 = vrsqrt.f32 %v705_v41  ;;  %vm836_vm7 = vmor %vm834_vm6, %vm835_vm5  ;;  %vm844_vm9 = vweird.f32 %v705_v41 }
 0x3e5   : > { %v830_v42 = vmul.f32 %v8290_v61, %v829_v21  ;;  %v827_v45 = vsel %vm826_vm4, %v8288_v25, %v823_v39 }
 0x3e6   : > { %v9483_v46 = vpop.f32.mrf.mxu1  ;;  %v879_v49 = vmul.f32 %v827_v45, %v9380_v4 }
 0x3e7   : > { %v831_v11 = vmul.f32 0.5, %v830_v42  ;;  %v672_v33 = vpop.xlane.xlu1 %671  ;;  %1511 = vrot.lane.b32.xlu1 %v9476_v9, %s9047_s29  ;;  %1475 = vrot.lane.b32.xlu0 %v9456_v30, %s9049_s5 }
 0x3e8   : > { %v690_v52 = vmul.f32 %v672_v33, %v9248_v3  ;;  %v895_v54 = vmul.f32 %v879_v49, %v9358_v8  ;;  %v9517_v49 = vpack.i.bf16 %v9469_v18, %v9476_v9 }
 0x3e9   : > { %v832_v55 = vsub.f32 1.5, %v831_v11 }
 0x3ea   : > { %v8292_v35 = vpop.eup %8291  ;;  %v706_v7 = vadd.f32 1e-05, %v690_v52  ;;  %v911_v57 = vadd.f32 %v895_v54, %v9364_v13  ;;  %14519 = vst [vmem:[#allocation26_spill] sm:$0xff] %v9517_v49 }
 0x3eb   : > { %v833_v43 = vmul.f32 %v8290_v61, %v832_v55  ;;  %v839_v4 = vmul.f32 %v8292_v35, %v705_v41  ;;  %vm845_vm8 = vweird.f32 %v8292_v35 }
 0x3ec   : > { %8293 = vrsqrt.f32 %v706_v7  ;;  %7472 = vmatmul.msk.f32.gmra.mxu1 %vm409_vm13, %v911_v57  ;;  %vm846_vm10 = vmor %vm844_vm9, %vm845_vm8  ;;  %vm854_vm12 = vweird.f32 %v706_v7 }
 0x3ed   : > { %v840_v58 = vmul.f32 %v8292_v35, %v839_v4  ;;  %v837_v62 = vsel %vm836_vm7, %v8290_v61, %v833_v43 }
 0x3ee   : > { %v9494_v0 = vpop.f32.mrf.mxu1  ;;  %v880_v10 = vmul.f32 %v837_v62, %v9392_v37 }
 0x3ef   : > { %v841_v51 = vmul.f32 0.5, %v840_v58  ;;  %1058 = vrot.lane.b32.xlu0 %v9469_v18, %s9046_s28  ;;  %v675_v26 = vpop.xlane.xlu0 %674  ;;  %1064 = vrot.lane.b32.xlu1 %v9494_v0, %s9046_s28 }
 0x3f0   : > { %v691_v16 = vmul.f32 %v675_v26, %v9248_v3  ;;  %v896_v14 = vmul.f32 %v880_v10, %v9358_v8 }
 0x3f1   : > { %v842_v19 = vsub.f32 1.5, %v841_v51 }
 0x3f2   : > { %v8294_v20 = vpop.eup %8293  ;;  %v707_v25 = vadd.f32 1e-05, %v691_v16  ;;  %v912_v22 = vadd.f32 %v896_v14, %v9364_v13 }
 0x3f3   : > { %v843_v2 = vmul.f32 %v8292_v35, %v842_v19  ;;  %v849_v37 = vmul.f32 %v8294_v20, %v706_v7  ;;  %vm855_vm11 = vweird.f32 %v8294_v20 }
 0x3f4   : > { %8295 = vrsqrt.f32 %v707_v25  ;;  %7473 = vmatmul.msk.f32.gmra.mxu1 %vm409_vm13, %v912_v22  ;;  %vm856_vm14 = vmor %vm854_vm12, %vm855_vm11  ;;  %vm864_vm0 = vweird.f32 %v707_v25 }
 0x3f5   : > { %v850_v6 = vmul.f32 %v8294_v20, %v849_v37  ;;  %v847_v27 = vsel %vm846_vm10, %v8292_v35, %v843_v2 }
 0x3f6   : > { %v9505_v23 = vpop.f32.mrf.mxu1  ;;  %v881_v29 = vmul.f32 %v847_v27, %v9404_v63 }
 0x3f7   : > { %v851_v31 = vmul.f32 0.5, %v850_v6  ;;  %1477 = vrot.lane.b32.xlu0 %v9469_v18, %s9049_s5  ;;  %1517 = vrot.lane.b32.xlu1 %v9505_v23, %s9047_s29 }
 0x3f8   : > { %v897_v61 = vmul.f32 %v881_v29, %v9358_v8 }
 0x3f9   : > { %v852_v41 = vsub.f32 1.5, %v851_v31 }
 0x3fa   : > { %v8296_v39 = vpop.eup %8295  ;;  %v913_v21 = vadd.f32 %v897_v61, %v9364_v13 }
 0x3fb   : > { %v853_v42 = vmul.f32 %v8294_v20, %v852_v41  ;;  %v859_v45 = vmul.f32 %v8296_v39, %v707_v25  ;;  %vm865_vm15 = vweird.f32 %v8296_v39 }
 0x3fc   : > { %7474 = vmatmul.msk.f32.gmra.mxu1 %vm409_vm13, %v913_v21  ;;  %vm866_vm1 = vmor %vm864_vm0, %vm865_vm15 }
 0x3fd   : > { %v860_v63 = vmul.f32 %v8296_v39, %v859_v45  ;;  %v857_v11 = vsel %vm856_vm14, %v8294_v20, %v853_v42 }
 0x3fe   : > { %v9519_v33 = vpop.f32.mrf.mxu1  ;;  %v882_v52 = vmul.f32 %v857_v11, %v9416_v34 }
 0x3ff   : > { %v861_v54 = vmul.f32 0.5, %v860_v63  ;;  %7939 = vrot.lane.b32.xlu0 %v9517_v49, %s9048_s30  ;;  %1068 = vrot.lane.b32.xlu1 %v9519_v33, %s9046_s28  ;;  %v9543_v10 = vpack.i.bf16 %v9505_v23, %v9519_v33 }
 0x400   : > { %v898_v55 = vmul.f32 %v882_v52, %v9358_v8 }
 0x401   : > { %v862_v35 = vsub.f32 1.5, %v861_v54  ;;  %14520 = vst [vmem:[#allocation27_spill] sm:$0xff] %v9543_v10 }
 0x402   : > { %v914_v7 = vadd.f32 %v898_v55, %v9364_v13 }
 0x403   : > { %v863_v57 = vmul.f32 %v8296_v39, %v862_v35 }
 0x404   : > { %7475 = vmatmul.msk.f32.gmra.mxu1 %vm409_vm13, %v914_v7 }
 0x405   : > { %v867_v43 = vsel %vm866_vm1, %v8296_v39, %v863_v57 }
 0x406   : > { %v9529_v34 = vpop.f32.mrf.mxu1  ;;  %v883_v4 = vmul.f32 %v867_v43, %v9428_v1 }
 0x407   : > { %1479 = vrot.lane.b32.xlu0 %v9476_v9, %s9049_s5  ;;  %1519 = vrot.lane.b32.xlu1 %v9519_v33, %s9047_s29 }
 0x408   : > { %1521 = vrot.lane.b32.xlu2 %v9529_v34, %s9047_s29  ;;  %v899_v58 = vmul.f32 %v883_v4, %v9358_v8  ;;  %v9563_v8 = vpack.i.bf16 %v9483_v46, %v9494_v0 }
 0x40a   : > { %v915_v62 = vadd.f32 %v899_v58, %v9364_v13  ;;  %14521 = vst [vmem:[#allocation28_spill] sm:$0xff] %v9563_v8 }
 0x40c   : > { %7476 = vmatmul.msk.f32.gmra.mxu1 %vm409_vm13, %v915_v62 }
 0x40e   : > { %v9545_v1 = vpop.f32.mrf.mxu1 }
 0x40f   : > { %1062 = vrot.lane.b32.xlu0 %v9483_v46, %s9046_s28  ;;  %7949 = vrot.lane.b32.xlu1 %v9543_v10, %s9048_s30  ;;  %v9575_v13 = vpack.i.bf16 %v9529_v34, %v9545_v1 }
 0x410   : > { %2423 = vrot.lane.b32.xlu2 %v9545_v1, %s9050_s6 }
 0x411   : > { %14522 = vst [vmem:[#allocation29_spill] sm:$0xff] %v9575_v13 }
 0x416   : > { %v9607_v2 = vpop.f32.mrf.mxu1 }
 0x417   : > { %1513 = vrot.lane.b32.xlu0 %v9483_v46, %s9047_s29  ;;  %1487 = vrot.lane.b32.xlu1 %v9519_v33, %s9049_s5 }
 0x41f   : > { %1481 = vrot.lane.b32.xlu0 %v9483_v46, %s9049_s5  ;;  %1489 = vrot.lane.b32.xlu1 %v9529_v34, %s9049_s5 }
 0x427   : > { %7944 = vrot.lane.b32.xlu0 %v9563_v8, %s9048_s30  ;;  %1072 = vrot.lane.b32.xlu1 %v9545_v1, %s9046_s28 }
 0x42b   : > { %v9719_v60 = vpop.permute.xlu2 %7934 }
 0x42c   : > { %14530 = vst [vmem:[#allocation37_spill] sm:$0xff] %v9719_v60 }
 0x42f   : > { %1515 = vrot.lane.b32.xlu0 %v9494_v0, %s9047_s29  ;;  %1523 = vrot.lane.b32.xlu1 %v9545_v1, %s9047_s29 }
 0x437   : > { %1483 = vrot.lane.b32.xlu0 %v9494_v0, %s9049_s5  ;;  %7954 = vrot.lane.b32.xlu1 %v9575_v13, %s9048_s30 }
 0x439   : > { %v9581_v51 = vpop.permute.xlu0 %1054 }
 0x43f   : > { %1066 = vrot.lane.b32.xlu0 %v9505_v23, %s9046_s28 }
 0x441   : > { %v9585_v26 = vpop.permute.xlu0 %1505  ;;  %v9595_v19 = vpop.permute.xlu1 %1056 }
 0x447   : > { %1485 = vrot.lane.b32.xlu0 %v9505_v23, %s9049_s5 }
 0x449   : > { %v9589_v16 = vpop.permute.xlu0 %1473  ;;  %v9601_v25 = vpop.permute.xlu1 %1509 }
 0x44f   : > { %1967 = vrot.lane.b32.xlu0 %v9505_v23, %s9051_s7 }
 0x451   : > { %v9593_v14 = vpop.permute.xlu0 %1507  ;;  %v9609_v37 = vpop.permute.xlu1 %1060 }
 0x457   : > { %1969 = vrot.lane.b32.xlu0 %v9519_v33, %s9051_s7 }
 0x459   : > { %v9599_v20 = vpop.permute.xlu0 %1475  ;;  %v9621_v29 = vpop.permute.xlu1 %1511 }
 0x45f   : > { %1070 = vrot.lane.b32.xlu0 %v9529_v34, %s9046_s28 }
 0x461   : > { %v9605_v22 = vpop.permute.xlu0 %1058  ;;  %v9635_v21 = vpop.permute.xlu1 %1064 }
 0x462   : > { %v9733_v56 = vpop.permute.xlu2 %1521 }
 0x467   : > { %1971 = vrot.lane.b32.xlu0 %v9529_v34, %s9051_s7 }
 0x469   : > { %v9613_v6 = vpop.permute.xlu0 %1477  ;;  %v9615_v27 = vpop.f32.mrf.mxu1 }
 0x46a   : > { %1076 = vrot.lane.b32.xlu1 %v9615_v27, %s9046_s28  ;;  %v9649_v45 = vpop.permute.xlu1 %1517  ;;  %v9703_v58 = vpack.i.bf16 %v9607_v2, %v9615_v27  ;;  %v9749_v3 = vpop.permute.xlu2 %2423 }
 0x46b   : > { %14533 = vst [vmem:[#allocation40_spill] sm:$0xff] %v9749_v3 }
 0x46c   : > { %14527 = vst [vmem:[#allocation34_spill] sm:$0xff] %v9703_v58 }
 0x46f   : > { %1491 = vrot.lane.b32.xlu0 %v9545_v1, %s9049_s5 }
 0x471   : > { %v9623_v31 = vpop.permute.xlu0 %7939  ;;  %v9625_v61 = vpop.f32.mrf.mxu1 }
 0x472   : > { %14523 = vst [vmem:[#allocation30_spill] sm:$0xff] %v9623_v31  ;;  %1977 = vrot.lane.b32.xlu1 %v9615_v27, %s9051_s7  ;;  %v9659_v11 = vpop.permute.xlu1 %1068 }
 0x477   : > { %1973 = vrot.lane.b32.xlu0 %v9545_v1, %s9051_s7 }
 0x479   : > { %v9631_v41 = vpop.permute.xlu0 %1479  ;;  %v9633_v39 = vpop.f32.mrf.mxu1 }
 0x47a   : > { %2427 = vrot.lane.b32.xlu1 %v9615_v27, %s9050_s6  ;;  %1531 = vrot.lane.b32.xlu2 %v9633_v39, %s9047_s29  ;;  %v9671_v54 = vpop.permute.xlu1 %1519  ;;  %v9765_v36 = vpack.i.bf16 %v9625_v61, %v9633_v39 }
 0x47c   : > { %14535 = vst [vmem:[#allocation42_spill] sm:$0xff] %v9765_v36 }
 0x47f   : > { %1074 = vrot.lane.b32.xlu0 %v9607_v2, %s9046_s28 }
 0x481   : > { %v9643_v42 = vpop.permute.xlu0 %1062  ;;  %v9675_v35 = vpop.f32.mrf.mxu1 }
 0x482   : > { %1979 = vrot.lane.b32.xlu1 %v9625_v61, %s9051_s7  ;;  %1981 = vrot.lane.b32.xlu2 %v9633_v39, %s9051_s7  ;;  %v9685_v57 = vpop.permute.xlu1 %7949 }
 0x483   : > { %14525 = vst [vmem:[#allocation32_spill] sm:$0xff] %v9685_v57 }
 0x487   : > { %1525 = vrot.lane.b32.xlu0 %v9607_v2, %s9047_s29 }
 0x489   : > { %v9653_v63 = vpop.permute.xlu0 %1513  ;;  %v9731_v59 = vpop.f32.mrf.mxu1 }
 0x48a   : > { %2431 = vrot.lane.b32.xlu2 %v9633_v39, %s9050_s6  ;;  %1080 = vrot.lane.b32.xlu1 %v9633_v39, %s9046_s28  ;;  %v9699_v4 = vpop.permute.xlu1 %1487 }
 0x48b   : > { %14526 = vst [vmem:[#allocation33_spill] sm:$0xff] %v9699_v4 }
 0x48f   : > { %1975 = vrot.lane.b32.xlu0 %v9607_v2, %s9051_s7 }
 0x491   : > { %v9663_v52 = vpop.permute.xlu0 %1481 }
 0x492   : > { %1957 = vrot.lane.b32.xlu2 %v9456_v30, %s9051_s7  ;;  %2419 = vrot.lane.b32.xlu1 %v9519_v33, %s9050_s6  ;;  %v9713_v15 = vpop.permute.xlu1 %1489 }
 0x493   : > { %14528 = vst [vmem:[#allocation35_spill] sm:$0xff] %v9713_v15 }
 0x497   : > { %1493 = vrot.lane.b32.xlu0 %v9607_v2, %s9049_s5 }
 0x499   : > { %v9673_v55 = vpop.permute.xlu0 %7944 }
 0x49a   : > { %14524 = vst [vmem:[#allocation31_spill] sm:$0xff] %v9673_v55  ;;  %1499 = vrot.lane.b32.xlu1 %v9633_v39, %s9049_s5  ;;  %1983 = vrot.lane.b32.xlu2 %v9675_v35, %s9051_s7  ;;  %v9727_v48 = vpop.permute.xlu1 %1072 }
 0x49f   : > { %2425 = vrot.lane.b32.xlu0 %v9607_v2, %s9050_s6 }
 0x4a1   : > { %v9683_v7 = vpop.permute.xlu0 %1515 }
 0x4a2   : > { %2413 = vrot.lane.b32.xlu1 %v9483_v46, %s9050_s6  ;;  %2405 = vrot.lane.b32.xlu2 %v9452_v17, %s9050_s6  ;;  %v9743_v50 = vpop.permute.xlu1 %1523 }
 0x4a7   : > { %1527 = vrot.lane.b32.xlu0 %v9615_v27, %s9047_s29 }
 0x4a9   : > { %v9693_v43 = vpop.permute.xlu0 %1483 }
 0x4aa   : > { %1923 = vrot.lane.b32.xlu1 %v9452_v17, %s9052_s8  ;;  %2375 = vrot.lane.b32.xlu2 %v9456_v30, %s9053_s9  ;;  %v9759_v44 = vpop.permute.xlu1 %7954 }
 0x4ab   : > { %14534 = vst [vmem:[#allocation41_spill] sm:$0xff] %v9759_v44 }
 0x4af   : > { %7959 = vrot.lane.b32.xlu0 %v9703_v58, %s9048_s30 }
 0x4b1   : > { %v9707_v62 = vpop.permute.xlu0 %1066 }
 0x4b2   : > { %2433 = vrot.lane.b32.xlu1 %v9675_v35, %s9050_s6  ;;  %1931 = vrot.lane.b32.xlu2 %v9483_v46, %s9052_s8 }
 0x4b7   : > { %1495 = vrot.lane.b32.xlu0 %v9615_v27, %s9049_s5 }
 0x4b9   : > { %v9717_v5 = vpop.permute.xlu0 %1485 }
 0x4ba   : > { %14529 = vst [vmem:[#allocation36_spill] sm:$0xff] %v9717_v5  ;;  %1501 = vrot.lane.b32.xlu1 %v9675_v35, %s9049_s5  ;;  %2381 = vrot.lane.b32.xlu2 %v9483_v46, %s9053_s9 }
 0x4bf   : > { %1078 = vrot.lane.b32.xlu0 %v9625_v61, %s9046_s28 }
 0x4c1   : > { %v9729_v38 = vpop.permute.xlu0 %1967 }
 0x4c2   : > { %14531 = vst [vmem:[#allocation38_spill] sm:$0xff] %v9729_v38  ;;  %2383 = vrot.lane.b32.xlu2 %v9494_v0, %s9053_s9  ;;  %1084 = vrot.lane.b32.xlu1 %v9731_v59, %s9046_s28 }
 0x4c7   : > { %1529 = vrot.lane.b32.xlu0 %v9625_v61, %s9047_s29 }
 0x4c9   : > { %v9741_v53 = vpop.permute.xlu0 %1969 }
 0x4ca   : > { %14532 = vst [vmem:[#allocation39_spill] sm:$0xff] %v9741_v53  ;;  %1941 = vrot.lane.b32.xlu2 %v9545_v1, %s9052_s8  ;;  %2407 = vrot.lane.b32.xlu1 %v9456_v30, %s9050_s6 }
 0x4cf   : > { %2429 = vrot.lane.b32.xlu0 %v9625_v61, %s9050_s6 }
 0x4d1   : > { %v9753_v47 = vpop.permute.xlu0 %1070 }
 0x4d2   : > { %1943 = vrot.lane.b32.xlu2 %v9607_v2, %s9052_s8  ;;  %2373 = vrot.lane.b32.xlu1 %v9452_v17, %s9053_s9 }
 0x4d4   : > { %v9761_v40 = vpop.permute.xlu2 %1531 }
 0x4d7   : > { %7964 = vrot.lane.b32.xlu0 %v9765_v36, %s9048_s30 }
 0x4d9   : > { %v9769_v32 = vpop.permute.xlu0 %1971 }
 0x4da   : > { %14536 = vst [vmem:[#allocation43_spill] sm:$0xff] %v9769_v32  ;;  %1947 = vrot.lane.b32.xlu2 %v9625_v61, %s9052_s8  ;;  %1929 = vrot.lane.b32.xlu1 %v9476_v9, %s9052_s8 }
 0x4dc   : > { %v9775_v28 = vpop.permute.xlu1 %1076  ;;  %v9777_v24 = vpop.permute.xlu2 %1981 }
 0x4dd   : > { %14537 = vst [vmem:[#allocation44_spill] sm:$0xff] %v9777_v24 }
 0x4df   : > { %1082 = vrot.lane.b32.xlu0 %v9675_v35, %s9046_s28 }
 0x4e1   : > { %v9781_v38 = vpop.permute.xlu0 %1491 }
 0x4e2   : > { %14538 = vst [vmem:[#allocation45_spill] sm:$0xff] %v9781_v38  ;;  %2395 = vrot.lane.b32.xlu2 %v9615_v27, %s9053_s9  ;;  %2379 = vrot.lane.b32.xlu1 %v9476_v9, %s9053_s9 }
 0x4e4   : > { %v9787_v53 = vpop.permute.xlu1 %1977  ;;  %v9789_v32 = vpop.permute.xlu2 %2431 }
 0x4e5   : > { %14539 = vst [vmem:[#allocation46_spill] sm:$0xff] %v9787_v53 }
 0x4e6   : > { %14540 = vst [vmem:[#allocation47_spill] sm:$0xff] %v9789_v32 }
 0x4e7   : > { %1965 = vrot.lane.b32.xlu0 %v9494_v0, %s9051_s7 }
 0x4e9   : > { %v9793_v3 = vpop.permute.xlu0 %1973 }
 0x4ea   : > { %14541 = vst [vmem:[#allocation48_spill] sm:$0xff] %v9793_v3  ;;  %2397 = vrot.lane.b32.xlu2 %v9625_v61, %s9053_s9  ;;  %1935 = vrot.lane.b32.xlu1 %v9505_v23, %s9052_s8 }
 0x4ec   : > { %v9799_v24 = vpop.permute.xlu1 %2427  ;;  %v9801_v38 = vpop.permute.xlu2 %1957 }
 0x4ed   : > { %14542 = vst [vmem:[#allocation49_spill] sm:$0xff] %v9799_v24 }
 0x4ee   : > { %14543 = vst [vmem:[#allocation50_spill] sm:$0xff] %v9801_v38 }
 0x4ef   : > { %2421 = vrot.lane.b32.xlu0 %v9529_v34, %s9050_s6 }
 0x4f1   : > { %v9805_v53 = vpop.permute.xlu0 %1074 }
 0x4f2   : > { %1951 = vrot.lane.b32.xlu2 %v9675_v35, %s9052_s8  ;;  %1937 = vrot.lane.b32.xlu1 %v9519_v33, %s9052_s8 }
 0x4f4   : > { %v9811_v3 = vpop.permute.xlu1 %1979  ;;  %v9813_v60 = vpop.permute.xlu2 %1983 }
 0x4f5   : > { %14544 = vst [vmem:[#allocation51_spill] sm:$0xff] %v9811_v3 }
 0x4f6   : > { %14545 = vst [vmem:[#allocation52_spill] sm:$0xff] %v9813_v60 }
 0x4f7   : > { %1963 = vrot.lane.b32.xlu0 %v9483_v46, %s9051_s7 }
 0x4f9   : > { %v9817_v15 = vpop.permute.xlu0 %1525 }
 0x4fa   : > { %2399 = vrot.lane.b32.xlu2 %v9633_v39, %s9053_s9  ;;  %2385 = vrot.lane.b32.xlu1 %v9505_v23, %s9053_s9 }
 0x4fc   : > { %v9823_v38 = vpop.permute.xlu1 %1080  ;;  %v9825_v31 = vpop.permute.xlu2 %2405 }
 0x4fd   : > { %14546 = vst [vmem:[#allocation53_spill] sm:$0xff] %v9825_v31  ;;  %v9845_v31 = vpack.i.bf16 %v9675_v35, %v9731_v59 }
 0x4ff   : > { %1497 = vrot.lane.b32.xlu0 %v9625_v61, %s9049_s5  ;;  %14551 = vst [vmem:[#allocation58_spill] sm:$0xff] %v9845_v31 }
 0x501   : > { %v9829_v3 = vpop.permute.xlu0 %1975 }
 0x502   : > { %14547 = vst [vmem:[#allocation54_spill] sm:$0xff] %v9829_v3  ;;  %1503 = vrot.lane.b32.xlu2 %v9731_v59, %s9049_s5  ;;  %1939 = vrot.lane.b32.xlu1 %v9529_v34, %s9052_s8 }
 0x504   : > { %v9835_v60 = vpop.permute.xlu1 %2419  ;;  %v9837_v24 = vpop.permute.xlu2 %2375 }
 0x505   : > { %14548 = vst [vmem:[#allocation55_spill] sm:$0xff] %v9835_v60 }
 0x506   : > { %14549 = vst [vmem:[#allocation56_spill] sm:$0xff] %v9837_v24 }
 0x507   : > { %1961 = vrot.lane.b32.xlu0 %v9476_v9, %s9051_s7 }
 0x509   : > { %v9841_v55 = vpop.permute.xlu0 %1493 }
 0x50a   : > { %14550 = vst [vmem:[#allocation57_spill] sm:$0xff] %v9841_v55  ;;  %8009 = vrot.lane.b32.xlu2 %v9845_v31, %s9054_s10  ;;  %2389 = vrot.lane.b32.xlu1 %v9529_v34, %s9053_s9 }
 0x50c   : > { %v9851_v3 = vpop.permute.xlu1 %1499  ;;  %v9853_v60 = vpop.permute.xlu2 %1931 }
 0x50d   : > { %14552 = vst [vmem:[#allocation59_spill] sm:$0xff] %v9851_v3 }
 0x50e   : > { %14553 = vst [vmem:[#allocation60_spill] sm:$0xff] %v9853_v60 }
 0x50f   : > { %2417 = vrot.lane.b32.xlu0 %v9505_v23, %s9050_s6 }
 0x511   : > { %v9857_v24 = vpop.permute.xlu0 %2425 }
 0x512   : > { %14554 = vst [vmem:[#allocation61_spill] sm:$0xff] %v9857_v24  ;;  %1953 = vrot.lane.b32.xlu2 %v9731_v59, %s9052_s8  ;;  %2391 = vrot.lane.b32.xlu1 %v9545_v1, %s9053_s9 }
 0x514   : > { %v9863_v55 = vpop.permute.xlu1 %2413  ;;  %v9865_v4 = vpop.permute.xlu2 %2381 }
 0x515   : > { %14555 = vst [vmem:[#allocation62_spill] sm:$0xff] %v9863_v55 }
 0x516   : > { %14556 = vst [vmem:[#allocation63_spill] sm:$0xff] %v9865_v4 }
 0x517   : > { %1959 = vrot.lane.b32.xlu0 %v9469_v18, %s9051_s7 }
 0x519   : > { %v9869_v3 = vpop.permute.xlu0 %1527 }
 0x51a   : > { %1945 = vrot.lane.b32.xlu1 %v9615_v27, %s9052_s8 }
 0x51c   : > { %v9873_v60 = vpop.permute.xlu1 %1923  ;;  %v9875_v24 = vpop.permute.xlu2 %2383 }
 0x51d   : > { %14557 = vst [vmem:[#allocation64_spill] sm:$0xff] %v9873_v60 }
 0x51e   : > { %14558 = vst [vmem:[#allocation65_spill] sm:$0xff] %v9875_v24 }
 0x51f   : > { %2415 = vrot.lane.b32.xlu0 %v9494_v0, %s9050_s6 }
 0x521   : > { %v9879_v57 = vpop.permute.xlu0 %7959 }
 0x522   : > { %7974 = vrot.lane.b32.xlu1 %v9703_v58, %s9054_s10 }
 0x524   : > { %v9883_v4 = vpop.permute.xlu1 %2433  ;;  %v9885_v55 = vpop.permute.xlu2 %1941 }
 0x525   : > { %14559 = vst [vmem:[#allocation66_spill] sm:$0xff] %v9883_v4 }
 0x526   : > { %14560 = vst [vmem:[#allocation67_spill] sm:$0xff] %v9885_v55 }
 0x527   : > { %1955 = vrot.lane.b32.xlu0 %v9452_v17, %s9051_s7 }
 0x529   : > { %v9889_v32 = vpop.permute.xlu0 %1495 }
 0x52a   : > { %14561 = vst [vmem:[#allocation68_spill] sm:$0xff] %v9889_v32  ;;  %7989 = vrot.lane.b32.xlu1 %v9563_v8, %s9054_s10 }
 0x52c   : > { %v9893_v60 = vpop.permute.xlu1 %1501  ;;  %v9895_v24 = vpop.permute.xlu2 %1943 }
 0x52d   : > { %14562 = vst [vmem:[#allocation69_spill] sm:$0xff] %v9893_v60 }
 0x52e   : > { %14563 = vst [vmem:[#allocation70_spill] sm:$0xff] %v9895_v24 }
 0x52f   : > { %2411 = vrot.lane.b32.xlu0 %v9476_v9, %s9050_s6 }
 0x531   : > { %v1079_v58 = vpop.permute.xlu0 %1078 }
 0x532   : > { %1949 = vrot.lane.b32.xlu1 %v9633_v39, %s9052_s8 }
 0x534   : > { %v1085_v55 = vpop.permute.xlu1 %1084  ;;  %v9901_v44 = vpop.permute.xlu2 %1947 }
 0x535   : > { %14564 = vst [vmem:[#allocation71_spill] sm:$0xff] %v9901_v44  ;;  %7477 = vmatpush.xpose.msk.msra.mxu2 %vm1086_vm2, %v1085_v55 }
 0x537   : > { %2409 = vrot.lane.b32.xlu0 %v9469_v18, %s9050_s6 }
 0x539   : > { %v9906_v8 = vpop.permute.xlu0 %1529 }
 0x53a   : > { %1535 = vrot.lane.b32.xlu1 %v9731_v59, %s9047_s29 }
 0x53c   : > { %v9910_v24 = vpop.permute.xlu1 %2407  ;;  %v9912_v60 = vpop.permute.xlu2 %2395 }
 0x53d   : > { %14565 = vst [vmem:[#allocation72_spill] sm:$0xff] %v9910_v24 }
 0x53e   : > { %14566 = vst [vmem:[#allocation73_spill] sm:$0xff] %v9912_v60 }
 0x53f   : > { %1533 = vrot.lane.b32.xlu0 %v9675_v35, %s9047_s29 }
 0x541   : > { %v9916_v32 = vpop.permute.xlu0 %2429 }
 0x542   : > { %14567 = vst [vmem:[#allocation74_spill] sm:$0xff] %v9916_v32  ;;  %1985 = vrot.lane.b32.xlu1 %v9731_v59, %s9051_s7 }
 0x544   : > { %v9920_v55 = vpop.permute.xlu1 %2373  ;;  %v9922_v44 = vpop.permute.xlu2 %2397 }
 0x545   : > { %14568 = vst [vmem:[#allocation75_spill] sm:$0xff] %v9920_v55 }
 0x546   : > { %14569 = vst [vmem:[#allocation76_spill] sm:$0xff] %v9922_v44 }
 0x547   : > { %1925 = vrot.lane.b32.xlu0 %v9456_v30, %s9052_s8 }
 0x549   : > { %v9926_v4 = vpop.permute.xlu0 %7964 }
 0x54c   : > { %v9928_v24 = vpop.permute.xlu1 %1929  ;;  %v9930_v60 = vpop.permute.xlu2 %1951 }
 0x54d   : > { %14570 = vst [vmem:[#allocation77_spill] sm:$0xff] %v9928_v24 }
 0x54e   : > { %14571 = vst [vmem:[#allocation78_spill] sm:$0xff] %v9930_v60 }
 0x54f   : > { %1927 = vrot.lane.b32.xlu0 %v9469_v18, %s9052_s8 }
 0x551   : > { %v1083_v32 = vpop.permute.xlu0 %1082 }
 0x552   : > { %7478 = vmatpush.xpose.msk.msra.mxu2 %vm1086_vm2, %v1083_v32 }
 0x554   : > { %v9935_v5 = vpop.permute.xlu1 %2379  ;;  %v9937_v55 = vpop.permute.xlu2 %2399 }
 0x555   : > { %14572 = vst [vmem:[#allocation79_spill] sm:$0xff] %v9935_v5 }
 0x556   : > { %14573 = vst [vmem:[#allocation80_spill] sm:$0xff] %v9937_v55  ;;  %7479 = vmatpush.xpose.msk.msra.mxu2 %vm1086_vm2, %v9823_v38 }
 0x557   : > { %2377 = vrot.lane.b32.xlu0 %v9469_v18, %s9053_s9 }
 0x559   : > { %v9943_v44 = vpop.permute.xlu0 %1965 }
 0x55a   : > { %7480 = vmatpush.xpose.msk.msra.mxu2 %vm1086_vm2, %v1079_v58 }
 0x55c   : > { %v9946_v60 = vpop.permute.xlu1 %1935  ;;  %v9948_v24 = vpop.permute.xlu2 %1503 }
 0x55d   : > { %14574 = vst [vmem:[#allocation81_spill] sm:$0xff] %v9946_v60 }
 0x55e   : > { %7481 = vmatpush.xpose.msk.msra.mxu2 %vm1086_vm2, %v9775_v28 }
 0x55f   : > { %1933 = vrot.lane.b32.xlu0 %v9494_v0, %s9052_s8 }
 0x561   : > { %v9954_v32 = vpop.permute.xlu0 %2421 }
 0x562   : > { %7482 = vmatpush.xpose.msk.msra.mxu2 %vm1086_vm2, %v9805_v53 }
 0x564   : > { %v9958_v38 = vpop.permute.xlu1 %1937  ;;  %v8010_v55 = vpop.permute.xlu2 %8009 }
 0x565   : > { %14575 = vst [vmem:[#allocation82_spill] sm:$0xff] %v9958_v38  ;;  %v8011_v5 = vunpack.i.l.bf16 %v8010_v55  ;;  %v8012_v58 = vunpack.i.h.bf16 %v8010_v55 }
 0x566   : > { %7483 = vmatpush.xpose.msk.msra.mxu2 %vm1086_vm2, %v9727_v48 }
 0x567   : > { %2387 = vrot.lane.b32.xlu0 %v9519_v33, %s9053_s9  ;;  %1858 = vmatpush.msra.mxu1 %v8011_v5 }
 0x569   : > { %v9964_v28 = vpop.permute.xlu0 %1963  ;;  %1859 = vmatpush.msra.mxu1 %v8012_v58 }
 0x56a   : > { %7484 = vmatpush.xpose.msk.msra.mxu2 %vm1086_vm2, %v9753_v47 }
 0x56c   : > { %v9968_v60 = vpop.permute.xlu1 %2385 }
 0x56e   : > { %7485 = vmatpush.xpose.msk.msra.mxu2 %vm1086_vm2, %v9659_v11 }
 0x56f   : > { %7969 = vrot.lane.b32.xlu0 %v9765_v36, %s9054_s10 }
 0x571   : > { %v9974_v53 = vpop.permute.xlu0 %1497 }
 0x572   : > { %7486 = vmatpush.xpose.msk.msra.mxu2 %vm1086_vm2, %v9707_v62 }
 0x574   : > { %v9978_v48 = vpop.permute.xlu1 %1939 }
 0x575   : > { %14576 = vst [vmem:[#allocation83_spill] sm:$0xff] %v9978_v48 }
 0x576   : > { %7487 = vmatpush.xpose.msk.msra.mxu2 %vm1086_vm2, %v9635_v21 }
 0x577   : > { %2393 = vrot.lane.b32.xlu0 %v9607_v2, %s9053_s9 }
 0x579   : > { %v9984_v47 = vpop.permute.xlu0 %1961 }
 0x57a   : > { %7488 = vmatpush.xpose.msk.msra.mxu2 %vm1086_vm2, %v9643_v42 }
 0x57c   : > { %v9988_v5 = vpop.permute.xlu1 %2389 }
 0x57e   : > { %7489 = vmatpush.xpose.msk.msra.mxu2 %vm1086_vm2, %v9609_v37 }
 0x57f   : > { %7979 = vrot.lane.b32.xlu0 %v9575_v13, %s9054_s10 }
 0x581   : > { %v9994_v11 = vpop.permute.xlu0 %2417 }
 0x582   : > { %7490 = vmatpush.xpose.msk.msra.mxu2 %vm1086_vm2, %v9605_v22 }
 0x584   : > { %v9998_v21 = vpop.permute.xlu1 %2391 }
 0x586   : > { %7491 = vmatpush.xpose.msk.msra.mxu2 %vm1086_vm2, %v9595_v19 }
 0x587   : > { %7984 = vrot.lane.b32.xlu0 %v9543_v10, %s9054_s10 }
 0x589   : > { %v10004_v42 = vpop.permute.xlu0 %1959 }
 0x58a   : > { %7492 = vmatpush.xpose.msk.msra.mxu2 %vm1086_vm2, %v9581_v51 }
 0x58c   : > { %v10008_v37 = vpop.permute.xlu1 %1945 }
 0x58d   : > { %14577 = vst [vmem:[#allocation84_spill] sm:$0xff] %v10008_v37  ;;  %7493 = vmatmul.msk.f32.vlgmr.msra.gmra.mxu2 %vm1086_vm2, %v9452_v17 }
 0x58f   : > { %7994 = vrot.lane.b32.xlu0 %v9517_v49, %s9054_s10  ;;  %v14625_v49 = vld [vmem:[#allocation65_spill] sm:$0xff] }
 0x591   : > { %v10014_v22 = vpop.permute.xlu0 %2415 }
 0x594   : > { %v7975_v62 = vpop.permute.xlu1 %7974 }
 0x595   : > { %7494 = vmatmul.msk.f32.gmra.mxu2 %vm1086_vm2, %v9456_v30 }
 0x597   : > { %7999 = vrot.lane.b32.xlu0 %v9464_v12, %s9054_s10 }
 0x599   : > { %v10020_v19 = vpop.permute.xlu0 %1955 }
 0x59c   : > { %v10022_v51 = vpop.permute.xlu1 %7989 }
 0x59d   : > { %7495 = vmatmul.msk.f32.gmra.mxu2 %vm1086_vm2, %v9469_v18 }
 0x59f   : > { %8004 = vrot.lane.b32.xlu0 %v9845_v31, %s9048_s30 }
 0x5a1   : > { %v10028_v17 = vpop.permute.xlu0 %2411 }
 0x5a4   : > { %v10030_v55 = vpop.permute.xlu1 %1949 }
 0x5a5   : > { %14578 = vst [vmem:[#allocation85_spill] sm:$0xff] %v10030_v55  ;;  %7496 = vmatmul.msk.f32.gmra.mxu2 %vm1086_vm2, %v9476_v9 }
 0x5a7   : > { %2435 = vrot.lane.b32.xlu0 %v9731_v59, %s9050_s6 }
 0x5a9   : > { %v10036_v30 = vpop.permute.xlu0 %2409 }
 0x5ac   : > { %v1536_v58 = vpop.permute.xlu1 %1535 }
 0x5ad   : > { %7497 = vmatmul.msk.f32.gmra.mxu2 %vm1086_vm2, %v9483_v46  ;;  %7509 = vmatpush.xpose.msk.msrb.mxu0 %vm1086_vm2, %v1536_v58  ;;  %v14388_v58 = vmov -1e+30  }
 0x5b1   : > { %v1534_v18 = vpop.permute.xlu0 %1533 }
 0x5b2   : > { %7510 = vmatpush.xpose.msk.msrb.mxu0 %vm1086_vm2, %v1534_v18 }
 0x5b5   : > { %7498 = vmatmul.msk.f32.gmra.mxu2 %vm1086_vm2, %v9494_v0 }
 0x5b6   : > { %7511 = vmatpush.xpose.msk.msrb.mxu0 %vm1086_vm2, %v9761_v40 }
 0x5b9   : > { %v10046_v9 = vpop.permute.xlu0 %1925 }
 0x5ba   : > { %14579 = vst [vmem:[#allocation86_spill] sm:$0xff] %v10046_v9  ;;  %7512 = vmatpush.xpose.msk.msrb.mxu0 %vm1086_vm2, %v9906_v8 }
 0x5bd   : > { %7499 = vmatmul.msk.f32.gmra.mxu2 %vm1086_vm2, %v9505_v23  ;;  %v7976_v23 = vunpack.i.l.bf16 %v7975_v62 }
 0x5be   : > { %7513 = vmatpush.xpose.msk.msrb.mxu0 %vm1086_vm2, %v9869_v3 }
 0x5c1   : > { %v10054_v46 = vpop.permute.xlu0 %1927 }
 0x5c2   : > { %14580 = vst [vmem:[#allocation87_spill] sm:$0xff] %v10054_v46  ;;  %7514 = vmatpush.xpose.msk.msrb.mxu0 %vm1086_vm2, %v9817_v15 }
 0x5c5   : > { %7500 = vmatmul.msk.f32.gmra.mxu2 %vm1086_vm2, %v9519_v33  ;;  %v7977_v33 = vunpack.i.h.bf16 %v7975_v62 }
 0x5c6   : > { %7515 = vmatpush.xpose.msk.msrb.mxu0 %vm1086_vm2, %v9743_v50 }
 0x5c9   : > { %v10062_v40 = vpop.permute.xlu0 %2377 }
 0x5ca   : > { %7516 = vmatpush.xpose.msk.msrb.mxu0 %vm1086_vm2, %v9733_v56 }
 0x5cd   : > { %7501 = vmatmul.msk.f32.gmra.mxu2 %vm1086_vm2, %v9529_v34 }
 0x5ce   : > { %7517 = vmatpush.xpose.msk.msrb.mxu0 %vm1086_vm2, %v9671_v54 }
 0x5d1   : > { %v10070_v3 = vpop.permute.xlu0 %1933 }
 0x5d2   : > { %14581 = vst [vmem:[#allocation88_spill] sm:$0xff] %v10070_v3  ;;  %7518 = vmatpush.xpose.msk.msrb.mxu0 %vm1086_vm2, %v9649_v45 }
 0x5d5   : > { %7502 = vmatmul.msk.f32.gmra.mxu2 %vm1086_vm2, %v9545_v1 }
 0x5d6   : > { %7519 = vmatpush.xpose.msk.msrb.mxu0 %vm1086_vm2, %v9683_v7 }
 0x5d9   : > { %v10078_v50 = vpop.permute.xlu0 %2387 }
 0x5da   : > { %7520 = vmatpush.xpose.msk.msrb.mxu0 %vm1086_vm2, %v9653_v63 }
 0x5dd   : > { %7503 = vmatmul.msk.f32.gmra.mxu2 %vm1086_vm2, %v9607_v2 }
 0x5de   : > { %7521 = vmatpush.xpose.msk.msrb.mxu0 %vm1086_vm2, %v9621_v29  ;;  %v7992_v29 = vunpack.i.h.bf16 %v10022_v51 }
 0x5e1   : > { %v7970_v56 = vpop.permute.xlu0 %7969 }
 0x5e2   : > { %v7971_v15 = vunpack.i.l.bf16 %v7970_v56  ;;  %7522 = vmatpush.xpose.msk.msrb.mxu0 %vm1086_vm2, %v9601_v25  ;;  %v7972_v0 = vunpack.i.h.bf16 %v7970_v56 }
 0x5e4   : > { %1860 = vmatpush.msra.mxu1 %v7971_v15 }
 0x5e5   : > { %7504 = vmatmul.msk.f32.gmra.mxu2 %vm1086_vm2, %v9615_v27  ;;  %v336_v27 = vlaneseq }
 0x5e6   : > { %7523 = vmatpush.xpose.msk.msrb.mxu0 %vm1086_vm2, %v9593_v14  ;;  %1861 = vmatpush.msra.mxu1 %v7972_v0 }
 0x5e7   : > { %v354_v45 = vand.u32 127, %v336_v27 }
 0x5e8   : > { %1862 = vmatpush.msra.mxu1 %v7976_v23 }
 0x5e9   : > { %v10092_v34 = vpop.permute.xlu0 %2393  ;;  %v10117_v54 = vand.u32 15, %v354_v45  ;;  %v14590_v45 = vld [vmem:[#allocation31_spill] sm:$0xff] }
 0x5ea   : > { %7524 = vmatpush.xpose.msk.msrb.mxu0 %vm1086_vm2, %v9585_v26  ;;  %1863 = vmatpush.msra.mxu1 %v7977_v33  ;;  %v7967_v33 = vunpack.i.h.bf16 %v9926_v4 }
 0x5ed   : > { %7505 = vmatmul.msk.f32.gmra.mxu2 %vm1086_vm2, %v9625_v61  ;;  %7525 = vmatmul.msk.f32.vlgmr.msrb.gmra.mxu0 %vm1086_vm2, %v9589_v16  ;;  %v7991_v16 = vunpack.i.l.bf16 %v10022_v51 }
 0x5f1   : > { %v7980_v1 = vpop.permute.xlu0 %7979 }
 0x5f2   : > { %v7981_v8 = vunpack.i.l.bf16 %v7980_v1  ;;  %v7982_v25 = vunpack.i.h.bf16 %v7980_v1 }
 0x5f4   : > { %1864 = vmatpush.msra.mxu1 %v7981_v8  ;;  %v7961_v8 = vunpack.i.l.bf16 %v9879_v57 }
 0x5f5   : > { %7506 = vmatmul.msk.f32.gmra.mxu2 %vm1086_vm2, %v9633_v39  ;;  %7526 = vmatmul.msk.f32.gmra.mxu0 %vm1086_vm2, %v9599_v20  ;;  %v10110_v39 = vshrl.u32 %v336_v27, 7  ;;  %v14587_v27 = vld [vmem:[#allocation32_spill] sm:$0xff] }
 0x5f6   : > { %1865 = vmatpush.msra.mxu1 %v7982_v25  ;;  %v7962_v25 = vunpack.i.h.bf16 %v9879_v57  ;;  %v7952_v57 = vunpack.i.h.bf16 %v14587_v27 }
 0x5f7   : > { %v347_v37 = vadd.s32 80, %v10110_v39  ;;  %v348_v48 = vadd.s32 88, %v10110_v39 }
 0x5f9   : > { %v7985_v14 = vpop.permute.xlu0 %7984 }
 0x5fa   : > { %v7986_v26 = vunpack.i.l.bf16 %v7985_v14  ;;  %v7987_v2 = vunpack.i.h.bf16 %v7985_v14  ;;  %v14583_v14 = vld [vmem:[#allocation36_spill] sm:$0xff] }
 0x5fc   : > { %1866 = vmatpush.msra.mxu1 %v7986_v26  ;;  %v14585_v26 = vld [vmem:[#allocation41_spill] sm:$0xff] }
 0x5fd   : > { %7507 = vmatmul.msk.f32.gmra.mxu2 %vm1086_vm2, %v9675_v35  ;;  %7527 = vmatmul.msk.f32.gmra.mxu0 %vm1086_vm2, %v9613_v6  ;;  %v355_v6 = vand.u32 15, %v10110_v39 }
 0x5fe   : > { %1867 = vmatpush.msra.mxu1 %v7987_v2  ;;  %v7957_v2 = vunpack.i.h.bf16 %v14585_v26 }
 0x5ff   : > { %vm372_vm3 = vcmp.eq.s32.totalorder %v355_v6, %v10117_v54  ;;  %v7947_v6 = vunpack.i.h.bf16 %v14590_v45 }
 0x600   : > { %1868 = vmatpush.msra.mxu1 %v7991_v16  ;;  %v10123_v18 = vsel %vm372_vm3, 0.0, %v14388_v58  ;;  %v14586_v16 = vld [vmem:[#allocation47_spill] sm:$0xff] }
 0x601   : > { %v7995_v61 = vpop.permute.xlu0 %7994  ;;  %14582 = vst [vmem:[#allocation89_spill] sm:$0xff] %v10123_v18 }
 0x602   : > { %v7996_v20 = vunpack.i.l.bf16 %v7995_v61  ;;  %1869 = vmatpush.msra.mxu1 %v7992_v29  ;;  %v7997_v63 = vunpack.i.h.bf16 %v7995_v61  ;;  %v7951_v29 = vunpack.i.l.bf16 %v14587_v27  ;;  %v14588_v61 = vld [vmem:[#allocation33_spill] sm:$0xff] }
 0x603   : > { %v14601_v27 = vld [vmem:[#allocation57_spill] sm:$0xff] }
 0x604   : > { %1870 = vmatpush.msra.mxu1 %v7996_v20  ;;  %v14589_v20 = vld [vmem:[#allocation74_spill] sm:$0xff] }
 0x605   : > { %7508 = vmatmul.msk.f32.gmra.mxu2 %vm1086_vm2, %v9731_v59  ;;  %7528 = vmatmul.msk.f32.gmra.mxu0 %vm1086_vm2, %v9631_v41 }
 0x606   : > { %1871 = vmatpush.msra.mxu1 %v7997_v63  ;;  %v7946_v63 = vunpack.i.l.bf16 %v14590_v45  ;;  %v14605_v45 = vld [vmem:[#allocation62_spill] sm:$0xff] }
 0x609   : > { %v8000_v7 = vpop.permute.xlu0 %7999 }
 0x60a   : > { %v8001_v62 = vunpack.i.l.bf16 %v8000_v7  ;;  %v8002_v51 = vunpack.i.h.bf16 %v8000_v7  ;;  %v14591_v7 = vld [vmem:[#allocation49_spill] sm:$0xff] }
 0x60c   : > { %1872 = vmatpush.msra.mxu1 %v8001_v62  ;;  %v14592_v62 = vld [vmem:[#allocation30_spill] sm:$0xff] }
 0x60d   : > { %7529 = vmatmul.msk.f32.gmra.mxu0 %vm1086_vm2, %v9663_v52  ;;  %v7966_v52 = vunpack.i.l.bf16 %v9926_v4  ;;  %v7956_v4 = vunpack.i.l.bf16 %v14585_v26  ;;  %v14598_v26 = vld [vmem:[#allocation52_spill] sm:$0xff] }
 0x60e   : > { %1873 = vmatpush.msra.mxu1 %v8002_v51  ;;  %v7941_v51 = vunpack.i.l.bf16 %v14592_v62 }
 0x610   : > { %v1168_v41 = vpop.f32.mrf.mxu2 }
 0x611   : > { %v10126_v56 = vadd.f32 %v1168_v41, %v10123_v18  ;;  %v8005_v15 = vpop.permute.xlu0 %8004  ;;  %v7942_v41 = vunpack.i.h.bf16 %v14592_v62  ;;  %v14608_v62 = vld [vmem:[#allocation43_spill] sm:$0xff] }
 0x612   : > { %v8006_v0 = vunpack.i.l.bf16 %v8005_v15  ;;  %v8007_v23 = vunpack.i.h.bf16 %v8005_v15  ;;  %v14593_v15 = vld [vmem:[#allocation35_spill] sm:$0xff] }
 0x613   : > { %1216 = vmax.xlane.f32.xlu1 %v10126_v56 }
 0x614   : > { %1408 = vmatpush.msra.mxu3 %v8006_v0  ;;  %v14594_v0 = vld [vmem:[#allocation61_spill] sm:$0xff] }
 0x615   : > { %7530 = vmatmul.msk.f32.gmra.mxu0 %vm1086_vm2, %v9693_v43  ;;  %v14584_v43 = vld [vmem:[#allocation66_spill] sm:$0xff] }
 0x616   : > { %1409 = vmatpush.msra.mxu3 %v8007_v23  ;;  %v14595_v23 = vld [vmem:[#allocation37_spill] sm:$0xff] }
 0x618   : > { %1410 = vmatpush.msra.mxu3 %v7966_v52  ;;  %v7936_v52 = vunpack.i.l.bf16 %v14595_v23 }
 0x619   : > { %v10133_v1 = vpop.permute.xlu0 %2435 }
 0x61a   : > { %1411 = vmatpush.msra.mxu3 %v7967_v33  ;;  %7573 = vmatpush.xpose.msk.msra.mxu0 %vm1086_vm2, %v10133_v1  ;;  %v7937_v33 = vunpack.i.h.bf16 %v14595_v23  ;;  %v14611_v23 = vld [vmem:[#allocation59_spill] sm:$0xff] }
 0x61c   : > { %1412 = vmatpush.msra.mxu3 %v7961_v8  ;;  %v1986_v8 = vpop.permute.xlu1 %1985 }
 0x61d   : > { %7531 = vmatmul.msk.f32.gmra.mxu0 %vm1086_vm2, %v14583_v14  ;;  %v14597_v14 = vld [vmem:[#allocation45_spill] sm:$0xff] }
 0x61e   : > { %1413 = vmatpush.msra.mxu3 %v7962_v25  ;;  %7574 = vmatpush.xpose.msk.msra.mxu0 %vm1086_vm2, %v14584_v43  ;;  %v14596_v25 = vld [vmem:[#allocation40_spill] sm:$0xff] }
 0x620   : > { %1414 = vmatpush.msra.mxu3 %v7956_v4  ;;  %v14599_v4 = vld [vmem:[#allocation55_spill] sm:$0xff] }
 0x622   : > { %1415 = vmatpush.msra.mxu3 %v7957_v2  ;;  %7575 = vmatpush.xpose.msk.msra.mxu0 %vm1086_vm2, %v14586_v16  ;;  %v14600_v2 = vld [vmem:[#allocation44_spill] sm:$0xff] }
 0x624   : > { %1416 = vmatpush.msra.mxu3 %v7951_v29  ;;  %v14602_v29 = vld [vmem:[#allocation51_spill] sm:$0xff] }
 0x625   : > { %7532 = vmatmul.msk.f32.gmra.mxu0 %vm1086_vm2, %v14588_v61  ;;  %v14604_v61 = vld [vmem:[#allocation68_spill] sm:$0xff] }
 0x626   : > { %1417 = vmatpush.msra.mxu3 %v7952_v57  ;;  %7576 = vmatpush.xpose.msk.msra.mxu0 %vm1086_vm2, %v14589_v20  ;;  %v14603_v57 = vld [vmem:[#allocation46_spill] sm:$0xff] }
 0x628   : > { %1418 = vmatpush.msra.mxu3 %v7946_v63  ;;  %v14606_v63 = vld [vmem:[#allocation54_spill] sm:$0xff] }
 0x62a   : > { %1419 = vmatpush.msra.mxu3 %v7947_v6  ;;  %7577 = vmatpush.xpose.msk.msra.mxu0 %vm1086_vm2, %v14591_v7  ;;  %v14607_v6 = vld [vmem:[#allocation48_spill] sm:$0xff] }
 0x62c   : > { %1420 = vmatpush.msra.mxu3 %v7941_v51  ;;  %v14609_v51 = vld [vmem:[#allocation72_spill] sm:$0xff] }
 0x62d   : > { %7533 = vmatmul.msk.f32.gmra.mxu0 %vm1086_vm2, %v14593_v15  ;;  %v1171_v15 = vpop.f32.mrf.mxu2 }
 0x62e   : > { %1421 = vmatpush.msra.mxu3 %v7942_v41  ;;  %7578 = vmatpush.xpose.msk.msra.mxu0 %vm1086_vm2, %v14594_v0  ;;  %v14610_v41 = vld [vmem:[#allocation39_spill] sm:$0xff] }
 0x630   : > { %1422 = vmatpush.msra.mxu3 %v7936_v52  ;;  %v14612_v52 = vld [vmem:[#allocation53_spill] sm:$0xff] }
 0x632   : > { %1423 = vmatpush.msra.mxu3 %v7937_v33  ;;  %7579 = vmatpush.xpose.msk.msra.mxu0 %vm1086_vm2, %v14596_v25  ;;  %v14614_v33 = vld [vmem:[#allocation69_spill] sm:$0xff] }
 0x634   : > { %7541 = vmatpush.xpose.msk.msrb.mxu3 %vm1086_vm2, %v1986_v8 }
 0x635   : > { %7534 = vmatmul.msk.f32.gmra.mxu0 %vm1086_vm2, %v14597_v14  ;;  %v1174_v8 = vpop.f32.mrf.mxu2  ;;  %v338_v14 = vadd.s32 8, %v10110_v39 }
 0x636   : > { %7580 = vmatpush.xpose.msk.msra.mxu0 %vm1086_vm2, %v9954_v32 }
 0x638   : > { %7542 = vmatpush.xpose.msk.msrb.mxu3 %vm1086_vm2, %v14598_v26 }
 0x63a   : > { %7581 = vmatpush.xpose.msk.msra.mxu0 %vm1086_vm2, %v14599_v4 }
 0x63c   : > { %7543 = vmatpush.xpose.msk.msrb.mxu3 %vm1086_vm2, %v14600_v2 }
 0x63d   : > { %7535 = vmatmul.msk.f32.gmra.mxu0 %vm1086_vm2, %v14601_v27  ;;  %v1177_v26 = vpop.f32.mrf.mxu2 }
 0x63e   : > { %7582 = vmatpush.xpose.msk.msra.mxu0 %vm1086_vm2, %v9994_v11 }
 0x640   : > { %7544 = vmatpush.xpose.msk.msrb.mxu3 %vm1086_vm2, %v14602_v29  ;;  %v14615_v29 = vld [vmem:[#allocation50_spill] sm:$0xff] }
 0x642   : > { %7583 = vmatpush.xpose.msk.msra.mxu0 %vm1086_vm2, %v10014_v22 }
 0x644   : > { %7545 = vmatpush.xpose.msk.msrb.mxu3 %vm1086_vm2, %v14603_v57 }
 0x645   : > { %7536 = vmatmul.msk.f32.gmra.mxu0 %vm1086_vm2, %v14604_v61  ;;  %v1180_v57 = vpop.f32.mrf.mxu2 }
 0x646   : > { %7584 = vmatpush.xpose.msk.msra.mxu0 %vm1086_vm2, %v14605_v45 }
 0x648   : > { %7546 = vmatpush.xpose.msk.msrb.mxu3 %vm1086_vm2, %v14606_v63 }
 0x64a   : > { %7585 = vmatpush.xpose.msk.msra.mxu0 %vm1086_vm2, %v10028_v17 }
 0x64c   : > { %7547 = vmatpush.xpose.msk.msrb.mxu3 %vm1086_vm2, %v14607_v6 }
 0x64d   : > { %7537 = vmatmul.msk.f32.gmra.mxu0 %vm1086_vm2, %v9974_v53  ;;  %v14613_v53 = vld [vmem:[#allocation38_spill] sm:$0xff] }
 0x64e   : > { %7586 = vmatpush.xpose.msk.msra.mxu0 %vm1086_vm2, %v10036_v30 }
 0x650   : > { %7548 = vmatpush.xpose.msk.msrb.mxu3 %vm1086_vm2, %v14608_v62  ;;  %v340_v62 = vadd.s32 24, %v10110_v39 }
 0x652   : > { %7587 = vmatpush.xpose.msk.msra.mxu0 %vm1086_vm2, %v14609_v51 }
 0x654   : > { %7549 = vmatpush.xpose.msk.msrb.mxu3 %vm1086_vm2, %v14610_v41 }
 0x655   : > { %7538 = vmatmul.msk.f32.gmra.mxu0 %vm1086_vm2, %v14611_v23  ;;  %v358_v23 = vand.u32 15, %v340_v62  ;;  %v14621_v62 = vld [vmem:[#allocation79_spill] sm:$0xff] }
 0x656   : > { %7588 = vmatpush.xpose.msk.msra.mxu0 %vm1086_vm2, %v14612_v52 }
 0x657   : > { %vm375_vm6 = vcmp.eq.s32.totalorder %v358_v23, %v10117_v54 }
 0x658   : > { %7550 = vmatpush.xpose.msk.msrb.mxu3 %vm1086_vm2, %v14613_v53 }
 0x65c   : > { %7551 = vmatpush.xpose.msk.msrb.mxu3 %vm1086_vm2, %v9943_v44  ;;  %v356_v44 = vand.u32 15, %v338_v14  ;;  %v1183_v14 = vpop.f32.mrf.mxu2 }
 0x65d   : > { %7539 = vmatmul.msk.f32.gmra.mxu0 %vm1086_vm2, %v14614_v33 }
 0x65e   : > { %vm373_vm4 = vcmp.eq.s32.totalorder %v356_v44, %v10117_v54  ;;  %v342_v44 = vadd.s32 40, %v10110_v39 }
 0x660   : > { %7552 = vmatpush.xpose.msk.msrb.mxu3 %vm1086_vm2, %v9964_v28  ;;  %v339_v28 = vadd.s32 16, %v10110_v39 }
 0x664   : > { %7553 = vmatpush.xpose.msk.msrb.mxu3 %vm1086_vm2, %v9984_v47  ;;  %v14616_v47 = vld [vmem:[#allocation75_spill] sm:$0xff] }
 0x665   : > { %7540 = vmatmul.msk.f32.gmra.mxu0 %vm1086_vm2, %v9948_v24  ;;  %v10240_v24 = vsel %vm373_vm4, 0.0, %v14388_v58 }
 0x666   : > { %14617 = vst [vmem:[#allocation36_spill] sm:$0xff] %v10240_v24  ;;  %v10243_v63 = vadd.f32 %v1171_v15, %v10240_v24 }
 0x668   : > { %7554 = vmatpush.xpose.msk.msrb.mxu3 %vm1086_vm2, %v10004_v42  ;;  %v357_v42 = vand.u32 15, %v339_v28 }
 0x66a   : > { %v1618_v2 = vpop.f32.mrf.mxu0  ;;  %vm374_vm5 = vcmp.eq.s32.totalorder %v357_v42, %v10117_v54 }
 0x66b   : > { %v10228_v27 = vadd.f32 %v1618_v2, %v10123_v18  ;;  %v10255_v41 = vsel %vm374_vm5, 0.0, %v14388_v58  ;;  %v341_v2 = vadd.s32 32, %v10110_v39  ;;  %vm3031_vm5 = vcmask 130048  }
 0x66c   : > { %7555 = vmatpush.xpose.msk.msrb.mxu3 %vm1086_vm2, %v14615_v29  ;;  %14619 = vst [vmem:[#allocation66_spill] sm:$0xff] %v10255_v41  ;;  %v10258_v53 = vadd.f32 %v1174_v8, %v10255_v41  ;;  %v10271_v8 = vsel %vm375_vm6, 0.0, %v14388_v58  ;;  %v360_v29 = vand.u32 15, %v342_v44  ;;  %vm3048_vm6 = vcmask 195584  }
 0x66d   : > { %1666 = vmax.xlane.f32.xlu0 %v10228_v27  ;;  %7589 = vmatmul.msk.f32.vlgmr.msra.gmra.mxu0 %vm1086_vm2, %v14616_v47  ;;  %14620 = vst [vmem:[#allocation41_spill] sm:$0xff] %v10271_v8  ;;  %v10274_v47 = vadd.f32 %v1177_v26, %v10271_v8 }
 0x66e   : > { %vm377_vm7 = vcmp.eq.s32.totalorder %v360_v29, %v10117_v54  ;;  %v14624_v29 = vld [vmem:[#allocation63_spill] sm:$0xff] }
 0x670   : > { %7556 = vmatpush.xpose.msk.msrb.mxu3 %vm1086_vm2, %v10020_v19  ;;  %v14618_v19 = vld [vmem:[#allocation56_spill] sm:$0xff] }
 0x672   : > { %v1621_v61 = vpop.f32.mrf.mxu0 }
 0x673   : > { %v10246_v6 = vadd.f32 %v1621_v61, %v10240_v24  ;;  %v359_v61 = vand.u32 15, %v341_v2  ;;  %v343_v2 = vadd.s32 48, %v10110_v39 }
 0x675   : > { %1668 = vmax.xlane.f32.xlu2 %v10246_v6  ;;  %1218 = vmax.xlane.f32.xlu0 %v10243_v63  ;;  %vm376_vm8 = vcmp.eq.s32.totalorder %v359_v61, %v10117_v54  ;;  %v361_v61 = vand.u32 15, %v343_v2 }
 0x676   : > { %7590 = vmatmul.msk.f32.gmra.mxu0 %vm1086_vm2, %v14618_v19  ;;  %v10286_v19 = vsel %vm377_vm7, 0.0, %v14388_v58  ;;  %v10289_v23 = vsel %vm376_vm8, 0.0, %v14388_v58 }
 0x677   : > { %14622 = vst [vmem:[#allocation47_spill] sm:$0xff] %v10286_v19  ;;  %vm378_vm9 = vcmp.eq.s32.totalorder %v361_v61, %v10117_v54 }
 0x678   : > { %14623 = vst [vmem:[#allocation32_spill] sm:$0xff] %v10289_v23 }
 0x67a   : > { %v1624_v15 = vpop.f32.mrf.mxu0 }
 0x67b   : > { %v10261_v33 = vadd.f32 %v1624_v15, %v10255_v41  ;;  %v10292_v15 = vadd.f32 %v1183_v14, %v10286_v19  ;;  %v10306_v14 = vadd.f32 %v1180_v57, %v10289_v23 }
 0x67d   : > { %1670 = vmax.xlane.f32.xlu1 %v10261_v33  ;;  %1220 = vmax.xlane.f32.xlu0 %v10258_v53 }
 0x67e   : > { %7591 = vmatmul.msk.f32.gmra.mxu0 %vm1086_vm2, %v10062_v40  ;;  %v1186_v40 = vpop.f32.mrf.mxu2 }
 0x682   : > { %v1627_v28 = vpop.f32.mrf.mxu0 }
 0x683   : > { %v10277_v42 = vadd.f32 %v1627_v28, %v10271_v8 }
 0x685   : > { %1222 = vmax.xlane.f32.xlu1 %v10274_v47  ;;  %1672 = vmax.xlane.f32.xlu0 %v10277_v42 }
 0x686   : > { %7592 = vmatmul.msk.f32.gmra.mxu0 %vm1086_vm2, %v14621_v62  ;;  %v1189_v28 = vpop.f32.mrf.mxu2 }
 0x68a   : > { %v1630_v26 = vpop.f32.mrf.mxu0 }
 0x68b   : > { %v10295_v44 = vadd.f32 %v1630_v26, %v10289_v23  ;;  %v344_v26 = vadd.s32 56, %v10110_v39 }
 0x68d   : > { %1674 = vmax.xlane.f32.xlu2 %v10295_v44  ;;  %1226 = vmax.xlane.f32.xlu0 %v10292_v15  ;;  %v362_v12 = vand.u32 15, %v344_v26 }
 0x68e   : > { %7593 = vmatmul.msk.f32.gmra.mxu0 %vm1086_vm2, %v14624_v29  ;;  %v14626_v29 = vmov -1e+30  }
 0x68f   : > { %v10315_v2 = vsel %vm378_vm9, 0.0, %v14626_v29  ;;  %vm379_vm10 = vcmp.eq.s32.totalorder %v362_v12, %v10117_v54 }
 0x690   : > { %14627 = vst [vmem:[#allocation33_spill] sm:$0xff] %v10315_v2  ;;  %v10321_v23 = vadd.f32 %v1186_v40, %v10315_v2  ;;  %v10330_v61 = vsel %vm379_vm10, 0.0, %v14626_v29 }
 0x691   : > { %14628 = vst [vmem:[#allocation74_spill] sm:$0xff] %v10330_v61  ;;  %v10336_v40 = vadd.f32 %v1189_v28, %v10330_v61 }
 0x692   : > { %v1633_v62 = vpop.f32.mrf.mxu0 }
 0x693   : > { %v10303_v58 = vadd.f32 %v1633_v62, %v10286_v19  ;;  %v1192_v62 = vpop.f32.mrf.mxu2 }
 0x695   : > { %1676 = vmax.xlane.f32.xlu1 %v10303_v58  ;;  %1224 = vmax.xlane.f32.xlu2 %v10306_v14 }
 0x696   : > { %7594 = vmatmul.msk.f32.gmra.mxu0 %vm1086_vm2, %v14625_v49  ;;  %v345_v49 = vadd.s32 64, %v10110_v39 }
 0x698   : > { %v363_v26 = vand.u32 15, %v345_v49 }
 0x69a   : > { %v1636_v19 = vpop.f32.mrf.mxu0  ;;  %vm380_vm11 = vcmp.eq.s32.totalorder %v363_v26, %v10117_v54 }
 0x69b   : > { %v10318_v57 = vadd.f32 %v1636_v19, %v10315_v2  ;;  %v1195_v2 = vpop.f32.mrf.mxu2  ;;  %v10345_v12 = vsel %vm380_vm11, 0.0, %v14626_v29 }
 0x69c   : > { %14629 = vst [vmem:[#allocation31_spill] sm:$0xff] %v10345_v12 }
 0x69d   : > { %1228 = vmax.xlane.f32.xlu2 %v10321_v23  ;;  %1678 = vmax.xlane.f32.xlu0 %v10318_v57 }
 0x69e   : > { %7595 = vmatmul.msk.f32.gmra.mxu0 %vm1086_vm2, %v9968_v60  ;;  %v346_v60 = vadd.s32 72, %v10110_v39 }
 0x6a0   : > { %v364_v49 = vand.u32 15, %v346_v60  ;;  %v365_v60 = vand.u32 15, %v347_v37 }
 0x6a2   : > { %v1639_v19 = vpop.f32.mrf.mxu0  ;;  %vm381_vm12 = vcmp.eq.s32.totalorder %v364_v49, %v10117_v54  ;;  %vm382_vm14 = vcmp.eq.s32.totalorder %v365_v60, %v10117_v54  ;;  %v366_v49 = vand.u32 15, %v348_v48  ;;  %v350_v48 = vadd.s32 104, %v10110_v39 }
 0x6a3   : > { %v10333_v55 = vadd.f32 %v1639_v19, %v10330_v61  ;;  %v10351_v61 = vadd.f32 %v1192_v62, %v10345_v12  ;;  %v10360_v26 = vsel %vm381_vm12, 0.0, %v14626_v29 }
 0x6a4   : > { %14631 = vst [vmem:[#allocation30_spill] sm:$0xff] %v10360_v26  ;;  %vm383_vm15 = vcmp.eq.s32.totalorder %v366_v49, %v10117_v54 }
 0x6a5   : > { %1680 = vmax.xlane.f32.xlu1 %v10333_v55  ;;  %1230 = vmax.xlane.f32.xlu2 %v10336_v40  ;;  %v10386_v60 = vsel %vm383_vm15, 0.0, %v14626_v29 }
 0x6a6   : > { %7596 = vmatmul.msk.f32.gmra.mxu0 %vm1086_vm2, %v10078_v50  ;;  %v1198_v50 = vpop.f32.mrf.mxu2  ;;  %14633 = vst [vmem:[#allocation61_spill] sm:$0xff] %v10386_v60 }
 0x6aa   : > { %v1642_v19 = vpop.f32.mrf.mxu0 }
 0x6ab   : > { %v10348_v28 = vadd.f32 %v1642_v19, %v10345_v12  ;;  %v10366_v12 = vadd.f32 %v1195_v2, %v10360_v26  ;;  %v349_v2 = vadd.s32 96, %v10110_v39 }
 0x6ad   : > { %14630 = vst [vmem:[#allocation49_spill] sm:$0xff] %v10348_v28  ;;  %1682 = vmax.xlane.f32.xlu1 %v10348_v28  ;;  %1232 = vmax.xlane.f32.xlu2 %v10351_v61 }
 0x6ae   : > { %7597 = vmatmul.msk.f32.gmra.mxu0 %vm1086_vm2, %v9988_v5  ;;  %v10375_v5 = vsel %vm382_vm14, 0.0, %v14626_v29  ;;  %v1201_v37 = vpop.f32.mrf.mxu2 }
 0x6af   : > { %14632 = vst [vmem:[#allocation35_spill] sm:$0xff] %v10375_v5  ;;  %v10389_v38 = vadd.f32 %v1201_v37, %v10386_v60  ;;  %v351_v37 = vadd.s32 112, %v10110_v39 }
 0x6b2   : > { %v1645_v19 = vpop.f32.mrf.mxu0 }
 0x6b3   : > { %v10363_v62 = vadd.f32 %v1645_v19, %v10360_v26  ;;  %v10378_v19 = vadd.f32 %v1198_v50, %v10375_v5  ;;  %v14634_v50 = vld [vmem:[#allocation73_spill] sm:$0xff] }
 0x6b5   : > { %1684 = vmax.xlane.f32.xlu1 %v10363_v62  ;;  %1234 = vmax.xlane.f32.xlu2 %v10366_v12 }
 0x6b6   : > { %7598 = vmatmul.msk.f32.gmra.mxu0 %vm1086_vm2, %v9998_v21  ;;  %v367_v21 = vand.u32 15, %v349_v2  ;;  %v1204_v26 = vpop.f32.mrf.mxu2 }
 0x6b8   : > { %vm384_vm0 = vcmp.eq.s32.totalorder %v367_v21, %v10117_v54  ;;  %v14636_v21 = vld [vmem:[#allocation76_spill] sm:$0xff] }
 0x6b9   : > { %v10397_v49 = vsel %vm384_vm0, 0.0, %v14626_v29 }
 0x6ba   : > { %14635 = vst [vmem:[#allocation37_spill] sm:$0xff] %v10397_v49  ;;  %v10400_v3 = vadd.f32 %v1204_v26, %v10397_v49  ;;  %v352_v26 = vadd.s32 120, %v10110_v39 }
 0x6bd   : > { %1236 = vmax.xlane.f32.xlu1 %v10378_v19 }
 0x6be   : > { %7599 = vmatmul.msk.f32.gmra.mxu0 %vm1086_vm2, %v10092_v34  ;;  %v368_v34 = vand.u32 15, %v350_v48  ;;  %v1207_v2 = vpop.f32.mrf.mxu2 }
 0x6c0   : > { %vm385_vm1 = vcmp.eq.s32.totalorder %v368_v34, %v10117_v54  ;;  %v14638_v34 = vld [vmem:[#allocation80_spill] sm:$0xff] }
 0x6c1   : > { %v10408_v36 = vsel %vm385_vm1, 0.0, %v14626_v29 }
 0x6c2   : > { %14637 = vst [vmem:[#allocation40_spill] sm:$0xff] %v10408_v36  ;;  %v10411_v46 = vadd.f32 %v1207_v2, %v10408_v36  ;;  %v10427_v2 = vpop.permute.xlu2 %1953 }
 0x6c3   : > { %14640 = vst [vmem:[#allocation52_spill] sm:$0xff] %v10427_v2 }
 0x6c5   : > { %1238 = vmax.xlane.f32.xlu1 %v10389_v38 }
 0x6c6   : > { %7600 = vmatmul.msk.f32.gmra.mxu0 %vm1086_vm2, %v14634_v50  ;;  %v369_v50 = vand.u32 15, %v351_v37  ;;  %v1210_v48 = vpop.f32.mrf.mxu2  ;;  %v1217_v37 = vpop.xlane.xlu1 %1216 }
 0x6c7   : > { %v1248_v39 = vsub.f32 %v10126_v56, %v1217_v37 }
 0x6c8   : > { %vm386_vm3 = vcmp.eq.s32.totalorder %v369_v50, %v10117_v54 }
 0x6c9   : > { %v10419_v10 = vsel %vm386_vm3, 0.0, %v14626_v29 }
 0x6ca   : > { %14639 = vst [vmem:[#allocation45_spill] sm:$0xff] %v10419_v10  ;;  %v10422_v9 = vadd.f32 %v1210_v48, %v10419_v10 }
 0x6cd   : > { %1240 = vmax.xlane.f32.xlu1 %v10400_v3 }
 0x6ce   : > { %7601 = vmatmul.msk.f32.gmra.mxu0 %vm1086_vm2, %v14636_v21  ;;  %v370_v21 = vand.u32 15, %v352_v26  ;;  %v1264_v26 = vmul.f32 1.442695, %v1248_v39 }
 0x6d0   : > { %vm387_vm4 = vcmp.eq.s32.totalorder %v370_v21, %v10117_v54 }
 0x6d1   : > { %v10430_v50 = vsel %vm387_vm4, 0.0, %v14626_v29 }
 0x6d2   : > { %14641 = vst [vmem:[#allocation55_spill] sm:$0xff] %v10430_v50 }
 0x6d5   : > { %1242 = vmax.xlane.f32.xlu1 %v10411_v46 }
 0x6d6   : > { %7602 = vmatmul.msk.f32.gmra.mxu0 %vm1086_vm2, %v14638_v34  ;;  %v1213_v34 = vpop.f32.mrf.mxu2 }
 0x6d7   : > { %v10434_v48 = vadd.f32 %v1213_v34, %v10430_v50 }
 0x6dd   : > { %1244 = vmax.xlane.f32.xlu1 %v10422_v9 }
 0x6e0   : > { %v1667_v13 = vpop.xlane.xlu0 %1666 }
 0x6e1   : > { %v1698_v31 = vsub.f32 %v10228_v27, %v1667_v13 }
 0x6e3   : > { %v1714_v41 = vmul.f32 1.442695, %v1698_v31 }
 0x6e5   : > { %8297 = vpow2.f32 %v1714_v41  ;;  %1246 = vmax.xlane.f32.xlu1 %v10434_v48 }
 0x6e6   : > { %8299 = vpow2.f32 %v1264_v26 }
 0x6e8   : > { %v1219_v54 = vpop.xlane.xlu0 %1218  ;;  %v1669_v56 = vpop.xlane.xlu2 %1668 }
 0x6e9   : > { %v1699_v21 = vsub.f32 %v10246_v6, %v1669_v56  ;;  %v1249_v13 = vsub.f32 %v10243_v63, %v1219_v54 }
 0x6eb   : > { %v10438_v37 = vpop.eup %8297  ;;  %v1716_v29 = vmul.f32 1.442695, %v1699_v21  ;;  %v1266_v39 = vmul.f32 1.442695, %v1249_v13 }
 0x6ec   : > { %v10440_v2 = vpop.eup %8299  ;;  %1746 = vadd.xlane.f32.xlu2 %v10438_v37 }
 0x6ed   : > { %1296 = vadd.xlane.f32.xlu1 %v10440_v2  ;;  %8301 = vpow2.f32 %v1716_v29 }
 0x6f0   : > { %v1671_v31 = vpop.xlane.xlu1 %1670  ;;  %v1221_v41 = vpop.xlane.xlu0 %1220 }
 0x6f1   : > { %v1700_v27 = vsub.f32 %v10261_v33, %v1671_v31  ;;  %v1250_v6 = vsub.f32 %v10258_v53, %v1221_v41 }
 0x6f3   : > { %v1718_v34 = vmul.f32 1.442695, %v1700_v27  ;;  %v10446_v26 = vpop.eup %8301  ;;  %v1268_v56 = vmul.f32 1.442695, %v1250_v6 }
 0x6f4   : > { %1748 = vadd.xlane.f32.xlu0 %v10446_v26 }
 0x6f5   : > { %8303 = vpow2.f32 %v1718_v34 }
 0x6f6   : > { %8305 = vpow2.f32 %v1266_v39 }
 0x6f7   : > { %8307 = vpow2.f32 %v1268_v56 }
 0x6f8   : > { %v1223_v21 = vpop.xlane.xlu1 %1222  ;;  %v1673_v33 = vpop.xlane.xlu0 %1672 }
 0x6f9   : > { %v1251_v24 = vsub.f32 %v10274_v47, %v1223_v21 }
 0x6fb   : > { %v10451_v63 = vpop.eup %8303  ;;  %v1270_v54 = vmul.f32 1.442695, %v1251_v24 }
 0x6fc   : > { %v10453_v29 = vpop.eup %8305  ;;  %1750 = vadd.xlane.f32.xlu1 %v10451_v63 }
 0x6fd   : > { %8309 = vpow2.f32 %v1270_v54  ;;  %1298 = vadd.xlane.f32.xlu0 %v10453_v29  ;;  %v10457_v13 = vpop.eup %8307 }
 0x700   : > { %v1675_v53 = vpop.xlane.xlu2 %1674  ;;  %v1227_v27 = vpop.xlane.xlu0 %1226 }
 0x701   : > { %v1253_v39 = vsub.f32 %v10292_v15, %v1227_v27 }
 0x703   : > { %v10459_v31 = vpop.eup %8309  ;;  %v1274_v56 = vmul.f32 1.442695, %v1253_v39 }
 0x704   : > { %1302 = vadd.xlane.f32.xlu2 %v10459_v31  ;;  %1300 = vadd.xlane.f32.xlu1 %v10457_v13 }
 0x708   : > { %v1225_v47 = vpop.xlane.xlu2 %1224  ;;  %v10465_v34 = vpop.xlane.xlu1 %1676 }
 0x709   : > { %v1252_v24 = vsub.f32 %v10306_v14, %v1225_v47 }
 0x70b   : > { %v1272_v41 = vmul.f32 1.442695, %v1252_v24 }
 0x70d   : > { %8311 = vpow2.f32 %v1272_v41 }
 0x70e   : > { %8313 = vpow2.f32 %v1274_v56 }
 0x710   : > { %v1229_v6 = vpop.xlane.xlu2 %1228 }
 0x711   : > { %v1254_v54 = vsub.f32 %v10321_v23, %v1229_v6 }
 0x713   : > { %v10467_v21 = vpop.eup %8311  ;;  %v1276_v14 = vmul.f32 1.442695, %v1254_v54 }
 0x714   : > { %1304 = vadd.xlane.f32.xlu2 %v10467_v21  ;;  %v10473_v47 = vpop.eup %8313 }
 0x715   : > { %8315 = vpow2.f32 %v1276_v14 }
 0x718   : > { %v10471_v18 = vpop.xlane.xlu1 %1680  ;;  %v1231_v52 = vpop.xlane.xlu2 %1230 }
 0x719   : > { %v1255_v15 = vsub.f32 %v10336_v40, %v1231_v52 }
 0x71b   : > { %v1278_v41 = vmul.f32 1.442695, %v1255_v15  ;;  %v10479_v39 = vpop.eup %8315 }
 0x71c   : > { %1306 = vadd.xlane.f32.xlu2 %v10473_v47 }
 0x71d   : > { %8317 = vpow2.f32 %v1278_v41 }
 0x720   : > { %v10477_v24 = vpop.xlane.xlu1 %1682  ;;  %v1233_v27 = vpop.xlane.xlu2 %1232 }
 0x721   : > { %14642 = vst [vmem:[#allocation44_spill] sm:$0xff] %v10477_v24  ;;  %v1256_v23 = vsub.f32 %v10351_v61, %v1233_v27  ;;  %v1701_v61 = vsub.f32 %v10277_v42, %v1673_v33 }
 0x723   : > { %v1280_v56 = vmul.f32 1.442695, %v1256_v23  ;;  %v10485_v28 = vpop.eup %8317  ;;  %v1720_v27 = vmul.f32 1.442695, %v1701_v61 }
 0x724   : > { %1308 = vadd.xlane.f32.xlu2 %v10479_v39 }
 0x725   : > { %8319 = vpow2.f32 %v1280_v56 }
 0x728   : > { %v10483_v6 = vpop.xlane.xlu1 %1684  ;;  %v1235_v54 = vpop.xlane.xlu2 %1234 }
 0x729   : > { %v1257_v52 = vsub.f32 %v10366_v12, %v1235_v54 }
 0x72b   : > { %v1282_v15 = vmul.f32 1.442695, %v1257_v52  ;;  %v10490_v8 = vpop.eup %8319 }
 0x72c   : > { %1310 = vadd.xlane.f32.xlu2 %v10485_v28 }
 0x730   : > { %v1237_v40 = vpop.xlane.xlu1 %1236 }
 0x731   : > { %v1258_v14 = vsub.f32 %v10378_v19, %v1237_v40  ;;  %v1702_v19 = vsub.f32 %v10295_v44, %v1675_v53 }
 0x733   : > { %v1284_v24 = vmul.f32 1.442695, %v1258_v14  ;;  %v1722_v42 = vmul.f32 1.442695, %v1702_v19  ;;  %v10508_v14 = vpop.f32.mrf.mxu0  ;;  %v1679_v19 = vpop.xlane.xlu0 %1678 }
 0x734   : > { %1312 = vadd.xlane.f32.xlu2 %v10490_v8 }
 0x735   : > { %8321 = vpow2.f32 %v1284_v24 }
 0x736   : > { %8323 = vpow2.f32 %v1282_v15 }
 0x737   : > { %8325 = vpow2.f32 %v1720_v27  ;;  %v1703_v27 = vsub.f32 %v10303_v58, %v10465_v34  ;;  %v1704_v58 = vsub.f32 %v10318_v57, %v1679_v19 }
 0x738   : > { %v1239_v41 = vpop.xlane.xlu1 %1238 }
 0x739   : > { %v1259_v23 = vsub.f32 %v10389_v38, %v1239_v41  ;;  %v1726_v34 = vmul.f32 1.442695, %v1704_v58 }
 0x73b   : > { %v10495_v56 = vpop.eup %8321  ;;  %v1286_v12 = vmul.f32 1.442695, %v1259_v23  ;;  %v1651_v41 = vpop.f32.mrf.mxu0  ;;  %v1724_v23 = vmul.f32 1.442695, %v1703_v27 }
 0x73c   : > { %v10497_v54 = vpop.eup %8323  ;;  %1316 = vadd.xlane.f32.xlu0 %v10495_v56 }
 0x73d   : > { %8327 = vpow2.f32 %v1286_v12  ;;  %1314 = vadd.xlane.f32.xlu2 %v10497_v54  ;;  %v10503_v52 = vpop.eup %8325 }
 0x73e   : > { %8329 = vpow2.f32 %v1722_v42 }
 0x740   : > { %v1241_v33 = vpop.xlane.xlu1 %1240 }
 0x741   : > { %v1260_v24 = vsub.f32 %v10400_v3, %v1241_v33 }
 0x743   : > { %v10505_v38 = vpop.eup %8327  ;;  %v1288_v40 = vmul.f32 1.442695, %v1260_v24 }
 0x744   : > { %1752 = vadd.xlane.f32.xlu0 %v10503_v52  ;;  %v10512_v15 = vpop.eup %8329 }
 0x745   : > { %8331 = vpow2.f32 %v1288_v40  ;;  %1318 = vadd.xlane.f32.xlu2 %v10505_v38 }
 0x748   : > { %v1243_v44 = vpop.xlane.xlu1 %1242 }
 0x749   : > { %v1261_v53 = vsub.f32 %v10411_v46, %v1243_v44  ;;  %v10522_v46 = vadd.f32 %v1651_v41, %v10386_v60  ;;  %v10529_v44 = vpop.f32.mrf.mxu0 }
 0x74b   : > { %v10514_v61 = vpop.eup %8331  ;;  %v1290_v3 = vmul.f32 1.442695, %v1261_v53 }
 0x74c   : > { %1320 = vadd.xlane.f32.xlu1 %v10514_v61  ;;  %1754 = vadd.xlane.f32.xlu0 %v10512_v15 }
 0x74d   : > { %8333 = vpow2.f32 %v1290_v3 }
 0x74e   : > { %8335 = vpow2.f32 %v1724_v23 }
 0x750   : > { %v1245_v12 = vpop.xlane.xlu1 %1244 }
 0x751   : > { %v1262_v42 = vsub.f32 %v10422_v9, %v1245_v12 }
 0x753   : > { %v10524_v33 = vpop.eup %8333  ;;  %v1292_v24 = vmul.f32 1.442695, %v1262_v42 }
 0x754   : > { %1688 = vmax.xlane.f32.xlu0 %v10522_v46  ;;  %1322 = vadd.xlane.f32.xlu2 %v10524_v33  ;;  %v10532_v53 = vpop.eup %8335 }
 0x755   : > { %8337 = vpow2.f32 %v1292_v24 }
 0x756   : > { %8339 = vpow2.f32 %v1726_v34 }
 0x758   : > { %v1247_v40 = vpop.xlane.xlu1 %1246 }
 0x759   : > { %v1263_v9 = vsub.f32 %v10434_v48, %v1247_v40  ;;  %v1657_v48 = vpop.f32.mrf.mxu0 }
 0x75a   : > { %v10547_v40 = vadd.f32 %v1657_v48, %v10408_v36 }
 0x75b   : > { %v10534_v3 = vpop.eup %8337  ;;  %v1294_v27 = vmul.f32 1.442695, %v1263_v9 }
 0x75c   : > { %1324 = vadd.xlane.f32.xlu1 %v10534_v3  ;;  %1756 = vadd.xlane.f32.xlu0 %v10532_v53  ;;  %v10538_v23 = vpop.eup %8339 }
 0x75d   : > { %8341 = vpow2.f32 %v1294_v27 }
 0x75f   : > { %v1747_v57 = vpop.xlane.xlu2 %1746 }
 0x760   : > { %8343 = vrcp.f32 %v1747_v57  ;;  %v1297_v41 = vpop.xlane.xlu1 %1296 }
 0x761   : > { %8345 = vrcp.f32 %v1297_v41  ;;  %v1660_v9 = vpop.f32.mrf.mxu0 }
 0x762   : > { %v10556_v41 = vadd.f32 %v1660_v9, %v10419_v10 }
 0x763   : > { %v10540_v12 = vpop.eup %8341 }
 0x764   : > { %1758 = vadd.xlane.f32.xlu0 %v10538_v23  ;;  %1326 = vadd.xlane.f32.xlu2 %v10540_v12 }
 0x766   : > { %v8344_v19 = vpop.eup %8343 }
 0x767   : > { %v8346_v42 = vpop.eup %8345  ;;  %v1794_v24 = vmul.f32 %v8344_v19, %v10438_v37  ;;  %v1749_v58 = vpop.xlane.xlu0 %1748 }
 0x768   : > { %v1344_v34 = vmul.f32 %v8346_v42, %v10440_v2  ;;  %8347 = vrcp.f32 %v1749_v58 }
 0x769   : > { %1874 = vmatmul.f32.vlgmr.msra.gmra.mxu1 %v1794_v24  ;;  %v1663_v19 = vpop.f32.mrf.mxu0 }
 0x76a   : > { %1424 = vmatmul.f32.vlgmr.msra.gmra.mxu3 %v1344_v34  ;;  %v10570_v58 = vadd.f32 %v1663_v19, %v10430_v50 }
 0x76b   : > { %7841 = vmatpush.xpose.msk.msra.mxu3 %vm1086_vm2, %v10133_v1  ;;  %v1707_v1 = vsub.f32 %v10363_v62, %v10483_v6 }
 0x76c   : > { %1692 = vmax.xlane.f32.xlu0 %v10547_v40 }
 0x76d   : > { %v1732_v24 = vmul.f32 1.442695, %v1707_v1 }
 0x76e   : > { %v8348_v27 = vpop.eup %8347 }
 0x76f   : > { %7842 = vmatpush.xpose.msk.msra.mxu3 %vm1086_vm2, %v14584_v43  ;;  %v1751_v37 = vpop.xlane.xlu1 %1750  ;;  %v1795_v2 = vmul.f32 %v8348_v27, %v10446_v26 }
 0x770   : > { %8349 = vrcp.f32 %v1751_v37  ;;  %v1299_v57 = vpop.xlane.xlu0 %1298 }
 0x771   : > { %8351 = vrcp.f32 %v1299_v57  ;;  %1877 = vmatmul.f32.gmra.mxu1 %v1795_v2  ;;  %v14646_v2 = vld [vmem:[#allocation53_spill] sm:$0xff] }
 0x773   : > { %7843 = vmatpush.xpose.msk.msra.mxu3 %vm1086_vm2, %v14586_v16 }
 0x774   : > { %1694 = vmax.xlane.f32.xlu0 %v10556_v41 }
 0x775   : > { %2403 = vrot.lane.b32.xlu1 %v9731_v59, %s9053_s9 }
 0x776   : > { %v8350_v43 = vpop.eup %8349 }
 0x777   : > { %v8352_v48 = vpop.eup %8351  ;;  %7844 = vmatpush.xpose.msk.msra.mxu3 %vm1086_vm2, %v14589_v20  ;;  %v1301_v26 = vpop.xlane.xlu1 %1300  ;;  %v1796_v42 = vmul.f32 %v8350_v43, %v10451_v63 }
 0x778   : > { %8353 = vrcp.f32 %v1301_v26  ;;  %v1345_v16 = vmul.f32 %v8352_v48, %v10453_v29  ;;  %v1303_v59 = vpop.xlane.xlu2 %1302 }
 0x779   : > { %1880 = vmatmul.f32.gmra.mxu1 %v1796_v42  ;;  %8355 = vpow2.f32 %v1732_v24 }
 0x77a   : > { %1427 = vmatmul.f32.gmra.mxu3 %v1345_v16  ;;  %8357 = vrcp.f32 %v1303_v59 }
 0x77b   : > { %7845 = vmatpush.xpose.msk.msra.mxu3 %vm1086_vm2, %v14591_v7  ;;  %v10584_v7 = vpop.f32.mrf.mxu0 }
 0x77c   : > { %1696 = vmax.xlane.f32.xlu0 %v10570_v58  ;;  %2401 = vrot.lane.b32.xlu2 %v9675_v35, %s9053_s9 }
 0x77e   : > { %v8354_v20 = vpop.eup %8353 }
 0x77f   : > { %7846 = vmatpush.xpose.msk.msra.mxu3 %vm1086_vm2, %v14594_v0  ;;  %v1346_v62 = vmul.f32 %v8354_v20, %v10457_v13  ;;  %v10580_v63 = vpop.eup %8355  ;;  %v14647_v20 = vld [vmem:[#allocation89_spill] sm:$0xff] }
 0x780   : > { %v8358_v29 = vpop.eup %8357 }
 0x781   : > { %v1347_v6 = vmul.f32 %v8358_v29, %v10459_v31 }
 0x782   : > { %1430 = vmatmul.f32.gmra.mxu3 %v1346_v62  ;;  %v10642_v62 = vadd.f32 %v10584_v7, %v14647_v20 }
 0x783   : > { %7847 = vmatpush.xpose.msk.msra.mxu3 %vm1086_vm2, %v14596_v25  ;;  %v10592_v0 = vpop.f32.mrf.mxu0 }
 0x784   : > { %1764 = vadd.xlane.f32.xlu0 %v10580_v63 }
 0x787   : > { %7848 = vmatpush.xpose.msk.msra.mxu3 %vm1086_vm2, %v9954_v32  ;;  %v1305_v35 = vpop.xlane.xlu2 %1304 }
 0x788   : > { %8359 = vrcp.f32 %v1305_v35 }
 0x78a   : > { %1433 = vmatmul.f32.gmra.mxu3 %v1347_v6 }
 0x78b   : > { %7849 = vmatpush.xpose.msk.msra.mxu3 %vm1086_vm2, %v14599_v4  ;;  %v10601_v31 = vpop.f32.mrf.mxu0 }
 0x78e   : > { %v8360_v13 = vpop.eup %8359 }
 0x78f   : > { %7850 = vmatpush.xpose.msk.msra.mxu3 %vm1086_vm2, %v9994_v11  ;;  %v1307_v25 = vpop.xlane.xlu2 %1306  ;;  %v1348_v34 = vmul.f32 %v8360_v13, %v10467_v21  ;;  %v10608_v11 = vadd.f32 %v10529_v44, %v10397_v49  ;;  %v14645_v44 = vld [vmem:[#allocation49_spill] sm:$0xff] }
 0x790   : > { %8361 = vrcp.f32 %v1307_v25 }
 0x792   : > { %1436 = vmatmul.f32.gmra.mxu3 %v1348_v34 }
 0x793   : > { %7851 = vmatpush.xpose.msk.msra.mxu3 %vm1086_vm2, %v10014_v22  ;;  %v1705_v22 = vsub.f32 %v10333_v55, %v10471_v18  ;;  %v2527_v27 = vpop.f32.mrf.mxu0  ;;  %v14643_v55 = vld [vmem:[#allocation41_spill] sm:$0xff] }
 0x794   : > { %v10623_v18 = vadd.f32 %v2527_v27, %v14643_v55 }
 0x795   : > { %v1728_v37 = vmul.f32 1.442695, %v1705_v22 }
 0x796   : > { %v8362_v32 = vpop.eup %8361 }
 0x797   : > { %7852 = vmatpush.xpose.msk.msra.mxu3 %vm1086_vm2, %v14605_v45  ;;  %v1309_v4 = vpop.xlane.xlu2 %1308  ;;  %v1349_v9 = vmul.f32 %v8362_v32, %v10473_v47 }
 0x798   : > { %8363 = vrcp.f32 %v1309_v4 }
 0x79a   : > { %1439 = vmatmul.f32.gmra.mxu3 %v1349_v9 }
 0x79b   : > { %7853 = vmatpush.xpose.msk.msra.mxu3 %vm1086_vm2, %v10028_v17  ;;  %v10618_v17 = vadd.f32 %v10508_v14, %v10375_v5 }
 0x79e   : > { %v8364_v21 = vpop.eup %8363 }
 0x79f   : > { %7854 = vmatpush.xpose.msk.msra.mxu3 %vm1086_vm2, %v10036_v30  ;;  %1690 = vmax.xlane.f32.xlu1 %v10608_v11  ;;  %v1311_v45 = vpop.xlane.xlu2 %1310  ;;  %v1350_v47 = vmul.f32 %v8364_v21, %v10479_v39  ;;  %v14644_v30 = vld [vmem:[#allocation44_spill] sm:$0xff] }
 0x7a0   : > { %8365 = vrcp.f32 %v1311_v45  ;;  %v1706_v39 = vsub.f32 %v14645_v44, %v14644_v30 }
 0x7a1   : > { %8367 = vpow2.f32 %v1728_v37 }
 0x7a2   : > { %1442 = vmatmul.f32.gmra.mxu3 %v1350_v47 }
 0x7a3   : > { %7855 = vmatpush.xpose.msk.msra.mxu3 %vm1086_vm2, %v14609_v51  ;;  %v1730_v51 = vmul.f32 1.442695, %v1706_v39 }
 0x7a5   : > { %1686 = vmax.xlane.f32.xlu2 %v10618_v17 }
 0x7a6   : > { %v8366_v57 = vpop.eup %8365 }
 0x7a7   : > { %7856 = vmatpush.xpose.msk.msra.mxu3 %vm1086_vm2, %v14646_v2  ;;  %2572 = vmax.xlane.f32.xlu1 %v10623_v18  ;;  %v1313_v14 = vpop.xlane.xlu2 %1312  ;;  %v1351_v1 = vmul.f32 %v8366_v57, %v10485_v28  ;;  %v10632_v43 = vpop.eup %8367 }
 0x7a8   : > { %8369 = vrcp.f32 %v1313_v14 }
 0x7a9   : > { %8371 = vpow2.f32 %v1730_v51 }
 0x7aa   : > { %1445 = vmatmul.f32.gmra.mxu3 %v1351_v1 }
 0x7ad   : > { %1760 = vadd.xlane.f32.xlu2 %v10632_v43 }
 0x7ae   : > { %v8370_v48 = vpop.eup %8369 }
 0x7af   : > { %v1317_v19 = vpop.xlane.xlu0 %1316  ;;  %v1352_v42 = vmul.f32 %v8370_v48, %v10490_v8  ;;  %v10636_v16 = vpop.eup %8371 }
 0x7b0   : > { %v1315_v26 = vpop.xlane.xlu2 %1314 }
 0x7b1   : > { %8373 = vrcp.f32 %v1315_v26 }
 0x7b2   : > { %1448 = vmatmul.f32.gmra.mxu3 %v1352_v42  ;;  %8375 = vrcp.f32 %v1317_v19 }
 0x7b5   : > { %1762 = vadd.xlane.f32.xlu2 %v10636_v16 }
 0x7b7   : > { %v8374_v28 = vpop.eup %8373  ;;  %v1753_v24 = vpop.xlane.xlu0 %1752 }
 0x7b8   : > { %8377 = vrcp.f32 %v1753_v24  ;;  %v1353_v59 = vmul.f32 %v8374_v28, %v10497_v54  ;;  %v1319_v29 = vpop.xlane.xlu2 %1318  ;;  %v8376_v35 = vpop.eup %8375  ;;  %v14648_v54 = vld [vmem:[#allocation36_spill] sm:$0xff]  ;;  %v14653_v28 = vld [vmem:[#allocation29_spill] sm:$0xff]  ;;  %v14654_v24 = vld [vmem:[#allocation86_spill] sm:$0xff] }
 0x7b9   : > { %8379 = vrcp.f32 %v1319_v29  ;;  %v1354_v25 = vmul.f32 %v8376_v35, %v10495_v56  ;;  %v10649_v34 = vadd.f32 %v10592_v0, %v14648_v54  ;;  %v14649_v56 = vld [vmem:[#allocation66_spill] sm:$0xff]  ;;  %v14656_v29 = vld [vmem:[#allocation87_spill] sm:$0xff] }
 0x7ba   : > { %1451 = vmatmul.f32.gmra.mxu3 %v1353_v59  ;;  %v10658_v21 = vadd.f32 %v10601_v31, %v14649_v56  ;;  %v14655_v59 = vld [vmem:[#allocation27_spill] sm:$0xff] }
 0x7bd   : > { %2566 = vmax.xlane.f32.xlu2 %v10642_v62 }
 0x7be   : > { %v8378_v8 = vpop.eup %8377 }
 0x7bf   : > { %v1755_v6 = vpop.xlane.xlu0 %1754  ;;  %v1797_v13 = vmul.f32 %v8378_v8, %v10503_v52  ;;  %v1321_v7 = vpop.xlane.xlu1 %1320  ;;  %v14657_v8 = vld [vmem:[#allocation28_spill] sm:$0xff] }
 0x7c0   : > { %8381 = vrcp.f32 %v1755_v6  ;;  %v8380_v32 = vpop.eup %8379  ;;  %v14658_v6 = vld [vmem:[#allocation77_spill] sm:$0xff] }
 0x7c1   : > { %1883 = vmatmul.f32.gmra.mxu1 %v1797_v13  ;;  %8383 = vrcp.f32 %v1321_v7  ;;  %v1355_v22 = vmul.f32 %v8380_v32, %v10505_v38  ;;  %v14659_v13 = vld [vmem:[#allocation42_spill] sm:$0xff]  ;;  %v14660_v7 = vld [vmem:[#allocation60_spill] sm:$0xff] }
 0x7c2   : > { %1454 = vmatmul.f32.gmra.mxu3 %v1354_v25 }
 0x7c5   : > { %2568 = vmax.xlane.f32.xlu2 %v10649_v34 }
 0x7c6   : > { %v8382_v4 = vpop.eup %8381 }
 0x7c7   : > { %v10652_v9 = vpop.xlane.xlu0 %1688  ;;  %v1798_v52 = vmul.f32 %v8382_v4, %v10512_v15  ;;  %v1323_v0 = vpop.xlane.xlu2 %1322 }
 0x7c8   : > { %v8384_v45 = vpop.eup %8383  ;;  %8385 = vrcp.f32 %v1323_v0 }
 0x7c9   : > { %1886 = vmatmul.f32.gmra.mxu1 %v1798_v52  ;;  %v1356_v27 = vmul.f32 %v8384_v45, %v10514_v61  ;;  %v14661_v45 = vld [vmem:[#allocation88_spill] sm:$0xff] }
 0x7ca   : > { %1457 = vmatmul.f32.gmra.mxu3 %v1355_v22 }
 0x7cd   : > { %2570 = vmax.xlane.f32.xlu2 %v10658_v21 }
 0x7ce   : > { %v8386_v38 = vpop.eup %8385 }
 0x7cf   : > { %v1757_v47 = vpop.xlane.xlu0 %1756  ;;  %v1325_v37 = vpop.xlane.xlu1 %1324  ;;  %v1357_v31 = vmul.f32 %v8386_v38, %v10524_v33 }
 0x7d0   : > { %8387 = vrcp.f32 %v1757_v47 }
 0x7d1   : > { %8389 = vrcp.f32 %v1325_v37 }
 0x7d2   : > { %1460 = vmatmul.f32.gmra.mxu3 %v1356_v27  ;;  %v1709_v27 = vsub.f32 %v10522_v46, %v10652_v9 }
 0x7d6   : > { %v8388_v30 = vpop.eup %8387 }
 0x7d7   : > { %v1759_v15 = vpop.xlane.xlu0 %1758  ;;  %v1327_v44 = vpop.xlane.xlu2 %1326  ;;  %v1799_v39 = vmul.f32 %v8388_v30, %v10532_v53  ;;  %v14650_v53 = vld [vmem:[#allocation58_spill] sm:$0xff]  ;;  %v1736_v30 = vmul.f32 1.442695, %v1709_v27 }
 0x7d8   : > { %8391 = vrcp.f32 %v1759_v15  ;;  %v8390_v57 = vpop.eup %8389 }
 0x7d9   : > { %1889 = vmatmul.f32.gmra.mxu1 %v1799_v39  ;;  %8393 = vrcp.f32 %v1327_v44  ;;  %v1358_v48 = vmul.f32 %v8390_v57, %v10534_v3  ;;  %v14652_v3 = vld [vmem:[#allocation64_spill] sm:$0xff] }
 0x7da   : > { %1463 = vmatmul.f32.gmra.mxu3 %v1357_v31  ;;  %v14662_v31 = vld [vmem:[#allocation81_spill] sm:$0xff] }
 0x7de   : > { %v8392_v2 = vpop.eup %8391 }
 0x7df   : > { %v1693_v14 = vpop.xlane.xlu0 %1692  ;;  %v2402_v61 = vpop.permute.xlu2 %2401  ;;  %v1800_v1 = vmul.f32 %v8392_v2, %v10538_v23  ;;  %v14651_v23 = vld [vmem:[#allocation34_spill] sm:$0xff] }
 0x7e0   : > { %v1711_v51 = vsub.f32 %v10547_v40, %v1693_v14  ;;  %7603 = vmatmul.msk.f32.gmra.mxu0 %vm1086_vm2, %v2402_v61  ;;  %v8394_v33 = vpop.eup %8393 }
 0x7e1   : > { %1892 = vmatmul.f32.gmra.mxu1 %v1800_v1  ;;  %v1359_v26 = vmul.f32 %v8394_v33, %v10540_v12 }
 0x7e2   : > { %v1740_v19 = vmul.f32 1.442695, %v1711_v51  ;;  %1466 = vmatmul.f32.gmra.mxu3 %v1358_v48  ;;  %v14663_v51 = vld [vmem:[#allocation82_spill] sm:$0xff] }
 0x7e4   : > { %8395 = vpow2.f32 %v1740_v19 }
 0x7e5   : > { %8014 = vrot.lane.b32.xlu2 %v14650_v53, %s9056_s11 }
 0x7e7   : > { %v1695_v4 = vpop.xlane.xlu0 %1694  ;;  %v10707_v0 = vpop.permute.xlu1 %2403 }
 0x7e8   : > { %v1712_v9 = vsub.f32 %v10556_v41, %v1695_v4  ;;  %v14665_v4 = vld [vmem:[#allocation67_spill] sm:$0xff] }
 0x7ea   : > { %v10671_v42 = vpop.eup %8395  ;;  %1469 = vmatmul.f32.gmra.mxu3 %v1359_v26  ;;  %v1742_v1 = vmul.f32 1.442695, %v1712_v9  ;;  %v14664_v26 = vld [vmem:[#allocation83_spill] sm:$0xff] }
 0x7eb   : > { %1772 = vadd.xlane.f32.xlu1 %v10671_v42 }
 0x7ed   : > { %8029 = vrot.lane.b32.xlu2 %v14651_v23, %s9056_s11  ;;  %v10678_v40 = vpop.f32.mrf.mxu3 }
 0x7ef   : > { %v10715_v15 = vpop.xlane.xlu0 %1696 }
 0x7f2   : > { %7557 = vmatmul.msk.f32.vlgmr.msrb.gmra.mxu3 %vm1086_vm2, %v14652_v3 }
 0x7f5   : > { %8039 = vrot.lane.b32.xlu2 %v14653_v28, %s9056_s11 }
 0x7f7   : > { %v1765_v19 = vpop.xlane.xlu0 %1764 }
 0x7fa   : > { %7558 = vmatmul.msk.f32.gmra.mxu3 %vm1086_vm2, %v14654_v24 }
 0x7fd   : > { %v10684_v12 = vpop.f32.mrf.mxu3  ;;  %8064 = vrot.lane.b32.xlu2 %v14655_v59, %s9057_s13 }
 0x802   : > { %7559 = vmatmul.msk.f32.gmra.mxu3 %vm1086_vm2, %v14656_v29 }
 0x804   : > { %8024 = vrot.lane.b32.xlu1 %v14650_v53, %s9057_s13 }
 0x805   : > { %v10692_v35 = vpop.f32.mrf.mxu3  ;;  %8074 = vrot.lane.b32.xlu2 %v14657_v8, %s9057_s13 }
 0x80a   : > { %7560 = vmatmul.msk.f32.gmra.mxu3 %vm1086_vm2, %v14658_v6 }
 0x80c   : > { %8034 = vrot.lane.b32.xlu1 %v14659_v13, %s9057_s13 }
 0x80d   : > { %v10700_v25 = vpop.f32.mrf.mxu3 }
 0x812   : > { %7561 = vmatmul.msk.f32.gmra.mxu3 %vm1086_vm2, %v14660_v7  ;;  %v1691_v44 = vpop.xlane.xlu1 %1690 }
 0x813   : > { %v1710_v39 = vsub.f32 %v10608_v11, %v1691_v44 }
 0x815   : > { %v10704_v32 = vpop.f32.mrf.mxu3  ;;  %v1738_v61 = vmul.f32 1.442695, %v1710_v39  ;;  %v14668_v39 = vld [vmem:[#allocation71_spill] sm:$0xff] }
 0x818   : > { %v1687_v22 = vpop.xlane.xlu2 %1686 }
 0x819   : > { %v1708_v52 = vsub.f32 %v10618_v17, %v1687_v22 }
 0x81a   : > { %7562 = vmatmul.msk.f32.gmra.mxu3 %vm1086_vm2, %v14661_v45 }
 0x81b   : > { %v1734_v47 = vmul.f32 1.442695, %v1708_v52 }
 0x81d   : > { %8397 = vpow2.f32 %v1734_v47  ;;  %v10713_v37 = vpop.f32.mrf.mxu3  ;;  %v14666_v47 = vld [vmem:[#allocation70_spill] sm:$0xff] }
 0x820   : > { %v1761_v38 = vpop.xlane.xlu2 %1760 }
 0x821   : > { %8399 = vrcp.f32 %v1761_v38 }
 0x822   : > { %7563 = vmatmul.msk.f32.gmra.mxu3 %vm1086_vm2, %v14662_v31  ;;  %8401 = vpow2.f32 %v1736_v30  ;;  %v14667_v30 = vld [vmem:[#allocation84_spill] sm:$0xff] }
 0x823   : > { %v10719_v17 = vpop.eup %8397 }
 0x824   : > { %1766 = vadd.xlane.f32.xlu0 %v10719_v17 }
 0x825   : > { %v10723_v46 = vpop.f32.mrf.mxu3 }
 0x827   : > { %v8400_v57 = vpop.eup %8399 }
 0x828   : > { %v1763_v2 = vpop.xlane.xlu2 %1762  ;;  %v1801_v14 = vmul.f32 %v8400_v57, %v10632_v43  ;;  %v10729_v48 = vpop.eup %8401 }
 0x829   : > { %8403 = vrcp.f32 %v1763_v2  ;;  %v2530_v57 = vpop.f32.mrf.mxu0 }
 0x82a   : > { %7564 = vmatmul.msk.f32.gmra.mxu3 %vm1086_vm2, %v14663_v51  ;;  %1895 = vmatmul.f32.gmra.mxu1 %v1801_v14  ;;  %8405 = vpow2.f32 %v1738_v61  ;;  %v14670_v14 = vld [vmem:[#allocation78_spill] sm:$0xff]  ;;  %v14671_v51 = vld [vmem:[#allocation52_spill] sm:$0xff] }
 0x82b   : > { %8407 = vpow2.f32 %v1742_v1 }
 0x82c   : > { %1768 = vadd.xlane.f32.xlu0 %v10729_v48  ;;  %8409 = vrcp.f32 %v1765_v19 }
 0x82d   : > { %v10732_v11 = vpop.f32.mrf.mxu3 }
 0x82f   : > { %v8404_v41 = vpop.eup %8403 }
 0x830   : > { %v2567_v33 = vpop.xlane.xlu2 %2566  ;;  %v1802_v43 = vmul.f32 %v8404_v41, %v10636_v16  ;;  %v10738_v3 = vpop.eup %8405  ;;  %v14673_v41 = vld [vmem:[#allocation32_spill] sm:$0xff] }
 0x831   : > { %v2598_v53 = vsub.f32 %v10642_v62, %v2567_v33  ;;  %v10740_v29 = vpop.eup %8407  ;;  %v2533_v1 = vpop.f32.mrf.mxu0  ;;  %v10791_v33 = vadd.f32 %v2530_v57, %v14673_v41 }
 0x832   : > { %7565 = vmatmul.msk.f32.gmra.mxu3 %vm1086_vm2, %v14664_v26  ;;  %1898 = vmatmul.f32.gmra.mxu1 %v1802_v43  ;;  %v8410_v6 = vpop.eup %8409 }
 0x833   : > { %v2614_v24 = vmul.f32 1.442695, %v2598_v53  ;;  %v1803_v62 = vmul.f32 %v8410_v6, %v10580_v63  ;;  %v1713_v53 = vsub.f32 %v10570_v58, %v10715_v15  ;;  %v14674_v15 = vld [vmem:[#allocation74_spill] sm:$0xff] }
 0x834   : > { %1770 = vadd.xlane.f32.xlu0 %v10738_v3 }
 0x835   : > { %8411 = vpow2.f32 %v2614_v24  ;;  %v10743_v7 = vpop.f32.mrf.mxu3  ;;  %v1744_v24 = vmul.f32 1.442695, %v1713_v53  ;;  %v14675_v53 = vld [vmem:[#allocation25_spill] sm:$0xff] }
 0x836   : > { %1774 = vadd.xlane.f32.xlu1 %v10740_v29 }
 0x837   : > { %8413 = vpow2.f32 %v1744_v24 }
 0x838   : > { %v10746_v16 = vpop.xlane.xlu2 %2568 }
 0x839   : > { %v10793_v43 = vpop.f32.mrf.mxu0 }
 0x83a   : > { %7566 = vmatmul.msk.f32.gmra.mxu3 %vm1086_vm2, %v14665_v4  ;;  %1901 = vmatmul.f32.gmra.mxu1 %v1803_v62 }
 0x83b   : > { %v10751_v22 = vpop.eup %8411 }
 0x83c   : > { %2646 = vadd.xlane.f32.xlu2 %v10751_v22 }
 0x83d   : > { %v10754_v52 = vpop.f32.mrf.mxu3 }
 0x840   : > { %v10756_v45 = vpop.xlane.xlu2 %2570 }
 0x842   : > { %7567 = vmatmul.msk.f32.gmra.mxu3 %vm1086_vm2, %v14666_v47 }
 0x845   : > { %v10760_v27 = vpop.f32.mrf.mxu3 }
 0x848   : > { %8019 = vrot.lane.b32.xlu0 %v14659_v13, %s9056_s11  ;;  %v8015_v63 = vpop.permute.xlu2 %8014  ;;  %v14669_v13 = vld [vmem:[#allocation85_spill] sm:$0xff] }
 0x849   : > { %v8016_v38 = vunpack.i.l.bf16 %v8015_v63  ;;  %v8017_v44 = vunpack.i.h.bf16 %v8015_v63  ;;  %v2539_v63 = vpop.f32.mrf.mxu0 }
 0x84a   : > { %7568 = vmatmul.msk.f32.gmra.mxu3 %vm1086_vm2, %v14667_v30 }
 0x84b   : > { %2308 = vmatpush.msrb.mxu2 %v8016_v38  ;;  %v10805_v38 = vadd.f32 %v2539_v63, %v14674_v15 }
 0x84d   : > { %v10766_v31 = vpop.f32.mrf.mxu3  ;;  %2309 = vmatpush.msrb.mxu2 %v8017_v44  ;;  %v10807_v44 = vpop.eup %8413 }
 0x84f   : > { %8049 = vrot.lane.b32.xlu1 %v14655_v59, %s9056_s11  ;;  %v10784_v59 = vpop.xlane.xlu1 %2572 }
 0x852   : > { %7569 = vmatmul.msk.f32.gmra.mxu3 %vm1086_vm2, %v14668_v39 }
 0x855   : > { %v10772_v9 = vpop.f32.mrf.mxu3 }
 0x857   : > { %8054 = vrot.lane.b32.xlu1 %v14653_v28, %s9057_s13 }
 0x85a   : > { %7570 = vmatmul.msk.f32.gmra.mxu3 %vm1086_vm2, %v14669_v13 }
 0x85d   : > { %v10778_v2 = vpop.f32.mrf.mxu3 }
 0x85e   : > { %v1773_v28 = vpop.xlane.xlu1 %1772 }
 0x862   : > { %7571 = vmatmul.msk.f32.gmra.mxu3 %vm1086_vm2, %v14670_v14 }
 0x865   : > { %v10782_v61 = vpop.f32.mrf.mxu3 }
 0x86a   : > { %7572 = vmatmul.msk.f32.gmra.mxu3 %vm1086_vm2, %v14671_v51 }
 0x86d   : > { %v10788_v19 = vpop.f32.mrf.mxu3 }
 0x86e   : > { %14672 = vst [vmem:[#allocation57_spill] sm:$0xff] %v10788_v19 }
 0x872   : > { %7604 = vmatmul.msk.f32.vlgmr.msra.gmra.mxu3 %vm1086_vm2, %v10707_v0  ;;  %2574 = vmax.xlane.f32.xlu0 %v10791_v33 }
 0x875   : > { %v2068_v26 = vpop.f32.mrf.mxu3 }
 0x876   : > { %v10801_v6 = vadd.f32 %v2068_v26, %v14647_v20  ;;  %v8025_v62 = vpop.permute.xlu1 %8024 }
 0x877   : > { %v8026_v4 = vunpack.i.l.bf16 %v8025_v62  ;;  %v8027_v47 = vunpack.i.h.bf16 %v8025_v62  ;;  %v14676_v62 = vld [vmem:[#allocation47_spill] sm:$0xff] }
 0x878   : > { %2116 = vmax.xlane.f32.xlu2 %v10801_v6  ;;  %v10828_v19 = vadd.f32 %v2533_v1, %v14676_v62 }
 0x879   : > { %2758 = vmatpush.msrb.mxu1 %v8026_v4 }
 0x87b   : > { %2759 = vmatpush.msrb.mxu1 %v8027_v47 }
 0x87d   : > { %v2071_v58 = vpop.f32.mrf.mxu3 }
 0x87e   : > { %v8035_v0 = vpop.permute.xlu1 %8034 }
 0x87f   : > { %v8036_v30 = vunpack.i.l.bf16 %v8035_v0  ;;  %v8037_v39 = vunpack.i.h.bf16 %v8035_v0 }
 0x880   : > { %2580 = vmax.xlane.f32.xlu2 %v10805_v38 }
 0x881   : > { %1776 = vadd.xlane.f32.xlu1 %v10807_v44  ;;  %2760 = vmatpush.msrb.mxu1 %v8036_v30  ;;  %v14677_v30 = vld [vmem:[#allocation33_spill] sm:$0xff] }
 0x883   : > { %2761 = vmatpush.msrb.mxu1 %v8037_v39 }
 0x885   : > { %v2074_v13 = vpop.f32.mrf.mxu3 }
 0x886   : > { %8044 = vrot.lane.b32.xlu0 %v14651_v23, %s9057_s13 }
 0x88d   : > { %v2077_v57 = vpop.f32.mrf.mxu3 }
 0x895   : > { %v10813_v14 = vpop.f32.mrf.mxu3 }
 0x897   : > { %v1767_v51 = vpop.xlane.xlu0 %1766 }
 0x898   : > { %8415 = vrcp.f32 %v1767_v51 }
 0x89a   : > { %8079 = vrot.lane.b32.xlu1 %v14675_v53, %s9056_s11 }
 0x89d   : > { %v2083_v26 = vpop.f32.mrf.mxu3 }
 0x89e   : > { %v8416_v24 = vpop.eup %8415  ;;  %v10818_v4 = vadd.f32 %v2083_v26, %v14676_v62 }
 0x89f   : > { %v1769_v47 = vpop.xlane.xlu0 %1768  ;;  %v1804_v63 = vmul.f32 %v8416_v24, %v10719_v17 }
 0x8a0   : > { %8417 = vrcp.f32 %v1769_v47  ;;  %2126 = vmax.xlane.f32.xlu2 %v10818_v4 }
 0x8a1   : > { %1904 = vmatmul.f32.gmra.mxu1 %v1804_v63  ;;  %v8030_v63 = vpop.permute.xlu2 %8029 }
 0x8a5   : > { %v2086_v23 = vpop.f32.mrf.mxu3 }
 0x8a6   : > { %v8418_v0 = vpop.eup %8417  ;;  %v10823_v39 = vadd.f32 %v2086_v23, %v14677_v30 }
 0x8a7   : > { %v1771_v51 = vpop.xlane.xlu0 %1770  ;;  %v1805_v20 = vmul.f32 %v8418_v0, %v10729_v48 }
 0x8a8   : > { %8419 = vrcp.f32 %v1771_v51  ;;  %2128 = vmax.xlane.f32.xlu2 %v10823_v39 }
 0x8a9   : > { %1907 = vmatmul.f32.gmra.mxu1 %v1805_v20  ;;  %8421 = vrcp.f32 %v1773_v28  ;;  %v1775_v24 = vpop.xlane.xlu1 %1774  ;;  %v8031_v28 = vunpack.i.l.bf16 %v8030_v63 }
 0x8aa   : > { %8423 = vrcp.f32 %v1775_v24 }
 0x8ae   : > { %v8420_v26 = vpop.eup %8419 }
 0x8af   : > { %v1806_v17 = vmul.f32 %v8420_v26, %v10738_v3  ;;  %v8422_v47 = vpop.eup %8421  ;;  %v8040_v3 = vpop.permute.xlu2 %8039  ;;  %v8032_v26 = vunpack.i.h.bf16 %v8030_v63 }
 0x8b0   : > { %2576 = vmax.xlane.f32.xlu0 %v10828_v19  ;;  %v1807_v48 = vmul.f32 %v8422_v47, %v10671_v42  ;;  %v8424_v20 = vpop.eup %8423  ;;  %v8041_v24 = vunpack.i.l.bf16 %v8040_v3  ;;  %v8042_v47 = vunpack.i.h.bf16 %v8040_v3 }
 0x8b1   : > { %1910 = vmatmul.f32.gmra.mxu1 %v1806_v17  ;;  %v1808_v1 = vmul.f32 %v8424_v20, %v10740_v29  ;;  %v10835_v17 = vadd.f32 %v2071_v58, %v14648_v54  ;;  %v14678_v58 = vld [vmem:[#allocation26_spill] sm:$0xff]  ;;  %v2599_v20 = vsub.f32 %v10649_v34, %v10746_v16 }
 0x8b7   : > { %v8065_v63 = vpop.permute.xlu2 %8064 }
 0x8b9   : > { %1913 = vmatmul.f32.gmra.mxu1 %v1807_v48 }
 0x8ba   : > { %v8020_v23 = vpop.permute.xlu0 %8019 }
 0x8bb   : > { %v8021_v0 = vunpack.i.l.bf16 %v8020_v23  ;;  %v8022_v51 = vunpack.i.h.bf16 %v8020_v23  ;;  %v10841_v23 = vadd.f32 %v2074_v13, %v14649_v56 }
 0x8bd   : > { %2310 = vmatpush.msrb.mxu2 %v8021_v0  ;;  %v2089_v0 = vpop.f32.mrf.mxu3 }
 0x8be   : > { %v10853_v13 = vadd.f32 %v2089_v0, %v14674_v15  ;;  %v2542_v0 = vpop.f32.mrf.mxu0 }
 0x8bf   : > { %2311 = vmatpush.msrb.mxu2 %v8022_v51  ;;  %v2616_v51 = vmul.f32 1.442695, %v2599_v20 }
 0x8c1   : > { %1916 = vmatmul.f32.gmra.mxu1 %v1808_v1  ;;  %2312 = vmatpush.msrb.mxu2 %v8031_v28  ;;  %v8050_v42 = vpop.permute.xlu1 %8049  ;;  %v8075_v1 = vpop.permute.xlu2 %8074  ;;  %8425 = vpow2.f32 %v2616_v51 }
 0x8c2   : > { %v8051_v29 = vunpack.i.l.bf16 %v8050_v42  ;;  %v8052_v48 = vunpack.i.h.bf16 %v8050_v42 }
 0x8c3   : > { %2313 = vmatpush.msrb.mxu2 %v8032_v26  ;;  %v2600_v26 = vsub.f32 %v10658_v21, %v10756_v45  ;;  %v10874_v21 = vadd.f32 %v10793_v43, %v14677_v30 }
 0x8c4   : > { %8059 = vrot.lane.b32.xlu0 %v14657_v8, %s9056_s11  ;;  %2118 = vmax.xlane.f32.xlu1 %v10835_v17  ;;  %v10847_v8 = vadd.f32 %v2077_v57, %v14643_v55 }
 0x8c5   : > { %2314 = vmatpush.msrb.mxu2 %v8041_v24  ;;  %v10856_v28 = vpop.f32.mrf.mxu3  ;;  %v2618_v16 = vmul.f32 1.442695, %v2600_v26  ;;  %v14679_v24 = vld [vmem:[#allocation30_spill] sm:$0xff]  ;;  %v2601_v26 = vsub.f32 %v10623_v18, %v10784_v59  ;;  %v10888_v18 = vadd.f32 %v10813_v14, %v14673_v41  ;;  %v8076_v14 = vunpack.i.l.bf16 %v8075_v1 }
 0x8c7   : > { %2315 = vmatpush.msrb.mxu2 %v8042_v47  ;;  %v10858_v3 = vpop.eup %8425  ;;  %8427 = vpow2.f32 %v2618_v16 }
 0x8c9   : > { %2316 = vmatpush.msrb.mxu2 %v8051_v29  ;;  %v10860_v57 = vpop.xlane.xlu2 %2646  ;;  %v8055_v29 = vpop.permute.xlu1 %8054 }
 0x8cb   : > { %2317 = vmatpush.msrb.mxu2 %v8052_v48 }
 0x8cc   : > { %8069 = vrot.lane.b32.xlu0 %v14678_v58, %s9056_s11  ;;  %2120 = vmax.xlane.f32.xlu1 %v10841_v23 }
 0x8cd   : > { %v2095_v34 = vpop.f32.mrf.mxu3  ;;  %v10870_v15 = vpop.eup %8427 }
 0x8ce   : > { %v10866_v42 = vadd.f32 %v2095_v34, %v14679_v24  ;;  %v2545_v34 = vpop.f32.mrf.mxu0 }
 0x8cf   : > { %v10884_v43 = vadd.f32 %v2545_v34, %v14679_v24  ;;  %v8066_v34 = vunpack.i.l.bf16 %v8065_v63  ;;  %v8077_v24 = vunpack.i.h.bf16 %v8075_v1 }
 0x8d4   : > { %2122 = vmax.xlane.f32.xlu1 %v10847_v8 }
 0x8dc   : > { %2130 = vmax.xlane.f32.xlu1 %v10853_v13 }
 0x8e4   : > { %2648 = vadd.xlane.f32.xlu1 %v10858_v3 }
 0x8e5   : > { %v2575_v51 = vpop.xlane.xlu0 %2574 }
 0x8eb   : > { %v2117_v47 = vpop.xlane.xlu2 %2116 }
 0x8ec   : > { %v2148_v48 = vsub.f32 %v10801_v6, %v2117_v47  ;;  %2134 = vmax.xlane.f32.xlu1 %v10866_v42  ;;  %v2620_v47 = vmul.f32 1.442695, %v2601_v26  ;;  %v8057_v26 = vunpack.i.h.bf16 %v8055_v29 }
 0x8ee   : > { %v2164_v20 = vmul.f32 1.442695, %v2148_v48 }
 0x8f0   : > { %8429 = vpow2.f32 %v2164_v20 }
 0x8f4   : > { %v1777_v45 = vpop.xlane.xlu1 %1776  ;;  %2650 = vadd.xlane.f32.xlu1 %v10870_v15 }
 0x8f5   : > { %8431 = vrcp.f32 %v1777_v45  ;;  %v8056_v45 = vunpack.i.l.bf16 %v8055_v29 }
 0x8f6   : > { %v10879_v6 = vpop.eup %8429  ;;  %2578 = vmax.xlane.f32.xlu0 %v10874_v21  ;;  %8433 = vpow2.f32 %v2620_v47  ;;  %v2602_v47 = vsub.f32 %v10791_v33, %v2575_v51 }
 0x8f7   : > { %2196 = vadd.xlane.f32.xlu2 %v10879_v6 }
 0x8f8   : > { %v8045_v16 = vpop.permute.xlu0 %8044 }
 0x8f9   : > { %v8046_v48 = vunpack.i.l.bf16 %v8045_v16  ;;  %v8047_v30 = vunpack.i.h.bf16 %v8045_v16 }
 0x8fb   : > { %v8432_v20 = vpop.eup %8431  ;;  %2762 = vmatpush.msrb.mxu1 %v8046_v48  ;;  %v8067_v48 = vunpack.i.h.bf16 %v8065_v63  ;;  %v2622_v63 = vmul.f32 1.442695, %v2602_v47 }
 0x8fc   : > { %2584 = vmax.xlane.f32.xlu1 %v10884_v43  ;;  %v1809_v59 = vmul.f32 %v8432_v20, %v10807_v44  ;;  %v10893_v16 = vpop.eup %8433  ;;  %v14680_v20 = vld [vmem:[#allocation31_spill] sm:$0xff] }
 0x8fd   : > { %2763 = vmatpush.msrb.mxu1 %v8047_v30  ;;  %v2098_v30 = vpop.f32.mrf.mxu3  ;;  %8435 = vpow2.f32 %v2622_v63 }
 0x8fe   : > { %1919 = vmatmul.f32.gmra.mxu1 %v1809_v59  ;;  %2124 = vmax.xlane.f32.xlu0 %v10888_v18  ;;  %v10902_v59 = vadd.f32 %v2542_v0, %v14680_v20 }
 0x8ff   : > { %2764 = vmatpush.msrb.mxu1 %v8056_v45 }
 0x901   : > { %2765 = vmatpush.msrb.mxu1 %v8057_v26  ;;  %v2548_v26 = vpop.f32.mrf.mxu0 }
 0x903   : > { %2766 = vmatpush.msrb.mxu1 %v8066_v34  ;;  %v10911_v51 = vpop.eup %8435 }
 0x904   : > { %2652 = vadd.xlane.f32.xlu1 %v10893_v16 }
 0x905   : > { %2767 = vmatpush.msrb.mxu1 %v8067_v48  ;;  %v10908_v48 = vadd.f32 %v10856_v28, %v14680_v20  ;;  %v10918_v28 = vadd.f32 %v2098_v30, %v10375_v5  ;;  %v2581_v30 = vpop.xlane.xlu2 %2580 }
 0x907   : > { %2768 = vmatpush.msrb.mxu1 %v8076_v14 }
 0x909   : > { %2769 = vmatpush.msrb.mxu1 %v8077_v24  ;;  %v2551_v63 = vpop.f32.mrf.mxu0 }
 0x90a   : > { %v10944_v62 = vadd.f32 %v2551_v63, %v10386_v60 }
 0x90c   : > { %v8080_v29 = vpop.permute.xlu1 %8079 }
 0x90f   : > { %8089 = vrot.lane.b32.xlu2 %v14675_v53, %s9057_s13  ;;  %v2101_v53 = vpop.f32.mrf.mxu3 }
 0x912   : > { %8084 = vrot.lane.b32.xlu0 %v14678_v58, %s9057_s13 }
 0x923   : > { %v2577_v44 = vpop.xlane.xlu0 %2576 }
 0x936   : > { %v8060_v45 = vpop.permute.xlu0 %8059 }
 0x937   : > { %v2119_v1 = vpop.xlane.xlu1 %2118  ;;  %v8061_v34 = vunpack.i.l.bf16 %v8060_v45  ;;  %v8062_v58 = vunpack.i.h.bf16 %v8060_v45 }
 0x938   : > { %v2149_v24 = vsub.f32 %v10835_v17, %v2119_v1  ;;  %2582 = vmax.xlane.f32.xlu2 %v10902_v59 }
 0x939   : > { %2318 = vmatpush.msrb.mxu2 %v8061_v34 }
 0x93a   : > { %v2166_v33 = vmul.f32 1.442695, %v2149_v24  ;;  %v2104_v24 = vpop.f32.mrf.mxu3 }
 0x93b   : > { %2319 = vmatpush.msrb.mxu2 %v8062_v58  ;;  %v8081_v58 = vunpack.i.l.bf16 %v8080_v29 }
 0x93c   : > { %8437 = vpow2.f32 %v2166_v33  ;;  %2132 = vmax.xlane.f32.xlu0 %v10908_v48  ;;  %v10923_v33 = vadd.f32 %v2104_v24, %v10397_v49 }
 0x93e   : > { %v8070_v0 = vpop.permute.xlu0 %8069 }
 0x93f   : > { %v2121_v14 = vpop.xlane.xlu1 %2120  ;;  %v8071_v17 = vunpack.i.l.bf16 %v8070_v0  ;;  %v8072_v45 = vunpack.i.h.bf16 %v8070_v0 }
 0x940   : > { %v2150_v47 = vsub.f32 %v10841_v23, %v2121_v14  ;;  %2654 = vadd.xlane.f32.xlu2 %v10911_v51  ;;  %v8082_v23 = vunpack.i.h.bf16 %v8080_v29 }
 0x941   : > { %2320 = vmatpush.msrb.mxu2 %v8071_v17  ;;  %v10929_v17 = vadd.f32 %v2101_v53, %v10386_v60  ;;  %v10941_v53 = vadd.f32 %v2548_v26, %v10375_v5 }
 0x942   : > { %v10915_v1 = vpop.eup %8437  ;;  %v2168_v34 = vmul.f32 1.442695, %v2150_v47  ;;  %v2554_v47 = vpop.f32.mrf.mxu0 }
 0x943   : > { %2321 = vmatpush.msrb.mxu2 %v8072_v45  ;;  %2198 = vadd.xlane.f32.xlu1 %v10915_v1  ;;  %v2603_v45 = vsub.f32 %v10828_v19, %v2577_v44  ;;  %v2127_v19 = vpop.xlane.xlu2 %2126 }
 0x944   : > { %8439 = vpow2.f32 %v2168_v34  ;;  %2136 = vmax.xlane.f32.xlu0 %v10918_v28  ;;  %v10936_v34 = vadd.f32 %v2554_v47, %v10397_v49 }
 0x945   : > { %2322 = vmatpush.msrb.mxu2 %v8081_v58  ;;  %v2624_v24 = vmul.f32 1.442695, %v2603_v45 }
 0x947   : > { %2323 = vmatpush.msrb.mxu2 %v8082_v23  ;;  %v2123_v0 = vpop.xlane.xlu1 %2122  ;;  %v2107_v23 = vpop.f32.mrf.mxu3  ;;  %8441 = vpow2.f32 %v2624_v24 }
 0x948   : > { %2140 = vmax.xlane.f32.xlu2 %v10923_v33  ;;  %v2151_v29 = vsub.f32 %v10847_v8, %v2123_v0  ;;  %v2605_v8 = vsub.f32 %v10805_v38, %v2581_v30  ;;  %v2153_v0 = vsub.f32 %v10818_v4, %v2127_v19 }
 0x94a   : > { %v10926_v14 = vpop.eup %8439  ;;  %v2170_v44 = vmul.f32 1.442695, %v2151_v29  ;;  %v2174_v26 = vmul.f32 1.442695, %v2153_v0  ;;  %v10968_v29 = vadd.f32 %v2107_v23, %v10408_v36 }
 0x94b   : > { %2200 = vadd.xlane.f32.xlu1 %v10926_v14  ;;  %v2129_v4 = vpop.xlane.xlu2 %2128 }
 0x94c   : > { %2138 = vmax.xlane.f32.xlu0 %v10929_v17 }
 0x94d   : > { %v10950_v47 = vpop.eup %8441 }
 0x94f   : > { %v2131_v58 = vpop.xlane.xlu1 %2130  ;;  %v10954_v63 = vpop.f32.mrf.mxu3 }
 0x950   : > { %v2155_v20 = vsub.f32 %v10853_v13, %v2131_v58  ;;  %2590 = vmax.xlane.f32.xlu2 %v10936_v34  ;;  %v2628_v13 = vmul.f32 1.442695, %v2605_v8 }
 0x952   : > { %v2178_v41 = vmul.f32 1.442695, %v2155_v20 }
 0x953   : > { %2586 = vmax.xlane.f32.xlu1 %v10941_v53 }
 0x954   : > { %8443 = vpow2.f32 %v2178_v41  ;;  %2588 = vmax.xlane.f32.xlu0 %v10944_v62 }
 0x955   : > { %8445 = vpow2.f32 %v2170_v44  ;;  %v2557_v44 = vpop.f32.mrf.mxu0 }
 0x956   : > { %8447 = vpow2.f32 %v2628_v13 }
 0x957   : > { %8449 = vpow2.f32 %v2174_v26  ;;  %v2113_v30 = vpop.f32.mrf.mxu3  ;;  %v2649_v0 = vpop.xlane.xlu1 %2648  ;;  %v10976_v26 = vadd.f32 %v2557_v44, %v10408_v36 }
 0x958   : > { %v10971_v24 = vadd.f32 %v2113_v30, %v10430_v50 }
 0x95a   : > { %v10952_v45 = vpop.eup %8443 }
 0x95b   : > { %v10956_v20 = vpop.eup %8445  ;;  %2656 = vadd.xlane.f32.xlu1 %v10950_v47  ;;  %2210 = vadd.xlane.f32.xlu2 %v10952_v45 }
 0x95c   : > { %2202 = vadd.xlane.f32.xlu0 %v10956_v20  ;;  %v10961_v41 = vpop.eup %8447 }
 0x95d   : > { %v10963_v38 = vpop.eup %8449 }
 0x95f   : > { %v2563_v8 = vpop.f32.mrf.mxu3  ;;  %v2135_v55 = vpop.xlane.xlu1 %2134 }
 0x960   : > { %v10979_v23 = vadd.f32 %v2563_v8, %v10430_v50  ;;  %v2154_v8 = vsub.f32 %v10823_v39, %v2129_v4 }
 0x963   : > { %2660 = vadd.xlane.f32.xlu2 %v10961_v41  ;;  %2206 = vadd.xlane.f32.xlu1 %v10963_v38 }
 0x969   : > { %v2579_v58 = vpop.xlane.xlu0 %2578 }
 0x96a   : > { %v2197_v19 = vpop.xlane.xlu2 %2196  ;;  %v2604_v5 = vsub.f32 %v10874_v21, %v2579_v58 }
 0x96b   : > { %8451 = vrcp.f32 %v2197_v19  ;;  %2146 = vmax.xlane.f32.xlu2 %v10971_v24  ;;  %2142 = vmax.xlane.f32.xlu1 %v10968_v29 }
 0x96c   : > { %v2626_v44 = vmul.f32 1.442695, %v2604_v5 }
 0x971   : > { %v8452_v13 = vpop.eup %8451  ;;  %v2125_v49 = vpop.xlane.xlu0 %2124 }
 0x972   : > { %v2152_v30 = vsub.f32 %v10888_v18, %v2125_v49  ;;  %v2244_v60 = vmul.f32 %v8452_v13, %v10879_v6  ;;  %v2176_v49 = vmul.f32 1.442695, %v2154_v8  ;;  %v2651_v18 = vpop.xlane.xlu1 %2650  ;;  %v8090_v21 = vpop.permute.xlu2 %8089  ;;  %v11000_v8 = vadd.f32 %v10954_v63, %v10419_v10 }
 0x973   : > { %2596 = vmax.xlane.f32.xlu2 %v10979_v23  ;;  %2592 = vmax.xlane.f32.xlu1 %v10976_v26  ;;  %v8092_v39 = vunpack.i.h.bf16 %v8090_v21  ;;  %v11009_v63 = vpop.f32.mrf.mxu1 }
 0x974   : > { %v2172_v19 = vmul.f32 1.442695, %v2152_v30  ;;  %2324 = vmatmul.f32.vlgmr.msrb.gmra.mxu2 %v2244_v60  ;;  %v8091_v30 = vunpack.i.l.bf16 %v8090_v21 }
 0x976   : > { %8453 = vpow2.f32 %v2172_v19 }
 0x977   : > { %8455 = vpow2.f32 %v2626_v44 }
 0x978   : > { %8457 = vrcp.f32 %v10860_v57 }
 0x979   : > { %8459 = vpow2.f32 %v2176_v49 }
 0x97a   : > { %8461 = vrcp.f32 %v2649_v0  ;;  %v2585_v19 = vpop.xlane.xlu1 %2584  ;;  %v2157_v0 = vsub.f32 %v10866_v42, %v2135_v55 }
 0x97b   : > { %8463 = vrcp.f32 %v2651_v18  ;;  %v11016_v42 = vpop.f32.mrf.mxu1 }
 0x97c   : > { %v10986_v36 = vpop.eup %8453  ;;  %v2182_v21 = vmul.f32 1.442695, %v2157_v0 }
 0x97d   : > { %2204 = vadd.xlane.f32.xlu0 %v10986_v36  ;;  %v10991_v6 = vpop.eup %8455 }
 0x97e   : > { %v8458_v58 = vpop.eup %8457 }
 0x97f   : > { %v10994_v4 = vpop.eup %8459  ;;  %v2694_v57 = vmul.f32 %v8458_v58, %v10751_v22 }
 0x980   : > { %v8462_v44 = vpop.eup %8461 }
 0x981   : > { %v2695_v49 = vmul.f32 %v8462_v44, %v10858_v3 }
 0x982   : > { %v2653_v22 = vpop.xlane.xlu1 %2652 }
 0x983   : > { %8465 = vrcp.f32 %v2653_v22 }
 0x984   : > { %v8085_v13 = vpop.permute.xlu0 %8084  ;;  %8467 = vpow2.f32 %v2182_v21 }
 0x985   : > { %v8086_v60 = vunpack.i.l.bf16 %v8085_v13  ;;  %2658 = vadd.xlane.f32.xlu0 %v10991_v6  ;;  %v8087_v5 = vunpack.i.h.bf16 %v8085_v13  ;;  %v2560_v13 = vpop.f32.mrf.mxu0 }
 0x987   : > { %2770 = vmatpush.msrb.mxu1 %v8086_v60  ;;  %v8464_v60 = vpop.eup %8463 }
 0x988   : > { %v2696_v58 = vmul.f32 %v8464_v60, %v10870_v15 }
 0x989   : > { %2771 = vmatpush.msrb.mxu1 %v8087_v5  ;;  %v11006_v5 = vadd.f32 %v2560_v13, %v10419_v10  ;;  %v8466_v3 = vpop.eup %8465 }
 0x98a   : > { %v11012_v18 = vpop.eup %8467  ;;  %v2697_v55 = vmul.f32 %v8466_v3, %v10893_v16 }
 0x98b   : > { %2772 = vmatpush.msrb.mxu1 %v8091_v30 }
 0x98d   : > { %2208 = vadd.xlane.f32.xlu0 %v10994_v4  ;;  %2773 = vmatpush.msrb.mxu1 %v8092_v39 }
 0x98e   : > { %2774 = vmatmul.f32.vlgmr.msrb.gmra.mxu1 %v2694_v57  ;;  %v11019_v57 = vpop.f32.mrf.mxu1 }
 0x995   : > { %2144 = vmax.xlane.f32.xlu0 %v11000_v8 }
 0x996   : > { %2777 = vmatmul.f32.gmra.mxu1 %v2695_v49  ;;  %v11023_v21 = vpop.f32.mrf.mxu1 }
 0x99d   : > { %2594 = vmax.xlane.f32.xlu0 %v11006_v5 }
 0x99e   : > { %2780 = vmatmul.f32.gmra.mxu1 %v2696_v58 }
 0x9a5   : > { %2214 = vadd.xlane.f32.xlu0 %v11012_v18 }
 0x9a6   : > { %2783 = vmatmul.f32.gmra.mxu1 %v2697_v55 }
 0x9ab   : > { %v2583_v30 = vpop.xlane.xlu2 %2582 }
 0x9ac   : > { %v2606_v49 = vsub.f32 %v10902_v59, %v2583_v30  ;;  %v2607_v59 = vsub.f32 %v10884_v43, %v2585_v19  ;;  %v11036_v43 = vpop.f32.mrf.mxu1 }
 0x9ae   : > { %v2630_v22 = vmul.f32 1.442695, %v2606_v49  ;;  %v2632_v49 = vmul.f32 1.442695, %v2607_v59 }
 0x9af   : > { %v2133_v39 = vpop.xlane.xlu0 %2132 }
 0x9b0   : > { %v2156_v15 = vsub.f32 %v10908_v48, %v2133_v39 }
 0x9b2   : > { %v2180_v44 = vmul.f32 1.442695, %v2156_v15 }
 0x9b3   : > { %v2655_v0 = vpop.xlane.xlu2 %2654 }
 0x9b4   : > { %8469 = vpow2.f32 %v2180_v44 }
 0x9b5   : > { %8471 = vrcp.f32 %v2655_v0 }
 0x9b6   : > { %v2199_v13 = vpop.xlane.xlu1 %2198 }
 0x9b7   : > { %8473 = vrcp.f32 %v2199_v13  ;;  %v2137_v16 = vpop.xlane.xlu0 %2136 }
 0x9b8   : > { %v2158_v60 = vsub.f32 %v10918_v28, %v2137_v16  ;;  %8475 = vpow2.f32 %v2630_v22 }
 0x9ba   : > { %v11025_v58 = vpop.eup %8469  ;;  %v2184_v3 = vmul.f32 1.442695, %v2158_v60 }
 0x9bb   : > { %v8472_v48 = vpop.eup %8471  ;;  %2212 = vadd.xlane.f32.xlu1 %v11025_v58  ;;  %v2141_v28 = vpop.xlane.xlu2 %2140 }
 0x9bc   : > { %8477 = vpow2.f32 %v2184_v3  ;;  %v2698_v55 = vmul.f32 %v8472_v48, %v10911_v51 }
 0x9bd   : > { %v8474_v30 = vpop.eup %8473 }
 0x9be   : > { %2786 = vmatmul.f32.gmra.mxu1 %v2698_v55  ;;  %v2201_v39 = vpop.xlane.xlu1 %2200  ;;  %v2245_v15 = vmul.f32 %v8474_v30, %v10915_v1  ;;  %v11031_v0 = vpop.eup %8475 }
 0x9bf   : > { %8479 = vrcp.f32 %v2201_v39  ;;  %v2139_v44 = vpop.xlane.xlu0 %2138  ;;  %v11045_v39 = vpop.f32.mrf.mxu1 }
 0x9c0   : > { %2327 = vmatmul.f32.gmra.mxu2 %v2245_v15  ;;  %v2159_v22 = vsub.f32 %v10929_v17, %v2139_v44  ;;  %8481 = vpow2.f32 %v2632_v49  ;;  %v2160_v15 = vsub.f32 %v10923_v33, %v2141_v28 }
 0x9c2   : > { %v11033_v13 = vpop.eup %8477  ;;  %v2186_v1 = vmul.f32 1.442695, %v2159_v22  ;;  %v2188_v44 = vmul.f32 1.442695, %v2160_v15 }
 0x9c3   : > { %2216 = vadd.xlane.f32.xlu0 %v11033_v13  ;;  %2662 = vadd.xlane.f32.xlu1 %v11031_v0  ;;  %v2591_v59 = vpop.xlane.xlu2 %2590 }
 0x9c4   : > { %8483 = vpow2.f32 %v2186_v1 }
 0x9c5   : > { %v8480_v51 = vpop.eup %8479 }
 0x9c6   : > { %v2587_v19 = vpop.xlane.xlu1 %2586  ;;  %v2246_v16 = vmul.f32 %v8480_v51, %v10926_v14  ;;  %v11043_v55 = vpop.eup %8481  ;;  %v2610_v14 = vsub.f32 %v10936_v34, %v2591_v59 }
 0x9c7   : > { %v2608_v60 = vsub.f32 %v10941_v53, %v2587_v19  ;;  %v2589_v3 = vpop.xlane.xlu0 %2588  ;;  %v11059_v28 = vpop.f32.mrf.mxu1 }
 0x9c8   : > { %v2609_v48 = vsub.f32 %v10944_v62, %v2589_v3  ;;  %2330 = vmatmul.f32.gmra.mxu2 %v2246_v16  ;;  %v2638_v22 = vmul.f32 1.442695, %v2610_v14 }
 0x9c9   : > { %v2634_v17 = vmul.f32 1.442695, %v2608_v60 }
 0x9ca   : > { %v2636_v30 = vmul.f32 1.442695, %v2609_v48  ;;  %v11050_v49 = vpop.eup %8483 }
 0x9cb   : > { %8485 = vpow2.f32 %v2634_v17  ;;  %2664 = vadd.xlane.f32.xlu1 %v11043_v55 }
 0x9cc   : > { %8487 = vpow2.f32 %v2636_v30 }
 0x9ce   : > { %v2657_v53 = vpop.xlane.xlu1 %2656  ;;  %v2211_v33 = vpop.xlane.xlu2 %2210 }
 0x9cf   : > { %8489 = vrcp.f32 %v2657_v53  ;;  %v2203_v62 = vpop.xlane.xlu0 %2202  ;;  %v11069_v17 = vpop.f32.mrf.mxu1 }
 0x9d0   : > { %8491 = vrcp.f32 %v2203_v62 }
 0x9d1   : > { %v11052_v51 = vpop.eup %8485  ;;  %8493 = vpow2.f32 %v2188_v44 }
 0x9d2   : > { %v11054_v1 = vpop.eup %8487  ;;  %2666 = vadd.xlane.f32.xlu2 %v11052_v51  ;;  %8495 = vpow2.f32 %v2638_v22 }
 0x9d3   : > { %2668 = vadd.xlane.f32.xlu0 %v11054_v1  ;;  %2218 = vadd.xlane.f32.xlu1 %v11050_v49 }
 0x9d5   : > { %v8490_v34 = vpop.eup %8489 }
 0x9d6   : > { %v2207_v19 = vpop.xlane.xlu1 %2206  ;;  %v2699_v16 = vmul.f32 %v8490_v34, %v10950_v47  ;;  %v8492_v60 = vpop.eup %8491 }
 0x9d7   : > { %v2247_v3 = vmul.f32 %v8492_v60, %v10956_v20  ;;  %v11063_v48 = vpop.eup %8493  ;;  %v2661_v30 = vpop.xlane.xlu2 %2660 }
 0x9d8   : > { %2789 = vmatmul.f32.gmra.mxu1 %v2699_v16  ;;  %v11065_v59 = vpop.eup %8495  ;;  %v11072_v44 = vpop.f32.mrf.mxu1 }
 0x9d9   : > { %2333 = vmatmul.f32.gmra.mxu2 %v2247_v3 }
 0x9da   : > { %2220 = vadd.xlane.f32.xlu2 %v11063_v48 }
 0x9db   : > { %2670 = vadd.xlane.f32.xlu1 %v11065_v59 }
 0x9de   : > { %v2143_v15 = vpop.xlane.xlu1 %2142 }
 0x9df   : > { %v2161_v14 = vsub.f32 %v10968_v29, %v2143_v15  ;;  %v2147_v62 = vpop.xlane.xlu2 %2146 }
 0x9e0   : > { %v2163_v16 = vsub.f32 %v10971_v24, %v2147_v62  ;;  %v11081_v29 = vpop.f32.mrf.mxu1 }
 0x9e1   : > { %v2190_v47 = vmul.f32 1.442695, %v2161_v14 }
 0x9e2   : > { %v2194_v60 = vmul.f32 1.442695, %v2163_v16 }
 0x9e3   : > { %8497 = vpow2.f32 %v2190_v47 }
 0x9e6   : > { %v2593_v53 = vpop.xlane.xlu1 %2592 }
 0x9e7   : > { %v2611_v20 = vsub.f32 %v10976_v26, %v2593_v53 }
 0x9e8   : > { %v11087_v53 = vpop.f32.mrf.mxu1 }
 0x9e9   : > { %v11075_v22 = vpop.eup %8497  ;;  %v2640_v34 = vmul.f32 1.442695, %v2611_v20 }
 0x9ea   : > { %2222 = vadd.xlane.f32.xlu0 %v11075_v22 }
 0x9eb   : > { %8499 = vpow2.f32 %v2640_v34 }
 0x9f0   : > { %v2205_v3 = vpop.xlane.xlu0 %2204 }
 0x9f1   : > { %v11079_v50 = vpop.eup %8499  ;;  %8501 = vrcp.f32 %v2205_v3 }
 0x9f2   : > { %2672 = vadd.xlane.f32.xlu2 %v11079_v50  ;;  %8503 = vpow2.f32 %v2194_v60 }
 0x9f3   : > { %8505 = vrcp.f32 %v2207_v19 }
 0x9f7   : > { %v8502_v26 = vpop.eup %8501 }
 0x9f8   : > { %v2659_v15 = vpop.xlane.xlu0 %2658  ;;  %v2248_v14 = vmul.f32 %v8502_v26, %v10986_v36  ;;  %v11085_v47 = vpop.eup %8503 }
 0x9f9   : > { %8507 = vrcp.f32 %v2659_v15  ;;  %v8506_v24 = vpop.eup %8505  ;;  %v11092_v36 = vpop.f32.mrf.mxu1 }
 0x9fa   : > { %2336 = vmatmul.f32.gmra.mxu2 %v2248_v14  ;;  %2226 = vadd.xlane.f32.xlu2 %v11085_v47  ;;  %8509 = vrcp.f32 %v2661_v30  ;;  %v2249_v34 = vmul.f32 %v8506_v24, %v10963_v38  ;;  %v2597_v14 = vpop.xlane.xlu2 %2596 }
 0x9ff   : > { %v8508_v20 = vpop.eup %8507 }
 0xa00   : > { %v2209_v62 = vpop.xlane.xlu0 %2208  ;;  %v2700_v16 = vmul.f32 %v8508_v20, %v10991_v6  ;;  %v8510_v19 = vpop.eup %8509  ;;  %v2613_v6 = vsub.f32 %v10979_v23, %v2597_v14 }
 0xa01   : > { %8511 = vrcp.f32 %v2209_v62  ;;  %v2701_v15 = vmul.f32 %v8510_v19, %v10961_v41  ;;  %v11098_v20 = vpop.f32.mrf.mxu1 }
 0xa02   : > { %2339 = vmatmul.f32.gmra.mxu2 %v2249_v34  ;;  %2792 = vmatmul.f32.gmra.mxu1 %v2700_v16  ;;  %8513 = vrcp.f32 %v2211_v33  ;;  %v2644_v62 = vmul.f32 1.442695, %v2613_v6  ;;  %v2325_v16 = vpop.f32.mrf.mxu2 }
 0xa07   : > { %v8512_v60 = vpop.eup %8511 }
 0xa08   : > { %v2145_v3 = vpop.xlane.xlu0 %2144  ;;  %v2250_v26 = vmul.f32 %v8512_v60, %v10994_v4  ;;  %v8514_v24 = vpop.eup %8513 }
 0xa09   : > { %v2162_v30 = vsub.f32 %v11000_v8, %v2145_v3  ;;  %v2251_v33 = vmul.f32 %v8514_v24, %v10952_v45  ;;  %v11106_v23 = vpop.f32.mrf.mxu1 }
 0xa0a   : > { %2342 = vmatmul.f32.gmra.mxu2 %v2250_v26  ;;  %2795 = vmatmul.f32.gmra.mxu1 %v2701_v15 }
 0xa0b   : > { %v2192_v38 = vmul.f32 1.442695, %v2162_v30 }
 0xa0d   : > { %8515 = vpow2.f32 %v2192_v38 }
 0xa0e   : > { %8517 = vpow2.f32 %v2644_v62 }
 0xa10   : > { %v2595_v34 = vpop.xlane.xlu0 %2594 }
 0xa11   : > { %v2612_v4 = vsub.f32 %v11006_v5, %v2595_v34  ;;  %v11114_v45 = vpop.f32.mrf.mxu1 }
 0xa12   : > { %2345 = vmatmul.f32.gmra.mxu2 %v2251_v33  ;;  %2903 = vrot.lane.b32.xlu2 %v2325_v16, %s14441_s14 }
 0xa13   : > { %v11103_v41 = vpop.eup %8515  ;;  %v2642_v8 = vmul.f32 1.442695, %v2612_v4 }
 0xa14   : > { %2224 = vadd.xlane.f32.xlu1 %v11103_v41  ;;  %v11108_v19 = vpop.eup %8517 }
 0xa15   : > { %8519 = vpow2.f32 %v2642_v8 }
 0xa18   : > { %v2215_v15 = vpop.xlane.xlu0 %2214 }
 0xa19   : > { %v11116_v5 = vpop.f32.mrf.mxu1 }
 0xa1b   : > { %v11110_v60 = vpop.eup %8519 }
 0xa1c   : > { %2674 = vadd.xlane.f32.xlu0 %v11110_v60  ;;  %2676 = vadd.xlane.f32.xlu1 %v11108_v19 }
 0xa21   : > { %v2775_v26 = vpop.f32.mrf.mxu1 }
 0xa29   : > { %v2778_v62 = vpop.f32.mrf.mxu1 }
 0xa2e   : > { %v2213_v3 = vpop.xlane.xlu1 %2212 }
 0xa2f   : > { %8521 = vrcp.f32 %v2213_v3 }
 0xa30   : > { %2839 = vrot.lane.b32.xlu0 %v11009_v63, %s9059_s20  ;;  %8523 = vrcp.f32 %v2215_v15 }
 0xa31   : > { %v2781_v8 = vpop.f32.mrf.mxu1 }
 0xa35   : > { %v8522_v14 = vpop.eup %8521  ;;  %2967 = vrot.lane.b32.xlu1 %v2775_v26, %s14443_s22 }
 0xa36   : > { %v2663_v30 = vpop.xlane.xlu1 %2662  ;;  %v2252_v38 = vmul.f32 %v8522_v14, %v11025_v58  ;;  %v2217_v6 = vpop.xlane.xlu0 %2216 }
 0xa37   : > { %8525 = vrcp.f32 %v2663_v30  ;;  %v8524_v24 = vpop.eup %8523 }
 0xa38   : > { %2841 = vrot.lane.b32.xlu0 %v11016_v42, %s9059_s20  ;;  %2348 = vmatmul.f32.gmra.mxu2 %v2252_v38  ;;  %8527 = vrcp.f32 %v2217_v6  ;;  %v2253_v33 = vmul.f32 %v8524_v24, %v11012_v18 }
 0xa3d   : > { %2843 = vrot.lane.b32.xlu1 %v11019_v57, %s9059_s20  ;;  %v8526_v63 = vpop.eup %8525 }
 0xa3e   : > { %v2665_v34 = vpop.xlane.xlu1 %2664  ;;  %v2702_v16 = vmul.f32 %v8526_v63, %v11031_v0  ;;  %v8528_v42 = vpop.eup %8527 }
 0xa3f   : > { %8529 = vrcp.f32 %v2665_v34  ;;  %v2254_v18 = vmul.f32 %v8528_v42, %v11033_v13 }
 0xa40   : > { %2351 = vmatmul.f32.gmra.mxu2 %v2253_v33  ;;  %2969 = vrot.lane.b32.xlu0 %v2778_v62, %s14443_s22 }
 0xa41   : > { %2798 = vmatmul.f32.gmra.mxu1 %v2702_v16 }
 0xa43   : > { %v2328_v58 = vpop.f32.mrf.mxu2 }
 0xa44   : > { %2905 = vrot.lane.b32.xlu2 %v2328_v58, %s14441_s14 }
 0xa45   : > { %v8530_v4 = vpop.eup %8529  ;;  %v2667_v3 = vpop.xlane.xlu2 %2666  ;;  %2845 = vrot.lane.b32.xlu1 %v11023_v21, %s9059_s20 }
 0xa46   : > { %8531 = vrcp.f32 %v2667_v3  ;;  %v2219_v57 = vpop.xlane.xlu1 %2218  ;;  %v2703_v0 = vmul.f32 %v8530_v4, %v11043_v55  ;;  %v2669_v26 = vpop.xlane.xlu0 %2668  ;;  %v922_v4 = vld [vmem:[#allocation2 + $0x90] sm:$0xff] }
 0xa47   : > { %8533 = vrcp.f32 %v2219_v57  ;;  %v2784_v55 = vpop.f32.mrf.mxu1 }
 0xa48   : > { %2354 = vmatmul.f32.gmra.mxu2 %v2254_v18  ;;  %2971 = vrot.lane.b32.xlu0 %v2781_v8, %s14443_s22  ;;  %8535 = vrcp.f32 %v2669_v26 }
 0xa49   : > { %2801 = vmatmul.f32.gmra.mxu1 %v2703_v0 }
 0xa4b   : > { %v2331_v15 = vpop.f32.mrf.mxu2 }
 0xa4c   : > { %v8532_v14 = vpop.eup %8531  ;;  %2907 = vrot.lane.b32.xlu2 %v2331_v15, %s14441_s14 }
 0xa4d   : > { %v2221_v30 = vpop.xlane.xlu2 %2220  ;;  %2847 = vrot.lane.b32.xlu1 %v11036_v43, %s9059_s20  ;;  %v2704_v21 = vmul.f32 %v8532_v14, %v11052_v51  ;;  %v8534_v13 = vpop.eup %8533 }
 0xa4e   : > { %8537 = vrcp.f32 %v2221_v30  ;;  %v2255_v38 = vmul.f32 %v8534_v13, %v11050_v49  ;;  %v8536_v6 = vpop.eup %8535  ;;  %v2671_v24 = vpop.xlane.xlu1 %2670 }
 0xa4f   : > { %8539 = vrcp.f32 %v2671_v24  ;;  %v2787_v43 = vpop.f32.mrf.mxu1  ;;  %v2705_v51 = vmul.f32 %v8536_v6, %v11054_v1 }
 0xa50   : > { %2973 = vrot.lane.b32.xlu0 %v2784_v55, %s14443_s22  ;;  %2357 = vmatmul.f32.gmra.mxu2 %v2255_v38 }
 0xa51   : > { %2804 = vmatmul.f32.gmra.mxu1 %v2704_v21 }
 0xa54   : > { %v8538_v62 = vpop.eup %8537 }
 0xa55   : > { %2849 = vrot.lane.b32.xlu1 %v11045_v39, %s9059_s20  ;;  %v2256_v63 = vmul.f32 %v8538_v62, %v11063_v48  ;;  %v8540_v49 = vpop.eup %8539 }
 0xa56   : > { %v2706_v48 = vmul.f32 %v8540_v49, %v11065_v59 }
 0xa57   : > { %v2790_v39 = vpop.f32.mrf.mxu1 }
 0xa58   : > { %2975 = vrot.lane.b32.xlu0 %v2787_v43, %s14443_s22  ;;  %2360 = vmatmul.f32.gmra.mxu2 %v2256_v63 }
 0xa59   : > { %2807 = vmatmul.f32.gmra.mxu1 %v2705_v51 }
 0xa5c   : > { %v2334_v34 = vpop.f32.mrf.mxu2 }
 0xa5d   : > { %v2223_v33 = vpop.xlane.xlu0 %2222  ;;  %2851 = vrot.lane.b32.xlu1 %v11059_v28, %s9059_s20  ;;  %2909 = vrot.lane.b32.xlu2 %v2334_v34, %s14441_s14 }
 0xa5e   : > { %8541 = vrcp.f32 %v2223_v33 }
 0xa60   : > { %2977 = vrot.lane.b32.xlu0 %v2790_v39, %s14443_s22 }
 0xa61   : > { %2810 = vmatmul.f32.gmra.mxu1 %v2706_v48 }
 0xa64   : > { %v8542_v1 = vpop.eup %8541 }
 0xa65   : > { %v2673_v16 = vpop.xlane.xlu2 %2672  ;;  %2853 = vrot.lane.b32.xlu1 %v11069_v17, %s9059_s20  ;;  %v2257_v42 = vmul.f32 %v8542_v1, %v11075_v22  ;;  %v923_v22 = vld [vmem:[#allocation2 + $0xd0] sm:$0xff] }
 0xa66   : > { %8543 = vrcp.f32 %v2673_v16  ;;  %3125 = vmatpush.msrb.mxu3 %v923_v22 }
 0xa67   : > { %2363 = vmatmul.f32.gmra.mxu2 %v2257_v42 }
 0xa68   : > { %3126 = vmatpush.msrb.mxu3 %v922_v4 }
 0xa6c   : > { %v8544_v58 = vpop.eup %8543 }
 0xa6d   : > { %2855 = vrot.lane.b32.xlu1 %v11072_v44, %s9059_s20  ;;  %v2707_v28 = vmul.f32 %v8544_v58, %v11079_v50  ;;  %v921_v50 = vld [vmem:[#allocation2 + $0x50] sm:$0xff]  ;;  %v2227_v3 = vpop.xlane.xlu2 %2226 }
 0xa6e   : > { %3127 = vmatpush.msrb.mxu3 %v921_v50 }
 0xa6f   : > { %2813 = vmatmul.f32.gmra.mxu1 %v2707_v28 }
 0xa75   : > { %2857 = vrot.lane.b32.xlu1 %v11081_v29, %s9059_s20  ;;  %v2904_v38 = vpop.permute.xlu2 %2903 }
 0xa7d   : > { %v2337_v59 = vpop.f32.mrf.mxu2  ;;  %2859 = vrot.lane.b32.xlu1 %v11087_v53, %s9059_s20  ;;  %v920_v53 = vld [vmem:[#allocation2 + $0x10] sm:$0xff] }
 0xa7e   : > { %2911 = vrot.lane.b32.xlu2 %v2337_v59, %s14441_s14  ;;  %3128 = vmatpush.msrb.mxu3 %v920_v53 }
 0xa7f   : > { %v2793_v17 = vpop.f32.mrf.mxu1 }
 0xa80   : > { %2979 = vrot.lane.b32.xlu0 %v2793_v17, %s14443_s22 }
 0xa85   : > { %v2340_v44 = vpop.f32.mrf.mxu2  ;;  %2861 = vrot.lane.b32.xlu1 %v11092_v36, %s9059_s20 }
 0xa86   : > { %2913 = vrot.lane.b32.xlu2 %v2340_v44, %s14441_s14 }
 0xa87   : > { %v2225_v29 = vpop.xlane.xlu1 %2224  ;;  %v2796_v8 = vpop.f32.mrf.mxu1 }
 0xa88   : > { %8545 = vrcp.f32 %v2225_v29  ;;  %2981 = vrot.lane.b32.xlu0 %v2796_v8, %s14443_s22 }
 0xa89   : > { %8547 = vrcp.f32 %v2227_v3 }
 0xa8d   : > { %v2343_v57 = vpop.f32.mrf.mxu2  ;;  %2863 = vrot.lane.b32.xlu1 %v11098_v20, %s9059_s20 }
 0xa8e   : > { %v8546_v18 = vpop.eup %8545  ;;  %2915 = vrot.lane.b32.xlu2 %v2343_v57, %s14441_s14 }
 0xa8f   : > { %v2675_v36 = vpop.xlane.xlu0 %2674  ;;  %v2258_v0 = vmul.f32 %v8546_v18, %v11103_v41  ;;  %v2677_v26 = vpop.xlane.xlu1 %2676 }
 0xa90   : > { %8549 = vrcp.f32 %v2675_v36  ;;  %v8548_v15 = vpop.eup %8547 }
 0xa91   : > { %2366 = vmatmul.f32.gmra.mxu2 %v2258_v0  ;;  %8551 = vrcp.f32 %v2677_v26  ;;  %v2259_v20 = vmul.f32 %v8548_v15, %v11085_v47 }
 0xa95   : > { %v2346_v14 = vpop.f32.mrf.mxu2  ;;  %2865 = vrot.lane.b32.xlu1 %v11106_v23, %s9059_s20 }
 0xa96   : > { %v8550_v30 = vpop.eup %8549  ;;  %2917 = vrot.lane.b32.xlu2 %v2346_v14, %s14441_s14 }
 0xa97   : > { %v2708_v21 = vmul.f32 %v8550_v30, %v11110_v60  ;;  %v8552_v13 = vpop.eup %8551 }
 0xa98   : > { %v2709_v41 = vmul.f32 %v8552_v13, %v11108_v19 }
 0xa99   : > { %2369 = vmatmul.f32.gmra.mxu2 %v2259_v20  ;;  %2816 = vmatmul.f32.gmra.mxu1 %v2708_v21 }
 0xa9d   : > { %2867 = vrot.lane.b32.xlu1 %v11114_v45, %s9059_s20 }
 0xa9e   : > { %v2906_v19 = vpop.permute.xlu2 %2905 }
 0xaa1   : > { %2819 = vmatmul.f32.gmra.mxu1 %v2709_v41 }
 0xaa2   : > { %v2840_v55 = vpop.permute.xlu0 %2839 }
 0xaa3   : > { %v3015_v23 = vsel %vm1086_vm2, %v10678_v40, %v2840_v55 }
 0xaa4   : > { %v3032_v47 = vsel %vm3031_vm5, %v3015_v23, %v2904_v38 }
 0xaa5   : > { %2869 = vrot.lane.b32.xlu1 %v11116_v5, %s9059_s20 }
 0xaa6   : > { %v2908_v5 = vpop.permute.xlu2 %2907 }
 0xaa7   : > { %v2968_v60 = vpop.permute.xlu1 %2967 }
 0xaa8   : > { %v3049_v6 = vsel %vm3048_vm6, %v3032_v47, %v2968_v60 }
 0xaa9   : > { %7605 = vmatmul.msk.f32.vlgmr.msrb.gmra.mxu3 %vm409_vm13, %v3049_v6 }
 0xaaa   : > { %v2842_v45 = vpop.permute.xlu0 %2841 }
 0xaab   : > { %v3016_v24 = vsel %vm1086_vm2, %v10684_v12, %v2842_v45 }
 0xaac   : > { %v3033_v40 = vsel %vm3031_vm5, %v3016_v24, %v2906_v19 }
 0xaaf   : > { %v2844_v62 = vpop.permute.xlu1 %2843 }
 0xab0   : > { %v3017_v51 = vsel %vm1086_vm2, %v10692_v35, %v2844_v62 }
 0xab1   : > { %v3034_v49 = vsel %vm3031_vm5, %v3017_v51, %v2908_v5 }
 0xab2   : > { %v2970_v63 = vpop.permute.xlu0 %2969 }
 0xab3   : > { %v3050_v43 = vsel %vm3048_vm6, %v3033_v40, %v2970_v63 }
 0xab4   : > { %7606 = vmatmul.msk.f32.gmra.mxu3 %vm409_vm13, %v3050_v43  ;;  %v11240_v43 = vld [vmem:[%s14349_s3 + $0x3] ss:$0 sm:$0xff] }
 0xab7   : > { %v2846_v48 = vpop.permute.xlu1 %2845  ;;  %v2910_v1 = vpop.permute.xlu2 %2909 }
 0xab8   : > { %v3018_v16 = vsel %vm1086_vm2, %v10700_v25, %v2846_v48 }
 0xab9   : > { %v3035_v35 = vsel %vm3031_vm5, %v3018_v16, %v2910_v1 }
 0xaba   : > { %v2972_v34 = vpop.permute.xlu0 %2971 }
 0xabb   : > { %v3051_v33 = vsel %vm3048_vm6, %v3034_v49, %v2972_v34  ;;  %v2349_v39 = vpop.f32.mrf.mxu2  ;;  %v14681_v34 = vld [vmem:[#allocation8_spill] sm:$0xff] }
 0xabc   : > { %2919 = vrot.lane.b32.xlu2 %v2349_v39, %s14441_s14  ;;  %7607 = vmatmul.msk.f32.gmra.mxu3 %vm409_vm13, %v3051_v33 }
 0xabe   : > { %v2799_v12 = vpop.f32.mrf.mxu1 }
 0xabf   : > { %2983 = vrot.lane.b32.xlu0 %v2799_v12, %s14443_s22  ;;  %v2848_v25 = vpop.permute.xlu1 %2847 }
 0xac0   : > { %v3019_v29 = vsel %vm1086_vm2, %v10704_v32, %v2848_v25 }
 0xac2   : > { %v2974_v42 = vpop.permute.xlu0 %2973 }
 0xac3   : > { %v3052_v58 = vsel %vm3048_vm6, %v3035_v35, %v2974_v42  ;;  %v2352_v28 = vpop.f32.mrf.mxu2 }
 0xac4   : > { %2921 = vrot.lane.b32.xlu2 %v2352_v28, %s14441_s14  ;;  %7608 = vmatmul.msk.f32.gmra.mxu3 %vm409_vm13, %v3052_v58 }
 0xac6   : > { %v2802_v59 = vpop.f32.mrf.mxu1 }
 0xac7   : > { %2985 = vrot.lane.b32.xlu0 %v2802_v59, %s14443_s22  ;;  %v2850_v18 = vpop.permute.xlu1 %2849 }
 0xac8   : > { %v3020_v0 = vsel %vm1086_vm2, %v10713_v37, %v2850_v18 }
 0xaca   : > { %v2976_v50 = vpop.permute.xlu0 %2975 }
 0xacb   : > { %v2355_v17 = vpop.f32.mrf.mxu2 }
 0xacc   : > { %2923 = vrot.lane.b32.xlu2 %v2355_v17, %s14441_s14 }
 0xace   : > { %v2805_v22 = vpop.f32.mrf.mxu1 }
 0xacf   : > { %2987 = vrot.lane.b32.xlu0 %v2805_v22, %s14443_s22  ;;  %v2852_v20 = vpop.permute.xlu1 %2851 }
 0xad0   : > { %v3021_v41 = vsel %vm1086_vm2, %v10723_v46, %v2852_v20 }
 0xad2   : > { %v2978_v15 = vpop.permute.xlu0 %2977 }
 0xad3   : > { %v2358_v4 = vpop.f32.mrf.mxu2 }
 0xad4   : > { %2925 = vrot.lane.b32.xlu2 %v2358_v4, %s14441_s14 }
 0xad6   : > { %v2808_v44 = vpop.f32.mrf.mxu1 }
 0xad7   : > { %2989 = vrot.lane.b32.xlu0 %v2808_v44, %s14443_s22  ;;  %v2854_v38 = vpop.permute.xlu1 %2853 }
 0xad8   : > { %v2912_v8 = vpop.permute.xlu2 %2911  ;;  %v3022_v60 = vsel %vm1086_vm2, %v10732_v11, %v2854_v38 }
 0xad9   : > { %v3036_v53 = vsel %vm3031_vm5, %v3019_v29, %v2912_v8 }
 0xada   : > { %v3053_v3 = vsel %vm3048_vm6, %v3036_v53, %v2976_v50 }
 0xadb   : > { %7609 = vmatmul.msk.f32.gmra.mxu3 %vm409_vm13, %v3053_v3  ;;  %v2361_v57 = vpop.f32.mrf.mxu2 }
 0xadc   : > { %2927 = vrot.lane.b32.xlu2 %v2361_v57, %s14441_s14 }
 0xade   : > { %v2811_v36 = vpop.f32.mrf.mxu1 }
 0xadf   : > { %2991 = vrot.lane.b32.xlu0 %v2811_v36, %s14443_s22  ;;  %v2856_v11 = vpop.permute.xlu1 %2855  ;;  %v14685_v36 = vld [vmem:[#allocation10_spill] sm:$0xff] }
 0xae0   : > { %v2914_v26 = vpop.permute.xlu2 %2913  ;;  %v3023_v39 = vsel %vm1086_vm2, %v10743_v7, %v2856_v11  ;;  %v14689_v11 = vld [vmem:[#allocation12_spill] sm:$0xff] }
 0xae1   : > { %v3037_v32 = vsel %vm3031_vm5, %v3020_v0, %v2914_v26 }
 0xae2   : > { %v3054_v14 = vsel %vm3048_vm6, %v3037_v32, %v2978_v15 }
 0xae3   : > { %7610 = vmatmul.msk.f32.gmra.mxu3 %vm409_vm13, %v3054_v14 }
 0xae7   : > { %v2858_v49 = vpop.permute.xlu1 %2857 }
 0xae8   : > { %v2916_v13 = vpop.permute.xlu2 %2915  ;;  %v3024_v58 = vsel %vm1086_vm2, %v10754_v52, %v2858_v49  ;;  %v14683_v52 = vld [vmem:[#allocation9_spill] sm:$0xff] }
 0xae9   : > { %v3038_v37 = vsel %vm3031_vm5, %v3021_v41, %v2916_v13  ;;  %v14691_v49 = vld [vmem:[#allocation13_spill] sm:$0xff] }
 0xaea   : > { %v2364_v30 = vpop.f32.mrf.mxu2 }
 0xaeb   : > { %2929 = vrot.lane.b32.xlu2 %v2364_v30, %s14441_s14 }
 0xaec   : > { %v2814_v21 = vpop.f32.mrf.mxu1 }
 0xaed   : > { %2993 = vrot.lane.b32.xlu0 %v2814_v21, %s14443_s22  ;;  %v14687_v21 = vld [vmem:[#allocation11_spill] sm:$0xff] }
 0xaef   : > { %v2860_v28 = vpop.permute.xlu1 %2859 }
 0xaf0   : > { %v2918_v47 = vpop.permute.xlu2 %2917  ;;  %v3025_v44 = vsel %vm1086_vm2, %v10760_v27, %v2860_v28 }
 0xaf1   : > { %v3039_v6 = vsel %vm3031_vm5, %v3022_v60, %v2918_v47 }
 0xaf2   : > { %v2980_v55 = vpop.permute.xlu0 %2979 }
 0xaf3   : > { %v3055_v23 = vsel %vm3048_vm6, %v3038_v37, %v2980_v55 }
 0xaf4   : > { %7611 = vmatmul.msk.f32.gmra.mxu3 %vm409_vm13, %v3055_v23 }
 0xaf7   : > { %v2862_v57 = vpop.permute.xlu1 %2861 }
 0xaf8   : > { %v3026_v15 = vsel %vm1086_vm2, %v10766_v31, %v2862_v57 }
 0xafa   : > { %v2982_v45 = vpop.permute.xlu0 %2981 }
 0xafb   : > { %v3056_v19 = vsel %vm3048_vm6, %v3039_v6, %v2982_v45 }
 0xafc   : > { %7612 = vmatmul.msk.f32.gmra.mxu3 %vm409_vm13, %v3056_v19 }
 0xaff   : > { %v2864_v31 = vpop.permute.xlu1 %2863 }
 0xb00   : > { %v3027_v23 = vsel %vm1086_vm2, %v10772_v9, %v2864_v31 }
 0xb07   : > { %v2866_v6 = vpop.permute.xlu1 %2865 }
 0xb08   : > { %v3028_v19 = vsel %vm1086_vm2, %v10778_v2, %v2866_v6 }
 0xb14   : > { %v2367_v46 = vpop.f32.mrf.mxu2 }
 0xb15   : > { %2931 = vrot.lane.b32.xlu2 %v2367_v46, %s14441_s14 }
 0xb16   : > { %v2817_v24 = vpop.f32.mrf.mxu1  ;;  %v2920_v63 = vpop.permute.xlu2 %2919 }
 0xb17   : > { %2995 = vrot.lane.b32.xlu0 %v2817_v24, %s14443_s22  ;;  %v3040_v12 = vsel %vm3031_vm5, %v3023_v39, %v2920_v63 }
 0xb1c   : > { %v2370_v62 = vpop.f32.mrf.mxu2 }
 0xb1d   : > { %2933 = vrot.lane.b32.xlu2 %v2370_v62, %s14441_s14 }
 0xb1e   : > { %v2820_v40 = vpop.f32.mrf.mxu1  ;;  %v2922_v48 = vpop.permute.xlu2 %2921 }
 0xb1f   : > { %2997 = vrot.lane.b32.xlu0 %v2820_v40, %s14443_s22  ;;  %v3041_v59 = vsel %vm3031_vm5, %v3024_v58, %v2922_v48 }
 0xb26   : > { %v2924_v17 = vpop.permute.xlu2 %2923 }
 0xb27   : > { %v3042_v29 = vsel %vm3031_vm5, %v3025_v44, %v2924_v17 }
 0xb2c   : > { %v3130_v5 = vpop.f32.mrf.mxu3 }
 0xb2d   : > { %v3131_v51 = vadd.f32 %v3130_v5, %v11240_v43 }
 0xb2e   : > { %v2926_v18 = vpop.permute.xlu2 %2925 }
 0xb2f   : > { %v11244_v33 = vadd.f32 %v3131_v51, %v14681_v34  ;;  %v3043_v30 = vsel %vm3031_vm5, %v3026_v15, %v2926_v18  ;;  %v14697_v15 = vld [vmem:[#allocation15_spill] sm:$0xff] }
 0xb31   : > { %14682 = vst [vmem:[#allocation51_spill] sm:$0xff] %v11244_v33  ;;  %v2984_v1 = vpop.permute.xlu0 %2983  ;;  %v3196_v16 = vsel %vm409_vm13, %v11244_v33, 0.0 }
 0xb32   : > { %v3057_v35 = vsel %vm3048_vm6, %v3040_v12, %v2984_v1  ;;  %3197 = vadd.xlane.f32.xlu1 %v3196_v16  ;;  %v14693_v1 = vld [vmem:[#allocation14_spill] sm:$0xff] }
 0xb33   : > { %7613 = vmatmul.msk.f32.gmra.mxu3 %vm409_vm13, %v3057_v35 }
 0xb36   : > { %v2928_v55 = vpop.permute.xlu2 %2927 }
 0xb37   : > { %v3133_v42 = vpop.f32.mrf.mxu3  ;;  %v3044_v38 = vsel %vm3031_vm5, %v3027_v23, %v2928_v55 }
 0xb38   : > { %v3134_v25 = vadd.f32 %v3133_v42, %v11240_v43  ;;  %v2868_v42 = vpop.permute.xlu1 %2867 }
 0xb39   : > { %v2986_v7 = vpop.permute.xlu0 %2985  ;;  %v3029_v28 = vsel %vm1086_vm2, %v10782_v61, %v2868_v42 }
 0xb3a   : > { %v3058_v22 = vsel %vm3048_vm6, %v3041_v59, %v2986_v7  ;;  %v11264_v8 = vadd.f32 %v3134_v25, %v14683_v52 }
 0xb3b   : > { %7614 = vmatmul.msk.f32.gmra.mxu3 %vm409_vm13, %v3058_v22 }
 0xb3c   : > { %14684 = vst [vmem:[#allocation46_spill] sm:$0xff] %v11264_v8  ;;  %v3199_v27 = vsel %vm409_vm13, %v11264_v8, 0.0 }
 0xb3f   : > { %v3136_v4 = vpop.f32.mrf.mxu3 }
 0xb40   : > { %v3137_v50 = vadd.f32 %v3136_v4, %v11240_v43  ;;  %v2870_v22 = vpop.permute.xlu1 %2869  ;;  %v14695_v4 = vld [vmem:[#allocation57_spill] sm:$0xff] }
 0xb41   : > { %v2988_v53 = vpop.permute.xlu0 %2987  ;;  %v3030_v44 = vsel %vm1086_vm2, %v14695_v4, %v2870_v22 }
 0xb42   : > { %v3059_v3 = vsel %vm3048_vm6, %v3042_v29, %v2988_v53  ;;  %v11269_v0 = vadd.f32 %v3137_v50, %v14685_v36  ;;  %v14696_v53 = vld [vmem:[#allocation19_spill] sm:$0xff] }
 0xb43   : > { %7615 = vmatmul.msk.f32.gmra.mxu3 %vm409_vm13, %v3059_v3 }
 0xb44   : > { %14686 = vst [vmem:[#allocation68_spill] sm:$0xff] %v11269_v0  ;;  %v3202_v14 = vsel %vm409_vm13, %v11269_v0, 0.0 }
 0xb45   : > { %v2930_v45 = vpop.permute.xlu2 %2929 }
 0xb46   : > { %3200 = vadd.xlane.f32.xlu2 %v3199_v27  ;;  %v3045_v24 = vsel %vm3031_vm5, %v3028_v19, %v2930_v45 }
 0xb47   : > { %v3139_v26 = vpop.f32.mrf.mxu3 }
 0xb48   : > { %v3140_v32 = vadd.f32 %v3139_v26, %v11240_v43 }
 0xb49   : > { %v2990_v20 = vpop.permute.xlu0 %2989  ;;  %3203 = vadd.xlane.f32.xlu0 %v3202_v14 }
 0xb4a   : > { %v11280_v13 = vadd.f32 %v3140_v32, %v14687_v21  ;;  %v3060_v41 = vsel %vm3048_vm6, %v3043_v30, %v2990_v20  ;;  %v14699_v21 = vld [vmem:[#allocation16_spill] sm:$0xff] }
 0xb4b   : > { %7616 = vmatmul.msk.f32.gmra.mxu3 %vm409_vm13, %v3060_v41 }
 0xb4c   : > { %14688 = vst [vmem:[#allocation62_spill] sm:$0xff] %v11280_v13  ;;  %v3205_v37 = vsel %vm409_vm13, %v11280_v13, 0.0 }
 0xb4e   : > { %3206 = vadd.xlane.f32.xlu2 %v3205_v37 }
 0xb51   : > { %v2992_v47 = vpop.permute.xlu0 %2991 }
 0xb52   : > { %v3061_v60 = vsel %vm3048_vm6, %v3044_v38, %v2992_v47 }
 0xb53   : > { %7617 = vmatmul.msk.f32.gmra.mxu3 %vm409_vm13, %v3061_v60 }
 0xb5e   : > { %v3142_v46 = vpop.f32.mrf.mxu3 }
 0xb5f   : > { %v3143_v62 = vadd.f32 %v3142_v46, %v11240_v43  ;;  %v2994_v40 = vpop.permute.xlu0 %2993 }
 0xb60   : > { %v3062_v9 = vsel %vm3048_vm6, %v3045_v24, %v2994_v40 }
 0xb61   : > { %v11297_v63 = vadd.f32 %v3143_v62, %v14689_v11  ;;  %7618 = vmatmul.msk.f32.gmra.mxu3 %vm409_vm13, %v3062_v9 }
 0xb63   : > { %14690 = vst [vmem:[#allocation54_spill] sm:$0xff] %v11297_v63  ;;  %v3208_v5 = vsel %vm409_vm13, %v11297_v63, 0.0 }
 0xb64   : > { %3209 = vadd.xlane.f32.xlu1 %v3208_v5 }
 0xb66   : > { %v3145_v51 = vpop.f32.mrf.mxu3 }
 0xb67   : > { %v3146_v2 = vadd.f32 %v3145_v51, %v11240_v43 }
 0xb69   : > { %v11304_v34 = vadd.f32 %v3146_v2, %v14691_v49  ;;  %v14701_v2 = vld [vmem:[#allocation17_spill] sm:$0xff] }
 0xb6b   : > { %14692 = vst [vmem:[#allocation48_spill] sm:$0xff] %v11304_v34  ;;  %v3211_v39 = vsel %vm409_vm13, %v11304_v34, 0.0 }
 0xb6c   : > { %3212 = vadd.xlane.f32.xlu0 %v3211_v39 }
 0xb6f   : > { %v2932_v58 = vpop.permute.xlu2 %2931 }
 0xb70   : > { %v3046_v59 = vsel %vm3031_vm5, %v3029_v28, %v2932_v58 }
 0xb77   : > { %v3148_v48 = vpop.f32.mrf.mxu3  ;;  %v2934_v25 = vpop.permute.xlu2 %2933 }
 0xb78   : > { %v3149_v12 = vadd.f32 %v3148_v48, %v11240_v43  ;;  %v3047_v50 = vsel %vm3031_vm5, %v3030_v44, %v2934_v25 }
 0xb7a   : > { %v11310_v16 = vadd.f32 %v3149_v12, %v14693_v1  ;;  %v14703_v1 = vld [vmem:[#allocation18_spill] sm:$0xff] }
 0xb7c   : > { %14694 = vst [vmem:[#allocation43_spill] sm:$0xff] %v11310_v16  ;;  %v3214_v35 = vsel %vm409_vm13, %v11310_v16, 0.0 }
 0xb7d   : > { %3215 = vadd.xlane.f32.xlu1 %v3214_v35 }
 0xb7f   : > { %v3151_v18 = vpop.f32.mrf.mxu3 }
 0xb80   : > { %v3152_v27 = vadd.f32 %v3151_v18, %v11240_v43 }
 0xb82   : > { %v11333_v32 = vadd.f32 %v3152_v27, %v14697_v15 }
 0xb84   : > { %14698 = vst [vmem:[#allocation72_spill] sm:$0xff] %v11333_v32  ;;  %v3217_v14 = vsel %vm409_vm13, %v11333_v32, 0.0 }
 0xb89   : > { %v2996_v7 = vpop.permute.xlu0 %2995 }
 0xb8a   : > { %v3063_v17 = vsel %vm3048_vm6, %v3046_v59, %v2996_v7  ;;  %v14705_v59 = vld [vmem:[#allocation20_spill] sm:$0xff] }
 0xb8b   : > { %7619 = vmatmul.msk.f32.gmra.mxu3 %vm409_vm13, %v3063_v17 }
 0xb91   : > { %v2998_v29 = vpop.permute.xlu0 %2997 }
 0xb92   : > { %v3064_v52 = vsel %vm3048_vm6, %v3047_v50, %v2998_v29 }
 0xb93   : > { %7620 = vmatmul.msk.f32.gmra.mxu3 %vm409_vm13, %v3064_v52 }
 0xba5   : > { %v3198_v61 = vpop.xlane.xlu1 %3197 }
 0xba6   : > { %v3244_v3 = vmul.f32 %v3198_v61, %v14696_v53 }
 0xba8   : > { %v11326_v57 = vsub.f32 %v11244_v33, %v3244_v3 }
 0xbaa   : > { %v3276_v36 = vmul.f32 %v11326_v57, %v11326_v57 }
 0xbac   : > { %v3292_v26 = vsel %vm409_vm13, %v3276_v36, 0.0 }
 0xbad   : > { %3293 = vadd.xlane.f32.xlu2 %v3292_v26  ;;  %v14707_v26 = vld [vmem:[#allocation21_spill] sm:$0xff] }
 0xbb5   : > { %3218 = vadd.xlane.f32.xlu2 %v3217_v14 }
 0xbb6   : > { %v3154_v30 = vpop.f32.mrf.mxu3 }
 0xbb7   : > { %v3155_v20 = vadd.f32 %v3154_v30, %v11240_v43 }
 0xbb9   : > { %v11339_v41 = vadd.f32 %v3155_v20, %v14699_v21  ;;  %v3201_v37 = vpop.xlane.xlu2 %3200 }
 0xbba   : > { %v3245_v31 = vmul.f32 %v3201_v37, %v14696_v53 }
 0xbbb   : > { %14700 = vst [vmem:[#allocation39_spill] sm:$0xff] %v11339_v41  ;;  %v3220_v55 = vsel %vm409_vm13, %v11339_v41, 0.0 }
 0xbbc   : > { %v11345_v23 = vsub.f32 %v11264_v8, %v3245_v31  ;;  %3221 = vadd.xlane.f32.xlu0 %v3220_v55  ;;  %v3204_v38 = vpop.xlane.xlu0 %3203 }
 0xbbd   : > { %v3246_v47 = vmul.f32 %v3204_v38, %v14696_v53 }
 0xbbe   : > { %v3157_v60 = vpop.f32.mrf.mxu3  ;;  %v3277_v45 = vmul.f32 %v11345_v23, %v11345_v23 }
 0xbbf   : > { %v11349_v6 = vsub.f32 %v11269_v0, %v3246_v47  ;;  %v3158_v62 = vadd.f32 %v3157_v60, %v11240_v43  ;;  %v14709_v47 = vld [vmem:[#allocation22_spill] sm:$0xff] }
 0xbc0   : > { %v3295_v40 = vsel %vm409_vm13, %v3277_v45, 0.0 }
 0xbc1   : > { %v3207_v19 = vpop.xlane.xlu2 %3206  ;;  %v3278_v46 = vmul.f32 %v11349_v6, %v11349_v6  ;;  %v11365_v49 = vadd.f32 %v3158_v62, %v14701_v2  ;;  %v3580_v2 = vld [vmem:[#allocation2 + $0x18] sm:$0xff] }
 0xbc2   : > { %v3247_v24 = vmul.f32 %v3207_v19, %v14696_v53 }
 0xbc3   : > { %v3298_v9 = vsel %vm409_vm13, %v3278_v46, 0.0  ;;  %14702 = vst [vmem:[#allocation59_spill] sm:$0xff] %v11365_v49  ;;  %v3223_v12 = vsel %vm409_vm13, %v11365_v49, 0.0 }
 0xbc4   : > { %v11360_v11 = vsub.f32 %v11280_v13, %v3247_v24  ;;  %3296 = vadd.xlane.f32.xlu0 %v3295_v40  ;;  %3299 = vadd.xlane.f32.xlu1 %v3298_v9  ;;  %v14711_v24 = vld [vmem:[#allocation23_spill] sm:$0xff] }
 0xbc5   : > { %v3583_v9 = vld [vmem:[#allocation2 + $0xd8] sm:$0xff] }
 0xbc6   : > { %v3160_v5 = vpop.f32.mrf.mxu3  ;;  %v3279_v51 = vmul.f32 %v11360_v11, %v11360_v11  ;;  %3649 = vmatpush.msra.mxu2 %v3583_v9 }
 0xbc7   : > { %v3161_v39 = vadd.f32 %v3160_v5, %v11240_v43  ;;  %v3582_v5 = vld [vmem:[#allocation2 + $0x98] sm:$0xff] }
 0xbc8   : > { %v3301_v48 = vsel %vm409_vm13, %v3279_v51, 0.0  ;;  %3650 = vmatpush.msra.mxu2 %v3582_v5  ;;  %v3581_v51 = vld [vmem:[#allocation2 + $0x58] sm:$0xff] }
 0xbc9   : > { %3302 = vadd.xlane.f32.xlu2 %v3301_v48  ;;  %v11372_v35 = vadd.f32 %v3161_v39, %v14703_v1 }
 0xbca   : > { %3651 = vmatpush.msra.mxu2 %v3581_v51 }
 0xbcb   : > { %14704 = vst [vmem:[#allocation38_spill] sm:$0xff] %v11372_v35  ;;  %v3226_v28 = vsel %vm409_vm13, %v11372_v35, 0.0 }
 0xbcc   : > { %3224 = vadd.xlane.f32.xlu1 %v3223_v12  ;;  %3652 = vmatpush.msra.mxu2 %v3580_v2 }
 0xbce   : > { %v3163_v42 = vpop.f32.mrf.mxu3 }
 0xbcf   : > { %v3164_v58 = vadd.f32 %v3163_v42, %v11240_v43 }
 0xbd1   : > { %v11378_v7 = vadd.f32 %v3164_v58, %v14705_v59  ;;  %3227 = vadd.xlane.f32.xlu2 %v3226_v28 }
 0xbd3   : > { %14706 = vst [vmem:[#allocation69_spill] sm:$0xff] %v11378_v7  ;;  %v3229_v17 = vsel %vm409_vm13, %v11378_v7, 0.0 }
 0xbd4   : > { %3230 = vadd.xlane.f32.xlu0 %v3229_v17 }
 0xbd6   : > { %v3166_v3 = vpop.f32.mrf.mxu3 }
 0xbd7   : > { %v3210_v22 = vpop.xlane.xlu1 %3209  ;;  %v3167_v36 = vadd.f32 %v3166_v3, %v11240_v43 }
 0xbd8   : > { %v3248_v25 = vmul.f32 %v3210_v22, %v14696_v53 }
 0xbd9   : > { %v11398_v15 = vadd.f32 %v3167_v36, %v14707_v26 }
 0xbda   : > { %v11384_v4 = vsub.f32 %v11297_v63, %v3248_v25 }
 0xbdb   : > { %14708 = vst [vmem:[#allocation50_spill] sm:$0xff] %v11398_v15  ;;  %v3232_v14 = vsel %vm409_vm13, %v11398_v15, 0.0 }
 0xbdc   : > { %v3280_v44 = vmul.f32 %v11384_v4, %v11384_v4 }
 0xbde   : > { %v3304_v50 = vsel %vm409_vm13, %v3280_v44, 0.0 }
 0xbdf   : > { %3305 = vadd.xlane.f32.xlu0 %v3304_v50  ;;  %v3213_v29 = vpop.xlane.xlu0 %3212 }
 0xbe0   : > { %v3249_v52 = vmul.f32 %v3213_v29, %v14696_v53 }
 0xbe2   : > { %v11391_v61 = vsub.f32 %v11304_v34, %v3249_v52 }
 0xbe4   : > { %v3281_v18 = vmul.f32 %v11391_v61, %v11391_v61  ;;  %v3169_v37 = vpop.f32.mrf.mxu3 }
 0xbe5   : > { %v3170_v55 = vadd.f32 %v3169_v37, %v11240_v43 }
 0xbe6   : > { %v3307_v27 = vsel %vm409_vm13, %v3281_v18, 0.0 }
 0xbe7   : > { %3308 = vadd.xlane.f32.xlu1 %v3307_v27  ;;  %v11411_v60 = vadd.f32 %v3170_v55, %v14709_v47 }
 0xbe9   : > { %14710 = vst [vmem:[#allocation75_spill] sm:$0xff] %v11411_v60  ;;  %v3235_v45 = vsel %vm409_vm13, %v11411_v60, 0.0 }
 0xbef   : > { %3233 = vadd.xlane.f32.xlu1 %v3232_v14  ;;  %v11439_v14 = vld [vmem:[%s14349_s3 + $0x4] ss:$0 sm:$0xff] }
 0xbf0   : > { %v3216_v30 = vpop.xlane.xlu1 %3215 }
 0xbf1   : > { %v3250_v20 = vmul.f32 %v3216_v30, %v14696_v53 }
 0xbf3   : > { %v11404_v21 = vsub.f32 %v11310_v16, %v3250_v20 }
 0xbf5   : > { %v3282_v31 = vmul.f32 %v11404_v21, %v11404_v21 }
 0xbf7   : > { %v3310_v38 = vsel %vm409_vm13, %v3282_v31, 0.0 }
 0xbf8   : > { %3311 = vadd.xlane.f32.xlu2 %v3310_v38  ;;  %v11446_v38 = vld [vmem:[%s14349_s3 + $0x5] ss:$0 sm:$0xff] }
 0xc00   : > { %3236 = vadd.xlane.f32.xlu2 %v3235_v45 }
 0xc0e   : > { %v3172_v19 = vpop.f32.mrf.mxu3 }
 0xc0f   : > { %v3173_v46 = vadd.f32 %v3172_v19, %v11240_v43  ;;  %v14713_v19 = vld [vmem:[#allocation24_spill] sm:$0xff] }
 0xc11   : > { %v11417_v62 = vadd.f32 %v3173_v46, %v14711_v24 }
 0xc13   : > { %14712 = vst [vmem:[#allocation56_spill] sm:$0xff] %v11417_v62  ;;  %v3238_v40 = vsel %vm409_vm13, %v11417_v62, 0.0 }
 0xc14   : > { %3239 = vadd.xlane.f32.xlu0 %v3238_v40 }
 0xc16   : > { %v3175_v18 = vpop.f32.mrf.mxu3 }
 0xc17   : > { %v3176_v26 = vadd.f32 %v3175_v18, %v11240_v43 }
 0xc19   : > { %v11452_v46 = vadd.f32 %v3176_v26, %v14713_v19 }
 0xc1b   : > { %14714 = vst [vmem:[#allocation79_spill] sm:$0xff] %v11452_v46  ;;  %v3241_v51 = vsel %vm409_vm13, %v11452_v46, 0.0 }
 0xc20   : > { %v3294_v39 = vpop.xlane.xlu2 %3293 }
 0xc21   : > { %v3340_v48 = vmul.f32 %v3294_v39, %v14696_v53 }
 0xc23   : > { %v3356_v12 = vadd.f32 1e-05, %v3340_v48 }
 0xc25   : > { %8553 = vrsqrt.f32 %v3356_v12  ;;  %vm3378_vm8 = vweird.f32 %v3356_v12 }
 0xc28   : > { %v3219_v1 = vpop.xlane.xlu2 %3218 }
 0xc29   : > { %v3251_v42 = vmul.f32 %v3219_v1, %v14696_v53 }
 0xc2b   : > { %v8554_v58 = vpop.eup %8553  ;;  %v11424_v28 = vsub.f32 %v11333_v32, %v3251_v42 }
 0xc2c   : > { %v3373_v59 = vmul.f32 %v8554_v58, %v3356_v12  ;;  %vm3379_vm7 = vweird.f32 %v8554_v58 }
 0xc2d   : > { %v3283_v17 = vmul.f32 %v11424_v28, %v11424_v28  ;;  %vm3380_vm9 = vmor %vm3378_vm8, %vm3379_vm7 }
 0xc2e   : > { %v3374_v22 = vmul.f32 %v8554_v58, %v3373_v59 }
 0xc2f   : > { %v3222_v25 = vpop.xlane.xlu0 %3221  ;;  %v3313_v44 = vsel %vm409_vm13, %v3283_v17, 0.0 }
 0xc30   : > { %v3375_v50 = vmul.f32 0.5, %v3374_v22  ;;  %v3252_v29 = vmul.f32 %v3222_v25, %v14696_v53  ;;  %3314 = vadd.xlane.f32.xlu0 %v3313_v44 }
 0xc32   : > { %v3376_v52 = vsub.f32 1.5, %v3375_v50  ;;  %v11431_v3 = vsub.f32 %v11339_v41, %v3252_v29 }
 0xc34   : > { %v3377_v36 = vmul.f32 %v8554_v58, %v3376_v52  ;;  %v3284_v27 = vmul.f32 %v11431_v3, %v11431_v3 }
 0xc36   : > { %v3381_v30 = vsel %vm3380_vm9, %v8554_v58, %v3377_v36  ;;  %v3316_v20 = vsel %vm409_vm13, %v3284_v27, 0.0 }
 0xc37   : > { %v3532_v37 = vmul.f32 %v3381_v30, %v11326_v57  ;;  %3317 = vadd.xlane.f32.xlu1 %v3316_v20  ;;  %v3297_v31 = vpop.xlane.xlu0 %3296  ;;  %v3300_v55 = vpop.xlane.xlu1 %3299 }
 0xc38   : > { %v3341_v43 = vmul.f32 %v3297_v31, %v14696_v53  ;;  %v3342_v47 = vmul.f32 %v3300_v55, %v14696_v53 }
 0xc39   : > { %v3548_v45 = vmul.f32 %v3532_v37, %v11439_v14 }
 0xc3a   : > { %v3357_v24 = vadd.f32 1e-05, %v3341_v43  ;;  %v3358_v40 = vadd.f32 1e-05, %v3342_v47 }
 0xc3b   : > { %v3564_v57 = vadd.f32 %v3548_v45, %v11446_v38 }
 0xc3c   : > { %8555 = vrsqrt.f32 %v3357_v24  ;;  %v3303_v9 = vpop.xlane.xlu2 %3302  ;;  %vm3388_vm11 = vweird.f32 %v3357_v24  ;;  %vm3398_vm15 = vweird.f32 %v3358_v40 }
 0xc3d   : > { %8557 = vrsqrt.f32 %v3358_v40  ;;  %v3343_v5 = vmul.f32 %v3303_v9, %v14696_v53  ;;  %7621 = vmatmul.msk.f32.vlgmr.msra.gmra.mxu2 %vm409_vm13, %v3564_v57 }
 0xc3f   : > { %v3359_v2 = vadd.f32 1e-05, %v3343_v5  ;;  %3242 = vadd.xlane.f32.xlu1 %v3241_v51  ;;  %v3225_v39 = vpop.xlane.xlu1 %3224 }
 0xc40   : > { %v3253_v48 = vmul.f32 %v3225_v39, %v14696_v53 }
 0xc41   : > { %8559 = vrsqrt.f32 %v3359_v2  ;;  %vm3408_vm3 = vweird.f32 %v3359_v2 }
 0xc42   : > { %v8556_v12 = vpop.eup %8555  ;;  %v11461_v1 = vsub.f32 %v11365_v49, %v3253_v48 }
 0xc43   : > { %v8558_v42 = vpop.eup %8557  ;;  %v3383_v58 = vmul.f32 %v8556_v12, %v3357_v24  ;;  %vm3389_vm10 = vweird.f32 %v8556_v12 }
 0xc44   : > { %v3393_v59 = vmul.f32 %v8558_v42, %v3358_v40  ;;  %v3228_v17 = vpop.xlane.xlu2 %3227  ;;  %v3285_v22 = vmul.f32 %v11461_v1, %v11461_v1  ;;  %vm3399_vm12 = vweird.f32 %v8558_v42  ;;  %vm3390_vm14 = vmor %vm3388_vm11, %vm3389_vm10 }
 0xc45   : > { %v3384_v25 = vmul.f32 %v8556_v12, %v3383_v58  ;;  %v3254_v44 = vmul.f32 %v3228_v17, %v14696_v53  ;;  %vm3400_vm0 = vmor %vm3398_vm15, %vm3399_vm12 }
 0xc46   : > { %v3394_v50 = vmul.f32 %v8558_v42, %v3393_v59  ;;  %v3319_v29 = vsel %vm409_vm13, %v3285_v22, 0.0 }
 0xc47   : > { %v8560_v52 = vpop.eup %8559  ;;  %v3385_v18 = vmul.f32 0.5, %v3384_v25  ;;  %v11468_v36 = vsub.f32 %v11372_v35, %v3254_v44  ;;  %v3231_v27 = vpop.xlane.xlu0 %3230  ;;  %3320 = vadd.xlane.f32.xlu2 %v3319_v29 }
 0xc48   : > { %v3395_v26 = vmul.f32 0.5, %v3394_v50  ;;  %v3403_v30 = vmul.f32 %v8560_v52, %v3359_v2  ;;  %v3255_v20 = vmul.f32 %v3231_v27, %v14696_v53  ;;  %vm3409_vm1 = vweird.f32 %v8560_v52 }
 0xc49   : > { %v3386_v37 = vsub.f32 1.5, %v3385_v18  ;;  %v3286_v31 = vmul.f32 %v11468_v36, %v11468_v36  ;;  %vm3410_vm4 = vmor %vm3408_vm3, %vm3409_vm1 }
 0xc4a   : > { %v3396_v55 = vsub.f32 1.5, %v3395_v26  ;;  %v3404_v43 = vmul.f32 %v8560_v52, %v3403_v30  ;;  %v11474_v47 = vsub.f32 %v11378_v7, %v3255_v20 }
 0xc4b   : > { %v3387_v45 = vmul.f32 %v8556_v12, %v3386_v37  ;;  %v3322_v19 = vsel %vm409_vm13, %v3286_v31, 0.0 }
 0xc4c   : > { %v3397_v57 = vmul.f32 %v8558_v42, %v3396_v55  ;;  %v3405_v9 = vmul.f32 0.5, %v3404_v43  ;;  %3323 = vadd.xlane.f32.xlu0 %v3322_v19  ;;  %v3287_v5 = vmul.f32 %v11474_v47, %v11474_v47 }
 0xc4d   : > { %v3391_v51 = vsel %vm3390_vm14, %v8556_v12, %v3387_v45 }
 0xc4e   : > { %v3533_v39 = vmul.f32 %v3391_v51, %v11345_v23  ;;  %v3325_v48 = vsel %vm409_vm13, %v3287_v5, 0.0  ;;  %v3401_v58 = vsel %vm3400_vm0, %v8558_v42, %v3397_v57  ;;  %v3406_v59 = vsub.f32 1.5, %v3405_v9 }
 0xc4f   : > { %3326 = vadd.xlane.f32.xlu2 %v3325_v48  ;;  %v3534_v17 = vmul.f32 %v3401_v58, %v11349_v6 }
 0xc50   : > { %v3549_v24 = vmul.f32 %v3533_v39, %v11439_v14  ;;  %v3407_v44 = vmul.f32 %v8560_v52, %v3406_v59 }
 0xc51   : > { %v3550_v40 = vmul.f32 %v3534_v17, %v11439_v14 }
 0xc52   : > { %v3306_v22 = vpop.xlane.xlu0 %3305  ;;  %v3565_v25 = vadd.f32 %v3549_v24, %v11446_v38  ;;  %v3411_v42 = vsel %vm3410_vm4, %v8560_v52, %v3407_v44 }
 0xc53   : > { %v3344_v12 = vmul.f32 %v3306_v22, %v14696_v53  ;;  %v3535_v50 = vmul.f32 %v3411_v42, %v11360_v11  ;;  %v3566_v6 = vadd.f32 %v3550_v40, %v11446_v38 }
 0xc54   : > { %7622 = vmatmul.msk.f32.gmra.mxu2 %vm409_vm13, %v3565_v25 }
 0xc55   : > { %v3360_v23 = vadd.f32 1e-05, %v3344_v12  ;;  %v3551_v2 = vmul.f32 %v3535_v50, %v11439_v14 }
 0xc57   : > { %8561 = vrsqrt.f32 %v3360_v23  ;;  %v3567_v52 = vadd.f32 %v3551_v2, %v11446_v38  ;;  %vm3418_vm8 = vweird.f32 %v3360_v23 }
 0xc5a   : > { %v3309_v29 = vpop.xlane.xlu1 %3308 }
 0xc5b   : > { %v3345_v18 = vmul.f32 %v3309_v29, %v14696_v53 }
 0xc5c   : > { %7623 = vmatmul.msk.f32.gmra.mxu2 %vm409_vm13, %v3566_v6 }
 0xc5d   : > { %v8562_v27 = vpop.eup %8561  ;;  %v3361_v26 = vadd.f32 1e-05, %v3345_v18 }
 0xc5e   : > { %v3413_v30 = vmul.f32 %v8562_v27, %v3360_v23  ;;  %vm3419_vm7 = vweird.f32 %v8562_v27 }
 0xc5f   : > { %8563 = vrsqrt.f32 %v3361_v26  ;;  %vm3420_vm9 = vmor %vm3418_vm8, %vm3419_vm7  ;;  %vm3428_vm11 = vweird.f32 %v3361_v26 }
 0xc60   : > { %v3414_v20 = vmul.f32 %v8562_v27, %v3413_v30 }
 0xc62   : > { %v3415_v37 = vmul.f32 0.5, %v3414_v20  ;;  %v3234_v31 = vpop.xlane.xlu1 %3233 }
 0xc63   : > { %v3256_v11 = vmul.f32 %v3234_v31, %v14696_v53 }
 0xc64   : > { %v3416_v55 = vsub.f32 1.5, %v3415_v37  ;;  %7624 = vmatmul.msk.f32.gmra.mxu2 %vm409_vm13, %v3567_v52 }
 0xc65   : > { %v8564_v43 = vpop.eup %8563  ;;  %v11496_v45 = vsub.f32 %v11398_v15, %v3256_v11 }
 0xc66   : > { %v3417_v19 = vmul.f32 %v8562_v27, %v3416_v55  ;;  %v3423_v57 = vmul.f32 %v8564_v43, %v3361_v26  ;;  %vm3429_vm10 = vweird.f32 %v8564_v43 }
 0xc67   : > { %v3288_v9 = vmul.f32 %v11496_v45, %v11496_v45  ;;  %vm3430_vm12 = vmor %vm3428_vm11, %vm3429_vm10 }
 0xc68   : > { %v3421_v5 = vsel %vm3420_vm9, %v8562_v27, %v3417_v19  ;;  %v3424_v51 = vmul.f32 %v8564_v43, %v3423_v57 }
 0xc69   : > { %v3536_v39 = vmul.f32 %v3421_v5, %v11384_v4  ;;  %v3328_v48 = vsel %vm409_vm13, %v3288_v9, 0.0 }
 0xc6a   : > { %v3425_v58 = vmul.f32 0.5, %v3424_v51  ;;  %3329 = vadd.xlane.f32.xlu1 %v3328_v48 }
 0xc6b   : > { %v3312_v59 = vpop.xlane.xlu2 %3311  ;;  %v3552_v24 = vmul.f32 %v3536_v39, %v11439_v14 }
 0xc6c   : > { %v3426_v17 = vsub.f32 1.5, %v3425_v58  ;;  %v3346_v22 = vmul.f32 %v3312_v59, %v14696_v53 }
 0xc6d   : > { %v3568_v25 = vadd.f32 %v3552_v24, %v11446_v38 }
 0xc6e   : > { %v3427_v44 = vmul.f32 %v8564_v43, %v3426_v17  ;;  %v3362_v12 = vadd.f32 1e-05, %v3346_v22 }
 0xc6f   : > { %7625 = vmatmul.msk.f32.gmra.mxu2 %vm409_vm13, %v3568_v25 }
 0xc70   : > { %v3431_v4 = vsel %vm3430_vm12, %v8564_v43, %v3427_v44  ;;  %8565 = vrsqrt.f32 %v3362_v12  ;;  %vm3438_vm15 = vweird.f32 %v3362_v12 }
 0xc71   : > { %v3537_v23 = vmul.f32 %v3431_v4, %v11391_v61 }
 0xc73   : > { %v3237_v40 = vpop.xlane.xlu2 %3236  ;;  %v3553_v42 = vmul.f32 %v3537_v23, %v11439_v14 }
 0xc74   : > { %v3257_v50 = vmul.f32 %v3237_v40, %v14696_v53 }
 0xc75   : > { %v3569_v29 = vadd.f32 %v3553_v42, %v11446_v38 }
 0xc76   : > { %v8566_v6 = vpop.eup %8565  ;;  %v11511_v18 = vsub.f32 %v11411_v60, %v3257_v50 }
 0xc77   : > { %v3433_v27 = vmul.f32 %v8566_v6, %v3362_v12  ;;  %7626 = vmatmul.msk.f32.gmra.mxu2 %vm409_vm13, %v3569_v29  ;;  %vm3439_vm14 = vweird.f32 %v8566_v6 }
 0xc78   : > { %v3289_v26 = vmul.f32 %v11511_v18, %v11511_v18  ;;  %vm3440_vm0 = vmor %vm3438_vm15, %vm3439_vm14 }
 0xc79   : > { %v3434_v30 = vmul.f32 %v8566_v6, %v3433_v27 }
 0xc7a   : > { %v3331_v61 = vsel %vm409_vm13, %v3289_v26, 0.0 }
 0xc7b   : > { %v3435_v2 = vmul.f32 0.5, %v3434_v30  ;;  %3332 = vadd.xlane.f32.xlu0 %v3331_v61 }
 0xc7d   : > { %v3436_v20 = vsub.f32 1.5, %v3435_v2 }
 0xc7f   : > { %v3437_v37 = vmul.f32 %v8566_v6, %v3436_v20 }
 0xc81   : > { %v3441_v31 = vsel %vm3440_vm0, %v8566_v6, %v3437_v37 }
 0xc82   : > { %v3538_v52 = vmul.f32 %v3441_v31, %v11404_v21 }
 0xc84   : > { %v3554_v11 = vmul.f32 %v3538_v52, %v11439_v14 }
 0xc86   : > { %v3570_v55 = vadd.f32 %v3554_v11, %v11446_v38 }
 0xc87   : > { %v3240_v43 = vpop.xlane.xlu0 %3239 }
 0xc88   : > { %v3258_v19 = vmul.f32 %v3240_v43, %v14696_v53  ;;  %7627 = vmatmul.msk.f32.gmra.mxu2 %vm409_vm13, %v3570_v55 }
 0xc8a   : > { %v11523_v57 = vsub.f32 %v11417_v62, %v3258_v19 }
 0xc8c   : > { %v3290_v9 = vmul.f32 %v11523_v57, %v11523_v57 }
 0xc8e   : > { %v3334_v5 = vsel %vm409_vm13, %v3290_v9, 0.0 }
 0xc8f   : > { %3335 = vadd.xlane.f32.xlu2 %v3334_v5 }
 0xca3   : > { %v3315_v51 = vpop.xlane.xlu0 %3314 }
 0xca4   : > { %v3347_v21 = vmul.f32 %v3315_v51, %v14696_v53 }
 0xca6   : > { %v3363_v39 = vadd.f32 1e-05, %v3347_v21 }
 0xca8   : > { %8567 = vrsqrt.f32 %v3363_v39  ;;  %vm3448_vm3 = vweird.f32 %v3363_v39 }
 0xcaa   : > { %v3318_v48 = vpop.xlane.xlu1 %3317 }
 0xcab   : > { %v3348_v58 = vmul.f32 %v3318_v48, %v14696_v53 }
 0xcad   : > { %v3364_v59 = vadd.f32 1e-05, %v3348_v58 }
 0xcae   : > { %v8568_v24 = vpop.eup %8567 }
 0xcaf   : > { %v3443_v17 = vmul.f32 %v8568_v24, %v3363_v39  ;;  %8569 = vrsqrt.f32 %v3364_v59  ;;  %vm3449_vm1 = vweird.f32 %v8568_v24  ;;  %vm3458_vm8 = vweird.f32 %v3364_v59 }
 0xcb0   : > { %vm3450_vm4 = vmor %vm3448_vm3, %vm3449_vm1 }
 0xcb1   : > { %v3444_v22 = vmul.f32 %v8568_v24, %v3443_v17 }
 0xcb2   : > { %v3243_v25 = vpop.xlane.xlu1 %3242 }
 0xcb3   : > { %v3445_v44 = vmul.f32 0.5, %v3444_v22  ;;  %v3259_v12 = vmul.f32 %v3243_v25, %v14696_v53 }
 0xcb5   : > { %v8570_v4 = vpop.eup %8569  ;;  %v3446_v23 = vsub.f32 1.5, %v3445_v44  ;;  %v11532_v40 = vsub.f32 %v11452_v46, %v3259_v12 }
 0xcb6   : > { %v3453_v42 = vmul.f32 %v8570_v4, %v3364_v59  ;;  %vm3459_vm7 = vweird.f32 %v8570_v4 }
 0xcb7   : > { %v3447_v50 = vmul.f32 %v8568_v24, %v3446_v23  ;;  %v3291_v29 = vmul.f32 %v11532_v40, %v11532_v40  ;;  %vm3460_vm9 = vmor %vm3458_vm8, %vm3459_vm7 }
 0xcb8   : > { %v3454_v6 = vmul.f32 %v8570_v4, %v3453_v42 }
 0xcb9   : > { %v3451_v27 = vsel %vm3450_vm4, %v8568_v24, %v3447_v50  ;;  %v3337_v26 = vsel %vm409_vm13, %v3291_v29, 0.0 }
 0xcba   : > { %v3539_v30 = vmul.f32 %v3451_v27, %v11424_v28  ;;  %v3455_v61 = vmul.f32 0.5, %v3454_v6  ;;  %3338 = vadd.xlane.f32.xlu1 %v3337_v26  ;;  %v3321_v2 = vpop.xlane.xlu2 %3320 }
 0xcbb   : > { %v3349_v20 = vmul.f32 %v3321_v2, %v14696_v53 }
 0xcbc   : > { %v3456_v37 = vsub.f32 1.5, %v3455_v61  ;;  %v3555_v31 = vmul.f32 %v3539_v30, %v11439_v14 }
 0xcbd   : > { %v3365_v52 = vadd.f32 1e-05, %v3349_v20 }
 0xcbe   : > { %v3457_v11 = vmul.f32 %v8570_v4, %v3456_v37  ;;  %v3571_v55 = vadd.f32 %v3555_v31, %v11446_v38 }
 0xcbf   : > { %8571 = vrsqrt.f32 %v3365_v52  ;;  %v3324_v43 = vpop.xlane.xlu0 %3323  ;;  %vm3468_vm11 = vweird.f32 %v3365_v52 }
 0xcc0   : > { %v3461_v19 = vsel %vm3460_vm9, %v8570_v4, %v3457_v11  ;;  %v3350_v28 = vmul.f32 %v3324_v43, %v14696_v53  ;;  %v11542_v9 = vpop.f32.mrf.mxu2  ;;  %7628 = vmatmul.msk.f32.gmra.mxu2 %vm409_vm13, %v3571_v55 }
 0xcc1   : > { %v3540_v5 = vmul.f32 %v3461_v19, %v11431_v3  ;;  %3718 = vrot.lane.b32.xlu0 %v11542_v9, %s9046_s28  ;;  %4168 = vrot.lane.b32.xlu2 %v11542_v9, %s9047_s29 }
 0xcc2   : > { %v3366_v51 = vadd.f32 1e-05, %v3350_v28  ;;  %v3327_v21 = vpop.xlane.xlu2 %3326 }
 0xcc3   : > { %v3351_v39 = vmul.f32 %v3327_v21, %v14696_v53  ;;  %v3556_v48 = vmul.f32 %v3540_v5, %v11439_v14 }
 0xcc4   : > { %8573 = vrsqrt.f32 %v3366_v51  ;;  %vm3478_vm15 = vweird.f32 %v3366_v51 }
 0xcc5   : > { %v8572_v58 = vpop.eup %8571  ;;  %v3367_v59 = vadd.f32 1e-05, %v3351_v39  ;;  %v3572_v17 = vadd.f32 %v3556_v48, %v11446_v38 }
 0xcc6   : > { %v3463_v24 = vmul.f32 %v8572_v58, %v3365_v52  ;;  %vm3469_vm10 = vweird.f32 %v8572_v58 }
 0xcc7   : > { %8575 = vrsqrt.f32 %v3367_v59  ;;  %vm3470_vm12 = vmor %vm3468_vm11, %vm3469_vm10  ;;  %vm3488_vm3 = vweird.f32 %v3367_v59 }
 0xcc8   : > { %v3464_v3 = vmul.f32 %v8572_v58, %v3463_v24  ;;  %7629 = vmatmul.msk.f32.gmra.mxu2 %vm409_vm13, %v3572_v17 }
 0xcca   : > { %v8574_v22 = vpop.eup %8573  ;;  %v3465_v25 = vmul.f32 0.5, %v3464_v3 }
 0xccb   : > { %v3473_v44 = vmul.f32 %v8574_v22, %v3366_v51  ;;  %vm3479_vm14 = vweird.f32 %v8574_v22 }
 0xccc   : > { %v3466_v12 = vsub.f32 1.5, %v3465_v25  ;;  %vm3480_vm0 = vmor %vm3478_vm15, %vm3479_vm14 }
 0xccd   : > { %v8576_v4 = vpop.eup %8575  ;;  %v3474_v23 = vmul.f32 %v8574_v22, %v3473_v44 }
 0xcce   : > { %v3467_v42 = vmul.f32 %v8572_v58, %v3466_v12  ;;  %v3483_v50 = vmul.f32 %v8576_v4, %v3367_v59  ;;  %vm3489_vm1 = vweird.f32 %v8576_v4 }
 0xccf   : > { %v3475_v29 = vmul.f32 0.5, %v3474_v23  ;;  %vm3490_vm4 = vmor %vm3488_vm3, %vm3489_vm1 }
 0xcd0   : > { %v3471_v6 = vsel %vm3470_vm12, %v8572_v58, %v3467_v42  ;;  %v3484_v27 = vmul.f32 %v8576_v4, %v3483_v50 }
 0xcd1   : > { %v3541_v26 = vmul.f32 %v3471_v6, %v11461_v1  ;;  %v3476_v30 = vsub.f32 1.5, %v3475_v29 }
 0xcd2   : > { %v3485_v61 = vmul.f32 0.5, %v3484_v27 }
 0xcd3   : > { %v3477_v2 = vmul.f32 %v8574_v22, %v3476_v30  ;;  %4136 = vrot.lane.b32.xlu1 %v11542_v9, %s9049_s5  ;;  %v3557_v20 = vmul.f32 %v3541_v26, %v11439_v14 }
 0xcd4   : > { %v3486_v37 = vsub.f32 1.5, %v3485_v61 }
 0xcd5   : > { %v3481_v31 = vsel %vm3480_vm0, %v8574_v22, %v3477_v2  ;;  %v3573_v52 = vadd.f32 %v3557_v20, %v11446_v38 }
 0xcd6   : > { %v3542_v11 = vmul.f32 %v3481_v31, %v11468_v36  ;;  %v3487_v55 = vmul.f32 %v8576_v4, %v3486_v37 }
 0xcd7   : > { %v11560_v1 = vpop.f32.mrf.mxu2  ;;  %7630 = vmatmul.msk.f32.gmra.mxu2 %vm409_vm13, %v3573_v52 }
 0xcd8   : > { %4170 = vrot.lane.b32.xlu0 %v11560_v1, %s9047_s29  ;;  %3720 = vrot.lane.b32.xlu2 %v11560_v1, %s9046_s28  ;;  %v3558_v43 = vmul.f32 %v3542_v11, %v11439_v14  ;;  %v3491_v19 = vsel %vm3490_vm4, %v8576_v4, %v3487_v55 }
 0xcd9   : > { %v3543_v36 = vmul.f32 %v3491_v19, %v11474_v47 }
 0xcda   : > { %v3574_v5 = vadd.f32 %v3558_v43, %v11446_v38 }
 0xcdb   : > { %4138 = vrot.lane.b32.xlu1 %v11560_v1, %s9049_s5  ;;  %v3559_v48 = vmul.f32 %v3543_v36, %v11439_v14 }
 0xcdd   : > { %v3330_v28 = vpop.xlane.xlu1 %3329  ;;  %v3575_v47 = vadd.f32 %v3559_v48, %v11446_v38 }
 0xcde   : > { %v3352_v51 = vmul.f32 %v3330_v28, %v14696_v53 }
 0xcdf   : > { %v11573_v21 = vpop.f32.mrf.mxu2  ;;  %7631 = vmatmul.msk.f32.gmra.mxu2 %vm409_vm13, %v3574_v5 }
 0xce0   : > { %v3368_v39 = vadd.f32 1e-05, %v3352_v51  ;;  %3722 = vrot.lane.b32.xlu0 %v11573_v21, %s9046_s28  ;;  %4140 = vrot.lane.b32.xlu2 %v11573_v21, %s9049_s5 }
 0xce2   : > { %8577 = vrsqrt.f32 %v3368_v39  ;;  %vm3498_vm8 = vweird.f32 %v3368_v39 }
 0xce3   : > { %4172 = vrot.lane.b32.xlu1 %v11573_v21, %s9047_s29 }
 0xce7   : > { %v11584_v58 = vpop.f32.mrf.mxu2  ;;  %7632 = vmatmul.msk.f32.gmra.mxu2 %vm409_vm13, %v3575_v47 }
 0xce8   : > { %v8578_v59 = vpop.eup %8577  ;;  %5072 = vrot.lane.b32.xlu0 %v11573_v21, %s9050_s6  ;;  %4174 = vrot.lane.b32.xlu2 %v11584_v58, %s9047_s29 }
 0xce9   : > { %v3493_v24 = vmul.f32 %v8578_v59, %v3368_v39  ;;  %vm3499_vm7 = vweird.f32 %v8578_v59 }
 0xcea   : > { %vm3500_vm9 = vmor %vm3498_vm8, %vm3499_vm7 }
 0xceb   : > { %v3494_v17 = vmul.f32 %v8578_v59, %v3493_v24  ;;  %3724 = vrot.lane.b32.xlu1 %v11584_v58, %s9046_s28 }
 0xced   : > { %v3495_v3 = vmul.f32 0.5, %v3494_v17 }
 0xcee   : > { %v3333_v22 = vpop.xlane.xlu0 %3332 }
 0xcef   : > { %v3496_v25 = vsub.f32 1.5, %v3495_v3  ;;  %v3353_v44 = vmul.f32 %v3333_v22, %v14696_v53 }
 0xcf0   : > { %4142 = vrot.lane.b32.xlu0 %v11584_v58, %s9049_s5 }
 0xcf1   : > { %v3497_v12 = vmul.f32 %v8578_v59, %v3496_v25  ;;  %v3369_v4 = vadd.f32 1e-05, %v3353_v44 }
 0xcf2   : > { %v11596_v23 = vpop.f32.mrf.mxu2 }
 0xcf3   : > { %14715 = vst [vmem:[#allocation63_spill] sm:$0xff] %v11596_v23  ;;  %v3501_v42 = vsel %vm3500_vm9, %v8578_v59, %v3497_v12  ;;  %8579 = vrsqrt.f32 %v3369_v4  ;;  %5074 = vrot.lane.b32.xlu1 %v11584_v58, %s9050_s6  ;;  %3726 = vrot.lane.b32.xlu2 %v11596_v23, %s9046_s28  ;;  %vm3508_vm11 = vweird.f32 %v3369_v4 }
 0xcf4   : > { %v3544_v50 = vmul.f32 %v3501_v42, %v11496_v45 }
 0xcf6   : > { %v3560_v29 = vmul.f32 %v3544_v50, %v11439_v14 }
 0xcf8   : > { %4176 = vrot.lane.b32.xlu0 %v11596_v23, %s9047_s29  ;;  %v3576_v6 = vadd.f32 %v3560_v29, %v11446_v38 }
 0xcf9   : > { %v8580_v27 = vpop.eup %8579 }
 0xcfa   : > { %v3503_v26 = vmul.f32 %v8580_v27, %v3369_v4  ;;  %v11607_v30 = vpop.f32.mrf.mxu2  ;;  %7633 = vmatmul.msk.f32.gmra.mxu2 %vm409_vm13, %v3576_v6  ;;  %vm3509_vm10 = vweird.f32 %v8580_v27 }
 0xcfb   : > { %14716 = vst [vmem:[#allocation65_spill] sm:$0xff] %v11607_v30  ;;  %4144 = vrot.lane.b32.xlu1 %v11596_v23, %s9049_s5  ;;  %4146 = vrot.lane.b32.xlu2 %v11607_v30, %s9049_s5  ;;  %vm3510_vm12 = vmor %vm3508_vm11, %vm3509_vm10 }
 0xcfc   : > { %v3504_v45 = vmul.f32 %v8580_v27, %v3503_v26 }
 0xcfe   : > { %v3505_v61 = vmul.f32 0.5, %v3504_v45 }
 0xd00   : > { %v3506_v2 = vsub.f32 1.5, %v3505_v61  ;;  %3728 = vrot.lane.b32.xlu0 %v11607_v30, %s9046_s28 }
 0xd02   : > { %v3507_v20 = vmul.f32 %v8580_v27, %v3506_v2  ;;  %v3336_v37 = vpop.xlane.xlu2 %3335 }
 0xd03   : > { %5076 = vrot.lane.b32.xlu1 %v11596_v23, %s9050_s6  ;;  %v3354_v31 = vmul.f32 %v3336_v37, %v14696_v53  ;;  %5078 = vrot.lane.b32.xlu2 %v11607_v30, %s9050_s6 }
 0xd04   : > { %v3511_v52 = vsel %vm3510_vm12, %v8580_v27, %v3507_v20 }
 0xd05   : > { %v3545_v11 = vmul.f32 %v3511_v52, %v11511_v18  ;;  %v3370_v55 = vadd.f32 1e-05, %v3354_v31 }
 0xd07   : > { %8581 = vrsqrt.f32 %v3370_v55  ;;  %v3561_v43 = vmul.f32 %v3545_v11, %v11439_v14  ;;  %vm3518_vm15 = vweird.f32 %v3370_v55 }
 0xd09   : > { %v3577_v19 = vadd.f32 %v3561_v43, %v11446_v38 }
 0xd0b   : > { %4178 = vrot.lane.b32.xlu1 %v11607_v30, %s9047_s29  ;;  %v11626_v36 = vpop.f32.mrf.mxu2  ;;  %4628 = vrot.lane.b32.xlu2 %v11607_v30, %s9051_s7 }
 0xd0c   : > { %14717 = vst [vmem:[#allocation73_spill] sm:$0xff] %v11626_v36  ;;  %7634 = vmatmul.msk.f32.gmra.mxu2 %vm409_vm13, %v3577_v19  ;;  %4148 = vrot.lane.b32.xlu0 %v11626_v36, %s9049_s5 }
 0xd0d   : > { %v8582_v18 = vpop.eup %8581 }
 0xd0e   : > { %v3513_v28 = vmul.f32 %v8582_v18, %v3370_v55  ;;  %vm3519_vm14 = vweird.f32 %v8582_v18 }
 0xd0f   : > { %vm3520_vm0 = vmor %vm3518_vm15, %vm3519_vm14 }
 0xd10   : > { %v3514_v5 = vmul.f32 %v8582_v18, %v3513_v28 }
 0xd12   : > { %v3515_v51 = vmul.f32 0.5, %v3514_v5 }
 0xd13   : > { %3730 = vrot.lane.b32.xlu1 %v11626_v36, %s9046_s28  ;;  %4180 = vrot.lane.b32.xlu2 %v11626_v36, %s9047_s29 }
 0xd14   : > { %v3516_v39 = vsub.f32 1.5, %v3515_v51  ;;  %4630 = vrot.lane.b32.xlu0 %v11626_v36, %s9051_s7 }
 0xd16   : > { %v3517_v48 = vmul.f32 %v8582_v18, %v3516_v39 }
 0xd18   : > { %v3521_v47 = vsel %vm3520_vm0, %v8582_v18, %v3517_v48 }
 0xd19   : > { %v3546_v59 = vmul.f32 %v3521_v47, %v11523_v57 }
 0xd1b   : > { %5080 = vrot.lane.b32.xlu2 %v11626_v36, %s9050_s6  ;;  %v3562_v24 = vmul.f32 %v3546_v59, %v11439_v14  ;;  %v11732_v28 = vpop.permute.xlu2 %4168 }
 0xd1d   : > { %v3578_v17 = vadd.f32 %v3562_v24, %v11446_v38 }
 0xd1f   : > { %7635 = vmatmul.msk.f32.gmra.mxu2 %vm409_vm13, %v3578_v17 }
 0xd2d   : > { %v3339_v3 = vpop.xlane.xlu1 %3338 }
 0xd2e   : > { %v3355_v22 = vmul.f32 %v3339_v3, %v14696_v53 }
 0xd30   : > { %v3371_v25 = vadd.f32 1e-05, %v3355_v22 }
 0xd32   : > { %8583 = vrsqrt.f32 %v3371_v25  ;;  %vm3528_vm3 = vweird.f32 %v3371_v25  ;;  %v11742_v39 = vpop.permute.xlu2 %3720 }
 0xd38   : > { %v8584_v44 = vpop.eup %8583 }
 0xd39   : > { %v3523_v12 = vmul.f32 %v8584_v44, %v3371_v25  ;;  %vm3529_vm1 = vweird.f32 %v8584_v44 }
 0xd3a   : > { %vm3530_vm4 = vmor %vm3528_vm3, %vm3529_vm1  ;;  %v11756_v59 = vpop.permute.xlu2 %4140 }
 0xd3b   : > { %v3524_v4 = vmul.f32 %v8584_v44, %v3523_v12 }
 0xd3d   : > { %v3525_v42 = vmul.f32 0.5, %v3524_v4 }
 0xd3f   : > { %v3526_v50 = vsub.f32 1.5, %v3525_v42 }
 0xd41   : > { %v3527_v57 = vmul.f32 %v8584_v44, %v3526_v50 }
 0xd42   : > { %v11770_v3 = vpop.permute.xlu2 %4174 }
 0xd43   : > { %v3531_v29 = vsel %vm3530_vm4, %v8584_v44, %v3527_v57  ;;  %v11646_v6 = vpop.f32.mrf.mxu2 }
 0xd44   : > { %14718 = vst [vmem:[#allocation76_spill] sm:$0xff] %v11646_v6  ;;  %v3547_v27 = vmul.f32 %v3531_v29, %v11532_v40  ;;  %4150 = vrot.lane.b32.xlu1 %v11646_v6, %s9049_s5  ;;  %3732 = vrot.lane.b32.xlu2 %v11646_v6, %s9046_s28  ;;  %v11680_v40 = vpop.permute.xlu0 %3718 }
 0xd45   : > { %4182 = vrot.lane.b32.xlu0 %v11646_v6, %s9047_s29 }
 0xd46   : > { %v3563_v26 = vmul.f32 %v3547_v27, %v11439_v14 }
 0xd48   : > { %v3579_v45 = vadd.f32 %v3563_v26, %v11446_v38  ;;  %v11678_v38 = vpop.permute.xlu1 %4136 }
 0xd4a   : > { %7636 = vmatmul.msk.f32.gmra.mxu2 %vm409_vm13, %v3579_v45 }
 0xd4b   : > { %v11658_v61 = vpop.f32.mrf.mxu2 }
 0xd4c   : > { %14719 = vst [vmem:[#allocation80_spill] sm:$0xff] %v11658_v61  ;;  %4152 = vrot.lane.b32.xlu2 %v11658_v61, %s9049_s5  ;;  %4184 = vrot.lane.b32.xlu1 %v11658_v61, %s9047_s29  ;;  %v11692_v37 = vpop.permute.xlu0 %4170 }
 0xd4d   : > { %5082 = vrot.lane.b32.xlu0 %v11646_v6, %s9050_s6  ;;  %v11784_v12 = vpop.permute.xlu2 %3726 }
 0xd50   : > { %v11688_v2 = vpop.permute.xlu1 %4138 }
 0xd54   : > { %4634 = vrot.lane.b32.xlu1 %v11658_v61, %s9051_s7  ;;  %v11706_v52 = vpop.permute.xlu0 %3722 }
 0xd55   : > { %4632 = vrot.lane.b32.xlu0 %v11646_v6, %s9051_s7  ;;  %v11798_v50 = vpop.permute.xlu2 %4146 }
 0xd56   : > { %14731 = vst [vmem:[#allocation77_spill] sm:$0xff] %v11798_v50 }
 0xd58   : > { %v11700_v31 = vpop.permute.xlu1 %4172 }
 0xd5a   : > { %v11670_v14 = vpop.f32.mrf.mxu2 }
 0xd5b   : > { %14720 = vst [vmem:[#allocation44_spill] sm:$0xff] %v11670_v14  ;;  %4186 = vrot.lane.b32.xlu2 %v11670_v14, %s9047_s29 }
 0xd5c   : > { %3736 = vrot.lane.b32.xlu1 %v11670_v14, %s9046_s28  ;;  %v11720_v43 = vpop.permute.xlu0 %5072 }
 0xd5d   : > { %3734 = vrot.lane.b32.xlu0 %v11658_v61, %s9046_s28  ;;  %14723 = vst [vmem:[#allocation58_spill] sm:$0xff] %v11720_v43  ;;  %v11814_v45 = vpop.permute.xlu2 %5078 }
 0xd5e   : > { %14734 = vst [vmem:[#allocation88_spill] sm:$0xff] %v11814_v45  ;;  %v11919_v45 = vpack.i.bf16 %v11596_v23, %v11607_v30 }
 0xd60   : > { %v11714_v55 = vpop.permute.xlu1 %3724 }
 0xd62   : > { %v11690_v20 = vpop.f32.mrf.mxu2 }
 0xd63   : > { %4154 = vrot.lane.b32.xlu2 %v11670_v14, %s9049_s5  ;;  %14721 = vst [vmem:[#allocation49_spill] sm:$0xff] %v11690_v20 }
 0xd64   : > { %5086 = vrot.lane.b32.xlu1 %v11670_v14, %s9050_s6  ;;  %v11734_v5 = vpop.permute.xlu0 %4142 }
 0xd65   : > { %5084 = vrot.lane.b32.xlu0 %v11658_v61, %s9050_s6  ;;  %v11828_v49 = vpop.permute.xlu2 %4628 }
 0xd66   : > { %14737 = vst [vmem:[#allocation83_spill] sm:$0xff] %v11828_v49 }
 0xd68   : > { %v11730_v18 = vpop.permute.xlu1 %5074 }
 0xd69   : > { %14725 = vst [vmem:[#allocation64_spill] sm:$0xff] %v11730_v18 }
 0xd6a   : > { %v11710_v11 = vpop.f32.mrf.mxu2 }
 0xd6b   : > { %3738 = vrot.lane.b32.xlu2 %v11690_v20, %s9046_s28  ;;  %14722 = vst [vmem:[#allocation53_spill] sm:$0xff] %v11710_v11  ;;  %v11866_v53 = vpack.i.bf16 %v11690_v20, %v11710_v11 }
 0xd6c   : > { %4636 = vrot.lane.b32.xlu1 %v11670_v14, %s9051_s7  ;;  %v11748_v47 = vpop.permute.xlu0 %4176 }
 0xd6d   : > { %4188 = vrot.lane.b32.xlu0 %v11690_v20, %s9047_s29  ;;  %v11842_v0 = vpop.permute.xlu2 %4180 }
 0xd70   : > { %v11744_v48 = vpop.permute.xlu1 %4144 }
 0xd73   : > { %4638 = vrot.lane.b32.xlu2 %v11690_v20, %s9051_s7 }
 0xd74   : > { %5088 = vrot.lane.b32.xlu1 %v11690_v20, %s9050_s6  ;;  %v11764_v17 = vpop.permute.xlu0 %3728 }
 0xd75   : > { %4156 = vrot.lane.b32.xlu0 %v11690_v20, %s9049_s5  ;;  %v11856_v35 = vpop.permute.xlu2 %5080 }
 0xd76   : > { %14740 = vst [vmem:[#allocation84_spill] sm:$0xff] %v11856_v35 }
 0xd78   : > { %v11758_v24 = vpop.permute.xlu1 %5076 }
 0xd79   : > { %14727 = vst [vmem:[#allocation86_spill] sm:$0xff] %v11758_v24 }
 0xd7b   : > { %5090 = vrot.lane.b32.xlu2 %v11710_v11, %s9050_s6 }
 0xd7c   : > { %4190 = vrot.lane.b32.xlu1 %v11710_v11, %s9047_s29 }
 0xd7d   : > { %3740 = vrot.lane.b32.xlu0 %v11710_v11, %s9046_s28  ;;  %v11722_v19 = vpop.f32.mrf.mxu2 }
 0xd7e   : > { %14724 = vst [vmem:[#allocation34_spill] sm:$0xff] %v11722_v19  ;;  %v11776_v25 = vpop.permute.xlu0 %4148 }
 0xd7f   : > { %14728 = vst [vmem:[#allocation27_spill] sm:$0xff] %v11776_v25 }
 0xd80   : > { %v11772_v22 = vpop.permute.xlu1 %4178 }
 0xd83   : > { %4158 = vrot.lane.b32.xlu2 %v11710_v11, %s9049_s5 }
 0xd84   : > { %3742 = vrot.lane.b32.xlu1 %v11722_v19, %s9046_s28 }
 0xd85   : > { %4642 = vrot.lane.b32.xlu0 %v11722_v19, %s9051_s7 }
 0xd86   : > { %v11790_v42 = vpop.permute.xlu0 %4630 }
 0xd87   : > { %14730 = vst [vmem:[#allocation28_spill] sm:$0xff] %v11790_v42 }
 0xd88   : > { %v11788_v4 = vpop.permute.xlu1 %3730 }
 0xd8b   : > { %4640 = vrot.lane.b32.xlu2 %v11710_v11, %s9051_s7 }
 0xd8c   : > { %4160 = vrot.lane.b32.xlu1 %v11722_v19, %s9049_s5 }
 0xd8f   : > { %v11740_v51 = vpop.f32.mrf.mxu2 }
 0xd90   : > { %14726 = vst [vmem:[#allocation29_spill] sm:$0xff] %v11740_v51  ;;  %5094 = vrot.lane.b32.xlu0 %v11740_v51, %s9050_s6  ;;  %v8093_v13 = vpack.i.bf16 %v11722_v19, %v11740_v51 }
 0xd93   : > { %4192 = vrot.lane.b32.xlu2 %v11722_v19, %s9047_s29 }
 0xd94   : > { %4194 = vrot.lane.b32.xlu1 %v11740_v51, %s9047_s29 }
 0xd98   : > { %4644 = vrot.lane.b32.xlu0 %v11740_v51, %s9051_s7 }
 0xd9b   : > { %5092 = vrot.lane.b32.xlu2 %v11722_v19, %s9050_s6 }
 0xd9c   : > { %4624 = vrot.lane.b32.xlu1 %v11584_v58, %s9051_s7 }
 0xd9e   : > { %v11872_v34 = vpop.permute.xlu2 %3732 }
 0xda0   : > { %4162 = vrot.lane.b32.xlu0 %v11740_v51, %s9049_s5 }
 0xda2   : > { %v11780_v44 = vpop.f32.mrf.mxu2 }
 0xda3   : > { %3744 = vrot.lane.b32.xlu2 %v11740_v51, %s9046_s28  ;;  %14729 = vst [vmem:[#allocation87_spill] sm:$0xff] %v11780_v44 }
 0xda4   : > { %5036 = vrot.lane.b32.xlu1 %v11542_v9, %s9053_s9 }
 0xda6   : > { %v11887_v10 = vpop.permute.xlu2 %4152 }
 0xda7   : > { %14742 = vst [vmem:[#allocation85_spill] sm:$0xff] %v11887_v10  ;;  %v8123_v10 = vpack.i.bf16 %v11658_v61, %v11670_v14 }
 0xda8   : > { %5070 = vrot.lane.b32.xlu0 %v11560_v1, %s9050_s6 }
 0xdab   : > { %4196 = vrot.lane.b32.xlu2 %v11780_v44, %s9047_s29 }
 0xdac   : > { %5038 = vrot.lane.b32.xlu1 %v11560_v1, %s9053_s9 }
 0xdb0   : > { %4622 = vrot.lane.b32.xlu0 %v11573_v21, %s9051_s7 }
 0xdb3   : > { %4626 = vrot.lane.b32.xlu2 %v11596_v23, %s9051_s7 }
 0xdb4   : > { %4588 = vrot.lane.b32.xlu1 %v11560_v1, %s9052_s8 }
 0xdb6   : > { %v11800_v57 = vpop.permute.xlu1 %4150 }
 0xdb7   : > { %14732 = vst [vmem:[#allocation42_spill] sm:$0xff] %v11800_v57  ;;  %v11802_v29 = vpop.permute.xlu0 %4182 }
 0xdb8   : > { %4618 = vrot.lane.b32.xlu0 %v11542_v9, %s9051_s7 }
 0xdbb   : > { %5068 = vrot.lane.b32.xlu2 %v11542_v9, %s9050_s6 }
 0xdbc   : > { %5044 = vrot.lane.b32.xlu1 %v11596_v23, %s9053_s9 }
 0xdbe   : > { %v11810_v27 = vpop.permute.xlu1 %4184 }
 0xdbf   : > { %v11812_v26 = vpop.permute.xlu0 %5082 }
 0xdc0   : > { %14733 = vst [vmem:[#allocation60_spill] sm:$0xff] %v11812_v26  ;;  %5040 = vrot.lane.b32.xlu0 %v11573_v21, %s9053_s9 }
 0xdc3   : > { %4620 = vrot.lane.b32.xlu2 %v11560_v1, %s9051_s7 }
 0xdc4   : > { %4594 = vrot.lane.b32.xlu1 %v11596_v23, %s9052_s8 }
 0xdc6   : > { %v11822_v60 = vpop.permute.xlu1 %4634 }
 0xdc7   : > { %14735 = vst [vmem:[#allocation81_spill] sm:$0xff] %v11822_v60  ;;  %v11824_v15 = vpop.permute.xlu0 %4632 }
 0xdc8   : > { %14736 = vst [vmem:[#allocation82_spill] sm:$0xff] %v11824_v15  ;;  %4590 = vrot.lane.b32.xlu0 %v11573_v21, %s9052_s8 }
 0xdcb   : > { %4586 = vrot.lane.b32.xlu2 %v11542_v9, %s9052_s8 }
 0xdcc   : > { %4598 = vrot.lane.b32.xlu1 %v11626_v36, %s9052_s8 }
 0xdce   : > { %v11834_v16 = vpop.permute.xlu1 %3736 }
 0xdcf   : > { %v11836_v62 = vpop.permute.xlu0 %3734 }
 0xdd0   : > { %5046 = vrot.lane.b32.xlu0 %v11607_v30, %s9053_s9 }
 0xdd3   : > { %5042 = vrot.lane.b32.xlu2 %v11584_v58, %s9053_s9 }
 0xdd4   : > { %5054 = vrot.lane.b32.xlu1 %v11670_v14, %s9053_s9 }
 0xdd6   : > { %v11846_v46 = vpop.permute.xlu1 %5086 }
 0xdd7   : > { %14738 = vst [vmem:[#allocation67_spill] sm:$0xff] %v11846_v46  ;;  %v11848_v7 = vpop.permute.xlu0 %5084 }
 0xdd8   : > { %14739 = vst [vmem:[#allocation70_spill] sm:$0xff] %v11848_v7  ;;  %5048 = vrot.lane.b32.xlu0 %v11626_v36, %s9053_s9 }
 0xddb   : > { %4592 = vrot.lane.b32.xlu2 %v11584_v58, %s9052_s8 }
 0xddc   : > { %4602 = vrot.lane.b32.xlu1 %v11658_v61, %s9052_s8 }
 0xdde   : > { %v11858_v41 = vpop.permute.xlu1 %4636 }
 0xddf   : > { %v11860_v32 = vpop.permute.xlu0 %4188 }
 0xde0   : > { %4596 = vrot.lane.b32.xlu0 %v11607_v30, %s9052_s8  ;;  %v11946_v30 = vpack.i.bf16 %v11573_v21, %v11584_v58 }
 0xde2   : > { %14746 = vst [vmem:[#allocation26_spill] sm:$0xff] %v11946_v30 }
 0xde3   : > { %5050 = vrot.lane.b32.xlu2 %v11646_v6, %s9053_s9 }
 0xde4   : > { %8114 = vrot.lane.b32.xlu1 %v11866_v53, %s9048_s30 }
 0xde6   : > { %v11874_v63 = vpop.permute.xlu1 %5088 }
 0xde7   : > { %v11878_v8 = vpop.permute.xlu0 %4156 }
 0xde8   : > { %14741 = vst [vmem:[#allocation71_spill] sm:$0xff] %v11878_v8  ;;  %8094 = vrot.lane.b32.xlu0 %v8093_v13, %s9054_s10  ;;  %v11899_v8 = vpop.permute.xlu2 %4186 }
 0xdeb   : > { %5052 = vrot.lane.b32.xlu2 %v11658_v61, %s9053_s9 }
 0xdec   : > { %5096 = vrot.lane.b32.xlu1 %v11780_v44, %s9050_s6 }
 0xdee   : > { %v11885_v33 = vpop.permute.xlu1 %4190 }
 0xdef   : > { %v11889_v56 = vpop.permute.xlu0 %3740 }
 0xdf0   : > { %5056 = vrot.lane.b32.xlu0 %v11690_v20, %s9053_s9  ;;  %v11913_v57 = vpop.permute.xlu2 %4154 }
 0xdf1   : > { %14744 = vst [vmem:[#allocation52_spill] sm:$0xff] %v11913_v57  ;;  %v11932_v57 = vpack.i.bf16 %v11626_v36, %v11646_v6 }
 0xdf3   : > { %4600 = vrot.lane.b32.xlu2 %v11646_v6, %s9052_s8  ;;  %v11952_v6 = vpack.i.bf16 %v11542_v9, %v11560_v1 }
 0xdf4   : > { %4646 = vrot.lane.b32.xlu1 %v11780_v44, %s9051_s7 }
 0xdf5   : > { %14748 = vst [vmem:[#allocation9_spill] sm:$0xff] %v11952_v6 }
 0xdf6   : > { %v11897_v54 = vpop.permute.xlu1 %3742 }
 0xdf7   : > { %v11903_v43 = vpop.permute.xlu0 %4642 }
 0xdf8   : > { %8099 = vrot.lane.b32.xlu0 %v11866_v53, %s9054_s10  ;;  %v11936_v61 = vpop.permute.xlu2 %3738 }
 0xdfb   : > { %4604 = vrot.lane.b32.xlu2 %v11670_v14, %s9052_s8 }
 0xdfc   : > { %8124 = vrot.lane.b32.xlu1 %v8123_v10, %s9048_s30 }
 0xdfe   : > { %v11910_v18 = vpop.permute.xlu1 %4160 }
 0xdff   : > { %14743 = vst [vmem:[#allocation78_spill] sm:$0xff] %v11910_v18 }
 0xe00   : > { %8104 = vrot.lane.b32.xlu0 %v8093_v13, %s9048_s30  ;;  %v11958_v36 = vpop.permute.xlu2 %4638 }
 0xe02   : > { %v11915_v24 = vpop.permute.xlu0 %5094 }
 0xe03   : > { %4164 = vrot.lane.b32.xlu2 %v11780_v44, %s9049_s5 }
 0xe04   : > { %8129 = vrot.lane.b32.xlu1 %v11919_v45, %s9054_s10 }
 0xe06   : > { %v11925_v14 = vpop.permute.xlu1 %4194 }
 0xe08   : > { %8109 = vrot.lane.b32.xlu0 %v8123_v10, %s9054_s10  ;;  %v11972_v42 = vpop.permute.xlu2 %5090 }
 0xe0a   : > { %v11928_v18 = vpop.permute.xlu0 %4644 }
 0xe0b   : > { %5060 = vrot.lane.b32.xlu2 %v11722_v19, %s9053_s9 }
 0xe0c   : > { %8134 = vrot.lane.b32.xlu1 %v11932_v57, %s9048_s30 }
 0xe0e   : > { %v11940_v25 = vpop.permute.xlu1 %4624 }
 0xe0f   : > { %14745 = vst [vmem:[#allocation25_spill] sm:$0xff] %v11940_v25 }
 0xe10   : > { %5058 = vrot.lane.b32.xlu0 %v11710_v11, %s9053_s9 }
 0xe12   : > { %v11948_v49 = vpop.permute.xlu0 %4162 }
 0xe13   : > { %14747 = vst [vmem:[#allocation8_spill] sm:$0xff] %v11948_v49  ;;  %8139 = vrot.lane.b32.xlu2 %v11946_v30, %s9054_s10 }
 0xe14   : > { %8149 = vrot.lane.b32.xlu1 %v11952_v6, %s9054_s10 }
 0xe16   : > { %v11960_v25 = vpop.permute.xlu1 %5036 }
 0xe17   : > { %14749 = vst [vmem:[#allocation10_spill] sm:$0xff] %v11960_v25 }
 0xe18   : > { %8119 = vrot.lane.b32.xlu0 %v11932_v57, %s9054_s10 }
 0xe1a   : > { %v11964_v35 = vpop.permute.xlu0 %5070 }
 0xe1b   : > { %14750 = vst [vmem:[#allocation11_spill] sm:$0xff] %v11964_v35  ;;  %8144 = vrot.lane.b32.xlu2 %v11919_v45, %s9048_s30  ;;  %v11984_v35 = vpop.f32.mrf.mxu2 }
 0xe1c   : > { %5062 = vrot.lane.b32.xlu1 %v11740_v51, %s9053_s9  ;;  %14754 = vst [vmem:[#allocation57_spill] sm:$0xff] %v11984_v35 }
 0xe1e   : > { %v11970_v49 = vpop.permute.xlu1 %5038 }
 0xe1f   : > { %14751 = vst [vmem:[#allocation12_spill] sm:$0xff] %v11970_v49  ;;  %v11988_v49 = vpop.permute.xlu2 %4158 }
 0xe20   : > { %3746 = vrot.lane.b32.xlu0 %v11780_v44, %s9046_s28  ;;  %14755 = vst [vmem:[#allocation15_spill] sm:$0xff] %v11988_v49 }
 0xe22   : > { %v11976_v26 = vpop.permute.xlu0 %4622 }
 0xe23   : > { %14752 = vst [vmem:[#allocation13_spill] sm:$0xff] %v11976_v26  ;;  %4610 = vrot.lane.b32.xlu2 %v11722_v19, %s9052_s8 }
 0xe24   : > { %5064 = vrot.lane.b32.xlu1 %v11780_v44, %s9053_s9 }
 0xe26   : > { %v11982_v25 = vpop.permute.xlu1 %4588 }
 0xe27   : > { %14753 = vst [vmem:[#allocation14_spill] sm:$0xff] %v11982_v25  ;;  %v12003_v26 = vpop.permute.xlu2 %4640 }
 0xe28   : > { %4198 = vrot.lane.b32.xlu0 %v11984_v35, %s9047_s29  ;;  %s14885_s29 = smov 16  }
 0xe2a   : > { %v11990_v50 = vpop.permute.xlu0 %4618 }
 0xe2b   : > { %14756 = vst [vmem:[#allocation16_spill] sm:$0xff] %v11990_v50  ;;  %4612 = vrot.lane.b32.xlu2 %v11740_v51, %s9052_s8 }
 0xe2c   : > { %4614 = vrot.lane.b32.xlu1 %v11780_v44, %s9052_s8 }
 0xe2e   : > { %v11996_v19 = vpop.permute.xlu1 %5044 }
 0xe2f   : > { %14757 = vst [vmem:[#allocation17_spill] sm:$0xff] %v11996_v19  ;;  %v12015_v19 = vpop.permute.xlu2 %4192 }
 0xe30   : > { %3748 = vrot.lane.b32.xlu0 %v11984_v35, %s9046_s28  ;;  %s14884_s28 = smov 24  }
 0xe32   : > { %v12000_v25 = vpop.permute.xlu0 %5040 }
 0xe33   : > { %14758 = vst [vmem:[#allocation18_spill] sm:$0xff] %v12000_v25  ;;  %8174 = vrot.lane.b32.xlu2 %v8093_v13, %s9056_s11 }
 0xe34   : > { %8164 = vrot.lane.b32.xlu1 %v8093_v13, %s9057_s13 }
 0xe36   : > { %v12006_v49 = vpop.permute.xlu1 %4594 }
 0xe37   : > { %14759 = vst [vmem:[#allocation20_spill] sm:$0xff] %v12006_v49 }
 0xe38   : > { %4606 = vrot.lane.b32.xlu0 %v11690_v20, %s9052_s8 }
 0xe3a   : > { %v12010_v51 = vpop.permute.xlu0 %4590 }
 0xe3b   : > { %14760 = vst [vmem:[#allocation21_spill] sm:$0xff] %v12010_v51  ;;  %8179 = vrot.lane.b32.xlu2 %v8123_v10, %s9057_s13  ;;  %v12028_v51 = vpop.permute.xlu2 %5092 }
 0xe3c   : > { %8184 = vrot.lane.b32.xlu1 %v11866_v53, %s9056_s11 }
 0xe3e   : > { %v12017_v25 = vpop.permute.xlu1 %4598 }
 0xe3f   : > { %14761 = vst [vmem:[#allocation22_spill] sm:$0xff] %v12017_v25 }
 0xe40   : > { %4608 = vrot.lane.b32.xlu0 %v11710_v11, %s9052_s8 }
 0xe42   : > { %v12021_v13 = vpop.permute.xlu0 %5046 }
 0xe43   : > { %14762 = vst [vmem:[#allocation23_spill] sm:$0xff] %v12021_v13  ;;  %8204 = vrot.lane.b32.xlu2 %v11932_v57, %s9056_s11 }
 0xe44   : > { %8194 = vrot.lane.b32.xlu1 %v8123_v10, %s9056_s11  ;;  %v3745_v10 = vpop.permute.xlu2 %3744 }
 0xe46   : > { %v12026_v49 = vpop.permute.xlu1 %5054 }
 0xe47   : > { %14763 = vst [vmem:[#allocation24_spill] sm:$0xff] %v12026_v49 }
 0xe48   : > { %8154 = vrot.lane.b32.xlu0 %v11946_v30, %s9048_s30 }
 0xe4a   : > { %v12032_v20 = vpop.permute.xlu0 %5048 }
 0xe4b   : > { %14764 = vst [vmem:[#allocation90_spill] sm:$0xff] %v12032_v20  ;;  %8219 = vrot.lane.b32.xlu2 %v11952_v6, %s9057_s13 }
 0xe4c   : > { %8199 = vrot.lane.b32.xlu1 %v11919_v45, %s9057_s13 }
 0xe4e   : > { %v12038_v25 = vpop.permute.xlu1 %4602 }
 0xe4f   : > { %14765 = vst [vmem:[#allocation91_spill] sm:$0xff] %v12038_v25  ;;  %v4197_v25 = vpop.permute.xlu2 %4196 }
 0xe50   : > { %8159 = vrot.lane.b32.xlu0 %v11952_v6, %s9048_s30 }
 0xe52   : > { %v12042_v49 = vpop.permute.xlu0 %4596 }
 0xe53   : > { %14766 = vst [vmem:[#allocation92_spill] sm:$0xff] %v12042_v49  ;;  %4616 = vrot.lane.b32.xlu2 %v11984_v35, %s9052_s8 }
 0xe54   : > { %8214 = vrot.lane.b32.xlu1 %v11919_v45, %s9056_s11 }
 0xe56   : > { %v12048_v20 = vpop.permute.xlu1 %8114 }
 0xe57   : > { %v12064_v45 = vpop.permute.xlu2 %4626 }
 0xe58   : > { %8169 = vrot.lane.b32.xlu0 %v11866_v53, %s9057_s13  ;;  %14768 = vst [vmem:[#allocation94_spill] sm:$0xff] %v12064_v45  ;;  %v8223_v45 = vpack.i.bf16 %v11780_v44, %v11984_v35 }
 0xe5a   : > { %v12052_v13 = vpop.permute.xlu0 %8094 }
 0xe5c   : > { %4648 = vrot.lane.b32.xlu1 %v11984_v35, %s9051_s7  ;;  %s205_s7 = sand.u32 1, %s9031_s16  }
 0xe5d   : > { %s7442_s8 = sshll.u32 %s205_s7, 5  ;;  %s7347_s27 = scalar_lea.sflag [#allocation4], %s205_s7 }
 0xe5e   : > { %v12056_v6 = vpop.permute.xlu1 %5096 }
 0xe5f   : > { %v12074_v23 = vpop.permute.xlu2 %5068 }
 0xe60   : > { %8189 = vrot.lane.b32.xlu0 %v11932_v57, %s9057_s13  ;;  %14770 = vst [vmem:[#allocation96_spill] sm:$0xff] %v12074_v23 }
 0xe62   : > { %v12060_v49 = vpop.permute.xlu0 %5056 }
 0xe63   : > { %14767 = vst [vmem:[#allocation93_spill] sm:$0xff] %v12060_v49 }
 0xe64   : > { %4166 = vrot.lane.b32.xlu1 %v11984_v35, %s9049_s5  ;;  %s8993_s5 = scalar_lea.hbm %s14350_s4, 64 }
 0xe66   : > { %v12066_v11 = vpop.permute.xlu1 %4646 }
 0xe67   : > { %v12085_v15 = vpop.permute.xlu2 %4620 }
 0xe68   : > { %8209 = vrot.lane.b32.xlu0 %v11946_v30, %s9057_s13  ;;  %14772 = vst [vmem:[#allocation98_spill] sm:$0xff] %v12085_v15 }
 0xe6a   : > { %v12070_v53 = vpop.permute.xlu0 %8099 }
 0xe6e   : > { %v12072_v50 = vpop.permute.xlu1 %8124 }
 0xe6f   : > { %14769 = vst [vmem:[#allocation95_spill] sm:$0xff] %v12072_v50  ;;  %v12094_v50 = vpop.permute.xlu2 %4586 }
 0xe70   : > { %5098 = vrot.lane.b32.xlu0 %v11984_v35, %s9050_s6  ;;  %14775 = vst [vmem:[#allocation101_spill] sm:$0xff] %v12094_v50 }
 0xe72   : > { %v12078_v57 = vpop.permute.xlu0 %8104 }
 0xe76   : > { %v12080_v49 = vpop.permute.xlu1 %8129 }
 0xe77   : > { %14771 = vst [vmem:[#allocation97_spill] sm:$0xff] %v12080_v49  ;;  %v12102_v49 = vpop.permute.xlu2 %5042 }
 0xe78   : > { %8224 = vrot.lane.b32.xlu0 %v8223_v45, %s9054_s10  ;;  %14777 = vst [vmem:[#allocation103_spill] sm:$0xff] %v12102_v49  ;;  %s7836_s10 = sshll.u32 %s9109_s19, 5 }
 0xe79   : > { %s7358_s14 = scalar_lea.hbm %s14350_s4, %s7836_s10 }
 0xe7a   : > { %v12087_v30 = vpop.permute.xlu0 %8109  ;;  %s7361_s23 = sshll.u32 %s7358_s14, 4  ;;  %s7362_s23 = int_to_ptr.hbm [resolvable:$true] %s7361_s23 }
 0xe7e   : > { %v12089_v7 = vpop.permute.xlu1 %8134 }
 0xe7f   : > { %14773 = vst [vmem:[#allocation99_spill] sm:$0xff] %v12089_v7  ;;  %v12107_v46 = vpop.permute.xlu2 %4592 }
 0xe80   : > { %8229 = vrot.lane.b32.xlu0 %v8223_v45, %s9048_s30 }
 0xe82   : > { %v12092_v23 = vpop.permute.xlu0 %5058 }
 0xe83   : > { %14774 = vst [vmem:[#allocation100_spill] sm:$0xff] %v12092_v23 }
 0xe86   : > { %v12096_v60 = vpop.permute.xlu1 %8149 }
 0xe87   : > { %14776 = vst [vmem:[#allocation102_spill] sm:$0xff] %v12096_v60 }
 0xe88   : > { %5066 = vrot.lane.b32.xlu0 %v11984_v35, %s9053_s9  ;;  %v12114_v35 = vpop.permute.xlu2 %5050  ;;  %s207_s9 = scalar_lea.vmem [#allocation5], %s7442_s8 }
 0xe89   : > { %s7359_s22 = sshll.u32 %s207_s9, 4  ;;  %s7360_s22 = int_to_ptr.vmem [resolvable:$true] %s7359_s22 }
 0xe8a   : > { %v12100_v44 = vpop.permute.xlu0 %8119 }
 0xe8e   : > { %v12104_v15 = vpop.permute.xlu1 %5062 }
 0xe90   : > { %8234 = vrot.lane.b32.xlu0 %v8223_v45, %s9057_s13 }
 0xe92   : > { %v3747_v7 = vpop.permute.xlu0 %3746 }
 0xe96   : > { %v12110_v23 = vpop.permute.xlu1 %5064 }
 0xe98   : > { %8239 = vrot.lane.b32.xlu0 %v8223_v45, %s9056_s11 }
 0xe9a   : > { %v4199_v50 = vpop.permute.xlu0 %4198 }
 0xe9b   : > { %7669 = vmatpush.xpose.msk.msra.mxu3 %vm1086_vm2, %v4199_v50 }
 0xe9e   : > { %v12116_v49 = vpop.permute.xlu1 %4614 }
 0xe9f   : > { %7670 = vmatpush.xpose.msk.msra.mxu3 %vm1086_vm2, %v4197_v25  ;;  %v12129_v25 = vpop.permute.xlu2 %5052 }
 0xea2   : > { %v3749_v60 = vpop.permute.xlu0 %3748 }
 0xea3   : > { %7637 = vmatpush.xpose.msk.msrb.mxu0 %vm1086_vm2, %v3749_v60  ;;  %7671 = vmatpush.xpose.msk.msra.mxu3 %vm1086_vm2, %v11925_v14 }
 0xea6   : > { %v12131_v50 = vpop.permute.xlu1 %8164 }
 0xea7   : > { %7638 = vmatpush.xpose.msk.msrb.mxu0 %vm1086_vm2, %v3747_v7  ;;  %7672 = vmatpush.xpose.msk.msra.mxu3 %vm1086_vm2, %v12015_v19  ;;  %v12143_v60 = vpop.permute.xlu2 %4600  ;;  %v8101_v19 = vunpack.i.l.bf16 %v12070_v53 }
 0xeaa   : > { %v12124_v45 = vpop.permute.xlu0 %4606 }
 0xeab   : > { %7639 = vmatpush.xpose.msk.msrb.mxu0 %vm1086_vm2, %v3745_v10  ;;  %7673 = vmatpush.xpose.msk.msra.mxu3 %vm1086_vm2, %v11885_v33 }
 0xeae   : > { %v12145_v33 = vpop.permute.xlu1 %8184 }
 0xeaf   : > { %7640 = vmatpush.xpose.msk.msrb.mxu0 %vm1086_vm2, %v11897_v54  ;;  %7674 = vmatpush.xpose.msk.msra.mxu3 %vm1086_vm2, %v11860_v32 }
 0xeb2   : > { %v12137_v7 = vpop.permute.xlu0 %4608 }
 0xeb3   : > { %7641 = vmatpush.xpose.msk.msrb.mxu0 %vm1086_vm2, %v11889_v56  ;;  %7675 = vmatpush.xpose.msk.msra.mxu3 %vm1086_vm2, %v11899_v8  ;;  %v12161_v56 = vpop.permute.xlu2 %4604 }
 0xeb6   : > { %v12163_v8 = vpop.permute.xlu1 %8194 }
 0xeb7   : > { %7642 = vmatpush.xpose.msk.msrb.mxu0 %vm1086_vm2, %v11936_v61  ;;  %7676 = vmatpush.xpose.msk.msra.mxu3 %vm1086_vm2, %v11810_v27  ;;  %v14785_v27 = vld [vmem:[#allocation77_spill] sm:$0xff] }
 0xeba   : > { %v12151_v54 = vpop.permute.xlu0 %8154 }
 0xebb   : > { %7643 = vmatpush.xpose.msk.msrb.mxu0 %vm1086_vm2, %v11834_v16  ;;  %7677 = vmatpush.xpose.msk.msra.mxu3 %vm1086_vm2, %v11802_v29  ;;  %v12175_v16 = vpop.permute.xlu2 %4164 }
 0xebf   : > { %7644 = vmatpush.xpose.msk.msrb.mxu0 %vm1086_vm2, %v11836_v62  ;;  %7678 = vmatpush.xpose.msk.msra.mxu3 %vm1086_vm2, %v11842_v0  ;;  %v12179_v62 = vpop.permute.xlu1 %8199 }
 0xec2   : > { %v12165_v32 = vpop.permute.xlu0 %8159 }
 0xec3   : > { %7645 = vmatpush.xpose.msk.msrb.mxu0 %vm1086_vm2, %v11872_v34  ;;  %7679 = vmatpush.xpose.msk.msra.mxu3 %vm1086_vm2, %v11772_v22  ;;  %v12195_v61 = vpop.permute.xlu2 %5060  ;;  %v14781_v22 = vld [vmem:[#allocation97_spill] sm:$0xff] }
 0xec7   : > { %7646 = vmatpush.xpose.msk.msrb.mxu0 %vm1086_vm2, %v11788_v4  ;;  %7680 = vmatpush.xpose.msk.msra.mxu3 %vm1086_vm2, %v11748_v47  ;;  %v12197_v14 = vpop.permute.xlu1 %8214  ;;  %v8116_v47 = vunpack.i.l.bf16 %v12048_v20  ;;  %v14782_v4 = vld [vmem:[#allocation70_spill] sm:$0xff] }
 0xeca   : > { %v12177_v0 = vpop.permute.xlu0 %8169 }
 0xecb   : > { %7647 = vmatpush.xpose.msk.msrb.mxu0 %vm1086_vm2, %v11764_v17  ;;  %7681 = vmatpush.xpose.msk.msra.mxu3 %vm1086_vm2, %v11770_v3  ;;  %v14780_v17 = vld [vmem:[#allocation95_spill] sm:$0xff] }
 0xecc   : > { %v8126_v3 = vunpack.i.l.bf16 %v14780_v17  ;;  %v8127_v29 = vunpack.i.h.bf16 %v14780_v17  ;;  %v14797_v17 = vld [vmem:[#allocation25_spill] sm:$0xff] }
 0xecf   : > { %7648 = vmatpush.xpose.msk.msrb.mxu0 %vm1086_vm2, %v11784_v12  ;;  %7682 = vmatpush.xpose.msk.msra.mxu3 %vm1086_vm2, %v11700_v31  ;;  %v8131_v12 = vunpack.i.l.bf16 %v14781_v22 }
 0xed2   : > { %v12189_v34 = vpop.permute.xlu0 %8189 }
 0xed3   : > { %7649 = vmatpush.xpose.msk.msrb.mxu0 %vm1086_vm2, %v11714_v55  ;;  %7683 = vmatpush.xpose.msk.msra.mxu3 %vm1086_vm2, %v11692_v37  ;;  %v12209_v55 = vpop.permute.xlu2 %8139  ;;  %v4649_v37 = vpop.permute.xlu1 %4648 }
 0xed7   : > { %7650 = vmatpush.xpose.msk.msrb.mxu0 %vm1086_vm2, %v11706_v52  ;;  %7684 = vmatpush.xpose.msk.msra.mxu3 %vm1086_vm2, %v11732_v28  ;;  %v8102_v28 = vunpack.i.h.bf16 %v12070_v53  ;;  %v14787_v53 = vld [vmem:[#allocation60_spill] sm:$0xff] }
 0xeda   : > { %7685 = vmatmul.msk.f32.vlgmr.msra.gmra.mxu3 %vm1086_vm2, %v11678_v38  ;;  %v12205_v31 = vpop.permute.xlu0 %8209 }
 0xedb   : > { %7651 = vmatpush.xpose.msk.msrb.mxu0 %vm1086_vm2, %v11742_v39  ;;  %v12223_v52 = vpop.permute.xlu2 %8144  ;;  %v8107_v39 = vunpack.i.h.bf16 %v12078_v57 }
 0xedf   : > { %7652 = vmatpush.xpose.msk.msrb.mxu0 %vm1086_vm2, %v11680_v40 }
 0xee2   : > { %7653 = vmatmul.msk.f32.vlgmr.msrb.gmra.mxu0 %vm1086_vm2, %v11542_v9  ;;  %7686 = vmatmul.msk.f32.gmra.mxu3 %vm1086_vm2, %v11688_v2  ;;  %v5099_v38 = vpop.permute.xlu0 %5098  ;;  %v8096_v2 = vunpack.i.l.bf16 %v12052_v13 }
 0xee3   : > { %7701 = vmatpush.xpose.msk.msra.mxu0 %vm1086_vm2, %v4649_v37  ;;  %7733 = vmatpush.xpose.msk.msrb.mxu3 %vm1086_vm2, %v5099_v38  ;;  %v8142_v37 = vunpack.i.h.bf16 %v12209_v55 }
 0xee7   : > { %7702 = vmatpush.xpose.msk.msra.mxu0 %vm1086_vm2, %v12066_v11  ;;  %7734 = vmatpush.xpose.msk.msrb.mxu3 %vm1086_vm2, %v12056_v6  ;;  %v12241_v11 = vpop.permute.xlu2 %4610 }
 0xeea   : > { %7654 = vmatmul.msk.f32.gmra.mxu0 %vm1086_vm2, %v11560_v1  ;;  %7687 = vmatmul.msk.f32.gmra.mxu3 %vm1086_vm2, %v11756_v59  ;;  %v8225_v9 = vpop.permute.xlu0 %8224  ;;  %v8097_v1 = vunpack.i.h.bf16 %v12052_v13  ;;  %v8121_v59 = vunpack.i.l.bf16 %v12100_v44  ;;  %v14786_v13 = vld [vmem:[#allocation99_spill] sm:$0xff] }
 0xeeb   : > { %7703 = vmatpush.xpose.msk.msra.mxu0 %vm1086_vm2, %v11928_v18  ;;  %v8226_v40 = vunpack.i.l.bf16 %v8225_v9  ;;  %7735 = vmatpush.xpose.msk.msrb.mxu3 %vm1086_vm2, %v11915_v24  ;;  %v8227_v6 = vunpack.i.h.bf16 %v8225_v9  ;;  %v14778_v24 = vld [vmem:[#allocation67_spill] sm:$0xff]  ;;  %v8136_v10 = vunpack.i.l.bf16 %v14786_v13  ;;  %v8137_v38 = vunpack.i.h.bf16 %v14786_v13  ;;  %v14803_v13 = vld [vmem:[#allocation98_spill] sm:$0xff] }
 0xeed   : > { %4521 = vmatpush.msrb.mxu2 %v8226_v40 }
 0xeef   : > { %7704 = vmatpush.xpose.msk.msra.mxu0 %vm1086_vm2, %v11903_v43  ;;  %4522 = vmatpush.msrb.mxu2 %v8227_v6  ;;  %v8146_v6 = vunpack.i.l.bf16 %v12223_v52 }
 0xef0   : > { %7736 = vmatpush.xpose.msk.msrb.mxu3 %vm1086_vm2, %v12028_v51 }
 0xef1   : > { %4523 = vmatpush.msrb.mxu2 %v8096_v2  ;;  %v14789_v2 = vld [vmem:[#allocation102_spill] sm:$0xff] }
 0xef2   : > { %7655 = vmatmul.msk.f32.gmra.mxu0 %vm1086_vm2, %v11573_v21  ;;  %7688 = vmatmul.msk.f32.gmra.mxu3 %vm1086_vm2, %v11734_v5  ;;  %v8230_v43 = vpop.permute.xlu0 %8229  ;;  %v8106_v21 = vunpack.i.l.bf16 %v12078_v57  ;;  %v8111_v5 = vunpack.i.l.bf16 %v12087_v30  ;;  %v14788_v57 = vld [vmem:[#allocation28_spill] sm:$0xff] }
 0xef3   : > { %7705 = vmatpush.xpose.msk.msra.mxu0 %vm1086_vm2, %v12003_v26  ;;  %v8231_v18 = vunpack.i.l.bf16 %v8230_v43  ;;  %4524 = vmatpush.msrb.mxu2 %v8097_v1  ;;  %v8232_v51 = vunpack.i.h.bf16 %v8230_v43  ;;  %v8141_v26 = vunpack.i.l.bf16 %v12209_v55  ;;  %v8151_v1 = vunpack.i.l.bf16 %v14789_v2  ;;  %v14790_v43 = vld [vmem:[#allocation84_spill] sm:$0xff] }
 0xef4   : > { %7737 = vmatpush.xpose.msk.msrb.mxu3 %vm1086_vm2, %v11972_v42  ;;  %v14783_v42 = vld [vmem:[#allocation82_spill] sm:$0xff]  ;;  %v8147_v55 = vunpack.i.h.bf16 %v12223_v52  ;;  %v8157_v52 = vunpack.i.h.bf16 %v12151_v54 }
 0xef5   : > { %4071 = vmatpush.msra.mxu1 %v8231_v18  ;;  %4525 = vmatpush.msrb.mxu2 %v8101_v19  ;;  %v14791_v19 = vld [vmem:[#allocation83_spill] sm:$0xff]  ;;  %v8152_v18 = vunpack.i.h.bf16 %v14789_v2  ;;  %v8187_v2 = vunpack.i.h.bf16 %v12145_v33 }
 0xef7   : > { %7706 = vmatpush.xpose.msk.msra.mxu0 %vm1086_vm2, %v11958_v36  ;;  %4072 = vmatpush.msra.mxu1 %v8232_v51  ;;  %v8112_v36 = vunpack.i.h.bf16 %v12087_v30  ;;  %v14779_v30 = vld [vmem:[#allocation81_spill] sm:$0xff]  ;;  %v14793_v51 = vld [vmem:[#allocation27_spill] sm:$0xff] }
 0xef8   : > { %4526 = vmatpush.msrb.mxu2 %v8102_v28  ;;  %7738 = vmatpush.xpose.msk.msrb.mxu3 %vm1086_vm2, %v11874_v63  ;;  %v12267_v63 = vpop.permute.xlu2 %4612  ;;  %v14792_v28 = vld [vmem:[#allocation65_spill] sm:$0xff] }
 0xef9   : > { %4073 = vmatpush.msra.mxu1 %v8106_v21  ;;  %v8156_v21 = vunpack.i.l.bf16 %v12151_v54  ;;  %v8162_v54 = vunpack.i.h.bf16 %v12165_v32 }
 0xefa   : > { %4527 = vmatpush.msrb.mxu2 %v8111_v5  ;;  %7656 = vmatmul.msk.f32.gmra.mxu0 %vm1086_vm2, %v11584_v58  ;;  %v8117_v58 = vunpack.i.h.bf16 %v12048_v20  ;;  %v8132_v20 = vunpack.i.h.bf16 %v14781_v22  ;;  %v14798_v22 = vld [vmem:[#allocation73_spill] sm:$0xff] }
 0xefb   : > { %7707 = vmatpush.xpose.msk.msra.mxu0 %vm1086_vm2, %v11858_v41  ;;  %7689 = vmatmul.msk.f32.gmra.mxu3 %vm1086_vm2, %v11744_v48  ;;  %v12269_v41 = vpop.permute.xlu0 %5066  ;;  %v8122_v48 = vunpack.i.h.bf16 %v12100_v44  ;;  %v14784_v44 = vld [vmem:[#allocation63_spill] sm:$0xff] }
 0xefc   : > { %4074 = vmatpush.msra.mxu1 %v8107_v39  ;;  %4528 = vmatpush.msrb.mxu2 %v8112_v36  ;;  %v14794_v39 = vld [vmem:[#allocation88_spill] sm:$0xff]  ;;  %v14795_v36 = vld [vmem:[#allocation94_spill] sm:$0xff] }
 0xefd   : > { %7739 = vmatpush.xpose.msk.msrb.mxu3 %vm1086_vm2, %v14778_v24  ;;  %v8161_v24 = vunpack.i.l.bf16 %v12165_v32 }
 0xefe   : > { %4075 = vmatpush.msra.mxu1 %v8116_v47  ;;  %4529 = vmatpush.msrb.mxu2 %v8121_v59  ;;  %v8166_v59 = vunpack.i.l.bf16 %v12131_v50 }
 0xeff   : > { %7708 = vmatpush.xpose.msk.msra.mxu0 %vm1086_vm2, %v14779_v30 }
 0xf00   : > { %4076 = vmatpush.msra.mxu1 %v8117_v58  ;;  %4530 = vmatpush.msrb.mxu2 %v8122_v48  ;;  %v12297_v9 = vpop.permute.xlu2 %8174  ;;  %v14796_v48 = vld [vmem:[#allocation86_spill] sm:$0xff] }
 0xf01   : > { %7740 = vmatpush.xpose.msk.msrb.mxu3 %vm1086_vm2, %v14782_v4  ;;  %v8171_v4 = vunpack.i.l.bf16 %v12177_v0 }
 0xf02   : > { %4077 = vmatpush.msra.mxu1 %v8126_v3  ;;  %4531 = vmatpush.msrb.mxu2 %v8131_v12  ;;  %v8167_v3 = vunpack.i.h.bf16 %v12131_v50  ;;  %v14799_v12 = vld [vmem:[#allocation42_spill] sm:$0xff]  ;;  %v8172_v50 = vunpack.i.h.bf16 %v12177_v0 }
 0xf03   : > { %7709 = vmatpush.xpose.msk.msra.mxu0 %vm1086_vm2, %v14783_v42  ;;  %7690 = vmatmul.msk.f32.gmra.mxu3 %vm1086_vm2, %v14785_v27  ;;  %v8235_v40 = vpop.permute.xlu0 %8234 }
 0xf04   : > { %7657 = vmatmul.msk.f32.gmra.mxu0 %vm1086_vm2, %v14784_v44  ;;  %4078 = vmatpush.msra.mxu1 %v8127_v29  ;;  %v8236_v5 = vunpack.i.l.bf16 %v8235_v40  ;;  %v8237_v47 = vunpack.i.h.bf16 %v8235_v40  ;;  %v14800_v29 = vld [vmem:[#allocation64_spill] sm:$0xff]  ;;  %v8176_v44 = vunpack.i.l.bf16 %v12297_v9  ;;  %v8191_v40 = vunpack.i.l.bf16 %v12189_v34 }
 0xf05   : > { %4532 = vmatpush.msrb.mxu2 %v8132_v20  ;;  %7741 = vmatpush.xpose.msk.msrb.mxu3 %vm1086_vm2, %v14787_v53  ;;  %v14801_v20 = vld [vmem:[#allocation13_spill] sm:$0xff] }
 0xf06   : > { %4079 = vmatpush.msra.mxu1 %v8136_v10  ;;  %v8177_v10 = vunpack.i.h.bf16 %v12297_v9  ;;  %v14807_v9 = vld [vmem:[#allocation16_spill] sm:$0xff] }
 0xf07   : > { %7710 = vmatpush.xpose.msk.msra.mxu0 %vm1086_vm2, %v14788_v57  ;;  %4533 = vmatpush.msrb.mxu2 %v8141_v26  ;;  %v14802_v26 = vld [vmem:[#allocation58_spill] sm:$0xff]  ;;  %v14804_v57 = vld [vmem:[#allocation76_spill] sm:$0xff] }
 0xf08   : > { %4080 = vmatpush.msra.mxu1 %v8137_v38  ;;  %v8180_v30 = vpop.permute.xlu2 %8179  ;;  %v8186_v38 = vunpack.i.l.bf16 %v12145_v33  ;;  %v14809_v33 = vld [vmem:[#allocation80_spill] sm:$0xff] }
 0xf09   : > { %4534 = vmatpush.msrb.mxu2 %v8142_v37  ;;  %7742 = vmatpush.xpose.msk.msrb.mxu3 %vm1086_vm2, %v14790_v43  ;;  %v8181_v27 = vunpack.i.l.bf16 %v8180_v30  ;;  %v8182_v53 = vunpack.i.h.bf16 %v8180_v30  ;;  %v14805_v37 = vld [vmem:[#allocation85_spill] sm:$0xff]  ;;  %v8196_v43 = vunpack.i.l.bf16 %v12163_v8  ;;  %v14814_v30 = vld [vmem:[#allocation15_spill] sm:$0xff] }
 0xf0a   : > { %4081 = vmatpush.msra.mxu1 %v8146_v6  ;;  %v14806_v6 = vld [vmem:[#allocation11_spill] sm:$0xff] }
 0xf0b   : > { %7711 = vmatpush.xpose.msk.msra.mxu0 %vm1086_vm2, %v14791_v19  ;;  %4535 = vmatpush.msrb.mxu2 %v8151_v1  ;;  %v8240_v58 = vpop.permute.xlu0 %8239  ;;  %v8192_v1 = vunpack.i.h.bf16 %v12189_v34  ;;  %v8201_v19 = vunpack.i.l.bf16 %v12179_v62  ;;  %v14810_v34 = vld [vmem:[#allocation52_spill] sm:$0xff] }
 0xf0c   : > { %7658 = vmatmul.msk.f32.gmra.mxu0 %vm1086_vm2, %v14792_v28  ;;  %7691 = vmatmul.msk.f32.gmra.mxu3 %vm1086_vm2, %v14793_v51  ;;  %v8241_v42 = vunpack.i.l.bf16 %v8240_v58  ;;  %v8242_v32 = vunpack.i.h.bf16 %v8240_v58  ;;  %v8202_v28 = vunpack.i.h.bf16 %v12179_v62  ;;  %v8216_v62 = vunpack.i.l.bf16 %v12197_v14  ;;  %v14815_v58 = vld [vmem:[#allocation53_spill] sm:$0xff] }
 0xf0d   : > { %4082 = vmatpush.msra.mxu1 %v8147_v55  ;;  %4536 = vmatpush.msrb.mxu2 %v8152_v18  ;;  %v14808_v55 = vld [vmem:[#allocation96_spill] sm:$0xff]  ;;  %v8197_v18 = vunpack.i.h.bf16 %v12163_v8 }
 0xf0e   : > { %7743 = vmatpush.xpose.msk.msrb.mxu3 %vm1086_vm2, %v14794_v39 }
 0xf0f   : > { %7712 = vmatpush.xpose.msk.msra.mxu0 %vm1086_vm2, %v14795_v36  ;;  %5421 = vmatpush.msra.mxu2 %v8236_v5  ;;  %v8212_v36 = vunpack.i.h.bf16 %v12205_v31 }
 0xf10   : > { %4083 = vmatpush.msra.mxu1 %v8156_v21  ;;  %v8205_v0 = vpop.permute.xlu2 %8204  ;;  %v8211_v21 = vunpack.i.l.bf16 %v12205_v31  ;;  %v14813_v31 = vld [vmem:[#allocation49_spill] sm:$0xff] }
 0xf11   : > { %5422 = vmatpush.msra.mxu2 %v8237_v47  ;;  %v8206_v51 = vunpack.i.l.bf16 %v8205_v0  ;;  %v8207_v39 = vunpack.i.h.bf16 %v8205_v0  ;;  %v8217_v47 = vunpack.i.h.bf16 %v12197_v14  ;;  %v14816_v14 = vld [vmem:[#allocation78_spill] sm:$0xff] }
 0xf12   : > { %4084 = vmatpush.msra.mxu1 %v8157_v52  ;;  %7744 = vmatpush.xpose.msk.msrb.mxu3 %vm1086_vm2, %v14796_v48  ;;  %v14817_v48 = vld [vmem:[#allocation34_spill] sm:$0xff] }
 0xf13   : > { %7713 = vmatpush.xpose.msk.msra.mxu0 %vm1086_vm2, %v14797_v17  ;;  %5423 = vmatpush.msra.mxu2 %v8166_v59  ;;  %v14811_v59 = vld [vmem:[#allocation44_spill] sm:$0xff]  ;;  %v14827_v0 = vld [vmem:[#allocation14_spill] sm:$0xff] }
 0xf14   : > { %4085 = vmatpush.msra.mxu1 %v8161_v24  ;;  %7659 = vmatmul.msk.f32.gmra.mxu0 %vm1086_vm2, %v14798_v22  ;;  %v14812_v24 = vld [vmem:[#allocation71_spill] sm:$0xff]  ;;  %v14818_v17 = vld [vmem:[#allocation8_spill] sm:$0xff] }
 0xf15   : > { %7692 = vmatmul.msk.f32.gmra.mxu3 %vm1086_vm2, %v14799_v12  ;;  %5424 = vmatpush.msra.mxu2 %v8167_v3  ;;  %v14819_v3 = vld [vmem:[#allocation29_spill] sm:$0xff]  ;;  %v14820_v22 = vld [vmem:[#allocation87_spill] sm:$0xff] }
 0xf16   : > { %4086 = vmatpush.msra.mxu1 %v8162_v54  ;;  %7745 = vmatpush.xpose.msk.msrb.mxu3 %vm1086_vm2, %v14800_v29  ;;  %v4167_v54 = vpop.permute.xlu1 %4166  ;;  %v14821_v12 = vld [vmem:[#allocation57_spill] sm:$0xff] }
 0xf17   : > { %7714 = vmatpush.xpose.msk.msra.mxu0 %vm1086_vm2, %v14801_v20  ;;  %5425 = vmatpush.msra.mxu2 %v8171_v4  ;;  %v14822_v4 = vld [vmem:[#allocation10_spill] sm:$0xff]  ;;  %v14823_v29 = vld [vmem:[#allocation89_spill] sm:$0xff] }
 0xf18   : > { %4971 = vmatpush.msrb.mxu1 %v8241_v42  ;;  %v8220_v5 = vpop.permute.xlu2 %8219 }
 0xf19   : > { %5426 = vmatpush.msra.mxu2 %v8172_v50  ;;  %v8221_v8 = vunpack.i.l.bf16 %v8220_v5  ;;  %v8222_v52 = vunpack.i.h.bf16 %v8220_v5 }
 0xf1a   : > { %4972 = vmatpush.msrb.mxu1 %v8242_v32  ;;  %7746 = vmatpush.xpose.msk.msrb.mxu3 %vm1086_vm2, %v14802_v26  ;;  %v14826_v26 = vld [vmem:[#allocation36_spill] sm:$0xff] }
 0xf1b   : > { %7715 = vmatpush.xpose.msk.msra.mxu0 %vm1086_vm2, %v14803_v13  ;;  %5427 = vmatpush.msra.mxu2 %v8181_v27 }
 0xf1c   : > { %4973 = vmatpush.msrb.mxu1 %v8176_v44  ;;  %7660 = vmatmul.msk.f32.gmra.mxu0 %vm1086_vm2, %v14804_v57  ;;  %v14825_v44 = vld [vmem:[#allocation12_spill] sm:$0xff]  ;;  %v14828_v57 = vld [vmem:[#allocation18_spill] sm:$0xff] }
 0xf1d   : > { %7693 = vmatmul.msk.f32.gmra.mxu3 %vm1086_vm2, %v14805_v37  ;;  %5428 = vmatpush.msra.mxu2 %v8182_v53 }
 0xf1e   : > { %4974 = vmatpush.msrb.mxu1 %v8177_v10  ;;  %7747 = vmatpush.xpose.msk.msrb.mxu3 %vm1086_vm2, %v14806_v6 }
 0xf1f   : > { %7716 = vmatpush.xpose.msk.msra.mxu0 %vm1086_vm2, %v14807_v9  ;;  %5429 = vmatpush.msra.mxu2 %v8191_v40  ;;  %v14829_v40 = vld [vmem:[#allocation66_spill] sm:$0xff]  ;;  %v14830_v9 = vld [vmem:[#allocation21_spill] sm:$0xff] }
 0xf20   : > { %4975 = vmatpush.msrb.mxu1 %v8186_v38 }
 0xf21   : > { %5430 = vmatpush.msra.mxu2 %v8192_v1 }
 0xf22   : > { %4976 = vmatpush.msrb.mxu1 %v8187_v2  ;;  %7748 = vmatpush.xpose.msk.msrb.mxu3 %vm1086_vm2, %v14808_v55  ;;  %v14831_v2 = vld [vmem:[#allocation103_spill] sm:$0xff] }
 0xf23   : > { %5431 = vmatpush.msra.mxu2 %v8201_v19  ;;  %v14832_v19 = vld [vmem:[#allocation41_spill] sm:$0xff] }
 0xf24   : > { %4977 = vmatpush.msrb.mxu1 %v8196_v43  ;;  %7661 = vmatmul.msk.f32.gmra.mxu0 %vm1086_vm2, %v14809_v33 }
 0xf25   : > { %7694 = vmatmul.msk.f32.gmra.mxu3 %vm1086_vm2, %v14810_v34  ;;  %5432 = vmatpush.msra.mxu2 %v8202_v28  ;;  %v14833_v28 = vld [vmem:[#allocation17_spill] sm:$0xff]  ;;  %v14834_v34 = vld [vmem:[#allocation32_spill] sm:$0xff] }
 0xf26   : > { %4978 = vmatpush.msrb.mxu1 %v8197_v18 }
 0xf27   : > { %5433 = vmatpush.msra.mxu2 %v8211_v21 }
 0xf28   : > { %4979 = vmatpush.msrb.mxu1 %v8206_v51 }
 0xf29   : > { %5434 = vmatpush.msra.mxu2 %v8212_v36  ;;  %v14836_v36 = vld [vmem:[#allocation23_spill] sm:$0xff] }
 0xf2a   : > { %4980 = vmatpush.msrb.mxu1 %v8207_v39 }
 0xf2b   : > { %5435 = vmatpush.msra.mxu2 %v8221_v8 }
 0xf2c   : > { %4981 = vmatpush.msrb.mxu1 %v8216_v62  ;;  %7662 = vmatmul.msk.f32.gmra.mxu0 %vm1086_vm2, %v14811_v59  ;;  %v14837_v62 = vld [vmem:[#allocation47_spill] sm:$0xff] }
 0xf2d   : > { %7695 = vmatmul.msk.f32.gmra.mxu3 %vm1086_vm2, %v14812_v24  ;;  %5436 = vmatpush.msra.mxu2 %v8222_v52  ;;  %v14838_v24 = vld [vmem:[#allocation92_spill] sm:$0xff] }
 0xf2e   : > { %4982 = vmatpush.msrb.mxu1 %v8217_v47 }
 0xf34   : > { %7663 = vmatmul.msk.f32.gmra.mxu0 %vm1086_vm2, %v14813_v31  ;;  %v14839_v31 = vld [vmem:[#allocation90_spill] sm:$0xff] }
 0xf35   : > { %7696 = vmatmul.msk.f32.gmra.mxu3 %vm1086_vm2, %v14814_v30 }
 0xf3c   : > { %7664 = vmatmul.msk.f32.gmra.mxu0 %vm1086_vm2, %v14815_v58 }
 0xf3d   : > { %7697 = vmatmul.msk.f32.gmra.mxu3 %vm1086_vm2, %v14816_v14  ;;  %v14840_v14 = vld [vmem:[#allocation33_spill] sm:$0xff] }
 0xf44   : > { %7665 = vmatmul.msk.f32.gmra.mxu0 %vm1086_vm2, %v14817_v48 }
 0xf45   : > { %7698 = vmatmul.msk.f32.gmra.mxu3 %vm1086_vm2, %v14818_v17  ;;  %v14841_v17 = vld [vmem:[#allocation22_spill] sm:$0xff] }
 0xf4c   : > { %7666 = vmatmul.msk.f32.gmra.mxu0 %vm1086_vm2, %v14819_v3 }
 0xf4d   : > { %7699 = vmatmul.msk.f32.gmra.mxu3 %vm1086_vm2, %v12175_v16  ;;  %v14824_v16 = vld [vmem:[#allocation101_spill] sm:$0xff] }
 0xf54   : > { %7667 = vmatmul.msk.f32.gmra.mxu0 %vm1086_vm2, %v14820_v22 }
 0xf55   : > { %7700 = vmatmul.msk.f32.gmra.mxu3 %vm1086_vm2, %v4167_v54  ;;  %v14842_v54 = vld [vmem:[#allocation74_spill] sm:$0xff] }
 0xf5c   : > { %7668 = vmatmul.msk.f32.gmra.mxu0 %vm1086_vm2, %v14821_v12 }
 0xf5d   : > { %7749 = vmatmul.msk.f32.vlgmr.msrb.gmra.mxu3 %vm1086_vm2, %v14822_v4  ;;  %v4281_v42 = vpop.f32.mrf.mxu3 }
 0xf5e   : > { %v12395_v20 = vadd.f32 %v4281_v42, %v14823_v29 }
 0xf5f   : > { %v3831_v50 = vpop.f32.mrf.mxu0 }
 0xf60   : > { %v12398_v32 = vadd.f32 %v3831_v50, %v14823_v29  ;;  %4329 = vmax.xlane.f32.xlu2 %v12395_v20 }
 0xf62   : > { %3879 = vmax.xlane.f32.xlu1 %v12398_v32 }
 0xf64   : > { %7717 = vmatmul.msk.f32.vlgmr.msra.gmra.mxu0 %vm1086_vm2, %v14824_v16  ;;  %v14843_v16 = vld [vmem:[#allocation31_spill] sm:$0xff] }
 0xf65   : > { %7750 = vmatmul.msk.f32.gmra.mxu3 %vm1086_vm2, %v14825_v44  ;;  %v4284_v27 = vpop.f32.mrf.mxu3 }
 0xf66   : > { %v12407_v13 = vadd.f32 %v4284_v27, %v14826_v26 }
 0xf67   : > { %v3834_v10 = vpop.f32.mrf.mxu0 }
 0xf68   : > { %v12410_v53 = vadd.f32 %v3834_v10, %v14826_v26  ;;  %4331 = vmax.xlane.f32.xlu0 %v12407_v13  ;;  %v14844_v10 = vld [vmem:[#allocation91_spill] sm:$0xff] }
 0xf6a   : > { %3881 = vmax.xlane.f32.xlu1 %v12410_v53 }
 0xf6c   : > { %7718 = vmatmul.msk.f32.gmra.mxu0 %vm1086_vm2, %v14827_v0 }
 0xf6d   : > { %7751 = vmatmul.msk.f32.gmra.mxu3 %vm1086_vm2, %v14828_v57  ;;  %v4287_v37 = vpop.f32.mrf.mxu3  ;;  %v14846_v57 = vld [vmem:[#allocation30_spill] sm:$0xff] }
 0xf6e   : > { %v12430_v18 = vadd.f32 %v4287_v37, %v14829_v40 }
 0xf6f   : > { %v3837_v38 = vpop.f32.mrf.mxu0 }
 0xf70   : > { %v12419_v6 = vadd.f32 %v3837_v38, %v14829_v40 }
 0xf72   : > { %3883 = vmax.xlane.f32.xlu0 %v12419_v6 }
 0xf74   : > { %7719 = vmatmul.msk.f32.gmra.mxu0 %vm1086_vm2, %v14830_v9  ;;  %v14847_v9 = vld [vmem:[#allocation93_spill] sm:$0xff] }
 0xf75   : > { %7752 = vmatmul.msk.f32.gmra.mxu3 %vm1086_vm2, %v14831_v2  ;;  %v4290_v1 = vpop.f32.mrf.mxu3 }
 0xf76   : > { %v12446_v39 = vadd.f32 %v4290_v1, %v14832_v19 }
 0xf77   : > { %v3840_v43 = vpop.f32.mrf.mxu0 }
 0xf78   : > { %v12427_v55 = vadd.f32 %v3840_v43, %v14832_v19  ;;  %v14848_v43 = vld [vmem:[#allocation35_spill] sm:$0xff] }
 0xf7a   : > { %3885 = vmax.xlane.f32.xlu2 %v12427_v55  ;;  %4333 = vmax.xlane.f32.xlu0 %v12430_v18 }
 0xf7c   : > { %7720 = vmatmul.msk.f32.gmra.mxu0 %vm1086_vm2, %v12107_v46  ;;  %v14835_v46 = vld [vmem:[#allocation20_spill] sm:$0xff] }
 0xf7d   : > { %7753 = vmatmul.msk.f32.gmra.mxu3 %vm1086_vm2, %v14833_v28 }
 0xf7e   : > { %v4293_v33 = vpop.f32.mrf.mxu3 }
 0xf7f   : > { %v12439_v51 = vadd.f32 %v4293_v33, %v14834_v34  ;;  %v14849_v33 = vld [vmem:[#allocation100_spill] sm:$0xff] }
 0xf81   : > { %v3843_v21 = vpop.f32.mrf.mxu0  ;;  %4337 = vmax.xlane.f32.xlu1 %v12439_v51 }
 0xf82   : > { %v12442_v5 = vadd.f32 %v3843_v21, %v14834_v34  ;;  %4335 = vmax.xlane.f32.xlu0 %v12446_v39  ;;  %v14850_v21 = vld [vmem:[#allocation61_spill] sm:$0xff] }
 0xf84   : > { %7721 = vmatmul.msk.f32.gmra.mxu0 %vm1086_vm2, %v14835_v46  ;;  %3887 = vmax.xlane.f32.xlu2 %v12442_v5 }
 0xf85   : > { %7754 = vmatmul.msk.f32.gmra.mxu3 %vm1086_vm2, %v14836_v36 }
 0xf86   : > { %v4296_v8 = vpop.f32.mrf.mxu3 }
 0xf87   : > { %v12455_v52 = vadd.f32 %v4296_v8, %v14837_v62 }
 0xf89   : > { %v3846_v47 = vpop.f32.mrf.mxu0  ;;  %4339 = vmax.xlane.f32.xlu1 %v12455_v52 }
 0xf8a   : > { %v12458_v59 = vadd.f32 %v3846_v47, %v14837_v62 }
 0xf8c   : > { %7722 = vmatmul.msk.f32.gmra.mxu0 %vm1086_vm2, %v14838_v24  ;;  %3889 = vmax.xlane.f32.xlu2 %v12458_v59 }
 0xf8d   : > { %7755 = vmatmul.msk.f32.gmra.mxu3 %vm1086_vm2, %v14839_v31  ;;  %v14851_v31 = vld [vmem:[#allocation37_spill] sm:$0xff] }
 0xf8f   : > { %v4299_v30 = vpop.f32.mrf.mxu3 }
 0xf90   : > { %v12478_v4 = vadd.f32 %v4299_v30, %v14840_v14 }
 0xf91   : > { %v3849_v58 = vpop.f32.mrf.mxu0 }
 0xf92   : > { %v12467_v48 = vadd.f32 %v3849_v58, %v14840_v14 }
 0xf94   : > { %7723 = vmatmul.msk.f32.gmra.mxu0 %vm1086_vm2, %v14841_v17  ;;  %3891 = vmax.xlane.f32.xlu0 %v12467_v48 }
 0xf95   : > { %7756 = vmatmul.msk.f32.gmra.mxu3 %vm1086_vm2, %v12114_v35 }
 0xf98   : > { %v4302_v3 = vpop.f32.mrf.mxu3 }
 0xf99   : > { %v12475_v22 = vadd.f32 %v4302_v3, %v14842_v54  ;;  %v3852_v12 = vpop.f32.mrf.mxu0 }
 0xf9a   : > { %v12481_v42 = vadd.f32 %v3852_v12, %v14842_v54  ;;  %v14852_v12 = vld [vmem:[#allocation40_spill] sm:$0xff] }
 0xf9b   : > { %4343 = vmax.xlane.f32.xlu2 %v12475_v22 }
 0xf9c   : > { %7724 = vmatmul.msk.f32.gmra.mxu0 %vm1086_vm2, %v12143_v60  ;;  %4341 = vmax.xlane.f32.xlu0 %v12478_v4  ;;  %v14845_v60 = vld [vmem:[#allocation24_spill] sm:$0xff] }
 0xf9d   : > { %3893 = vmax.xlane.f32.xlu1 %v12481_v42  ;;  %7757 = vmatmul.msk.f32.gmra.mxu3 %vm1086_vm2, %v12129_v25 }
 0xfa0   : > { %v4305_v35 = vpop.f32.mrf.mxu3 }
 0xfa1   : > { %v3855_v50 = vpop.f32.mrf.mxu0  ;;  %v12494_v27 = vadd.f32 %v4305_v35, %v14843_v16  ;;  %v14853_v35 = vld [vmem:[#allocation45_spill] sm:$0xff] }
 0xfa2   : > { %v12491_v44 = vadd.f32 %v3855_v50, %v14843_v16  ;;  %v14854_v50 = vld [vmem:[#allocation55_spill] sm:$0xff] }
 0xfa4   : > { %7725 = vmatmul.msk.f32.gmra.mxu0 %vm1086_vm2, %v14844_v10  ;;  %3895 = vmax.xlane.f32.xlu2 %v12491_v44 }
 0xfa5   : > { %4345 = vmax.xlane.f32.xlu0 %v12494_v27  ;;  %7758 = vmatmul.msk.f32.gmra.mxu3 %vm1086_vm2, %v14845_v60 }
 0xfa8   : > { %v4308_v0 = vpop.f32.mrf.mxu3 }
 0xfa9   : > { %v3858_v25 = vpop.f32.mrf.mxu0  ;;  %v12506_v38 = vadd.f32 %v4308_v0, %v14846_v57 }
 0xfaa   : > { %v12503_v37 = vadd.f32 %v3858_v25, %v14846_v57  ;;  %v4617_v25 = vpop.permute.xlu2 %4616 }
 0xfac   : > { %7726 = vmatmul.msk.f32.gmra.mxu0 %vm1086_vm2, %v12161_v56  ;;  %3897 = vmax.xlane.f32.xlu2 %v12503_v37 }
 0xfad   : > { %4347 = vmax.xlane.f32.xlu0 %v12506_v38  ;;  %7759 = vmatmul.msk.f32.gmra.mxu3 %vm1086_vm2, %v14847_v9 }
 0xfb0   : > { %v4311_v2 = vpop.f32.mrf.mxu3 }
 0xfb1   : > { %v3861_v1 = vpop.f32.mrf.mxu0  ;;  %v12526_v8 = vadd.f32 %v4311_v2, %v14848_v43 }
 0xfb2   : > { %v12515_v28 = vadd.f32 %v3861_v1, %v14848_v43 }
 0xfb4   : > { %3899 = vmax.xlane.f32.xlu2 %v12515_v28  ;;  %7727 = vmatmul.msk.f32.gmra.mxu0 %vm1086_vm2, %v12124_v45 }
 0xfb5   : > { %7760 = vmatmul.msk.f32.gmra.mxu3 %vm1086_vm2, %v14849_v33 }
 0xfb8   : > { %v4314_v56 = vpop.f32.mrf.mxu3 }
 0xfb9   : > { %v12523_v46 = vadd.f32 %v4314_v56, %v14850_v21  ;;  %v3864_v36 = vpop.f32.mrf.mxu0 }
 0xfba   : > { %v12535_v24 = vadd.f32 %v3864_v36, %v14850_v21 }
 0xfbb   : > { %4351 = vmax.xlane.f32.xlu0 %v12523_v46 }
 0xfbc   : > { %4349 = vmax.xlane.f32.xlu2 %v12526_v8  ;;  %7728 = vmatmul.msk.f32.gmra.mxu0 %vm1086_vm2, %v12137_v7 }
 0xfbd   : > { %7761 = vmatmul.msk.f32.gmra.mxu3 %vm1086_vm2, %v12195_v61 }
 0xfc0   : > { %v4317_v45 = vpop.f32.mrf.mxu3 }
 0xfc1   : > { %v3867_v47 = vpop.f32.mrf.mxu0  ;;  %v12547_v58 = vadd.f32 %v4317_v45, %v14851_v31 }
 0xfc2   : > { %v12538_v30 = vadd.f32 %v3867_v47, %v14851_v31 }
 0xfc4   : > { %3901 = vmax.xlane.f32.xlu2 %v12535_v24  ;;  %3903 = vmax.xlane.f32.xlu1 %v12538_v30 }
 0xfc5   : > { %7729 = vmatmul.msk.f32.gmra.mxu0 %vm1086_vm2, %v12241_v11  ;;  %7762 = vmatmul.msk.f32.gmra.mxu3 %vm1086_vm2, %v12104_v15 }
 0xfc8   : > { %v4320_v7 = vpop.f32.mrf.mxu3 }
 0xfc9   : > { %v3870_v61 = vpop.f32.mrf.mxu0  ;;  %v12570_v0 = vadd.f32 %v4320_v7, %v14852_v12 }
 0xfca   : > { %v12555_v11 = vadd.f32 %v3870_v61, %v14852_v12 }
 0xfcc   : > { %4353 = vmax.xlane.f32.xlu1 %v12547_v58 }
 0xfcd   : > { %7730 = vmatmul.msk.f32.gmra.mxu0 %vm1086_vm2, %v12267_v63  ;;  %7763 = vmatmul.msk.f32.gmra.mxu3 %vm1086_vm2, %v12110_v23 }
 0xfd0   : > { %v4323_v17 = vpop.f32.mrf.mxu3 }
 0xfd1   : > { %v3873_v3 = vpop.f32.mrf.mxu0  ;;  %v12580_v56 = vadd.f32 %v4323_v17, %v14853_v35 }
 0xfd2   : > { %v12558_v15 = vadd.f32 %v3873_v3, %v14853_v35 }
 0xfd3   : > { %v4330_v7 = vpop.xlane.xlu2 %4329 }
 0xfd4   : > { %3907 = vmax.xlane.f32.xlu0 %v12558_v15  ;;  %3905 = vmax.xlane.f32.xlu1 %v12555_v11 }
 0xfd5   : > { %7731 = vmatmul.msk.f32.gmra.mxu0 %vm1086_vm2, %v12116_v49  ;;  %7764 = vmatmul.msk.f32.gmra.mxu3 %vm1086_vm2, %v12269_v41  ;;  %v3880_v23 = vpop.xlane.xlu1 %3879 }
 0xfd8   : > { %v4326_v63 = vpop.f32.mrf.mxu3 }
 0xfd9   : > { %v12567_v10 = vadd.f32 %v4326_v63, %v14854_v50  ;;  %v3876_v60 = vpop.f32.mrf.mxu0 }
 0xfdb   : > { %4359 = vmax.xlane.f32.xlu2 %v12567_v10  ;;  %v4332_v49 = vpop.xlane.xlu0 %4331 }
 0xfdc   : > { %4355 = vmax.xlane.f32.xlu1 %v12570_v0  ;;  %v4362_v47 = vsub.f32 %v12407_v13, %v4332_v49 }
 0xfdd   : > { %7732 = vmatmul.msk.f32.gmra.mxu0 %vm1086_vm2, %v4617_v25  ;;  %v3882_v9 = vpop.xlane.xlu1 %3881 }
 0xfde   : > { %v3912_v41 = vsub.f32 %v12410_v53, %v3882_v9  ;;  %v3911_v53 = vsub.f32 %v12398_v32, %v3880_v23  ;;  %v4379_v9 = vmul.f32 1.442695, %v4362_v47  ;;  %v4361_v32 = vsub.f32 %v12395_v20, %v4330_v7 }
 0xfe0   : > { %v5181_v2 = vpop.f32.mrf.mxu3  ;;  %v3929_v36 = vmul.f32 1.442695, %v3912_v41  ;;  %v3927_v17 = vmul.f32 1.442695, %v3911_v53  ;;  %v4377_v41 = vmul.f32 1.442695, %v4361_v32 }
 0xfe1   : > { %v12577_v1 = vadd.f32 %v5181_v2, %v14823_v29  ;;  %v4731_v33 = vpop.f32.mrf.mxu0 }
 0xfe2   : > { %v12583_v45 = vadd.f32 %v4731_v33, %v14823_v29  ;;  %8585 = vpow2.f32 %v3929_v36  ;;  %v12593_v29 = vadd.f32 %v3876_v60, %v14854_v50 }
 0xfe3   : > { %5229 = vmax.xlane.f32.xlu0 %v12577_v1  ;;  %8587 = vpow2.f32 %v3927_v17 }
 0xfe4   : > { %4779 = vmax.xlane.f32.xlu2 %v12583_v45  ;;  %4357 = vmax.xlane.f32.xlu1 %v12580_v56  ;;  %8589 = vpow2.f32 %v4379_v9 }
 0xfe5   : > { %v3884_v61 = vpop.xlane.xlu0 %3883 }
 0xfe8   : > { %v5184_v3 = vpop.f32.mrf.mxu3  ;;  %v12590_v25 = vpop.eup %8585 }
 0xfe9   : > { %v4734_v63 = vpop.f32.mrf.mxu0  ;;  %v12606_v47 = vpop.eup %8587  ;;  %v12626_v50 = vadd.f32 %v5184_v3, %v14826_v26 }
 0xfea   : > { %v12596_v2 = vadd.f32 %v4734_v63, %v14826_v26  ;;  %v12608_v63 = vpop.eup %8589 }
 0xfec   : > { %3909 = vmax.xlane.f32.xlu1 %v12593_v29  ;;  %3961 = vadd.xlane.f32.xlu2 %v12590_v25 }
 0xfed   : > { %4781 = vmax.xlane.f32.xlu0 %v12596_v2  ;;  %v3886_v13 = vpop.xlane.xlu2 %3885  ;;  %v4334_v60 = vpop.xlane.xlu0 %4333 }
 0xfee   : > { %v3914_v23 = vsub.f32 %v12427_v55, %v3886_v13 }
 0xff0   : > { %v5187_v49 = vpop.f32.mrf.mxu3  ;;  %v3933_v36 = vmul.f32 1.442695, %v3914_v23 }
 0xff1   : > { %v4737_v33 = vpop.f32.mrf.mxu0  ;;  %v12604_v53 = vadd.f32 %v5187_v49, %v14829_v40  ;;  %v3913_v49 = vsub.f32 %v12419_v6, %v3884_v61 }
 0xff2   : > { %8591 = vpow2.f32 %v3933_v36 }
 0xff3   : > { %14855 = vst [vmem:[#allocation67_spill] sm:$0xff] %v12604_v53  ;;  %8593 = vpow2.f32 %v4377_v41 }
 0xff4   : > { %3959 = vadd.xlane.f32.xlu1 %v12606_v47  ;;  %5233 = vmax.xlane.f32.xlu2 %v12604_v53 }
 0xff5   : > { %4411 = vadd.xlane.f32.xlu0 %v12608_v63  ;;  %v4336_v55 = vpop.xlane.xlu0 %4335 }
 0xff6   : > { %v4364_v7 = vsub.f32 %v12446_v39, %v4336_v55  ;;  %v3931_v39 = vmul.f32 1.442695, %v3913_v49 }
 0xff7   : > { %v3888_v41 = vpop.xlane.xlu2 %3887 }
 0xff8   : > { %v5190_v20 = vpop.f32.mrf.mxu3  ;;  %v12614_v9 = vpop.eup %8591  ;;  %v4383_v23 = vmul.f32 1.442695, %v4364_v7  ;;  %v3915_v6 = vsub.f32 %v12442_v5, %v3888_v41  ;;  %v4363_v5 = vsub.f32 %v12430_v18, %v4334_v60 }
 0xff9   : > { %v4740_v17 = vpop.f32.mrf.mxu0  ;;  %v12619_v13 = vpop.eup %8593  ;;  %v12645_v35 = vadd.f32 %v5190_v20, %v14832_v19 }
 0xffa   : > { %v12617_v32 = vadd.f32 %v4740_v17, %v14832_v19  ;;  %8595 = vpow2.f32 %v4383_v23  ;;  %v3935_v26 = vmul.f32 1.442695, %v3915_v6  ;;  %v4338_v19 = vpop.xlane.xlu1 %4337  ;;  %v12659_v6 = vadd.f32 %v4737_v33, %v14829_v40 }
 0xffb   : > { %8597 = vpow2.f32 %v3931_v39  ;;  %14858 = vst [vmem:[#allocation97_spill] sm:$0xff] %v12645_v35 }
 0xffc   : > { %14856 = vst [vmem:[#allocation81_spill] sm:$0xff] %v12617_v32  ;;  %4409 = vadd.xlane.f32.xlu1 %v12619_v13  ;;  %4785 = vmax.xlane.f32.xlu2 %v12617_v32  ;;  %8599 = vpow2.f32 %v3935_v26 }
 0xffd   : > { %3965 = vadd.xlane.f32.xlu0 %v12614_v9 }
 0xfff   : > { %v3890_v23 = vpop.xlane.xlu2 %3889 }
0x1000   : > { %v5193_v36 = vpop.f32.mrf.mxu3  ;;  %v12631_v7 = vpop.eup %8595  ;;  %v3916_v41 = vsub.f32 %v12458_v59, %v3890_v23  ;;  %v4365_v59 = vsub.f32 %v12439_v51, %v4338_v19 }
0x1001   : > { %v4743_v55 = vpop.f32.mrf.mxu0  ;;  %v12640_v3 = vadd.f32 %v5193_v36, %v14834_v34  ;;  %v4381_v36 = vmul.f32 1.442695, %v4363_v5 }
0x1002   : > { %v12629_v17 = vadd.f32 %v4743_v55, %v14834_v34  ;;  %v12642_v55 = vpop.eup %8597  ;;  %v4385_v33 = vmul.f32 1.442695, %v4365_v59 }
0x1003   : > { %14857 = vst [vmem:[#allocation95_spill] sm:$0xff] %v12640_v3  ;;  %v12664_v18 = vpop.eup %8599  ;;  %8601 = vpow2.f32 %v4381_v36 }
0x1004   : > { %4787 = vmax.xlane.f32.xlu2 %v12629_v17  ;;  %5231 = vmax.xlane.f32.xlu1 %v12626_v50 }
0x1005   : > { %4415 = vadd.xlane.f32.xlu0 %v12631_v7 }
0x1007   : > { %v12637_v61 = vpop.xlane.xlu0 %3891 }
0x1008   : > { %v12647_v31 = vpop.f32.mrf.mxu3 }
0x1009   : > { %v4746_v49 = vpop.f32.mrf.mxu0 }
0x100c   : > { %5237 = vmax.xlane.f32.xlu2 %v12640_v3  ;;  %3963 = vadd.xlane.f32.xlu1 %v12642_v55  ;;  %v3937_v3 = vmul.f32 1.442695, %v3916_v41  ;;  %v12677_v41 = vpop.eup %8601 }
0x100d   : > { %5235 = vmax.xlane.f32.xlu0 %v12645_v35 }
0x100e   : > { %v12654_v34 = vpop.xlane.xlu2 %4343  ;;  %8603 = vpow2.f32 %v3937_v3 }
0x100f   : > { %v12656_v39 = vpop.xlane.xlu0 %4341  ;;  %8605 = vpow2.f32 %v4385_v33 }
0x1010   : > { %v12669_v60 = vpop.f32.mrf.mxu3 }
0x1011   : > { %v4749_v20 = vpop.f32.mrf.mxu0 }
0x1012   : > { %v12662_v32 = vadd.f32 %v4749_v20, %v14840_v14  ;;  %v4340_v20 = vpop.xlane.xlu1 %4339 }
0x1013   : > { %v4366_v3 = vsub.f32 %v12455_v52, %v4340_v20  ;;  %v3917_v20 = vsub.f32 %v12467_v48, %v12637_v61  ;;  %v4367_v48 = vsub.f32 %v12478_v4, %v12656_v39 }
0x1014   : > { %14859 = vst [vmem:[#allocation70_spill] sm:$0xff] %v12662_v32  ;;  %4791 = vmax.xlane.f32.xlu2 %v12662_v32  ;;  %4783 = vmax.xlane.f32.xlu1 %v12659_v6  ;;  %v12679_v32 = vpop.eup %8603 }
0x1015   : > { %3967 = vadd.xlane.f32.xlu0 %v12664_v18  ;;  %v4387_v59 = vmul.f32 1.442695, %v4366_v3  ;;  %v12689_v53 = vpop.eup %8605  ;;  %v3939_v3 = vmul.f32 1.442695, %v3917_v20 }
0x1017   : > { %v12672_v40 = vpop.xlane.xlu2 %3895 }
0x1018   : > { %v4346_v26 = vpop.xlane.xlu0 %4345  ;;  %v5202_v36 = vpop.f32.mrf.mxu3 }
0x1019   : > { %v4752_v23 = vpop.f32.mrf.mxu0  ;;  %v4369_v51 = vsub.f32 %v12494_v27, %v4346_v26 }
0x101a   : > { %v12675_v5 = vadd.f32 %v4752_v23, %v14842_v54  ;;  %v12687_v23 = vadd.f32 %v5202_v36, %v14842_v54 }
0x101b   : > { %v4393_v19 = vmul.f32 1.442695, %v4369_v51 }
0x101c   : > { %14860 = vst [vmem:[#allocation82_spill] sm:$0xff] %v12675_v5  ;;  %4793 = vmax.xlane.f32.xlu2 %v12675_v5  ;;  %4413 = vadd.xlane.f32.xlu1 %v12677_v41  ;;  %v12692_v5 = vadd.f32 %v4746_v49, %v14837_v62 }
0x101d   : > { %3969 = vadd.xlane.f32.xlu0 %v12679_v32  ;;  %8607 = vpow2.f32 %v4393_v19  ;;  %v12713_v19 = vadd.f32 %v12647_v31, %v14837_v62  ;;  %v14864_v31 = vld [vmem:[#allocation26_spill] sm:$0xff] }
0x101e   : > { %8609 = vpow2.f32 %v4387_v59 }
0x101f   : > { %v3898_v35 = vpop.xlane.xlu2 %3897 }
0x1020   : > { %v3920_v27 = vsub.f32 %v12503_v37, %v3898_v35  ;;  %v12697_v52 = vpop.xlane.xlu0 %4347  ;;  %v3894_v35 = vpop.xlane.xlu1 %3893 }
0x1022   : > { %v3945_v54 = vmul.f32 1.442695, %v3920_v27  ;;  %v4389_v27 = vmul.f32 1.442695, %v4367_v48 }
0x1023   : > { %v12700_v33 = vpop.eup %8607 }
0x1024   : > { %5243 = vmax.xlane.f32.xlu2 %v12687_v23  ;;  %4417 = vadd.xlane.f32.xlu1 %v12689_v53  ;;  %14861 = vst [vmem:[#allocation63_spill] sm:$0xff] %v12700_v33  ;;  %v12702_v26 = vpop.eup %8609  ;;  %8611 = vpow2.f32 %v3945_v54 }
0x1025   : > { %4789 = vmax.xlane.f32.xlu0 %v12692_v5 }
0x1027   : > { %v3900_v59 = vpop.xlane.xlu2 %3899 }
0x102a   : > { %v12709_v36 = vpop.eup %8611 }
0x102b   : > { %14862 = vst [vmem:[#allocation77_spill] sm:$0xff] %v12709_v36 }
0x102c   : > { %4425 = vadd.xlane.f32.xlu2 %v12700_v33 }
0x102d   : > { %4419 = vadd.xlane.f32.xlu0 %v12702_v26 }
0x102e   : > { %v4352_v49 = vpop.xlane.xlu0 %4351 }
0x102f   : > { %v4372_v37 = vsub.f32 %v12523_v46, %v4352_v49  ;;  %v4350_v62 = vpop.xlane.xlu2 %4349 }
0x1031   : > { %v4399_v51 = vmul.f32 1.442695, %v4372_v37  ;;  %v3918_v37 = vsub.f32 %v12481_v42, %v3894_v35 }
0x1033   : > { %8613 = vpow2.f32 %v4399_v51  ;;  %v4755_v51 = vpop.f32.mrf.mxu0 }
0x1034   : > { %3977 = vadd.xlane.f32.xlu2 %v12709_v36  ;;  %8615 = vpow2.f32 %v3939_v3 }
0x1035   : > { %5239 = vmax.xlane.f32.xlu0 %v12713_v19 }
0x1037   : > { %v3904_v46 = vpop.xlane.xlu1 %3903  ;;  %v3902_v3 = vpop.xlane.xlu2 %3901 }
0x1038   : > { %v3923_v61 = vsub.f32 %v12538_v30, %v3904_v46  ;;  %v3941_v46 = vmul.f32 1.442695, %v3918_v37 }
0x1039   : > { %v12720_v49 = vpop.eup %8613 }
0x103a   : > { %v3951_v54 = vmul.f32 1.442695, %v3923_v61  ;;  %14863 = vst [vmem:[#allocation99_spill] sm:$0xff] %v12720_v49  ;;  %v12722_v20 = vpop.eup %8615  ;;  %v12738_v61 = vadd.f32 %v4755_v51, %v14843_v16 }
0x103c   : > { %4431 = vadd.xlane.f32.xlu2 %v12720_v49  ;;  %8617 = vpow2.f32 %v3951_v54  ;;  %14866 = vst [vmem:[#allocation28_spill] sm:$0xff] %v12738_v61  ;;  %v4368_v54 = vsub.f32 %v12475_v22, %v12654_v34  ;;  %v3919_v22 = vsub.f32 %v12491_v44, %v12672_v40 }
0x103d   : > { %3971 = vadd.xlane.f32.xlu0 %v12722_v20  ;;  %8244 = vrot.lane.b32.xlu1 %v14864_v31, %s9056_s11  ;;  %8619 = vpow2.f32 %v4389_v27  ;;  %v12742_v27 = vadd.f32 %v12669_v60, %v14840_v14  ;;  %v4370_v14 = vsub.f32 %v12506_v38, %v12697_v52  ;;  %v3921_v38 = vsub.f32 %v12515_v28, %v3900_v59 }
0x103e   : > { %8621 = vpow2.f32 %v3941_v46  ;;  %v4391_v37 = vmul.f32 1.442695, %v4368_v54  ;;  %v4371_v52 = vsub.f32 %v12526_v8, %v4350_v62 }
0x103f   : > { %v4354_v4 = vpop.xlane.xlu1 %4353  ;;  %v4395_v49 = vmul.f32 1.442695, %v4370_v14 }
0x1040   : > { %8623 = vpow2.f32 %v4391_v37 }
0x1042   : > { %v12728_v39 = vpop.eup %8617 }
0x1043   : > { %14865 = vst [vmem:[#allocation60_spill] sm:$0xff] %v12728_v39  ;;  %v12730_v30 = vpop.eup %8619 }
0x1044   : > { %3983 = vadd.xlane.f32.xlu2 %v12728_v39  ;;  %v12752_v51 = vpop.eup %8621 }
0x1045   : > { %4421 = vadd.xlane.f32.xlu0 %v12730_v30 }
0x1046   : > { %v12764_v36 = vpop.eup %8623 }
0x1047   : > { %v12735_v48 = vpop.xlane.xlu1 %3905  ;;  %v12750_v31 = vpop.xlane.xlu0 %3907 }
0x104c   : > { %4795 = vmax.xlane.f32.xlu2 %v12738_v61  ;;  %v3943_v61 = vmul.f32 1.442695, %v3919_v22  ;;  %v4397_v22 = vmul.f32 1.442695, %v4371_v52 }
0x104d   : > { %5241 = vmax.xlane.f32.xlu0 %v12742_v27 }
0x104e   : > { %v4360_v42 = vpop.xlane.xlu2 %4359 }
0x104f   : > { %v12748_v35 = vpop.xlane.xlu1 %4355  ;;  %v4376_v28 = vsub.f32 %v12567_v10, %v4360_v42 }
0x1055   : > { %3973 = vadd.xlane.f32.xlu0 %v12752_v51 }
0x1056   : > { %v12761_v34 = vpop.xlane.xlu0 %5229 }
0x1057   : > { %v12757_v60 = vpop.xlane.xlu2 %4779  ;;  %v4358_v39 = vpop.xlane.xlu1 %4357 }
0x1058   : > { %v4375_v46 = vsub.f32 %v12580_v56, %v4358_v39  ;;  %v3947_v56 = vmul.f32 1.442695, %v3921_v38 }
0x105a   : > { %v4405_v54 = vmul.f32 1.442695, %v4375_v46 }
0x105c   : > { %8625 = vpow2.f32 %v4405_v54  ;;  %v5205_v54 = vpop.f32.mrf.mxu3 }
0x105d   : > { %4423 = vadd.xlane.f32.xlu0 %v12764_v36  ;;  %8627 = vpow2.f32 %v4395_v49  ;;  %v4373_v49 = vsub.f32 %v12547_v58, %v4354_v4  ;;  %v4407_v4 = vmul.f32 1.442695, %v4376_v28 }
0x105e   : > { %8629 = vpow2.f32 %v3943_v61 }
0x105f   : > { %v3962_v37 = vpop.xlane.xlu2 %3961  ;;  %v3910_v33 = vpop.xlane.xlu1 %3909  ;;  %v4401_v62 = vmul.f32 1.442695, %v4373_v49 }
0x1060   : > { %v3926_v44 = vsub.f32 %v12593_v29, %v3910_v33  ;;  %v12770_v40 = vpop.xlane.xlu0 %4781  ;;  %v3922_v29 = vsub.f32 %v12535_v24, %v3902_v3 }
0x1062   : > { %v3957_v39 = vmul.f32 1.442695, %v3926_v44  ;;  %v12772_v14 = vpop.eup %8625  ;;  %v3949_v10 = vmul.f32 1.442695, %v3922_v29  ;;  %v3924_v29 = vsub.f32 %v12555_v11, %v12735_v48  ;;  %v12818_v11 = vadd.f32 %v5205_v54, %v14843_v16 }
0x1063   : > { %v12774_v46 = vpop.eup %8627  ;;  %4437 = vadd.xlane.f32.xlu2 %v12772_v14 }
0x1064   : > { %8631 = vpow2.f32 %v3957_v39  ;;  %v12780_v8 = vpop.eup %8629 }
0x1065   : > { %4427 = vadd.xlane.f32.xlu0 %v12774_v46  ;;  %8633 = vpow2.f32 %v3947_v56 }
0x1066   : > { %8635 = vpow2.f32 %v4397_v22 }
0x1067   : > { %v3960_v33 = vpop.xlane.xlu1 %3959  ;;  %v12783_v59 = vpop.xlane.xlu2 %5233  ;;  %3975 = vadd.xlane.f32.xlu1 %v12780_v8 }
0x1068   : > { %8637 = vrcp.f32 %v3960_v33  ;;  %v4412_v58 = vpop.xlane.xlu0 %4411 }
0x1069   : > { %8639 = vpow2.f32 %v4401_v62 }
0x106a   : > { %v12786_v61 = vpop.eup %8631  ;;  %8641 = vpow2.f32 %v4407_v4 }
0x106b   : > { %v12788_v42 = vpop.eup %8633  ;;  %3989 = vadd.xlane.f32.xlu2 %v12786_v61  ;;  %8643 = vrcp.f32 %v3962_v37  ;;  %v5208_v37 = vpop.f32.mrf.mxu3 }
0x106c   : > { %v12791_v38 = vpop.eup %8635  ;;  %8645 = vpow2.f32 %v3949_v10 }
0x106d   : > { %3979 = vadd.xlane.f32.xlu0 %v12788_v42 }
0x106e   : > { %v8638_v24 = vpop.eup %8637 }
0x106f   : > { %v4007_v3 = vmul.f32 %v8638_v24, %v12606_v47  ;;  %v4410_v52 = vpop.xlane.xlu1 %4409  ;;  %v12795_v44 = vpop.xlane.xlu2 %4785  ;;  %4429 = vadd.xlane.f32.xlu1 %v12791_v38 }
0x1070   : > { %8647 = vrcp.f32 %v4410_v52  ;;  %v3966_v56 = vpop.xlane.xlu0 %3965  ;;  %v12798_v39 = vpop.eup %8639 }
0x1071   : > { %4087 = vmatmul.f32.vlgmr.msra.gmra.mxu1 %v4007_v3  ;;  %v12800_v22 = vpop.eup %8641  ;;  %8649 = vrcp.f32 %v4412_v58  ;;  %v12814_v3 = vadd.f32 %v5208_v37, %v14846_v57  ;;  %v4758_v52 = vpop.f32.mrf.mxu0  ;;  %v3953_v58 = vmul.f32 1.442695, %v3924_v29 }
0x1072   : > { %14867 = vst [vmem:[#allocation102_spill] sm:$0xff] %v12800_v22  ;;  %v8644_v49 = vpop.eup %8643  ;;  %v12829_v29 = vadd.f32 %v4758_v52, %v14846_v57  ;;  %v14868_v52 = vld [vmem:[#allocation9_spill] sm:$0xff] }
0x1073   : > { %4439 = vadd.xlane.f32.xlu2 %v12800_v22  ;;  %v12803_v28 = vpop.eup %8645  ;;  %v4008_v10 = vmul.f32 %v8644_v49, %v12590_v25  ;;  %8651 = vpow2.f32 %v3953_v58  ;;  %v4374_v49 = vsub.f32 %v12570_v0, %v12748_v35  ;;  %v5211_v37 = vpop.f32.mrf.mxu3 }
0x1074   : > { %v12845_v58 = vadd.f32 %v5211_v37, %v14848_v43 }
0x1075   : > { %4433 = vadd.xlane.f32.xlu0 %v12798_v39  ;;  %v4403_v16 = vmul.f32 1.442695, %v4374_v49 }
0x1076   : > { %v8648_v47 = vpop.eup %8647 }
0x1077   : > { %v4457_v33 = vmul.f32 %v8648_v47, %v12619_v13  ;;  %v4788_v62 = vpop.xlane.xlu2 %4787  ;;  %v12809_v4 = vpop.xlane.xlu1 %5231  ;;  %3981 = vadd.xlane.f32.xlu1 %v12803_v28 }
0x1078   : > { %v4416_v24 = vpop.xlane.xlu0 %4415  ;;  %v8650_v22 = vpop.eup %8649 }
0x1079   : > { %4090 = vmatmul.f32.gmra.mxu1 %v4008_v10  ;;  %4537 = vmatmul.f32.vlgmr.msrb.gmra.mxu2 %v4457_v33  ;;  %v4458_v25 = vmul.f32 %v8650_v22, %v12608_v63  ;;  %v12832_v54 = vpop.eup %8651  ;;  %v4761_v33 = vpop.f32.mrf.mxu0  ;;  %v3925_v63 = vsub.f32 %v12558_v15, %v12750_v31 }
0x107b   : > { %5247 = vmax.xlane.f32.xlu2 %v12814_v3  ;;  %v3955_v15 = vmul.f32 1.442695, %v3925_v63 }
0x107f   : > { %v12820_v13 = vpop.xlane.xlu2 %5237  ;;  %v3964_v48 = vpop.xlane.xlu1 %3963  ;;  %5245 = vmax.xlane.f32.xlu1 %v12818_v11 }
0x1080   : > { %8653 = vrcp.f32 %v3964_v48  ;;  %v12826_v47 = vpop.xlane.xlu0 %5235  ;;  %v4815_v48 = vsub.f32 %v12629_v17, %v4788_v62 }
0x1081   : > { %4540 = vmatmul.f32.gmra.mxu2 %v4458_v25  ;;  %8655 = vrcp.f32 %v3966_v56  ;;  %v12847_v56 = vpop.f32.mrf.mxu3  ;;  %v4764_v25 = vpop.f32.mrf.mxu0 }
0x1082   : > { %8657 = vpow2.f32 %v4403_v16  ;;  %v12856_v63 = vadd.f32 %v4764_v25, %v14850_v21 }
0x1083   : > { %4797 = vmax.xlane.f32.xlu2 %v12829_v29 }
0x1086   : > { %v8654_v10 = vpop.eup %8653 }
0x1087   : > { %v12836_v0 = vpop.xlane.xlu1 %4783  ;;  %3985 = vadd.xlane.f32.xlu1 %v12832_v54  ;;  %v4009_v35 = vmul.f32 %v8654_v10, %v12642_v55  ;;  %v12840_v22 = vpop.xlane.xlu2 %4791  ;;  %v4835_v10 = vmul.f32 1.442695, %v4815_v48 }
0x1088   : > { %v3968_v57 = vpop.xlane.xlu0 %3967  ;;  %v8656_v31 = vpop.eup %8655 }
0x1089   : > { %8249 = vrot.lane.b32.xlu0 %v14868_v52, %s9056_s11  ;;  %4093 = vmatmul.f32.gmra.mxu1 %v4009_v35  ;;  %v12851_v55 = vpop.eup %8657  ;;  %8659 = vrcp.f32 %v3968_v57  ;;  %v4010_v16 = vmul.f32 %v8656_v31, %v12614_v9  ;;  %v12863_v57 = vpop.f32.mrf.mxu3  ;;  %v5261_v31 = vsub.f32 %v12577_v1, %v12761_v34 }
0x108a   : > { %8661 = vpow2.f32 %v3955_v15 }
0x108b   : > { %5249 = vmax.xlane.f32.xlu2 %v12845_v58 }
0x108f   : > { %4435 = vadd.xlane.f32.xlu1 %v12851_v55  ;;  %v4414_v49 = vpop.xlane.xlu1 %4413  ;;  %v12858_v35 = vpop.xlane.xlu2 %4793 }
0x1090   : > { %8663 = vrcp.f32 %v4414_v49  ;;  %v3970_v37 = vpop.xlane.xlu0 %3969  ;;  %v8660_v17 = vpop.eup %8659 }
0x1091   : > { %4096 = vmatmul.f32.gmra.mxu1 %v4010_v16  ;;  %8665 = vrcp.f32 %v4416_v24  ;;  %v12861_v62 = vpop.eup %8661  ;;  %v4011_v9 = vmul.f32 %v8660_v17, %v12664_v18  ;;  %v5262_v17 = vsub.f32 %v12626_v50, %v12809_v4 }
0x1092   : > { %8667 = vpow2.f32 %v4835_v10  ;;  %v5277_v10 = vmul.f32 1.442695, %v5261_v31  ;;  %v4813_v31 = vsub.f32 %v12659_v6, %v12836_v0 }
0x1093   : > { %4801 = vmax.xlane.f32.xlu2 %v12856_v63  ;;  %8669 = vrcp.f32 %v3970_v37  ;;  %v12876_v37 = vadd.f32 %v4761_v33, %v14848_v43 }
0x1096   : > { %v8664_v52 = vpop.eup %8663 }
0x1097   : > { %3987 = vadd.xlane.f32.xlu1 %v12861_v62  ;;  %v4459_v15 = vmul.f32 %v8664_v52, %v12677_v41  ;;  %v8666_v24 = vpop.eup %8665  ;;  %v4418_v49 = vpop.xlane.xlu1 %4417 }
0x1098   : > { %v12870_v48 = vpop.xlane.xlu0 %4789  ;;  %v12872_v25 = vpop.eup %8667  ;;  %8671 = vrcp.f32 %v4418_v49  ;;  %v4460_v34 = vmul.f32 %v8666_v24, %v12631_v7  ;;  %v4831_v49 = vmul.f32 1.442695, %v4813_v31 }
0x1099   : > { %4099 = vmatmul.f32.gmra.mxu1 %v4011_v9  ;;  %4543 = vmatmul.f32.gmra.mxu2 %v4459_v15  ;;  %v8670_v16 = vpop.eup %8669  ;;  %v12878_v18 = vpop.xlane.xlu2 %5243  ;;  %8673 = vpow2.f32 %v5277_v10  ;;  %v4811_v9 = vsub.f32 %v12583_v45, %v12757_v60  ;;  %v5279_v15 = vmul.f32 1.442695, %v5262_v17  ;;  %v4812_v60 = vsub.f32 %v12596_v2, %v12770_v40 }
0x109a   : > { %v5220_v41 = vpop.f32.mrf.mxu3  ;;  %v4012_v1 = vmul.f32 %v8670_v16, %v12679_v32 }
0x109b   : > { %4867 = vadd.xlane.f32.xlu2 %v12872_v25  ;;  %v12886_v43 = vadd.f32 %v5220_v41, %v14852_v12  ;;  %v4827_v4 = vmul.f32 1.442695, %v4811_v9  ;;  %v4829_v41 = vmul.f32 1.442695, %v4812_v60  ;;  %v14871_v60 = vld [vmem:[#allocation95_spill] sm:$0xff] }
0x109e   : > { %v8672_v33 = vpop.eup %8671 }
0x109f   : > { %4799 = vmax.xlane.f32.xlu1 %v12876_v37  ;;  %v12891_v32 = vpop.eup %8673  ;;  %v4461_v50 = vmul.f32 %v8672_v33, %v12689_v53 }
0x10a0   : > { %v4420_v52 = vpop.xlane.xlu0 %4419 }
0x10a1   : > { %4102 = vmatmul.f32.gmra.mxu1 %v4012_v1  ;;  %4546 = vmatmul.f32.gmra.mxu2 %v4460_v34  ;;  %8675 = vrcp.f32 %v4420_v52  ;;  %v12893_v7 = vpop.xlane.xlu2 %4425  ;;  %v14869_v1 = vld [vmem:[#allocation67_spill] sm:$0xff] }
0x10a2   : > { %8677 = vpow2.f32 %v5279_v15  ;;  %v5263_v6 = vsub.f32 %v14869_v1, %v12783_v59  ;;  %v14870_v59 = vld [vmem:[#allocation81_spill] sm:$0xff] }
0x10a3   : > { %5255 = vmax.xlane.f32.xlu2 %v12886_v43  ;;  %8679 = vpow2.f32 %v4827_v4  ;;  %v4814_v9 = vsub.f32 %v14870_v59, %v12795_v44 }
0x10a4   : > { %8681 = vpow2.f32 %v4831_v49  ;;  %v5281_v52 = vmul.f32 1.442695, %v5263_v6  ;;  %v5265_v49 = vsub.f32 %v14871_v60, %v12820_v13  ;;  %v4767_v13 = vpop.f32.mrf.mxu0 }
0x10a6   : > { %v5285_v44 = vmul.f32 1.442695, %v5265_v49 }
0x10a7   : > { %5309 = vadd.xlane.f32.xlu1 %v12891_v32  ;;  %v8676_v45 = vpop.eup %8675 }
0x10a8   : > { %v12899_v24 = vpop.xlane.xlu0 %5239  ;;  %v12903_v16 = vpop.eup %8677  ;;  %v4462_v53 = vmul.f32 %v8676_v45, %v12702_v26  ;;  %v4833_v45 = vmul.f32 1.442695, %v4814_v9 }
0x10a9   : > { %4549 = vmatmul.f32.gmra.mxu2 %v4461_v50  ;;  %v12909_v17 = vpop.xlane.xlu2 %3977  ;;  %v12911_v2 = vpop.eup %8679 }
0x10aa   : > { %v12914_v26 = vpop.eup %8681 }
0x10af   : > { %v8245_v10 = vpop.permute.xlu1 %8244  ;;  %5311 = vadd.xlane.f32.xlu1 %v12903_v16 }
0x10b0   : > { %v8246_v0 = vunpack.i.l.bf16 %v8245_v10  ;;  %v3972_v34 = vpop.xlane.xlu0 %3971  ;;  %v8247_v40 = vunpack.i.h.bf16 %v8245_v10 }
0x10b1   : > { %8683 = vrcp.f32 %v3972_v34  ;;  %4552 = vmatmul.f32.gmra.mxu2 %v4462_v53  ;;  %v12922_v31 = vpop.xlane.xlu2 %4431 }
0x10b2   : > { %4983 = vmatpush.msrb.mxu1 %v8246_v0  ;;  %8685 = vpow2.f32 %v4829_v41  ;;  %v12935_v0 = vadd.f32 %v12847_v56, %v14850_v21 }
0x10b3   : > { %4859 = vadd.xlane.f32.xlu0 %v12911_v2  ;;  %8687 = vpow2.f32 %v5281_v52 }
0x10b4   : > { %4984 = vmatpush.msrb.mxu1 %v8247_v40 }
0x10b7   : > { %v8684_v33 = vpop.eup %8683  ;;  %4863 = vadd.xlane.f32.xlu1 %v12914_v26 }
0x10b8   : > { %v4422_v15 = vpop.xlane.xlu0 %4421  ;;  %v4013_v50 = vmul.f32 %v8684_v33, %v12722_v20  ;;  %v12920_v4 = vpop.eup %8685  ;;  %v14872_v20 = vld [vmem:[#allocation97_spill] sm:$0xff]  ;;  %v14873_v33 = vld [vmem:[#allocation82_spill] sm:$0xff] }
0x10b9   : > { %8689 = vrcp.f32 %v4422_v15  ;;  %v12927_v10 = vpop.eup %8687  ;;  %v5264_v41 = vsub.f32 %v14872_v20, %v12826_v47  ;;  %v4818_v59 = vsub.f32 %v14873_v33, %v12858_v35  ;;  %v12941_v47 = vpop.xlane.xlu2 %3983  ;;  %v4816_v35 = vsub.f32 %v12692_v5, %v12870_v48 }
0x10ba   : > { %4105 = vmatmul.f32.gmra.mxu1 %v4013_v50  ;;  %8691 = vpow2.f32 %v4833_v45  ;;  %v4770_v15 = vpop.f32.mrf.mxu0  ;;  %v5268_v48 = vsub.f32 %v12687_v23, %v12878_v18 }
0x10bb   : > { %4861 = vadd.xlane.f32.xlu0 %v12920_v4  ;;  %8693 = vpow2.f32 %v5285_v44  ;;  %v5283_v52 = vmul.f32 1.442695, %v5264_v41  ;;  %v4837_v49 = vmul.f32 1.442695, %v4816_v35  ;;  %v14874_v41 = vld [vmem:[#allocation37_spill] sm:$0xff]  ;;  %v14877_v35 = vld [vmem:[#allocation63_spill] sm:$0xff] }
0x10bf   : > { %v8690_v53 = vpop.eup %8689  ;;  %5313 = vadd.xlane.f32.xlu1 %v12927_v10 }
0x10c0   : > { %v5242_v1 = vpop.xlane.xlu0 %5241  ;;  %v4463_v6 = vmul.f32 %v8690_v53, %v12730_v30  ;;  %v12943_v30 = vpop.eup %8691  ;;  %v5266_v53 = vsub.f32 %v12713_v19, %v12899_v24  ;;  %v12971_v19 = vadd.f32 %v12863_v57, %v14874_v41 }
0x10c1   : > { %v5267_v34 = vsub.f32 %v12742_v27, %v5242_v1  ;;  %v4841_v27 = vmul.f32 1.442695, %v4818_v59  ;;  %v12946_v56 = vpop.eup %8693  ;;  %v4796_v60 = vpop.xlane.xlu2 %4795  ;;  %v12961_v1 = vadd.f32 %v4767_v13, %v14874_v41  ;;  %v5291_v13 = vmul.f32 1.442695, %v5268_v48  ;;  %v14878_v48 = vld [vmem:[#allocation28_spill] sm:$0xff] }
0x10c2   : > { %4555 = vmatmul.f32.gmra.mxu2 %v4463_v6  ;;  %v5287_v6 = vmul.f32 1.442695, %v5266_v53  ;;  %v4773_v24 = vpop.f32.mrf.mxu0 }
0x10c3   : > { %v5289_v40 = vmul.f32 1.442695, %v5267_v34  ;;  %5251 = vmax.xlane.f32.xlu0 %v12935_v0 }
0x10c5   : > { %8695 = vpow2.f32 %v5289_v40  ;;  %v14875_v40 = vld [vmem:[#allocation45_spill] sm:$0xff] }
0x10c6   : > { %8697 = vpow2.f32 %v5283_v52  ;;  %v12981_v52 = vadd.f32 %v4773_v24, %v14875_v40  ;;  %v5223_v24 = vpop.f32.mrf.mxu3 }
0x10c7   : > { %4865 = vadd.xlane.f32.xlu1 %v12943_v30 }
0x10c8   : > { %v3974_v21 = vpop.xlane.xlu0 %3973 }
0x10c9   : > { %8699 = vrcp.f32 %v3974_v21 }
0x10ca   : > { %8701 = vpow2.f32 %v4841_v27 }
0x10cb   : > { %v12948_v9 = vpop.eup %8695  ;;  %5317 = vadd.xlane.f32.xlu0 %v12946_v56 }
0x10cc   : > { %5321 = vadd.xlane.f32.xlu2 %v12948_v9  ;;  %v12954_v50 = vpop.eup %8697 }
0x10cf   : > { %v8700_v45 = vpop.eup %8699  ;;  %5315 = vadd.xlane.f32.xlu1 %v12954_v50 }
0x10d0   : > { %v4424_v44 = vpop.xlane.xlu0 %4423  ;;  %v4014_v20 = vmul.f32 %v8700_v45, %v12752_v51  ;;  %v12963_v5 = vpop.eup %8701 }
0x10d1   : > { %8703 = vrcp.f32 %v4424_v44 }
0x10d2   : > { %4108 = vmatmul.f32.gmra.mxu1 %v4014_v20  ;;  %8705 = vpow2.f32 %v4837_v49 }
0x10d3   : > { %4803 = vmax.xlane.f32.xlu0 %v12961_v1  ;;  %8707 = vrcp.f32 %v12893_v7 }
0x10d4   : > { %4873 = vadd.xlane.f32.xlu2 %v12963_v5  ;;  %8709 = vpow2.f32 %v5287_v6  ;;  %v4819_v6 = vsub.f32 %v14878_v48, %v4796_v60 }
0x10d6   : > { %v12974_v34 = vpop.xlane.xlu2 %4437 }
0x10d7   : > { %v8704_v51 = vpop.eup %8703  ;;  %5253 = vmax.xlane.f32.xlu1 %v12971_v19 }
0x10d8   : > { %v4464_v23 = vmul.f32 %v8704_v51, %v12764_v36  ;;  %v12978_v18 = vpop.eup %8705  ;;  %v4428_v7 = vpop.xlane.xlu0 %4427  ;;  %v14876_v36 = vld [vmem:[#allocation70_spill] sm:$0xff] }
0x10d9   : > { %v8708_v33 = vpop.eup %8707  ;;  %v4817_v27 = vsub.f32 %v14876_v36, %v12840_v22  ;;  %v13000_v22 = vadd.f32 %v4770_v15, %v14852_v12  ;;  %v14879_v12 = vld [vmem:[#allocation77_spill] sm:$0xff] }
0x10da   : > { %4558 = vmatmul.f32.gmra.mxu2 %v4464_v23  ;;  %v3976_v57 = vpop.xlane.xlu1 %3975  ;;  %v12985_v59 = vpop.eup %8709  ;;  %v4465_v45 = vmul.f32 %v8708_v33, %v14877_v35 }
0x10db   : > { %8711 = vrcp.f32 %v3976_v57  ;;  %4869 = vadd.xlane.f32.xlu0 %v12978_v18  ;;  %v4839_v41 = vmul.f32 1.442695, %v4817_v27 }
0x10dc   : > { %8713 = vpow2.f32 %v5291_v13  ;;  %4807 = vmax.xlane.f32.xlu2 %v12981_v52 }
0x10dd   : > { %8715 = vrcp.f32 %v4428_v7  ;;  %v13007_v7 = vadd.f32 %v5223_v24, %v14875_v40  ;;  %v14880_v24 = vld [vmem:[#allocation99_spill] sm:$0xff] }
0x10de   : > { %v12987_v21 = vpop.xlane.xlu2 %3989  ;;  %8717 = vrcp.f32 %v12909_v17 }
0x10df   : > { %5319 = vadd.xlane.f32.xlu1 %v12985_v59 }
0x10e0   : > { %v3980_v13 = vpop.xlane.xlu0 %3979 }
0x10e1   : > { %v8712_v49 = vpop.eup %8711 }
0x10e2   : > { %v12994_v53 = vpop.eup %8713  ;;  %4561 = vmatmul.f32.gmra.mxu2 %v4465_v45  ;;  %v4430_v44 = vpop.xlane.xlu1 %4429  ;;  %v4015_v20 = vmul.f32 %v8712_v49, %v12780_v8  ;;  %v4843_v8 = vmul.f32 1.442695, %v4819_v6 }
0x10e3   : > { %5323 = vadd.xlane.f32.xlu0 %v12994_v53  ;;  %v8716_v51 = vpop.eup %8715  ;;  %8719 = vrcp.f32 %v4430_v44 }
0x10e4   : > { %4111 = vmatmul.f32.gmra.mxu1 %v4015_v20  ;;  %v8718_v23 = vpop.eup %8717  ;;  %8721 = vpow2.f32 %v4839_v41  ;;  %v4466_v57 = vmul.f32 %v8716_v51, %v12774_v46 }
0x10e5   : > { %8723 = vrcp.f32 %v3980_v13  ;;  %v4016_v15 = vmul.f32 %v8718_v23, %v14879_v12  ;;  %v14881_v23 = vld [vmem:[#allocation55_spill] sm:$0xff] }
0x10e6   : > { %v13002_v17 = vpop.xlane.xlu2 %4439  ;;  %8725 = vpow2.f32 %v4843_v8 }
0x10e7   : > { %4805 = vmax.xlane.f32.xlu1 %v13000_v22  ;;  %8727 = vrcp.f32 %v12922_v31 }
0x10e8   : > { %v4434_v41 = vpop.xlane.xlu0 %4433 }
0x10e9   : > { %v8720_v33 = vpop.eup %8719 }
0x10ea   : > { %4564 = vmatmul.f32.gmra.mxu2 %v4466_v57  ;;  %v3982_v60 = vpop.xlane.xlu1 %3981  ;;  %v13011_v36 = vpop.eup %8721  ;;  %v4467_v40 = vmul.f32 %v8720_v33, %v12791_v38 }
0x10eb   : > { %5257 = vmax.xlane.f32.xlu0 %v13007_v7  ;;  %v8724_v27 = vpop.eup %8723  ;;  %8729 = vrcp.f32 %v3982_v60 }
0x10ec   : > { %4114 = vmatmul.f32.gmra.mxu1 %v4016_v15  ;;  %v13017_v45 = vpop.eup %8725  ;;  %v4017_v20 = vmul.f32 %v8724_v27, %v12788_v42 }
0x10ed   : > { %v8728_v31 = vpop.eup %8727 }
0x10ee   : > { %v5248_v35 = vpop.xlane.xlu2 %5247  ;;  %v4468_v13 = vmul.f32 %v8728_v31, %v14880_v24 }
0x10ef   : > { %4871 = vadd.xlane.f32.xlu1 %v13011_v36  ;;  %v5270_v46 = vsub.f32 %v12814_v3, %v5248_v35  ;;  %v4776_v3 = vpop.f32.mrf.mxu0 }
0x10f0   : > { %v13024_v8 = vadd.f32 %v4776_v3, %v14881_v23 }
0x10f1   : > { %v5295_v49 = vmul.f32 1.442695, %v5270_v46  ;;  %v8730_v38 = vpop.eup %8729 }
0x10f2   : > { %4567 = vmatmul.f32.gmra.mxu2 %v4467_v40  ;;  %v5246_v44 = vpop.xlane.xlu1 %5245  ;;  %v4018_v57 = vmul.f32 %v8730_v38, %v12803_v28 }
0x10f3   : > { %v5269_v48 = vsub.f32 %v12818_v11, %v5246_v44  ;;  %4875 = vadd.xlane.f32.xlu0 %v13017_v45  ;;  %8731 = vpow2.f32 %v5295_v49  ;;  %v5226_v49 = vpop.f32.mrf.mxu3 }
0x10f4   : > { %4117 = vmatmul.f32.gmra.mxu1 %v4017_v20  ;;  %8733 = vrcp.f32 %v4434_v41  ;;  %v14882_v41 = vld [vmem:[#allocation60_spill] sm:$0xff] }
0x10f5   : > { %v5293_v6 = vmul.f32 1.442695, %v5269_v48 }
0x10f6   : > { %v4798_v51 = vpop.xlane.xlu2 %4797 }
0x10f7   : > { %8735 = vpow2.f32 %v5293_v6  ;;  %v4820_v35 = vsub.f32 %v12829_v29, %v4798_v51  ;;  %v13040_v6 = vadd.f32 %v5226_v49, %v14881_v23 }
0x10f8   : > { %8737 = vrcp.f32 %v12941_v47 }
0x10f9   : > { %v13027_v42 = vpop.eup %8731  ;;  %v4845_v31 = vmul.f32 1.442695, %v4820_v35 }
0x10fa   : > { %4570 = vmatmul.f32.gmra.mxu2 %v4468_v13  ;;  %v3986_v11 = vpop.xlane.xlu1 %3985  ;;  %5327 = vadd.xlane.f32.xlu2 %v13027_v42  ;;  %v8734_v12 = vpop.eup %8733 }
0x10fb   : > { %4809 = vmax.xlane.f32.xlu0 %v13024_v8  ;;  %v8250_v60 = vpop.permute.xlu0 %8249  ;;  %v4469_v40 = vmul.f32 %v8734_v12, %v12798_v39  ;;  %8739 = vrcp.f32 %v3986_v11 }
0x10fc   : > { %v8251_v15 = vunpack.i.l.bf16 %v8250_v60  ;;  %4120 = vmatmul.f32.gmra.mxu1 %v4018_v57  ;;  %v8252_v27 = vunpack.i.h.bf16 %v8250_v60 }
0x10fd   : > { %v13032_v33 = vpop.eup %8735 }
0x10fe   : > { %4985 = vmatpush.msrb.mxu1 %v8251_v15  ;;  %5325 = vadd.xlane.f32.xlu1 %v13032_v33  ;;  %v8738_v47 = vpop.eup %8737  ;;  %v5250_v46 = vpop.xlane.xlu2 %5249 }
0x10ff   : > { %v5271_v28 = vsub.f32 %v12845_v58, %v5250_v46  ;;  %v4019_v48 = vmul.f32 %v8738_v47, %v14882_v41  ;;  %v13064_v46 = vpop.f32.mrf.mxu1 }
0x1100   : > { %4986 = vmatpush.msrb.mxu1 %v8252_v27 }
0x1101   : > { %v5297_v44 = vmul.f32 1.442695, %v5271_v28  ;;  %v8740_v29 = vpop.eup %8739 }
0x1102   : > { %4573 = vmatmul.f32.gmra.mxu2 %v4469_v40  ;;  %v4436_v20 = vpop.xlane.xlu1 %4435  ;;  %v4020_v13 = vmul.f32 %v8740_v29, %v12832_v54 }
0x1103   : > { %8741 = vrcp.f32 %v4436_v20 }
0x1104   : > { %8743 = vpow2.f32 %v5297_v44  ;;  %4123 = vmatmul.f32.gmra.mxu1 %v4019_v48  ;;  %v13070_v44 = vpop.f32.mrf.mxu2 }
0x1105   : > { %8745 = vpow2.f32 %v4845_v31 }
0x1106   : > { %5259 = vmax.xlane.f32.xlu1 %v13040_v6  ;;  %v4802_v58 = vpop.xlane.xlu2 %4801  ;;  %8747 = vrcp.f32 %v12974_v34 }
0x1107   : > { %v4822_v39 = vsub.f32 %v12856_v63, %v4802_v58  ;;  %v13076_v31 = vpop.f32.mrf.mxu1 }
0x1109   : > { %v8742_v3 = vpop.eup %8741  ;;  %v4849_v51 = vmul.f32 1.442695, %v4822_v39 }
0x110a   : > { %v13045_v38 = vpop.eup %8743  ;;  %v3988_v24 = vpop.xlane.xlu1 %3987  ;;  %v4470_v23 = vmul.f32 %v8742_v3, %v12851_v55 }
0x110b   : > { %8749 = vrcp.f32 %v3988_v24  ;;  %5329 = vadd.xlane.f32.xlu2 %v13045_v38  ;;  %v13050_v11 = vpop.eup %8745 }
0x110c   : > { %8751 = vpow2.f32 %v4849_v51  ;;  %4126 = vmatmul.f32.gmra.mxu1 %v4020_v13  ;;  %4576 = vmatmul.f32.gmra.mxu2 %v4470_v23  ;;  %v8748_v63 = vpop.eup %8747  ;;  %v13079_v29 = vpop.f32.mrf.mxu2 }
0x110d   : > { %8753 = vrcp.f32 %v12987_v21  ;;  %v4471_v12 = vmul.f32 %v8748_v63, %v12772_v14  ;;  %v14883_v14 = vld [vmem:[#allocation102_spill] sm:$0xff] }
0x110e   : > { %4877 = vadd.xlane.f32.xlu1 %v13050_v11  ;;  %v13053_v34 = vpop.xlane.xlu2 %4867  ;;  %8755 = vrcp.f32 %v13002_v17 }
0x110f   : > { %v13082_v51 = vpop.f32.mrf.mxu1 }
0x1111   : > { %v8750_v57 = vpop.eup %8749 }
0x1112   : > { %v13057_v54 = vpop.eup %8751  ;;  %v4800_v55 = vpop.xlane.xlu1 %4799  ;;  %v4021_v60 = vmul.f32 %v8750_v57, %v12861_v62 }
0x1113   : > { %v4821_v15 = vsub.f32 %v12876_v37, %v4800_v55  ;;  %4881 = vadd.xlane.f32.xlu2 %v13057_v54  ;;  %v8754_v47 = vpop.eup %8753 }
0x1114   : > { %4129 = vmatmul.f32.gmra.mxu1 %v4021_v60  ;;  %4579 = vmatmul.f32.gmra.mxu2 %v4471_v12  ;;  %v8756_v35 = vpop.eup %8755  ;;  %v4022_v62 = vmul.f32 %v8754_v47, %v12786_v61 }
0x1115   : > { %v4847_v27 = vmul.f32 1.442695, %v4821_v15  ;;  %v4472_v49 = vmul.f32 %v8756_v35, %v14883_v14 }
0x1116   : > { %v5256_v21 = vpop.xlane.xlu2 %5255 }
0x1117   : > { %8757 = vpow2.f32 %v4847_v27  ;;  %v5274_v17 = vsub.f32 %v12886_v43, %v5256_v21  ;;  %v13087_v55 = vpop.f32.mrf.mxu1 }
0x1119   : > { %v5303_v28 = vmul.f32 1.442695, %v5274_v17 }
0x111a   : > { %v5310_v40 = vpop.xlane.xlu1 %5309 }
0x111b   : > { %8759 = vrcp.f32 %v5310_v40 }
0x111c   : > { %8761 = vpow2.f32 %v5303_v28  ;;  %4132 = vmatmul.f32.gmra.mxu1 %v4022_v62  ;;  %4582 = vmatmul.f32.gmra.mxu2 %v4472_v49  ;;  %v13085_v23 = vpop.f32.mrf.mxu2 }
0x111d   : > { %v13068_v37 = vpop.eup %8757 }
0x111e   : > { %4879 = vadd.xlane.f32.xlu0 %v13068_v37 }
0x111f   : > { %v13095_v40 = vpop.f32.mrf.mxu1 }
0x1121   : > { %v8760_v20 = vpop.eup %8759 }
0x1122   : > { %v13073_v43 = vpop.eup %8761  ;;  %v5357_v41 = vmul.f32 %v8760_v20, %v12891_v32  ;;  %v5312_v48 = vpop.xlane.xlu1 %5311 }
0x1123   : > { %8763 = vrcp.f32 %v5312_v48  ;;  %5335 = vadd.xlane.f32.xlu2 %v13073_v43 }
0x1124   : > { %5437 = vmatmul.f32.vlgmr.msra.gmra.mxu2 %v5357_v41  ;;  %v13091_v27 = vpop.f32.mrf.mxu2 }
0x1126   : > { %v4860_v61 = vpop.xlane.xlu0 %4859 }
0x1127   : > { %8765 = vrcp.f32 %v4860_v61  ;;  %v13107_v61 = vpop.f32.mrf.mxu1 }
0x1129   : > { %v8764_v58 = vpop.eup %8763 }
0x112a   : > { %v4864_v39 = vpop.xlane.xlu1 %4863  ;;  %v5358_v3 = vmul.f32 %v8764_v58, %v12903_v16 }
0x112c   : > { %5440 = vmatmul.f32.gmra.mxu2 %v5358_v3  ;;  %v13100_v49 = vpop.f32.mrf.mxu2 }
0x112d   : > { %v8766_v24 = vpop.eup %8765 }
0x112e   : > { %v4907_v32 = vmul.f32 %v8766_v24, %v12911_v2  ;;  %v4862_v13 = vpop.xlane.xlu0 %4861 }
0x112f   : > { %8767 = vrcp.f32 %v4862_v13 }
0x1130   : > { %4987 = vmatmul.f32.vlgmr.msrb.gmra.mxu1 %v4907_v32 }
0x1132   : > { %v5314_v63 = vpop.xlane.xlu1 %5313 }
0x1133   : > { %8769 = vrcp.f32 %v5314_v63 }
0x1134   : > { %8771 = vrcp.f32 %v4864_v39  ;;  %v13111_v32 = vpop.f32.mrf.mxu2 }
0x1135   : > { %v8768_v57 = vpop.eup %8767 }
0x1136   : > { %v5252_v60 = vpop.xlane.xlu0 %5251  ;;  %v4908_v16 = vmul.f32 %v8768_v57, %v12920_v4 }
0x1137   : > { %v5272_v12 = vsub.f32 %v12935_v0, %v5252_v60 }
0x1138   : > { %4990 = vmatmul.f32.gmra.mxu1 %v4908_v16 }
0x1139   : > { %v8770_v15 = vpop.eup %8769  ;;  %v5299_v2 = vmul.f32 1.442695, %v5272_v12 }
0x113a   : > { %v4866_v47 = vpop.xlane.xlu1 %4865  ;;  %v5359_v35 = vmul.f32 %v8770_v15, %v12927_v10  ;;  %v8772_v21 = vpop.eup %8771 }
0x113b   : > { %8773 = vpow2.f32 %v5299_v2  ;;  %v4909_v28 = vmul.f32 %v8772_v21, %v12914_v26 }
0x113c   : > { %5443 = vmatmul.f32.gmra.mxu2 %v5359_v35  ;;  %8775 = vrcp.f32 %v4866_v47 }
0x113e   : > { %v5318_v17 = vpop.xlane.xlu0 %5317 }
0x113f   : > { %v5322_v4 = vpop.xlane.xlu2 %5321 }
0x1140   : > { %4993 = vmatmul.f32.gmra.mxu1 %v4909_v28 }
0x1141   : > { %v13097_v0 = vpop.eup %8773 }
0x1142   : > { %5331 = vadd.xlane.f32.xlu1 %v13097_v0  ;;  %v5316_v62 = vpop.xlane.xlu1 %5315  ;;  %v8776_v14 = vpop.eup %8775 }
0x1143   : > { %8777 = vrcp.f32 %v5316_v62  ;;  %v4910_v20 = vmul.f32 %v8776_v14, %v12943_v30 }
0x1144   : > { %8779 = vrcp.f32 %v13053_v34 }
0x1145   : > { %8781 = vrcp.f32 %v5318_v17  ;;  %v13123_v2 = vpop.f32.mrf.mxu2 }
0x1146   : > { %v4804_v10 = vpop.xlane.xlu0 %4803 }
0x1147   : > { %v4823_v26 = vsub.f32 %v12961_v1, %v4804_v10  ;;  %v13105_v41 = vpop.xlane.xlu2 %4873 }
0x1148   : > { %4996 = vmatmul.f32.gmra.mxu1 %v4910_v20 }
0x1149   : > { %v8778_v48 = vpop.eup %8777  ;;  %v4851_v58 = vmul.f32 1.442695, %v4823_v26 }
0x114a   : > { %v5254_v39 = vpop.xlane.xlu1 %5253  ;;  %v5360_v3 = vmul.f32 %v8778_v48, %v12954_v50  ;;  %v8780_v24 = vpop.eup %8779 }
0x114b   : > { %8783 = vpow2.f32 %v4851_v58  ;;  %v5273_v34 = vsub.f32 %v12971_v19, %v5254_v39  ;;  %v4911_v13 = vmul.f32 %v8780_v24, %v12872_v25  ;;  %v8782_v63 = vpop.eup %8781  ;;  %v13117_v50 = vpop.f32.mrf.mxu1 }
0x114c   : > { %5446 = vmatmul.f32.gmra.mxu2 %v5360_v3  ;;  %v5361_v15 = vmul.f32 %v8782_v63, %v12946_v56 }
0x114d   : > { %v5301_v30 = vmul.f32 1.442695, %v5273_v34 }
0x114e   : > { %v4870_v1 = vpop.xlane.xlu0 %4869 }
0x114f   : > { %8785 = vpow2.f32 %v5301_v30  ;;  %v4808_v57 = vpop.xlane.xlu2 %4807 }
0x1150   : > { %8787 = vrcp.f32 %v4870_v1  ;;  %v4825_v60 = vsub.f32 %v12981_v52, %v4808_v57  ;;  %4999 = vmatmul.f32.gmra.mxu1 %v4911_v13 }
0x1151   : > { %v13115_v16 = vpop.eup %8783 }
0x1152   : > { %v4855_v12 = vmul.f32 1.442695, %v4825_v60  ;;  %4883 = vadd.xlane.f32.xlu1 %v13115_v16  ;;  %v5320_v19 = vpop.xlane.xlu1 %5319 }
0x1153   : > { %8789 = vrcp.f32 %v5320_v19  ;;  %v13127_v17 = vpop.f32.mrf.mxu1 }
0x1154   : > { %8791 = vpow2.f32 %v4855_v12  ;;  %5449 = vmatmul.f32.gmra.mxu2 %v5361_v15 }
0x1155   : > { %v13121_v25 = vpop.eup %8785  ;;  %8793 = vrcp.f32 %v5322_v4 }
0x1156   : > { %v8788_v47 = vpop.eup %8787  ;;  %v5324_v52 = vpop.xlane.xlu0 %5323  ;;  %5333 = vadd.xlane.f32.xlu0 %v13121_v25 }
0x1157   : > { %v4912_v35 = vmul.f32 %v8788_v47, %v12978_v18 }
0x1159   : > { %v8790_v21 = vpop.eup %8789  ;;  %5002 = vmatmul.f32.gmra.mxu1 %v4912_v35 }
0x115a   : > { %v13129_v28 = vpop.eup %8791  ;;  %v4806_v56 = vpop.xlane.xlu1 %4805  ;;  %v5362_v62 = vmul.f32 %v8790_v21, %v12985_v59 }
0x115b   : > { %v4824_v14 = vsub.f32 %v13000_v22, %v4806_v56  ;;  %4887 = vadd.xlane.f32.xlu2 %v13129_v28  ;;  %v8794_v18 = vpop.eup %8793 }
0x115c   : > { %5452 = vmatmul.f32.gmra.mxu2 %v5362_v62  ;;  %v5363_v59 = vmul.f32 %v8794_v18, %v12948_v9 }
0x115d   : > { %v4853_v10 = vmul.f32 1.442695, %v4824_v14  ;;  %v13134_v20 = vpop.f32.mrf.mxu2 }
0x115e   : > { %v5258_v26 = vpop.xlane.xlu0 %5257 }
0x115f   : > { %8795 = vpow2.f32 %v4853_v10  ;;  %v5275_v4 = vsub.f32 %v13007_v7, %v5258_v26 }
0x1160   : > { %8797 = vrcp.f32 %v5324_v52 }
0x1161   : > { %v5305_v48 = vmul.f32 1.442695, %v5275_v4  ;;  %v13137_v58 = vpop.f32.mrf.mxu1 }
0x1162   : > { %v4872_v39 = vpop.xlane.xlu1 %4871 }
0x1163   : > { %8799 = vpow2.f32 %v5305_v48 }
0x1164   : > { %8801 = vrcp.f32 %v4872_v39  ;;  %5455 = vmatmul.f32.gmra.mxu2 %v5363_v59 }
0x1165   : > { %v13140_v22 = vpop.eup %8795  ;;  %v13142_v3 = vpop.f32.mrf.mxu2  ;;  %8803 = vrcp.f32 %v13105_v41 }
0x1166   : > { %v4876_v24 = vpop.xlane.xlu0 %4875  ;;  %4885 = vadd.xlane.f32.xlu0 %v13140_v22  ;;  %v8798_v34 = vpop.eup %8797 }
0x1167   : > { %v5364_v9 = vmul.f32 %v8798_v34, %v12994_v53  ;;  %8805 = vrcp.f32 %v4876_v24 }
0x1169   : > { %v13145_v30 = vpop.eup %8799  ;;  %v13147_v7 = vpop.f32.mrf.mxu1 }
0x116a   : > { %v8802_v1 = vpop.eup %8801  ;;  %5337 = vadd.xlane.f32.xlu1 %v13145_v30 }
0x116b   : > { %v4913_v13 = vmul.f32 %v8802_v1, %v13011_v36  ;;  %v8804_v12 = vpop.eup %8803 }
0x116c   : > { %5458 = vmatmul.f32.gmra.mxu2 %v5364_v9  ;;  %v4914_v53 = vmul.f32 %v8804_v12, %v12963_v5 }
0x116d   : > { %v13153_v63 = vpop.f32.mrf.mxu2  ;;  %5005 = vmatmul.f32.gmra.mxu1 %v4913_v13  ;;  %v5328_v36 = vpop.xlane.xlu2 %5327 }
0x116e   : > { %v4810_v57 = vpop.xlane.xlu0 %4809  ;;  %v8806_v52 = vpop.eup %8805 }
0x116f   : > { %v4826_v60 = vsub.f32 %v13024_v8, %v4810_v57 }
0x1171   : > { %v4857_v19 = vmul.f32 1.442695, %v4826_v60  ;;  %v5326_v15 = vpop.xlane.xlu1 %5325  ;;  %v13156_v41 = vpop.f32.mrf.mxu1 }
0x1172   : > { %8807 = vrcp.f32 %v5326_v15 }
0x1173   : > { %8809 = vpow2.f32 %v4857_v19  ;;  %5502 = vrot.lane.b32.xlu2 %v13070_v44, %s9059_s20  ;;  %v4915_v44 = vmul.f32 %v8806_v52, %v13017_v45 }
0x1174   : > { %8811 = vrcp.f32 %v5328_v36 }
0x1175   : > { %v13161_v47 = vpop.f32.mrf.mxu2  ;;  %5008 = vmatmul.f32.gmra.mxu1 %v4914_v53 }
0x1178   : > { %v8808_v35 = vpop.eup %8807 }
0x1179   : > { %v13163_v8 = vpop.eup %8809  ;;  %v5260_v21 = vpop.xlane.xlu1 %5259  ;;  %v5365_v56 = vmul.f32 %v8808_v35, %v13032_v33 }
0x117a   : > { %v5276_v62 = vsub.f32 %v13040_v6, %v5260_v21  ;;  %4889 = vadd.xlane.f32.xlu1 %v13163_v8  ;;  %v13169_v14 = vpop.f32.mrf.mxu1  ;;  %v8812_v26 = vpop.eup %8811 }
0x117b   : > { %5461 = vmatmul.f32.gmra.mxu2 %v5365_v56  ;;  %v5366_v33 = vmul.f32 %v8812_v26, %v13027_v42 }
0x117c   : > { %v5307_v5 = vmul.f32 1.442695, %v5276_v62 }
0x117d   : > { %v13171_v10 = vpop.f32.mrf.mxu2  ;;  %5011 = vmatmul.f32.gmra.mxu1 %v4915_v44 }
0x117e   : > { %8813 = vpow2.f32 %v5307_v5  ;;  %v5330_v18 = vpop.xlane.xlu2 %5329 }
0x117f   : > { %8815 = vrcp.f32 %v5330_v18 }
0x1181   : > { %v4878_v4 = vpop.xlane.xlu1 %4877 }
0x1182   : > { %8817 = vrcp.f32 %v4878_v4  ;;  %v13177_v48 = vpop.f32.mrf.mxu1 }
0x1183   : > { %5464 = vmatmul.f32.gmra.mxu2 %v5366_v33 }
0x1184   : > { %v13174_v6 = vpop.eup %8813 }
0x1185   : > { %5339 = vadd.xlane.f32.xlu0 %v13174_v6  ;;  %v8816_v45 = vpop.eup %8815  ;;  %v13179_v39 = vpop.f32.mrf.mxu2 }
0x1186   : > { %v5367_v34 = vmul.f32 %v8816_v45, %v13045_v38  ;;  %v4882_v13 = vpop.xlane.xlu2 %4881 }
0x1188   : > { %v8818_v59 = vpop.eup %8817 }
0x1189   : > { %v4916_v24 = vmul.f32 %v8818_v59, %v13050_v11 }
0x118a   : > { %v13185_v42 = vpop.f32.mrf.mxu1 }
0x118b   : > { %5014 = vmatmul.f32.gmra.mxu1 %v4916_v24  ;;  %5467 = vmatmul.f32.gmra.mxu2 %v5367_v34 }
0x118f   : > { %v13183_v1 = vpop.f32.mrf.mxu2 }
0x1191   : > { %v4880_v9 = vpop.xlane.xlu0 %4879 }
0x1192   : > { %8819 = vrcp.f32 %v4880_v9  ;;  %v13190_v19 = vpop.f32.mrf.mxu1 }
0x1193   : > { %8821 = vrcp.f32 %v4882_v13 }
0x1196   : > { %v5336_v18 = vpop.xlane.xlu2 %5335 }
0x1197   : > { %v13187_v57 = vpop.f32.mrf.mxu2 }
0x1198   : > { %v8820_v60 = vpop.eup %8819 }
0x1199   : > { %v4917_v12 = vmul.f32 %v8820_v60, %v13068_v37  ;;  %v8822_v11 = vpop.eup %8821 }
0x119a   : > { %v4918_v15 = vmul.f32 %v8822_v11, %v13057_v54  ;;  %v13195_v53 = vpop.f32.mrf.mxu1 }
0x119b   : > { %5017 = vmatmul.f32.gmra.mxu1 %v4917_v12 }
0x119f   : > { %v13192_v38 = vpop.f32.mrf.mxu2 }
0x11a3   : > { %5020 = vmatmul.f32.gmra.mxu1 %v4918_v15 }
0x11a7   : > { %v5438_v36 = vpop.f32.mrf.mxu2 }
0x11a8   : > { %5630 = vrot.lane.b32.xlu1 %v5438_v36, %s14884_s28 }
0x11ad   : > { %v4988_v52 = vpop.f32.mrf.mxu1 }
0x11ae   : > { %5566 = vrot.lane.b32.xlu0 %v4988_v52, %s14885_s29 }
0x11af   : > { %v5441_v35 = vpop.f32.mrf.mxu2 }
0x11b0   : > { %5632 = vrot.lane.b32.xlu1 %v5441_v35, %s14884_s28 }
0x11b5   : > { %v5332_v37 = vpop.xlane.xlu1 %5331  ;;  %v4991_v21 = vpop.f32.mrf.mxu1 }
0x11b6   : > { %8823 = vrcp.f32 %v5332_v37  ;;  %5568 = vrot.lane.b32.xlu2 %v4991_v21, %s14885_s29  ;;  %5504 = vrot.lane.b32.xlu0 %v13079_v29, %s9059_s20  ;;  %v3587_v21 = vld [vmem:[#allocation2 + $0xe0] sm:$0xff] }
0x11b7   : > { %5786 = vmatpush.msrb.mxu0 %v3587_v21 }
0x11bc   : > { %v8824_v54 = vpop.eup %8823 }
0x11bd   : > { %v4994_v56 = vpop.f32.mrf.mxu1  ;;  %v5368_v62 = vmul.f32 %v8824_v54, %v13097_v0  ;;  %v3586_v54 = vld [vmem:[#allocation2 + $0xa0] sm:$0xff] }
0x11be   : > { %5570 = vrot.lane.b32.xlu2 %v4994_v56, %s14885_s29  ;;  %5506 = vrot.lane.b32.xlu0 %v13085_v23, %s9059_s20  ;;  %v3585_v56 = vld [vmem:[#allocation2 + $0x60] sm:$0xff] }
0x11bf   : > { %5470 = vmatmul.f32.gmra.mxu2 %v5368_v62  ;;  %v5444_v44 = vpop.f32.mrf.mxu2  ;;  %5787 = vmatpush.msrb.mxu0 %v3586_v54 }
0x11c0   : > { %5634 = vrot.lane.b32.xlu1 %v5444_v44, %s14884_s28 }
0x11c1   : > { %5788 = vmatpush.msrb.mxu0 %v3585_v56 }
0x11c5   : > { %v4884_v5 = vpop.xlane.xlu1 %4883  ;;  %v4997_v26 = vpop.f32.mrf.mxu1 }
0x11c6   : > { %8825 = vrcp.f32 %v4884_v5  ;;  %5572 = vrot.lane.b32.xlu2 %v4997_v26, %s14885_s29  ;;  %5508 = vrot.lane.b32.xlu0 %v13091_v27, %s9059_s20 }
0x11c9   : > { %v5334_v29 = vpop.xlane.xlu0 %5333 }
0x11ca   : > { %8827 = vrcp.f32 %v5334_v29 }
0x11cb   : > { %8829 = vrcp.f32 %v5336_v18 }
0x11cc   : > { %v8826_v0 = vpop.eup %8825 }
0x11cd   : > { %v5000_v4 = vpop.f32.mrf.mxu1  ;;  %v4919_v33 = vmul.f32 %v8826_v0, %v13115_v16 }
0x11ce   : > { %5574 = vrot.lane.b32.xlu2 %v5000_v4, %s14885_s29  ;;  %5510 = vrot.lane.b32.xlu0 %v13100_v49, %s9059_s20  ;;  %v4888_v9 = vpop.xlane.xlu2 %4887 }
0x11cf   : > { %5023 = vmatmul.f32.gmra.mxu1 %v4919_v33  ;;  %v5447_v23 = vpop.f32.mrf.mxu2 }
0x11d0   : > { %v8828_v45 = vpop.eup %8827  ;;  %5636 = vrot.lane.b32.xlu1 %v5447_v23, %s14884_s28 }
0x11d1   : > { %v5369_v27 = vmul.f32 %v8828_v45, %v13121_v25  ;;  %v8830_v59 = vpop.eup %8829 }
0x11d2   : > { %v5370_v34 = vmul.f32 %v8830_v59, %v13073_v43 }
0x11d3   : > { %5473 = vmatmul.f32.gmra.mxu2 %v5369_v27 }
0x11d6   : > { %v5003_v24 = vpop.f32.mrf.mxu1  ;;  %5512 = vrot.lane.b32.xlu0 %v13111_v32, %s9059_s20  ;;  %v5503_v26 = vpop.permute.xlu2 %5502 }
0x11d7   : > { %5576 = vrot.lane.b32.xlu2 %v5003_v24, %s14885_s29  ;;  %v5450_v16 = vpop.f32.mrf.mxu2 }
0x11d8   : > { %5638 = vrot.lane.b32.xlu1 %v5450_v16, %s14884_s28 }
0x11d9   : > { %v4886_v49 = vpop.xlane.xlu0 %4885 }
0x11da   : > { %8831 = vrcp.f32 %v4886_v49 }
0x11db   : > { %5476 = vmatmul.f32.gmra.mxu2 %v5370_v34 }
0x11dd   : > { %v5338_v13 = vpop.xlane.xlu1 %5337 }
0x11de   : > { %8833 = vrcp.f32 %v5338_v13  ;;  %5514 = vrot.lane.b32.xlu0 %v13123_v2, %s9059_s20 }
0x11df   : > { %v5453_v25 = vpop.f32.mrf.mxu2  ;;  %8835 = vrcp.f32 %v4888_v9 }
0x11e0   : > { %v8832_v60 = vpop.eup %8831  ;;  %5640 = vrot.lane.b32.xlu1 %v5453_v25, %s14884_s28 }
0x11e1   : > { %v4920_v32 = vmul.f32 %v8832_v60, %v13140_v22 }
0x11e3   : > { %5026 = vmatmul.f32.gmra.mxu1 %v4920_v32 }
0x11e4   : > { %v8834_v12 = vpop.eup %8833 }
0x11e5   : > { %v5371_v11 = vmul.f32 %v8834_v12, %v13145_v30  ;;  %v8836_v43 = vpop.eup %8835 }
0x11e6   : > { %5516 = vrot.lane.b32.xlu0 %v13134_v20, %s9059_s20  ;;  %v4921_v2 = vmul.f32 %v8836_v43, %v13129_v28 }
0x11e7   : > { %5479 = vmatmul.f32.gmra.mxu2 %v5371_v11  ;;  %v5456_v15 = vpop.f32.mrf.mxu2 }
0x11e8   : > { %5642 = vrot.lane.b32.xlu1 %v5456_v15, %s14884_s28 }
0x11ea   : > { %v5006_v36 = vpop.f32.mrf.mxu1 }
0x11eb   : > { %5578 = vrot.lane.b32.xlu2 %v5006_v36, %s14885_s29  ;;  %5029 = vmatmul.f32.gmra.mxu1 %v4921_v2 }
0x11ed   : > { %v4890_v52 = vpop.xlane.xlu1 %4889 }
0x11ee   : > { %8837 = vrcp.f32 %v4890_v52  ;;  %5518 = vrot.lane.b32.xlu0 %v13142_v3, %s9059_s20 }
0x11ef   : > { %v5459_v22 = vpop.f32.mrf.mxu2 }
0x11f0   : > { %5644 = vrot.lane.b32.xlu1 %v5459_v22, %s14884_s28 }
0x11f2   : > { %v5009_v30 = vpop.f32.mrf.mxu1 }
0x11f3   : > { %5580 = vrot.lane.b32.xlu2 %v5009_v30, %s14885_s29 }
0x11f4   : > { %v8838_v20 = vpop.eup %8837 }
0x11f5   : > { %v4922_v35 = vmul.f32 %v8838_v20, %v13163_v8  ;;  %v3584_v8 = vld [vmem:[#allocation2 + $0x20] sm:$0xff] }
0x11f6   : > { %5520 = vrot.lane.b32.xlu0 %v13153_v63, %s9059_s20  ;;  %5789 = vmatpush.msrb.mxu0 %v3584_v8 }
0x11f7   : > { %5032 = vmatmul.f32.gmra.mxu1 %v4922_v35 }
0x11f8   : > { %v5340_v28 = vpop.xlane.xlu0 %5339 }
0x11f9   : > { %8839 = vrcp.f32 %v5340_v28 }
0x11fa   : > { %v5012_v37 = vpop.f32.mrf.mxu1 }
0x11fb   : > { %5582 = vrot.lane.b32.xlu2 %v5012_v37, %s14885_s29 }
0x11fe   : > { %5522 = vrot.lane.b32.xlu0 %v13161_v47, %s9059_s20  ;;  %v5462_v3 = vpop.f32.mrf.mxu2 }
0x11ff   : > { %v8840_v62 = vpop.eup %8839  ;;  %5646 = vrot.lane.b32.xlu1 %v5462_v3, %s14884_s28 }
0x1200   : > { %v5372_v63 = vmul.f32 %v8840_v62, %v13174_v6 }
0x1202   : > { %5482 = vmatmul.f32.gmra.mxu2 %v5372_v63 }
0x1206   : > { %5524 = vrot.lane.b32.xlu0 %v13171_v10, %s9059_s20  ;;  %v5465_v44 = vpop.f32.mrf.mxu2  ;;  %v5678_v10 = vsel %vm1086_vm2, %v13064_v46, %v5503_v26 }
0x1207   : > { %5648 = vrot.lane.b32.xlu1 %v5465_v44, %s14884_s28 }
0x1208   : > { %v5015_v5 = vpop.f32.mrf.mxu1 }
0x1209   : > { %5584 = vrot.lane.b32.xlu2 %v5015_v5, %s14885_s29 }
0x120e   : > { %5526 = vrot.lane.b32.xlu0 %v13179_v39, %s9059_s20  ;;  %v5468_v47 = vpop.f32.mrf.mxu2 }
0x120f   : > { %5650 = vrot.lane.b32.xlu1 %v5468_v47, %s14884_s28 }
0x1216   : > { %5528 = vrot.lane.b32.xlu0 %v13183_v1, %s9059_s20  ;;  %v5569_v1 = vpop.permute.xlu2 %5568 }
0x1218   : > { %v5018_v6 = vpop.f32.mrf.mxu1 }
0x1219   : > { %5586 = vrot.lane.b32.xlu2 %v5018_v6, %s14885_s29 }
0x121a   : > { %v5631_v29 = vpop.permute.xlu1 %5630 }
0x121e   : > { %5530 = vrot.lane.b32.xlu0 %v13187_v57, %s9059_s20  ;;  %v5571_v59 = vpop.permute.xlu2 %5570 }
0x1220   : > { %v5567_v0 = vpop.permute.xlu0 %5566  ;;  %v5021_v18 = vpop.f32.mrf.mxu1 }
0x1221   : > { %v5694_v39 = vsel %vm3031_vm5, %v5678_v10, %v5567_v0  ;;  %5588 = vrot.lane.b32.xlu2 %v5021_v18, %s14885_s29 }
0x1222   : > { %v5710_v4 = vsel %vm3048_vm6, %v5694_v39, %v5631_v29  ;;  %v5633_v46 = vpop.permute.xlu1 %5632 }
0x1223   : > { %7765 = vmatmul.msk.f32.vlgmr.msrb.gmra.mxu0 %vm409_vm13, %v5710_v4 }
0x1226   : > { %5532 = vrot.lane.b32.xlu0 %v13192_v38, %s9059_s20  ;;  %v5573_v34 = vpop.permute.xlu2 %5572 }
0x1228   : > { %v5505_v33 = vpop.permute.xlu0 %5504 }
0x1229   : > { %v5679_v57 = vsel %vm1086_vm2, %v13076_v31, %v5505_v33 }
0x122a   : > { %v5695_v23 = vsel %vm3031_vm5, %v5679_v57, %v5569_v1 }
0x122b   : > { %v5711_v45 = vsel %vm3048_vm6, %v5695_v23, %v5633_v46 }
0x122c   : > { %7766 = vmatmul.msk.f32.gmra.mxu0 %vm409_vm13, %v5711_v45 }
0x1230   : > { %v5507_v27 = vpop.permute.xlu0 %5506 }
0x1231   : > { %v5680_v24 = vsel %vm1086_vm2, %v13082_v51, %v5507_v27  ;;  %v5575_v51 = vpop.permute.xlu2 %5574 }
0x1232   : > { %v5696_v16 = vsel %vm3031_vm5, %v5680_v24, %v5571_v59  ;;  %v5635_v38 = vpop.permute.xlu1 %5634 }
0x1233   : > { %v5712_v49 = vsel %vm3048_vm6, %v5696_v16, %v5635_v38 }
0x1234   : > { %7767 = vmatmul.msk.f32.gmra.mxu0 %vm409_vm13, %v5712_v49  ;;  %v13326_v49 = vld [vmem:[%s14349_s3 + $0x6] ss:$0 sm:$0xff] }
0x1238   : > { %v5509_v31 = vpop.permute.xlu0 %5508 }
0x1239   : > { %v5681_v9 = vsel %vm1086_vm2, %v13087_v55, %v5509_v31  ;;  %v5577_v52 = vpop.permute.xlu2 %5576 }
0x123a   : > { %v5697_v60 = vsel %vm3031_vm5, %v5681_v9, %v5573_v34  ;;  %v14886_v9 = vld [vmem:[#allocation51_spill] sm:$0xff] }
0x1240   : > { %v5511_v13 = vpop.permute.xlu0 %5510 }
0x1241   : > { %v5682_v11 = vsel %vm1086_vm2, %v13095_v40, %v5511_v13 }
0x1242   : > { %v5471_v25 = vpop.f32.mrf.mxu2  ;;  %v5637_v32 = vpop.permute.xlu1 %5636  ;;  %v5698_v15 = vsel %vm3031_vm5, %v5682_v11, %v5575_v51 }
0x1243   : > { %v5713_v12 = vsel %vm3048_vm6, %v5697_v60, %v5637_v32  ;;  %5652 = vrot.lane.b32.xlu1 %v5471_v25, %s14884_s28  ;;  %v14887_v32 = vld [vmem:[#allocation46_spill] sm:$0xff] }
0x1244   : > { %7768 = vmatmul.msk.f32.gmra.mxu0 %vm409_vm13, %v5713_v12 }
0x1245   : > { %v5579_v37 = vpop.permute.xlu2 %5578 }
0x1248   : > { %v5513_v43 = vpop.permute.xlu0 %5512 }
0x1249   : > { %v5683_v22 = vsel %vm1086_vm2, %v13107_v61, %v5513_v43 }
0x124a   : > { %v5639_v2 = vpop.permute.xlu1 %5638  ;;  %v5699_v20 = vsel %vm3031_vm5, %v5683_v22, %v5577_v52 }
0x124b   : > { %v5714_v55 = vsel %vm3048_vm6, %v5698_v15, %v5639_v2 }
0x124c   : > { %v5024_v36 = vpop.f32.mrf.mxu1  ;;  %7769 = vmatmul.msk.f32.gmra.mxu0 %vm409_vm13, %v5714_v55 }
0x124d   : > { %5590 = vrot.lane.b32.xlu2 %v5024_v36, %s14885_s29  ;;  %v5581_v44 = vpop.permute.xlu2 %5580 }
0x1250   : > { %v5515_v30 = vpop.permute.xlu0 %5514 }
0x1251   : > { %v5684_v21 = vsel %vm1086_vm2, %v13117_v50, %v5515_v30 }
0x1252   : > { %v5641_v35 = vpop.permute.xlu1 %5640  ;;  %v5700_v54 = vsel %vm3031_vm5, %v5684_v21, %v5579_v37 }
0x1253   : > { %v5715_v40 = vsel %vm3048_vm6, %v5699_v20, %v5641_v35  ;;  %v14888_v35 = vld [vmem:[#allocation62_spill] sm:$0xff] }
0x1254   : > { %7770 = vmatmul.msk.f32.gmra.mxu0 %vm409_vm13, %v5715_v40 }
0x1256   : > { %v5474_v28 = vpop.f32.mrf.mxu2 }
0x1257   : > { %5654 = vrot.lane.b32.xlu1 %v5474_v28, %s14884_s28 }
0x1258   : > { %v5517_v56 = vpop.permute.xlu0 %5516 }
0x1259   : > { %v5685_v63 = vsel %vm1086_vm2, %v13127_v17, %v5517_v56  ;;  %v5583_v17 = vpop.permute.xlu2 %5582 }
0x125a   : > { %v5643_v3 = vpop.permute.xlu1 %5642  ;;  %v5701_v50 = vsel %vm3031_vm5, %v5685_v63, %v5581_v44 }
0x125b   : > { %v5716_v61 = vsel %vm3048_vm6, %v5700_v54, %v5643_v3 }
0x125c   : > { %7771 = vmatmul.msk.f32.gmra.mxu0 %vm409_vm13, %v5716_v61 }
0x125e   : > { %v5477_v62 = vpop.f32.mrf.mxu2 }
0x125f   : > { %5656 = vrot.lane.b32.xlu1 %v5477_v62, %s14884_s28  ;;  %v14889_v62 = vld [vmem:[#allocation54_spill] sm:$0xff] }
0x1260   : > { %v5027_v8 = vpop.f32.mrf.mxu1  ;;  %v5519_v26 = vpop.permute.xlu0 %5518 }
0x1261   : > { %5592 = vrot.lane.b32.xlu2 %v5027_v8, %s14885_s29  ;;  %v5686_v29 = vsel %vm1086_vm2, %v13137_v58, %v5519_v26 }
0x1262   : > { %v5645_v5 = vpop.permute.xlu1 %5644  ;;  %v5702_v0 = vsel %vm3031_vm5, %v5686_v29, %v5583_v17  ;;  %v14890_v17 = vld [vmem:[#allocation48_spill] sm:$0xff] }
0x1263   : > { %v5717_v47 = vsel %vm3048_vm6, %v5701_v50, %v5645_v5  ;;  %v5585_v33 = vpop.permute.xlu2 %5584 }
0x1264   : > { %7772 = vmatmul.msk.f32.gmra.mxu0 %vm409_vm13, %v5717_v47 }
0x1268   : > { %v5030_v6 = vpop.f32.mrf.mxu1  ;;  %v5521_v4 = vpop.permute.xlu0 %5520 }
0x1269   : > { %5594 = vrot.lane.b32.xlu2 %v5030_v6, %s14885_s29  ;;  %v5687_v57 = vsel %vm1086_vm2, %v13147_v7, %v5521_v4 }
0x126a   : > { %v5480_v10 = vpop.f32.mrf.mxu2  ;;  %v5703_v46 = vsel %vm3031_vm5, %v5687_v57, %v5585_v33 }
0x126b   : > { %5658 = vrot.lane.b32.xlu1 %v5480_v10, %s14884_s28 }
0x1270   : > { %v5523_v45 = vpop.permute.xlu0 %5522 }
0x1271   : > { %v5647_v39 = vpop.permute.xlu1 %5646  ;;  %v5688_v59 = vsel %vm1086_vm2, %v13156_v41, %v5523_v45 }
0x1272   : > { %v5718_v18 = vsel %vm3048_vm6, %v5702_v0, %v5647_v39 }
0x1273   : > { %7773 = vmatmul.msk.f32.gmra.mxu0 %vm409_vm13, %v5718_v18  ;;  %v5587_v27 = vpop.permute.xlu2 %5586 }
0x1274   : > { %v5033_v1 = vpop.f32.mrf.mxu1  ;;  %v5704_v24 = vsel %vm3031_vm5, %v5688_v59, %v5587_v27 }
0x1275   : > { %5596 = vrot.lane.b32.xlu2 %v5033_v1, %s14885_s29 }
0x1278   : > { %v5525_v11 = vpop.permute.xlu0 %5524 }
0x1279   : > { %v5649_v23 = vpop.permute.xlu1 %5648  ;;  %v5689_v15 = vsel %vm1086_vm2, %v13169_v14, %v5525_v11 }
0x127a   : > { %v5719_v58 = vsel %vm3048_vm6, %v5703_v46, %v5649_v23 }
0x127b   : > { %7774 = vmatmul.msk.f32.gmra.mxu0 %vm409_vm13, %v5719_v58  ;;  %v5589_v43 = vpop.permute.xlu2 %5588 }
0x127c   : > { %v5705_v2 = vsel %vm3031_vm5, %v5689_v15, %v5589_v43 }
0x1280   : > { %v5527_v20 = vpop.permute.xlu0 %5526 }
0x1281   : > { %v5651_v16 = vpop.permute.xlu1 %5650  ;;  %v5690_v37 = vsel %vm1086_vm2, %v13177_v48, %v5527_v20 }
0x1282   : > { %v5720_v38 = vsel %vm3048_vm6, %v5704_v24, %v5651_v16  ;;  %v14891_v24 = vld [vmem:[#allocation19_spill] sm:$0xff] }
0x1283   : > { %7775 = vmatmul.msk.f32.gmra.mxu0 %vm409_vm13, %v5720_v38 }
0x1285   : > { %v5483_v7 = vpop.f32.mrf.mxu2 }
0x1286   : > { %5660 = vrot.lane.b32.xlu1 %v5483_v7, %s14884_s28  ;;  %s8987_s28 = sshra.s32 %s7362_s23, 4  ;;  %s8988_s28 = int_to_ptr.hbm [resolvable:$true] %s8987_s28 }
0x1287   : > { %s8989_s19 = scalar_lea.hbm %s8988_s28, 32  ;;  %p8994_p3 = scmp.lt.s32.totalorder %s8988_s28, %s14350_s4 }
0x1288   : > { %v5529_v8 = vpop.permute.xlu0 %5528  ;;  %p8990_p0 = scmp.ne.s32.totalorder %s8988_s28, %s8989_s19  ;;  %p8995_p4 = scmp.lt.s32.totalorder %s8993_s5, %s8989_s19 }
0x1289   : > { %v5691_v48 = vsel %vm1086_vm2, %v13185_v42, %v5529_v8 }
0x128a   : > { %p8991_p1 = pnand %p8990_p0, %p9126_p5  ;;  %p8996_p7 = por %p8995_p4, %p8994_p3 }
0x128c   : > { %p8992_p2 = pneg %p8991_p1 }
0x128e   : > { %p8997_p8 = pnand %p8996_p7, %p8992_p2 }
0x1290   : > { %v5531_v39 = vpop.permute.xlu0 %5530 }
0x1291   : > { %v5692_v42 = vsel %vm1086_vm2, %v13190_v19, %v5531_v39 }
0x1298   : > { %v5533_v57 = vpop.permute.xlu0 %5532 }
0x1299   : > { %v5693_v23 = vsel %vm1086_vm2, %v13195_v53, %v5533_v57 }
0x12a0   : > { %v5791_v31 = vpop.f32.mrf.mxu0 }
0x12a1   : > { %v5792_v34 = vadd.f32 %v5791_v31, %v13326_v49 }
0x12a3   : > { %v13330_v41 = vadd.f32 %v5792_v34, %v14886_v9 }
0x12a5   : > { %v5857_v13 = vsel %vm409_vm13, %v13330_v41, 0.0 }
0x12a6   : > { %5858 = vadd.xlane.f32.xlu2 %v5857_v13  ;;  %v14892_v13 = vld [vmem:[#allocation72_spill] sm:$0xff] }
0x12a7   : > { %v5591_v28 = vpop.permute.xlu2 %5590 }
0x12a8   : > { %v5706_v21 = vsel %vm3031_vm5, %v5690_v37, %v5591_v28 }
0x12a9   : > { %v5794_v25 = vpop.f32.mrf.mxu0 }
0x12aa   : > { %v5795_v60 = vadd.f32 %v5794_v25, %v13326_v49 }
0x12ac   : > { %v13336_v12 = vadd.f32 %v5795_v60, %v14887_v32 }
0x12ae   : > { %v5860_v51 = vsel %vm409_vm13, %v13336_v12, 0.0 }
0x12b0   : > { %5861 = vadd.xlane.f32.xlu1 %v5860_v51 }
0x12b1   : > { %v13345_v52 = vpop.f32.mrf.mxu0 }
0x12b5   : > { %v5653_v55 = vpop.permute.xlu1 %5652 }
0x12b6   : > { %v5721_v36 = vsel %vm3048_vm6, %v5705_v2, %v5653_v55  ;;  %v14893_v55 = vld [vmem:[#allocation39_spill] sm:$0xff] }
0x12b7   : > { %7776 = vmatmul.msk.f32.gmra.mxu0 %vm409_vm13, %v5721_v36 }
0x12bb   : > { %v5593_v44 = vpop.permute.xlu2 %5592 }
0x12bc   : > { %v5707_v5 = vsel %vm3031_vm5, %v5691_v48, %v5593_v44 }
0x12c1   : > { %v5800_v22 = vpop.f32.mrf.mxu0 }
0x12c2   : > { %v5801_v30 = vadd.f32 %v5800_v22, %v13326_v49 }
0x12c3   : > { %v5595_v18 = vpop.permute.xlu2 %5594 }
0x12c4   : > { %v13349_v40 = vadd.f32 %v5801_v30, %v14888_v35  ;;  %v5708_v4 = vsel %vm3031_vm5, %v5692_v42, %v5595_v18 }
0x12c6   : > { %v5866_v14 = vsel %vm409_vm13, %v13349_v40, 0.0 }
0x12c7   : > { %5867 = vadd.xlane.f32.xlu2 %v5866_v14 }
0x12c9   : > { %v5803_v54 = vpop.f32.mrf.mxu0  ;;  %v5655_v3 = vpop.permute.xlu1 %5654 }
0x12ca   : > { %v5804_v61 = vadd.f32 %v5803_v54, %v13326_v49  ;;  %v5722_v56 = vsel %vm3048_vm6, %v5706_v21, %v5655_v3 }
0x12cb   : > { %7777 = vmatmul.msk.f32.gmra.mxu0 %vm409_vm13, %v5722_v56  ;;  %v14894_v56 = vld [vmem:[#allocation38_spill] sm:$0xff] }
0x12cc   : > { %v13360_v63 = vadd.f32 %v5804_v61, %v14889_v62 }
0x12ce   : > { %v5869_v50 = vsel %vm409_vm13, %v13360_v63, 0.0 }
0x12cf   : > { %5870 = vadd.xlane.f32.xlu1 %v5869_v50  ;;  %v5597_v46 = vpop.permute.xlu2 %5596 }
0x12d0   : > { %v5709_v58 = vsel %vm3031_vm5, %v5693_v23, %v5597_v46  ;;  %v14897_v46 = vld [vmem:[#allocation68_spill] sm:$0xff] }
0x12d1   : > { %v5806_v47 = vpop.f32.mrf.mxu0  ;;  %v5657_v6 = vpop.permute.xlu1 %5656 }
0x12d2   : > { %v5807_v26 = vadd.f32 %v5806_v47, %v13326_v49  ;;  %v5723_v10 = vsel %vm3048_vm6, %v5707_v5, %v5657_v6  ;;  %v14895_v6 = vld [vmem:[#allocation69_spill] sm:$0xff] }
0x12d3   : > { %7778 = vmatmul.msk.f32.gmra.mxu0 %vm409_vm13, %v5723_v10 }
0x12d4   : > { %v13371_v29 = vadd.f32 %v5807_v26, %v14890_v17 }
0x12d6   : > { %v5872_v0 = vsel %vm409_vm13, %v13371_v29, 0.0 }
0x12d7   : > { %5873 = vadd.xlane.f32.xlu2 %v5872_v0 }
0x12d9   : > { %v13385_v19 = vpop.f32.mrf.mxu0 }
0x12dd   : > { %v5659_v1 = vpop.permute.xlu1 %5658 }
0x12de   : > { %v5724_v33 = vsel %vm3048_vm6, %v5708_v4, %v5659_v1  ;;  %v14896_v4 = vld [vmem:[#allocation79_spill] sm:$0xff] }
0x12df   : > { %7779 = vmatmul.msk.f32.gmra.mxu0 %vm409_vm13, %v5724_v33  ;;  %v5798_v33 = vadd.f32 %v13345_v52, %v13326_v49  ;;  %v6241_v52 = vld [vmem:[#allocation2 + $0x28] sm:$0xff] }
0x12e1   : > { %v5812_v7 = vpop.f32.mrf.mxu0  ;;  %v13454_v23 = vadd.f32 %v5798_v33, %v14897_v46 }
0x12e2   : > { %v5813_v53 = vadd.f32 %v5812_v7, %v13326_v49 }
0x12e4   : > { %v13396_v25 = vadd.f32 %v5813_v53, %v14892_v13 }
0x12e6   : > { %v5878_v11 = vsel %vm409_vm13, %v13396_v25, 0.0 }
0x12f0   : > { %v5815_v51 = vpop.f32.mrf.mxu0 }
0x12f1   : > { %v5816_v15 = vadd.f32 %v5815_v51, %v13326_v49 }
0x12f3   : > { %v13409_v36 = vadd.f32 %v5816_v15, %v14893_v55 }
0x12f5   : > { %v5881_v22 = vsel %vm409_vm13, %v13409_v36, 0.0 }
0x12f8   : > { %v5661_v45 = vpop.permute.xlu1 %5660  ;;  %v13413_v30 = vpop.f32.mrf.mxu0 }
0x12f9   : > { %v5725_v27 = vsel %vm3048_vm6, %v5709_v58, %v5661_v45  ;;  %v5863_v58 = vsel %vm409_vm13, %v13454_v23, 0.0  ;;  %v6247_v45 = vld [vmem:[#allocation2 + $0xe8] sm:$0xff] }
0x12fa   : > { %7780 = vmatmul.msk.f32.gmra.mxu0 %vm409_vm13, %v5725_v27  ;;  %6316 = vmatpush.msra.mxu1 %v6247_v45  ;;  %v6245_v27 = vld [vmem:[#allocation2 + $0xa8] sm:$0xff] }
0x12fb   : > { %7857 = vmatpush.msra.mxu3 %v6247_v45 }
0x12fc   : > { %6317 = vmatpush.msra.mxu1 %v6245_v27 }
0x12fd   : > { %7858 = vmatpush.msra.mxu3 %v6245_v27 }
0x1300   : > { %v5821_v14 = vpop.f32.mrf.mxu0 }
0x1301   : > { %v5822_v21 = vadd.f32 %v5821_v14, %v13326_v49 }
0x1303   : > { %v13425_v62 = vadd.f32 %v5822_v21, %v14894_v56 }
0x1305   : > { %v5887_v5 = vsel %vm409_vm13, %v13425_v62, 0.0 }
0x1319   : > { %v5859_v59 = vpop.xlane.xlu2 %5858 }
0x131a   : > { %v5905_v16 = vmul.f32 %v5859_v59, %v14891_v24  ;;  %v6243_v59 = vld [vmem:[#allocation2 + $0x68] sm:$0xff] }
0x131b   : > { %6318 = vmatpush.msra.mxu1 %v6243_v59  ;;  %7859 = vmatpush.msra.mxu3 %v6243_v59 }
0x131c   : > { %v13389_v38 = vsub.f32 %v13330_v41, %v5905_v16 }
0x131d   : > { %6319 = vmatpush.msra.mxu1 %v6241_v52  ;;  %7860 = vmatpush.msra.mxu3 %v6241_v52 }
0x131e   : > { %v5937_v31 = vmul.f32 %v13389_v38, %v13389_v38 }
0x1320   : > { %v5953_v34 = vsel %vm409_vm13, %v5937_v31, 0.0 }
0x1321   : > { %5954 = vadd.xlane.f32.xlu1 %v5953_v34 }
0x1323   : > { %v5862_v9 = vpop.xlane.xlu1 %5861 }
0x1324   : > { %v5906_v60 = vmul.f32 %v5862_v9, %v14891_v24 }
0x1326   : > { %v13400_v32 = vsub.f32 %v13336_v12, %v5906_v60 }
0x1328   : > { %v5938_v43 = vmul.f32 %v13400_v32, %v13400_v32 }
0x1329   : > { %5879 = vadd.xlane.f32.xlu1 %v5878_v11 }
0x132a   : > { %v5956_v2 = vsel %vm409_vm13, %v5938_v43, 0.0 }
0x132b   : > { %5957 = vadd.xlane.f32.xlu2 %v5956_v2 }
0x1333   : > { %5882 = vadd.xlane.f32.xlu2 %v5881_v22 }
0x1334   : > { %v5824_v44 = vpop.f32.mrf.mxu0 }
0x1335   : > { %v5825_v48 = vadd.f32 %v5824_v44, %v13326_v49 }
0x1337   : > { %v13437_v26 = vadd.f32 %v5825_v48, %v14895_v6 }
0x1339   : > { %v5890_v10 = vsel %vm409_vm13, %v13437_v26, 0.0 }
0x133a   : > { %v5868_v20 = vpop.xlane.xlu2 %5867 }
0x133b   : > { %v5908_v35 = vmul.f32 %v5868_v20, %v14891_v24 }
0x133d   : > { %v13417_v28 = vsub.f32 %v13349_v40, %v5908_v35 }
0x133f   : > { %v5940_v37 = vmul.f32 %v13417_v28, %v13417_v28 }
0x1341   : > { %v5962_v54 = vsel %vm409_vm13, %v5940_v37, 0.0  ;;  %v14898_v37 = vld [vmem:[#allocation56_spill] sm:$0xff] }
0x1342   : > { %5963 = vadd.xlane.f32.xlu1 %v5962_v54  ;;  %v5871_v3 = vpop.xlane.xlu1 %5870 }
0x1343   : > { %v5909_v61 = vmul.f32 %v5871_v3, %v14891_v24 }
0x1345   : > { %v13428_v8 = vsub.f32 %v13360_v63, %v5909_v61  ;;  %v13476_v61 = vld [vmem:[%s14349_s3 + $0x7] ss:$0 sm:$0xff] }
0x1347   : > { %v5941_v50 = vmul.f32 %v13428_v8, %v13428_v8 }
0x1348   : > { %v13441_v17 = vpop.f32.mrf.mxu0 }
0x1349   : > { %v5965_v47 = vsel %vm409_vm13, %v5941_v50, 0.0 }
0x134a   : > { %5888 = vadd.xlane.f32.xlu1 %v5887_v5  ;;  %5966 = vadd.xlane.f32.xlu2 %v5965_v47  ;;  %v13459_v31 = vpop.xlane.xlu2 %5873  ;;  %v13484_v5 = vld [vmem:[%s14349_s3 + $0x10] ss:$0 sm:$0xff] }
0x1350   : > { %v13443_v0 = vpop.f32.mrf.mxu0 }
0x1352   : > { %5891 = vadd.xlane.f32.xlu2 %v5890_v10 }
0x135c   : > { %v5833_v39 = vpop.f32.mrf.mxu0 }
0x135d   : > { %v5834_v22 = vadd.f32 %v5833_v39, %v13326_v49 }
0x135f   : > { %v13471_v21 = vadd.f32 %v5834_v22, %v14898_v37  ;;  %v5910_v37 = vmul.f32 %v13459_v31, %v14891_v24  ;;  %v14901_v31 = vld [vmem:[#allocation50_spill] sm:$0xff] }
0x1361   : > { %v5899_v48 = vsel %vm409_vm13, %v13471_v21, 0.0 }
0x1377   : > { %v5836_v18 = vpop.f32.mrf.mxu0 }
0x1378   : > { %v5837_v42 = vadd.f32 %v5836_v18, %v13326_v49 }
0x137a   : > { %v13447_v1 = vadd.f32 %v5837_v42, %v14896_v4 }
0x137c   : > { %v5902_v57 = vsel %vm409_vm13, %v13447_v1, 0.0 }
0x137d   : > { %5903 = vadd.xlane.f32.xlu0 %v5902_v57 }
0x1385   : > { %5864 = vadd.xlane.f32.xlu0 %v5863_v58 }
0x1394   : > { %v5955_v16 = vpop.xlane.xlu1 %5954 }
0x1395   : > { %v6001_v7 = vmul.f32 %v5955_v16, %v14891_v24 }
0x1397   : > { %v6017_v53 = vadd.f32 1e-05, %v6001_v7 }
0x1399   : > { %8841 = vrsqrt.f32 %v6017_v53  ;;  %vm6039_vm5 = vweird.f32 %v6017_v53 }
0x139c   : > { %v5880_v34 = vpop.xlane.xlu1 %5879 }
0x139d   : > { %v5912_v9 = vmul.f32 %v5880_v34, %v14891_v24 }
0x139e   : > { %v5958_v13 = vpop.xlane.xlu2 %5957 }
0x139f   : > { %v8842_v60 = vpop.eup %8841  ;;  %v13463_v51 = vsub.f32 %v13396_v25, %v5912_v9  ;;  %v6002_v11 = vmul.f32 %v5958_v13, %v14891_v24  ;;  %v5810_v9 = vadd.f32 %v13385_v19, %v13326_v49  ;;  %v5819_v19 = vadd.f32 %v13413_v30, %v13326_v49 }
0x13a0   : > { %v6034_v43 = vmul.f32 %v8842_v60, %v6017_v53  ;;  %vm6040_vm2 = vweird.f32 %v8842_v60 }
0x13a1   : > { %v6018_v15 = vadd.f32 1e-05, %v6002_v11  ;;  %v5944_v2 = vmul.f32 %v13463_v51, %v13463_v51  ;;  %vm6041_vm6 = vmor %vm6039_vm5, %vm6040_vm2  ;;  %v14899_v11 = vld [vmem:[#allocation43_spill] sm:$0xff] }
0x13a2   : > { %v6035_v55 = vmul.f32 %v8842_v60, %v6034_v43  ;;  %v13518_v43 = vadd.f32 %v5810_v9, %v14899_v11 }
0x13a3   : > { %8843 = vrsqrt.f32 %v6018_v15  ;;  %v5974_v20 = vsel %vm409_vm13, %v5944_v2, 0.0  ;;  %vm6049_vm8 = vweird.f32 %v6018_v15 }
0x13a4   : > { %v6036_v35 = vmul.f32 0.5, %v6035_v55  ;;  %5975 = vadd.xlane.f32.xlu2 %v5974_v20  ;;  %v5875_v55 = vsel %vm409_vm13, %v13518_v43, 0.0 }
0x13a6   : > { %v6037_v14 = vsub.f32 1.5, %v6036_v35  ;;  %v5883_v33 = vpop.xlane.xlu2 %5882  ;;  %v14900_v35 = vld [vmem:[#allocation59_spill] sm:$0xff] }
0x13a8   : > { %v6038_v54 = vmul.f32 %v8842_v60, %v6037_v14  ;;  %v13532_v14 = vadd.f32 %v5819_v19, %v14900_v35 }
0x13a9   : > { %v8844_v3 = vpop.eup %8843 }
0x13aa   : > { %v6042_v56 = vsel %vm6041_vm6, %v8842_v60, %v6038_v54  ;;  %v6044_v44 = vmul.f32 %v8844_v3, %v6018_v15  ;;  %vm6050_vm7 = vweird.f32 %v8844_v3  ;;  %v13537_v54 = vsub.f32 %v13371_v29, %v5910_v37 }
0x13ab   : > { %v6193_v50 = vmul.f32 %v6042_v56, %v13389_v38  ;;  %vm6051_vm9 = vmor %vm6049_vm8, %vm6050_vm7 }
0x13ac   : > { %v6045_v47 = vmul.f32 %v8844_v3, %v6044_v44  ;;  %5900 = vadd.xlane.f32.xlu2 %v5899_v48  ;;  %v5942_v56 = vmul.f32 %v13537_v54, %v13537_v54  ;;  %v5828_v44 = vadd.f32 %v13441_v17, %v13326_v49 }
0x13ad   : > { %v6209_v6 = vmul.f32 %v6193_v50, %v13476_v61 }
0x13ae   : > { %v6046_v10 = vmul.f32 0.5, %v6045_v47  ;;  %v5968_v48 = vsel %vm409_vm13, %v5942_v56, 0.0  ;;  %v13549_v47 = vadd.f32 %v5828_v44, %v14901_v31  ;;  %v5831_v31 = vadd.f32 %v13443_v0, %v13326_v49 }
0x13af   : > { %v13488_v39 = vadd.f32 %v6209_v6, %v13484_v5  ;;  %v5913_v6 = vmul.f32 %v5883_v33, %v14891_v24 }
0x13b0   : > { %v6047_v18 = vsub.f32 1.5, %v6046_v10 }
0x13b1   : > { %7782 = vmatmul.msk.f32.vlgmr.msra.gmra.mxu1 %vm409_vm13, %v13488_v39  ;;  %v13553_v10 = vsub.f32 %v13409_v36, %v5913_v6 }
0x13b2   : > { %v6048_v38 = vmul.f32 %v8844_v3, %v6047_v18 }
0x13b4   : > { %v6052_v42 = vsel %vm6051_vm9, %v8844_v3, %v6048_v38  ;;  %v5884_v3 = vsel %vm409_vm13, %v13532_v14, 0.0  ;;  %v5893_v38 = vsel %vm409_vm13, %v13549_v47, 0.0 }
0x13b5   : > { %v6194_v4 = vmul.f32 %v6052_v42, %v13400_v32  ;;  %v5964_v30 = vpop.xlane.xlu1 %5963 }
0x13b6   : > { %v6004_v11 = vmul.f32 %v5964_v30, %v14891_v24 }
0x13b7   : > { %v6210_v57 = vmul.f32 %v6194_v4, %v13476_v61 }
0x13b8   : > { %v13576_v19 = vadd.f32 1e-05, %v6004_v11 }
0x13b9   : > { %v13495_v46 = vadd.f32 %v6210_v57, %v13484_v5 }
0x13ba   : > { %vm6069_vm3 = vweird.f32 %v13576_v19 }
0x13bb   : > { %7783 = vmatmul.msk.f32.gmra.mxu1 %vm409_vm13, %v13495_v46 }
0x13bd   : > { %v13499_v58 = vpop.xlane.xlu2 %5966  ;;  %v5889_v42 = vpop.xlane.xlu1 %5888 }
0x13be   : > { %v5915_v57 = vmul.f32 %v5889_v42, %v14891_v24 }
0x13c5   : > { %v5892_v45 = vpop.xlane.xlu2 %5891 }
0x13c6   : > { %v5916_v27 = vmul.f32 %v5892_v45, %v14891_v24  ;;  %v5945_v45 = vmul.f32 %v13553_v10, %v13553_v10 }
0x13c8   : > { %v13503_v59 = vsub.f32 %v13437_v26, %v5916_v27 }
0x13ca   : > { %v5948_v32 = vmul.f32 %v13503_v59, %v13503_v59 }
0x13cc   : > { %v5986_v52 = vsel %vm409_vm13, %v5948_v32, 0.0  ;;  %v13568_v32 = vsub.f32 %v13425_v62, %v5915_v57 }
0x13cd   : > { %5987 = vadd.xlane.f32.xlu2 %v5986_v52  ;;  %v5977_v52 = vsel %vm409_vm13, %v5945_v45, 0.0  ;;  %v14902_v45 = vld [vmem:[#allocation75_spill] sm:$0xff] }
0x13f0   : > { %v5904_v16 = vpop.xlane.xlu0 %5903 }
0x13f1   : > { %v5920_v7 = vmul.f32 %v5904_v16, %v14891_v24  ;;  %v5947_v16 = vmul.f32 %v13568_v32, %v13568_v32 }
0x13f3   : > { %v13510_v53 = vsub.f32 %v13447_v1, %v5920_v7  ;;  %v5983_v7 = vsel %vm409_vm13, %v5947_v16, 0.0 }
0x13f5   : > { %v5952_v34 = vmul.f32 %v13510_v53, %v13510_v53 }
0x13f7   : > { %v5998_v13 = vsel %vm409_vm13, %v5952_v34, 0.0  ;;  %v6248_v34 = vld [vmem:[#allocation2 + $0xf0] sm:$0xff] }
0x13f8   : > { %5999 = vadd.xlane.f32.xlu0 %v5998_v13  ;;  %v5865_v60 = vpop.xlane.xlu0 %5864  ;;  %6381 = vmatpush.msrb.mxu3 %v6248_v34 }
0x13f9   : > { %v5907_v15 = vmul.f32 %v5865_v60, %v14891_v24  ;;  %v6246_v60 = vld [vmem:[#allocation2 + $0xb0] sm:$0xff] }
0x13fa   : > { %6382 = vmatpush.msrb.mxu3 %v6246_v60 }
0x13fb   : > { %v13522_v2 = vsub.f32 %v13454_v23, %v5907_v15 }
0x13fd   : > { %v5939_v22 = vmul.f32 %v13522_v2, %v13522_v2 }
0x13ff   : > { %v5959_v20 = vsel %vm409_vm13, %v5939_v22, 0.0  ;;  %v6242_v22 = vld [vmem:[#allocation2 + $0x30] sm:$0xff] }
0x1400   : > { %5876 = vadd.xlane.f32.xlu0 %v5875_v55  ;;  %v6244_v55 = vld [vmem:[#allocation2 + $0x70] sm:$0xff] }
0x1401   : > { %6383 = vmatpush.msrb.mxu3 %v6244_v55 }
0x1403   : > { %6384 = vmatpush.msrb.mxu3 %v6242_v22 }
0x1408   : > { %5960 = vadd.xlane.f32.xlu0 %v5959_v20 }
0x1410   : > { %5885 = vadd.xlane.f32.xlu0 %v5884_v3  ;;  %v6005_v3 = vmul.f32 %v13499_v58, %v14891_v24 }
0x1412   : > { %v13589_v6 = vadd.f32 1e-05, %v6005_v3 }
0x1414   : > { %vm6079_vm5 = vweird.f32 %v13589_v6 }
0x1417   : > { %v13545_v50 = vpop.xlane.xlu2 %5975 }
0x1418   : > { %5969 = vadd.xlane.f32.xlu0 %v5968_v48 }
0x141f   : > { %v5901_v18 = vpop.xlane.xlu2 %5900 }
0x1420   : > { %v5919_v17 = vmul.f32 %v5901_v18, %v14891_v24  ;;  %5894 = vadd.xlane.f32.xlu0 %v5893_v38 }
0x1422   : > { %v13559_v4 = vsub.f32 %v13471_v21, %v5919_v17 }
0x1424   : > { %v5951_v33 = vmul.f32 %v13559_v4, %v13559_v4 }
0x1426   : > { %v5995_v27 = vsel %vm409_vm13, %v5951_v33, 0.0  ;;  %v13594_v33 = vadd.f32 %v5831_v31, %v14902_v45 }
0x1427   : > { %5996 = vadd.xlane.f32.xlu2 %v5995_v27 }
0x1428   : > { %5978 = vadd.xlane.f32.xlu0 %v5977_v52 }
0x1430   : > { %5984 = vadd.xlane.f32.xlu0 %v5983_v7  ;;  %v5896_v7 = vsel %vm409_vm13, %v13594_v33, 0.0 }
0x146b   : > { %v6000_v9 = vpop.xlane.xlu0 %5999 }
0x146c   : > { %v6016_v13 = vmul.f32 %v6000_v9, %v14891_v24 }
0x146e   : > { %v6032_v15 = vadd.f32 1e-05, %v6016_v13 }
0x1470   : > { %8845 = vrsqrt.f32 %v6032_v15  ;;  %vm6189_vm11 = vweird.f32 %v6032_v15 }
0x1471   : > { %8847 = vrsqrt.f32 %v13576_v19 }
0x1472   : > { %8849 = vrsqrt.f32 %v13589_v6 }
0x1473   : > { %v5877_v20 = vpop.xlane.xlu0 %5876 }
0x1474   : > { %v5911_v35 = vmul.f32 %v5877_v20, %v14891_v24 }
0x1476   : > { %v8846_v37 = vpop.eup %8845  ;;  %v13583_v56 = vsub.f32 %v13518_v43, %v5911_v35 }
0x1477   : > { %v6184_v30 = vmul.f32 %v8846_v37, %v6032_v15  ;;  %v8848_v17 = vpop.eup %8847  ;;  %vm6190_vm10 = vweird.f32 %v8846_v37 }
0x1478   : > { %v5943_v44 = vmul.f32 %v13583_v56, %v13583_v56  ;;  %v6064_v49 = vmul.f32 %v8848_v17, %v13576_v19  ;;  %vm6191_vm12 = vmor %vm6189_vm11, %vm6190_vm10  ;;  %v8850_v13 = vpop.eup %8849  ;;  %vm6070_vm15 = vweird.f32 %v8848_v17 }
0x1479   : > { %v6185_v48 = vmul.f32 %v8846_v37, %v6184_v30  ;;  %vm6071_vm4 = vmor %vm6069_vm3, %vm6070_vm15  ;;  %vm6080_vm2 = vweird.f32 %v8850_v13 }
0x147a   : > { %v5971_v18 = vsel %vm409_vm13, %v5943_v44, 0.0  ;;  %v6065_v34 = vmul.f32 %v8848_v17, %v6064_v49  ;;  %vm6081_vm6 = vmor %vm6079_vm5, %vm6080_vm2 }
0x147b   : > { %v6186_v38 = vmul.f32 0.5, %v6185_v48  ;;  %5972 = vadd.xlane.f32.xlu1 %v5971_v18  ;;  %v5961_v42 = vpop.xlane.xlu0 %5960 }
0x147c   : > { %v6003_v58 = vmul.f32 %v5961_v42, %v14891_v24  ;;  %v6066_v20 = vmul.f32 0.5, %v6065_v34 }
0x147d   : > { %v6187_v57 = vsub.f32 1.5, %v6186_v38 }
0x147e   : > { %v6019_v27 = vadd.f32 1e-05, %v6003_v58  ;;  %v6067_v44 = vsub.f32 1.5, %v6066_v20 }
0x147f   : > { %v6188_v0 = vmul.f32 %v8846_v37, %v6187_v57 }
0x1480   : > { %8851 = vrsqrt.f32 %v6019_v27  ;;  %v6068_v57 = vmul.f32 %v8848_v17, %v6067_v44  ;;  %vm6059_vm0 = vweird.f32 %v6019_v27 }
0x1481   : > { %v6192_v52 = vsel %vm6191_vm12, %v8846_v37, %v6188_v0 }
0x1482   : > { %v6208_v16 = vmul.f32 %v6192_v52, %v13510_v53  ;;  %v6074_v53 = vmul.f32 %v8850_v13, %v13589_v6 }
0x1483   : > { %5897 = vadd.xlane.f32.xlu1 %v5896_v7  ;;  %v5886_v9 = vpop.xlane.xlu0 %5885 }
0x1484   : > { %v6224_v60 = vmul.f32 %v6208_v16, %v13476_v61  ;;  %v5914_v11 = vmul.f32 %v5886_v9, %v14891_v24  ;;  %v6075_v48 = vmul.f32 %v8850_v13, %v6074_v53  ;;  %v6072_v16 = vsel %vm6071_vm4, %v8848_v17, %v6068_v57 }
0x1486   : > { %v8852_v55 = vpop.eup %8851  ;;  %v13604_v22 = vadd.f32 %v6224_v60, %v13484_v5  ;;  %v13607_v15 = vsub.f32 %v13532_v14, %v5914_v11  ;;  %v6076_v45 = vmul.f32 0.5, %v6075_v48 }
0x1487   : > { %v6054_v35 = vmul.f32 %v8852_v55, %v6019_v27  ;;  %vm6060_vm14 = vweird.f32 %v8852_v55  ;;  %v6196_v27 = vmul.f32 %v6072_v16, %v13417_v28 }
0x1488   : > { %7797 = vmatmul.msk.f32.vlgmr.msra.gmra.mxu3 %vm409_vm13, %v13604_v22  ;;  %v5946_v37 = vmul.f32 %v13607_v15, %v13607_v15  ;;  %vm6061_vm1 = vmor %vm6059_vm0, %vm6060_vm14  ;;  %v6077_v7 = vsub.f32 1.5, %v6076_v45 }
0x1489   : > { %v6055_v3 = vmul.f32 %v8852_v55, %v6054_v35  ;;  %v6212_v53 = vmul.f32 %v6196_v27, %v13476_v61 }
0x148a   : > { %v5980_v30 = vsel %vm409_vm13, %v5946_v37, 0.0  ;;  %v6078_v19 = vmul.f32 %v8850_v13, %v6077_v7 }
0x148b   : > { %v6056_v31 = vmul.f32 0.5, %v6055_v3  ;;  %5981 = vadd.xlane.f32.xlu1 %v5980_v30  ;;  %v5970_v18 = vpop.xlane.xlu0 %5969  ;;  %v6228_v44 = vadd.f32 %v6212_v53, %v13484_v5 }
0x148c   : > { %v6006_v38 = vmul.f32 %v5970_v18, %v14891_v24  ;;  %v6082_v35 = vsel %vm6081_vm6, %v8850_v13, %v6078_v19 }
0x148d   : > { %v6057_v42 = vsub.f32 1.5, %v6056_v31  ;;  %v6197_v30 = vmul.f32 %v6082_v35, %v13428_v8 }
0x148e   : > { %v6022_v58 = vadd.f32 1e-05, %v6006_v38  ;;  %v6008_v38 = vmul.f32 %v13545_v50, %v14891_v24 }
0x148f   : > { %v6058_v49 = vmul.f32 %v8852_v55, %v6057_v42  ;;  %v6213_v6 = vmul.f32 %v6197_v30, %v13476_v61 }
0x1490   : > { %8853 = vrsqrt.f32 %v6022_v58  ;;  %7798 = vmatmul.msk.f32.vlgmr.msrb.gmra.mxu3 %vm409_vm13, %v13488_v39  ;;  %vm6089_vm8 = vweird.f32 %v6022_v58 }
0x1491   : > { %v6062_v0 = vsel %vm6061_vm1, %v8852_v55, %v6058_v49  ;;  %v6229_v31 = vadd.f32 %v6213_v6, %v13484_v5 }
0x1492   : > { %v6195_v52 = vmul.f32 %v6062_v0, %v13522_v2 }
0x1493   : > { %v5895_v34 = vpop.xlane.xlu0 %5894 }
0x1494   : > { %v5917_v9 = vmul.f32 %v5895_v34, %v14891_v24  ;;  %v6211_v60 = vmul.f32 %v6195_v52, %v13476_v61 }
0x1496   : > { %v8854_v11 = vpop.eup %8853  ;;  %v13624_v20 = vsub.f32 %v13549_v47, %v5917_v9  ;;  %v6227_v39 = vadd.f32 %v6211_v60, %v13484_v5 }
0x1497   : > { %v6084_v55 = vmul.f32 %v8854_v11, %v6022_v58  ;;  %vm6090_vm7 = vweird.f32 %v8854_v11 }
0x1498   : > { %7784 = vmatmul.msk.f32.gmra.mxu1 %vm409_vm13, %v6227_v39  ;;  %7799 = vmatmul.msk.f32.gmra.mxu3 %vm409_vm13, %v13495_v46  ;;  %v5949_v2 = vmul.f32 %v13624_v20, %v13624_v20  ;;  %vm6091_vm9 = vmor %vm6089_vm8, %vm6090_vm7 }
0x1499   : > { %v6085_v17 = vmul.f32 %v8854_v11, %v6084_v55 }
0x149a   : > { %v5989_v28 = vsel %vm409_vm13, %v5949_v2, 0.0 }
0x149b   : > { %v6086_v37 = vmul.f32 0.5, %v6085_v17  ;;  %5990 = vadd.xlane.f32.xlu1 %v5989_v28  ;;  %v5979_v42 = vpop.xlane.xlu0 %5978  ;;  %v5988_v28 = vpop.xlane.xlu2 %5987 }
0x149c   : > { %v6009_v58 = vmul.f32 %v5979_v42, %v14891_v24  ;;  %v6012_v6 = vmul.f32 %v5988_v28, %v14891_v24 }
0x149d   : > { %v6087_v3 = vsub.f32 1.5, %v6086_v37 }
0x149e   : > { %v13652_v57 = vadd.f32 1e-05, %v6009_v58  ;;  %v13674_v42 = vadd.f32 1e-05, %v6012_v6 }
0x149f   : > { %v6088_v46 = vmul.f32 %v8854_v11, %v6087_v3 }
0x14a0   : > { %7785 = vmatmul.msk.f32.gmra.mxu1 %vm409_vm13, %v6228_v44  ;;  %7800 = vmatmul.msk.f32.gmra.mxu3 %vm409_vm13, %v6227_v39  ;;  %vm6119_vm3 = vweird.f32 %v13652_v57 }
0x14a1   : > { %v6092_v48 = vsel %vm6091_vm9, %v8854_v11, %v6088_v46 }
0x14a2   : > { %v6198_v13 = vmul.f32 %v6092_v48, %v13537_v54  ;;  %v6024_v54 = vadd.f32 1e-05, %v6008_v38 }
0x14a3   : > { %v5985_v7 = vpop.xlane.xlu0 %5984 }
0x14a4   : > { %v6214_v8 = vmul.f32 %v6198_v13, %v13476_v61  ;;  %8855 = vrsqrt.f32 %v6024_v54  ;;  %v6011_v11 = vmul.f32 %v5985_v7, %v14891_v24  ;;  %vm6109_vm15 = vweird.f32 %v6024_v54 }
0x14a5   : > { %8857 = vrsqrt.f32 %v13652_v57 }
0x14a6   : > { %v6230_v18 = vadd.f32 %v6214_v8, %v13484_v5  ;;  %v13667_v53 = vadd.f32 1e-05, %v6011_v11 }
0x14a8   : > { %7786 = vmatmul.msk.f32.gmra.mxu1 %vm409_vm13, %v6229_v31  ;;  %7801 = vmatmul.msk.f32.gmra.mxu3 %vm409_vm13, %v6228_v44  ;;  %vm6139_vm8 = vweird.f32 %v13667_v53 }
0x14aa   : > { %v8856_v49 = vpop.eup %8855 }
0x14ab   : > { %v6104_v16 = vmul.f32 %v8856_v49, %v6024_v54  ;;  %v13656_v50 = vpop.eup %8857  ;;  %vm6110_vm11 = vweird.f32 %v8856_v49 }
0x14ac   : > { %v6114_v55 = vmul.f32 %v13656_v50, %v13652_v57  ;;  %vm6111_vm0 = vmor %vm6109_vm15, %vm6110_vm11  ;;  %vm6120_vm1 = vweird.f32 %v13656_v50  ;;  %vm6149_vm11 = vweird.f32 %v13674_v42 }
0x14ad   : > { %v6105_v34 = vmul.f32 %v8856_v49, %v6104_v16  ;;  %vm6121_vm4 = vmor %vm6119_vm3, %vm6120_vm1 }
0x14ae   : > { %v6115_v30 = vmul.f32 %v13656_v50, %v6114_v55 }
0x14af   : > { %v6106_v19 = vmul.f32 0.5, %v6105_v34 }
0x14b0   : > { %7787 = vmatmul.msk.f32.gmra.mxu1 %vm409_vm13, %v6230_v18  ;;  %7802 = vmatmul.msk.f32.gmra.mxu3 %vm409_vm13, %v6229_v31 }
0x14b1   : > { %v6107_v3 = vsub.f32 1.5, %v6106_v19 }
0x14b3   : > { %v6108_v8 = vmul.f32 %v8856_v49, %v6107_v3 }
0x14b5   : > { %v6112_v16 = vsel %vm6111_vm0, %v8856_v49, %v6108_v8  ;;  %v7104_v8 = vld [vmem:[%s14348_s2 + $0x70] sm:$0xff] }
0x14b8   : > { %7803 = vmatmul.msk.f32.gmra.mxu3 %vm409_vm13, %v6230_v18  ;;  %v6116_v18 = vmul.f32 0.5, %v6115_v30 }
0x14ba   : > { %v6117_v7 = vsub.f32 1.5, %v6116_v18 }
0x14bc   : > { %v6118_v11 = vmul.f32 %v13656_v50, %v6117_v7 }
0x14ee   : > { %v5973_v45 = vpop.xlane.xlu1 %5972 }
0x14ef   : > { %v6007_v0 = vmul.f32 %v5973_v45, %v14891_v24 }
0x14f1   : > { %v6023_v52 = vadd.f32 1e-05, %v6007_v0 }
0x14f3   : > { %8859 = vrsqrt.f32 %v6023_v52  ;;  %vm6099_vm12 = vweird.f32 %v6023_v52 }
0x14f4   : > { %8861 = vrsqrt.f32 %v13667_v53 }
0x14f6   : > { %v5898_v9 = vpop.xlane.xlu1 %5897 }
0x14f7   : > { %v5918_v60 = vmul.f32 %v5898_v9, %v14891_v24 }
0x14f9   : > { %v8860_v27 = vpop.eup %8859  ;;  %v13661_v39 = vsub.f32 %v13594_v33, %v5918_v60 }
0x14fa   : > { %v6094_v2 = vmul.f32 %v8860_v27, %v6023_v52  ;;  %vm6100_vm10 = vweird.f32 %v8860_v27  ;;  %v13677_v0 = vpop.eup %8861  ;;  %v6200_v52 = vmul.f32 %v6112_v16, %v13463_v51 }
0x14fb   : > { %v5950_v17 = vmul.f32 %v13661_v39, %v13661_v39  ;;  %vm6101_vm14 = vmor %vm6099_vm12, %vm6100_vm10  ;;  %v6134_v60 = vmul.f32 %v13677_v0, %v13667_v53  ;;  %vm6140_vm7 = vweird.f32 %v13677_v0 }
0x14fc   : > { %v6095_v35 = vmul.f32 %v8860_v27, %v6094_v2  ;;  %v6216_v55 = vmul.f32 %v6200_v52, %v13476_v61  ;;  %v6122_v2 = vsel %vm6121_vm4, %v13656_v50, %v6118_v11  ;;  %v7105_v50 = vld [vmem:[%s14348_s2 + $0x78] sm:$0xff]  ;;  %vm6141_vm9 = vmor %vm6139_vm8, %vm6140_vm7 }
0x14fd   : > { %v5992_v37 = vsel %vm409_vm13, %v5950_v17, 0.0  ;;  %v6135_v19 = vmul.f32 %v13677_v0, %v6134_v60  ;;  %7107 = vmatpush.msrb.mxu2 %v7105_v50  ;;  %v7099_v50 = vld [vmem:[%s14348_s2 + $0x48] sm:$0xff] }
0x14fe   : > { %v6096_v44 = vmul.f32 0.5, %v6095_v35  ;;  %5993 = vadd.xlane.f32.xlu0 %v5992_v37  ;;  %v5982_v46 = vpop.xlane.xlu1 %5981  ;;  %v13700_v35 = vld [vmem:[%s14349_s3 + $0x11] ss:$8 sm:$0x3] }
0x14ff   : > { %v6010_v48 = vmul.f32 %v5982_v46, %v14891_v24  ;;  %v13706_v30 = vperm.slane %v13700_v35, 1  ;;  %v6136_v46 = vmul.f32 0.5, %v6135_v19  ;;  %7108 = vmatpush.msrb.mxu2 %v7104_v8 }
0x1500   : > { %v6097_v13 = vsub.f32 1.5, %v6096_v44  ;;  %v6201_v44 = vmul.f32 %v6122_v2, %v13553_v10 }
0x1501   : > { %v6026_v31 = vadd.f32 1e-05, %v6010_v48  ;;  %v6232_v48 = vadd.f32 %v6216_v55, %v13484_v5 }
0x1502   : > { %v6098_v38 = vmul.f32 %v8860_v27, %v6097_v13  ;;  %v6217_v16 = vmul.f32 %v6201_v44, %v13476_v61 }
0x1503   : > { %8863 = vrsqrt.f32 %v6026_v31  ;;  %vm6129_vm5 = vweird.f32 %v6026_v31 }
0x1504   : > { %v6102_v58 = vsel %vm6101_vm14, %v8860_v27, %v6098_v38  ;;  %8865 = vrsqrt.f32 %v13674_v42 }
0x1505   : > { %v6199_v45 = vmul.f32 %v6102_v58, %v13583_v56  ;;  %v7103_v58 = vld [vmem:[%s14348_s2 + $0x68] sm:$0xff] }
0x1506   : > { %7109 = vmatpush.msrb.mxu2 %v7103_v58 }
0x1507   : > { %v6215_v34 = vmul.f32 %v6199_v45, %v13476_v61  ;;  %v6137_v45 = vsub.f32 1.5, %v6136_v46 }
0x1509   : > { %v8864_v9 = vpop.eup %8863  ;;  %v6231_v54 = vadd.f32 %v6215_v34, %v13484_v5  ;;  %v6138_v11 = vmul.f32 %v13677_v0, %v6137_v45 }
0x150a   : > { %v6124_v56 = vmul.f32 %v8864_v9, %v6026_v31  ;;  %v13692_v51 = vpop.eup %8865  ;;  %vm6130_vm2 = vweird.f32 %v8864_v9  ;;  %v7102_v31 = vld [vmem:[%s14348_s2 + $0x60] sm:$0xff] }
0x150b   : > { %7788 = vmatmul.msk.f32.gmra.mxu1 %vm409_vm13, %v6231_v54  ;;  %v13688_v49 = vpop.f32.mrf.mxu3  ;;  %7804 = vmatmul.msk.f32.gmra.mxu3 %vm409_vm13, %v6231_v54  ;;  %v6144_v57 = vmul.f32 %v13692_v51, %v13674_v42  ;;  %vm6131_vm6 = vmor %vm6129_vm5, %vm6130_vm2  ;;  %vm6150_vm10 = vweird.f32 %v13692_v51 }
0x150c   : > { %v6125_v27 = vmul.f32 %v8864_v9, %v6124_v56  ;;  %7110 = vmatpush.msrb.mxu2 %v7102_v31  ;;  %v6233_v56 = vadd.f32 %v6217_v16, %v13484_v5  ;;  %vm6151_vm12 = vmor %vm6149_vm11, %vm6150_vm10 }
0x150d   : > { %v6145_v10 = vmul.f32 %v13692_v51, %v6144_v57  ;;  %v6142_v57 = vsel %vm6141_vm9, %v13677_v0, %v6138_v11 }
0x150e   : > { %v6126_v17 = vmul.f32 0.5, %v6125_v27  ;;  %v5991_v28 = vpop.xlane.xlu1 %5990  ;;  %v7101_v27 = vld [vmem:[%s14348_s2 + $0x58] sm:$0xff]  ;;  %v6203_v0 = vmul.f32 %v6142_v57, %v13568_v32 }
0x150f   : > { %v6013_v37 = vmul.f32 %v5991_v28, %v14891_v24  ;;  %v6146_v52 = vmul.f32 0.5, %v6145_v10  ;;  %7111 = vmatpush.msrb.mxu2 %v7101_v27 }
0x1510   : > { %v6127_v3 = vsub.f32 1.5, %v6126_v17  ;;  %v6219_v16 = vmul.f32 %v6203_v0, %v13476_v61 }
0x1511   : > { %v13712_v6 = vadd.f32 1e-05, %v6013_v37  ;;  %v6147_v17 = vsub.f32 1.5, %v6146_v52  ;;  %v7098_v52 = vld [vmem:[%s14348_s2 + $0x40] sm:$0xff] }
0x1512   : > { %v6128_v13 = vmul.f32 %v8864_v9, %v6127_v3 }
0x1513   : > { %8867 = vrsqrt.f32 %v13712_v6  ;;  %7789 = vmatmul.msk.f32.gmra.mxu1 %vm409_vm13, %v6232_v48  ;;  %v6386_v18 = vpop.f32.mrf.mxu3  ;;  %7805 = vmatmul.msk.f32.gmra.mxu3 %vm409_vm13, %v6232_v48  ;;  %v6148_v46 = vmul.f32 %v13692_v51, %v6147_v17  ;;  %v7096_v17 = vld [vmem:[%s14348_s2 + $0x30] sm:$0xff]  ;;  %vm6159_vm0 = vweird.f32 %v13712_v6 }
0x1514   : > { %v13723_v38 = vadd.f32 %v6386_v18, %v13706_v30  ;;  %v6132_v7 = vsel %vm6131_vm6, %v8864_v9, %v6128_v13 }
0x1515   : > { %v6202_v9 = vmul.f32 %v6132_v7, %v13607_v15  ;;  %v7100_v15 = vld [vmem:[%s14348_s2 + $0x50] sm:$0xff]  ;;  %v6152_v45 = vsel %vm6151_vm12, %v13692_v51, %v6148_v46 }
0x1516   : > { %v13730_v34 = vmul.f32 0.70710677, %v13723_v38  ;;  %7112 = vmatpush.msrb.mxu2 %v7100_v15  ;;  %v6204_v51 = vmul.f32 %v6152_v45, %v13503_v59 }
0x1517   : > { %v6218_v3 = vmul.f32 %v6202_v9, %v13476_v61 }
0x1518   : > { %v13736_v60 = vand.u32 2147483647, %v13730_v34  ;;  %7113 = vmatpush.msrb.mxu2 %v7099_v50  ;;  %v6220_v45 = vmul.f32 %v6204_v51, %v13476_v61  ;;  %v7093_v51 = vld [vmem:[%s14348_s2 + $0x18] sm:$0xff]  ;;  %vm6466_vm12 = vcmp.ge.f32.partialorder %v13730_v34, 0.0 }
0x1519   : > { %v13738_v54 = vpop.eup %8867  ;;  %v6234_v8 = vadd.f32 %v6218_v3, %v13484_v5 }
0x151a   : > { %v6154_v19 = vmul.f32 %v13738_v54, %v13712_v6  ;;  %v6514_v55 = vmul.f32 0.3275911, %v13736_v60  ;;  %7114 = vmatpush.msrb.mxu2 %v7098_v52  ;;  %vm6160_vm14 = vweird.f32 %v13738_v54  ;;  %v6930_v50 = vsub.f32 0.0, %v13736_v60  ;;  %v7095_v6 = vld [vmem:[%s14348_s2 + $0x28] sm:$0xff] }
0x151b   : > { %7790 = vmatmul.msk.f32.gmra.mxu1 %vm409_vm13, %v6233_v56  ;;  %v6389_v2 = vpop.f32.mrf.mxu3  ;;  %7806 = vmatmul.msk.f32.gmra.mxu3 %vm409_vm13, %v6233_v56  ;;  %v7097_v56 = vld [vmem:[%s14348_s2 + $0x38] sm:$0xff]  ;;  %vm13814_vm1 = vmor %vm6159_vm0, %vm6160_vm14  ;;  %v13842_v52 = vperm.slane %v13700_v35, 0 }
0x151c   : > { %v13756_v28 = vadd.f32 1.0, %v6514_v55  ;;  %v13759_v37 = vadd.f32 %v6389_v2, %v13706_v30  ;;  %v6155_v53 = vmul.f32 %v13738_v54, %v6154_v19  ;;  %v6235_v55 = vadd.f32 %v6219_v16, %v13484_v5  ;;  %7115 = vmatpush.msrb.mxu2 %v7097_v56  ;;  %v7094_v16 = vld [vmem:[%s14348_s2 + $0x20] sm:$0xff] }
0x151e   : > { %8869 = vrcp.f32 %v13756_v28  ;;  %v13769_v44 = vmul.f32 0.70710677, %v13759_v37  ;;  %v6156_v48 = vmul.f32 0.5, %v6155_v53  ;;  %v6557_v27 = vand.u32 2147483648, %v13756_v28  ;;  %7116 = vmatpush.msrb.mxu2 %v7096_v17 }
0x151f   : > { %v6555_v15 = vand.u32 2147483647, %v13756_v28  ;;  %vm6551_vm3 = vweird.f32 %v13756_v28 }
0x1520   : > { %v13775_v13 = vand.u32 2147483647, %v13769_v44  ;;  %v6157_v7 = vsub.f32 1.5, %v6156_v48  ;;  %v6558_v0 = vor.u32 1.1754944e-38, %v6557_v27  ;;  %7117 = vmatpush.msrb.mxu2 %v7095_v6  ;;  %vm6467_vm0 = vcmp.ge.f32.partialorder %v13769_v44, 0.0 }
0x1521   : > { %vm6556_vm2 = vcmp.eq.f32.partialorder %v6555_v15, 8.507059e+37 }
0x1522   : > { %v6515_v18 = vmul.f32 0.3275911, %v13775_v13  ;;  %v6158_v2 = vmul.f32 %v13738_v54, %v6157_v7  ;;  %7118 = vmatpush.msrb.mxu2 %v7094_v16 }
0x1523   : > { %7791 = vmatmul.msk.f32.gmra.mxu1 %vm409_vm13, %v6234_v8  ;;  %v6392_v10 = vpop.f32.mrf.mxu3  ;;  %7807 = vmatmul.msk.f32.gmra.mxu3 %vm409_vm13, %v6234_v8 }
0x1524   : > { %v8870_v58 = vpop.eup %8869  ;;  %v13784_v32 = vadd.f32 %v6392_v10, %v13706_v30  ;;  %v13788_v42 = vadd.f32 1.0, %v6515_v18  ;;  %v6162_v18 = vsel %vm13814_vm1, %v13738_v54, %v6158_v2  ;;  %7119 = vmatpush.msrb.mxu2 %v7093_v51 }
0x1525   : > { %v6547_v31 = vmul.f32 %v8870_v58, %v13756_v28  ;;  %vm6552_vm15 = vweird.f32 %v8870_v58  ;;  %v6205_v56 = vmul.f32 %v6162_v18, %v13624_v20 }
0x1526   : > { %v13794_v11 = vmul.f32 0.70710677, %v13784_v32  ;;  %8871 = vrcp.f32 %v13788_v42  ;;  %vm6553_vm4 = vmor %vm6551_vm3, %vm6552_vm15  ;;  %v6572_v35 = vand.u32 2147483648, %v13788_v42  ;;  %v6570_v17 = vand.u32 2147483647, %v13788_v42 }
0x1527   : > { %v6548_v9 = vsub.f32 1.0, %v6547_v31  ;;  %vm6566_vm6 = vweird.f32 %v13788_v42 }
0x1528   : > { %v13804_v19 = vand.u32 2147483647, %v13794_v11  ;;  %v6573_v16 = vor.u32 1.1754944e-38, %v6572_v35  ;;  %vm6571_vm8 = vcmp.eq.f32.partialorder %v6570_v17, 8.507059e+37 }
0x1529   : > { %v6549_v59 = vmul.f32 %v8870_v58, %v6548_v9  ;;  %v6321_v9 = vpop.f32.mrf.mxu1 }
0x152a   : > { %v6516_v57 = vmul.f32 0.3275911, %v13804_v19 }
0x152b   : > { %v6550_v3 = vadd.f32 %v8870_v58, %v6549_v59  ;;  %7792 = vmatmul.msk.f32.gmra.mxu1 %vm409_vm13, %v6235_v55  ;;  %v6395_v46 = vpop.f32.mrf.mxu3  ;;  %7808 = vmatmul.msk.f32.gmra.mxu3 %vm409_vm13, %v6235_v55  ;;  %v6236_v59 = vadd.f32 %v6220_v45, %v13484_v5  ;;  %v6221_v45 = vmul.f32 %v6205_v56, %v13476_v61 }
0x152c   : > { %v13825_v48 = vadd.f32 1.0, %v6516_v57  ;;  %v13828_v8 = vadd.f32 %v6395_v46, %v13706_v30  ;;  %v8872_v28 = vpop.eup %8871  ;;  %v13863_v57 = vadd.f32 %v6321_v9, %v13842_v52  ;;  %v7091_v46 = vld [vmem:[%s14348_s2 + $0x8] sm:$0xff]  ;;  %v6932_v9 = vsub.f32 0.0, %v13804_v19 }
0x152d   : > { %v6554_v10 = vsel %vm6553_vm4, %v8870_v58, %v6550_v3  ;;  %v6562_v31 = vmul.f32 %v8872_v28, %v13788_v42  ;;  %v6946_v58 = vmul.f32 %v6930_v50, %v13736_v60  ;;  %v7092_v60 = vld [vmem:[%s14348_s2 + $0x10] sm:$0xff]  ;;  %vm6567_vm5 = vweird.f32 %v8872_v28 }
0x152e   : > { %v13837_v7 = vsel %vm6556_vm2, %v6558_v0, %v6554_v10  ;;  %8873 = vrcp.f32 %v13825_v48  ;;  %v13851_v55 = vmul.f32 0.70710677, %v13828_v8  ;;  %7120 = vmatpush.msrb.mxu2 %v7092_v60  ;;  %vm6568_vm7 = vmor %vm6566_vm6, %vm6567_vm5  ;;  %v6587_v60 = vand.u32 2147483648, %v13825_v48 }
0x152f   : > { %v6786_v54 = vmul.f32 1.0614054, %v13837_v7  ;;  %v6563_v27 = vsub.f32 1.0, %v6562_v31  ;;  %v6962_v3 = vmul.f32 1.442695, %v6946_v58  ;;  %v6931_v31 = vsub.f32 0.0, %v13775_v13 }
0x1530   : > { %v13860_v20 = vand.u32 2147483647, %v13851_v55  ;;  %7121 = vmatpush.msrb.mxu2 %v7091_v46  ;;  %v7090_v58 = vld [vmem:[%s14348_s2] sm:$0xff]  ;;  %vm6581_vm10 = vweird.f32 %v13825_v48 }
0x1531   : > { %v6802_v2 = vadd.f32 -1.4531521, %v6786_v54  ;;  %v6564_v15 = vmul.f32 %v8872_v28, %v6563_v27  ;;  %v6947_v46 = vmul.f32 %v6931_v31, %v13775_v13 }
0x1532   : > { %v6517_v18 = vmul.f32 0.3275911, %v13860_v20  ;;  %7122 = vmatpush.msrb.mxu2 %v7090_v58 }
0x1533   : > { %v6818_v53 = vmul.f32 %v6802_v2, %v13837_v7  ;;  %7793 = vmatmul.msk.f32.gmra.mxu1 %vm409_vm13, %v6236_v59  ;;  %v6398_v50 = vpop.f32.mrf.mxu3  ;;  %7809 = vmatmul.msk.f32.gmra.mxu3 %vm409_vm13, %v6236_v59  ;;  %v6565_v0 = vadd.f32 %v8872_v28, %v6564_v15 }
0x1534   : > { %v8874_v6 = vpop.eup %8873  ;;  %v13874_v10 = vadd.f32 %v6398_v50, %v13706_v30  ;;  %v13884_v27 = vadd.f32 1.0, %v6517_v18 }
0x1535   : > { %v6834_v42 = vadd.f32 1.4214138, %v6818_v53  ;;  %v6577_v54 = vmul.f32 %v8874_v6, %v13825_v48  ;;  %v6569_v51 = vsel %vm6568_vm7, %v8872_v28, %v6565_v0  ;;  %v6237_v28 = vadd.f32 %v6221_v45, %v13484_v5 }
0x1536   : > { %v13887_v56 = vsel %vm6571_vm8, %v6573_v16, %v6569_v51  ;;  %v13890_v35 = vmul.f32 0.70710677, %v13874_v10  ;;  %8875 = vrcp.f32 %v13884_v27  ;;  %vm6582_vm9 = vweird.f32 %v8874_v6 }
0x1537   : > { %v6850_v61 = vmul.f32 %v6834_v42, %v13837_v7  ;;  %v6578_v2 = vsub.f32 1.0, %v6577_v54  ;;  %v6787_v59 = vmul.f32 1.0614054, %v13887_v56  ;;  %v6585_v53 = vand.u32 2147483647, %v13825_v48  ;;  %vm6583_vm11 = vmor %vm6581_vm10, %vm6582_vm9 }
0x1538   : > { %8877 = vpow2.f32 %v6962_v3  ;;  %v13899_v0 = vand.u32 2147483647, %v13890_v35  ;;  %v6588_v45 = vor.u32 1.1754944e-38, %v6587_v60  ;;  %v6948_v3 = vmul.f32 %v6932_v9, %v13804_v19 }
0x1539   : > { %v6866_v15 = vadd.f32 -0.28449672, %v6850_v61  ;;  %v6579_v17 = vmul.f32 %v8874_v6, %v6578_v2  ;;  %v6803_v50 = vadd.f32 -1.4531521, %v6787_v59  ;;  %vm6586_vm14 = vcmp.eq.f32.partialorder %v6585_v53, 8.507059e+37 }
0x153a   : > { %v6518_v13 = vmul.f32 0.3275911, %v13899_v0  ;;  %v6964_v51 = vmul.f32 1.442695, %v6947_v46  ;;  %v6434_v59 = vmul.f32 0.5, %v13723_v38  ;;  %v9061_v53 = vmov -1.0  }
0x153b   : > { %v6882_v18 = vmul.f32 %v6866_v15, %v13837_v7  ;;  %v6580_v42 = vadd.f32 %v8874_v6, %v6579_v17  ;;  %7794 = vmatmul.msk.f32.gmra.mxu1 %vm409_vm13, %v6237_v28  ;;  %7810 = vmatmul.msk.f32.gmra.mxu3 %vm409_vm13, %v6237_v28  ;;  %v6819_v5 = vmul.f32 %v6803_v50, %v13887_v56  ;;  %v6401_v54 = vpop.f32.mrf.mxu3  ;;  %v6966_v15 = vmul.f32 1.442695, %v6948_v3 }
0x153c   : > { %v8876_v58 = vpop.eup %8875  ;;  %v13911_v2 = vadd.f32 1.0, %v6518_v13  ;;  %v13920_v17 = vadd.f32 %v6401_v54, %v13706_v30  ;;  %v6482_v38 = vsel %vm6466_vm12, 1.0, %v9061_v53  ;;  %vm6596_vm1 = vweird.f32 %v13884_v27 }
0x153d   : > { %v6898_v16 = vadd.f32 0.2548296, %v6882_v18  ;;  %v6584_v31 = vsel %vm6583_vm11, %v8874_v6, %v6580_v42  ;;  %v6835_v48 = vadd.f32 1.4214138, %v6819_v5  ;;  %v6592_v9 = vmul.f32 %v8876_v58, %v13884_v27 }
0x153e   : > { %v13909_v61 = vsel %vm6586_vm14, %v6588_v45, %v6584_v31  ;;  %v8878_v28 = vpop.eup %8877  ;;  %8879 = vrcp.f32 %v13911_v2  ;;  %v6600_v42 = vand.u32 2147483647, %v13884_v27  ;;  %v6602_v5 = vand.u32 2147483648, %v13884_v27 }
0x153f   : > { %v6914_v60 = vmul.f32 %v6898_v16, %v13837_v7  ;;  %v6788_v19 = vmul.f32 1.0614054, %v13909_v61  ;;  %v6851_v6 = vmul.f32 %v6835_v48, %v13887_v56  ;;  %v6593_v46 = vsub.f32 1.0, %v6592_v9 }
0x1540   : > { %8881 = vpow2.f32 %v6964_v51  ;;  %vm6597_vm15 = vweird.f32 %v8876_v58  ;;  %v13931_v34 = vmul.f32 0.70710677, %v13920_v17  ;;  %vm6601_vm4 = vcmp.eq.f32.partialorder %v6600_v42, 8.507059e+37 }
0x1541   : > { %v6994_v50 = vmul.f32 %v8878_v28, %v6914_v60  ;;  %v6804_v7 = vadd.f32 -1.4531521, %v6788_v19  ;;  %v6867_v18 = vadd.f32 -0.28449672, %v6851_v6  ;;  %v6594_v13 = vmul.f32 %v8876_v58, %v6593_v46  ;;  %vm6598_vm3 = vmor %vm6596_vm1, %vm6597_vm15 }
0x1542   : > { %8883 = vpow2.f32 %v6966_v15  ;;  %v6603_v19 = vor.u32 1.1754944e-38, %v6602_v5  ;;  %v13935_v9 = vand.u32 2147483647, %v13931_v34  ;;  %v6933_v27 = vsub.f32 0.0, %v13860_v20 }
0x1543   : > { %v7010_v45 = vsub.f32 1.0, %v6994_v50  ;;  %v6820_v3 = vmul.f32 %v6804_v7, %v13909_v61  ;;  %v6883_v16 = vmul.f32 %v6867_v18, %v13887_v56  ;;  %v6595_v48 = vadd.f32 %v8876_v58, %v6594_v13 }
0x1544   : > { %v8880_v51 = vpop.eup %8879  ;;  %v6615_v18 = vand.u32 2147483647, %v13911_v2  ;;  %vm6611_vm5 = vweird.f32 %v13911_v2  ;;  %vm6468_vm8 = vcmp.ge.f32.partialorder %v13794_v11, 0.0  ;;  %vm6469_vm10 = vcmp.ge.f32.partialorder %v13851_v55, 0.0 }
0x1545   : > { %v7026_v31 = vmul.f32 %v7010_v45, %v6482_v38  ;;  %v6836_v54 = vadd.f32 1.4214138, %v6820_v3  ;;  %v6899_v60 = vadd.f32 0.2548296, %v6883_v16  ;;  %v6599_v15 = vsel %vm6598_vm3, %v8876_v58, %v6595_v48 }
0x1546   : > { %v6607_v50 = vmul.f32 %v8880_v51, %v13911_v2  ;;  %v8882_v7 = vpop.eup %8881  ;;  %v13940_v46 = vsel %vm6601_vm4, %v6603_v19, %v6599_v15  ;;  %vm6612_vm2 = vweird.f32 %v8880_v51  ;;  %v6617_v58 = vand.u32 2147483648, %v13911_v2 }
0x1547   : > { %v7042_v28 = vadd.f32 1.0, %v7026_v31  ;;  %v6852_v6 = vmul.f32 %v6836_v54, %v13909_v61  ;;  %v6915_v38 = vmul.f32 %v6899_v60, %v13887_v56  ;;  %v6789_v45 = vmul.f32 1.0614054, %v13940_v46  ;;  %v6324_v54 = vpop.f32.mrf.mxu1  ;;  %vm6613_vm6 = vmor %vm6611_vm5, %vm6612_vm2 }
0x1548   : > { %v6608_v3 = vsub.f32 1.0, %v6607_v50  ;;  %v8884_v13 = vpop.eup %8883  ;;  %v6519_v31 = vmul.f32 0.3275911, %v13935_v9  ;;  %vm6616_vm7 = vcmp.eq.f32.partialorder %v6615_v18, 8.507059e+37  ;;  %v6484_v18 = vsel %vm6468_vm8, 1.0, %v9061_v53 }
0x1549   : > { %v7058_v42 = vmul.f32 %v7042_v28, %v6434_v59  ;;  %v6868_v5 = vadd.f32 -0.28449672, %v6852_v6  ;;  %v6995_v16 = vmul.f32 %v8882_v7, %v6915_v38  ;;  %v6805_v60 = vadd.f32 -1.4531521, %v6789_v45 }
0x154a   : > { %v6609_v19 = vmul.f32 %v8880_v51, %v6608_v3  ;;  %v6483_v59 = vsel %vm6467_vm0, 1.0, %v9061_v53  ;;  %v6949_v6 = vmul.f32 %v6933_v27, %v13860_v20  ;;  %v13953_v15 = vadd.f32 1.0, %v6519_v31 }
0x154b   : > { %v7074_v56 = vmul.f32 %v7058_v42, %v13863_v57  ;;  %v6884_v48 = vmul.f32 %v6868_v5, %v13909_v61  ;;  %v7011_v28 = vsub.f32 1.0, %v6995_v16  ;;  %v6821_v7 = vmul.f32 %v6805_v60, %v13940_v46 }
0x154c   : > { %v6610_v38 = vadd.f32 %v8880_v51, %v6609_v19  ;;  %v6435_v57 = vmul.f32 0.5, %v13759_v37  ;;  %v6618_v5 = vor.u32 1.1754944e-38, %v6617_v58  ;;  %8885 = vrcp.f32 %v13953_v15 }
0x154d   : > { %v6900_v50 = vadd.f32 0.2548296, %v6884_v48  ;;  %7123 = vmatmul.f32.vlgmr.msrb.gmra.mxu2 %v7074_v56  ;;  %v7027_v42 = vmul.f32 %v7011_v28, %v6483_v59  ;;  %v6837_v20 = vadd.f32 1.4214138, %v6821_v7  ;;  %v6968_v3 = vmul.f32 1.442695, %v6949_v6 }
0x154e   : > { %v6614_v27 = vsel %vm6613_vm6, %v8880_v51, %v6610_v38  ;;  %v6934_v31 = vsub.f32 0.0, %v13899_v0  ;;  %v6325_v58 = vadd.f32 %v6324_v54, %v13842_v52  ;;  %v6436_v38 = vmul.f32 0.5, %v13784_v32 }
0x154f   : > { %v6916_v44 = vmul.f32 %v6900_v50, %v13909_v61  ;;  %v7043_v45 = vadd.f32 1.0, %v7027_v42  ;;  %v6619_v16 = vsel %vm6616_vm7, %v6618_v5, %v6614_v27  ;;  %v6853_v37 = vmul.f32 %v6837_v20, %v13940_v46  ;;  %v6327_v60 = vpop.f32.mrf.mxu1 }
0x1550   : > { %v6790_v56 = vmul.f32 1.0614054, %v6619_v16  ;;  %8887 = vpow2.f32 %v6968_v3  ;;  %v6950_v28 = vmul.f32 %v6934_v31, %v13899_v0  ;;  %v6328_v54 = vadd.f32 %v6327_v60, %v13842_v52 }
0x1551   : > { %v6996_v2 = vmul.f32 %v8884_v13, %v6916_v44  ;;  %v7059_v48 = vmul.f32 %v7043_v45, %v6435_v57  ;;  %v6869_v61 = vadd.f32 -0.28449672, %v6853_v37  ;;  %v6630_v0 = vand.u32 2147483647, %v13953_v15 }
0x1552   : > { %v6806_v59 = vadd.f32 -1.4531521, %v6790_v56  ;;  %v8886_v51 = vpop.eup %8885  ;;  %v6970_v20 = vmul.f32 1.442695, %v6950_v28  ;;  %v6632_v27 = vand.u32 2147483648, %v13953_v15  ;;  %vm6626_vm11 = vweird.f32 %v13953_v15 }
0x1553   : > { %v7012_v19 = vsub.f32 1.0, %v6996_v2  ;;  %v7075_v6 = vmul.f32 %v7059_v48, %v6325_v58  ;;  %v6885_v11 = vmul.f32 %v6869_v61, %v13940_v46  ;;  %v6622_v7 = vmul.f32 %v8886_v51, %v13953_v15 }
0x1554   : > { %v6822_v13 = vmul.f32 %v6806_v59, %v6619_v16  ;;  %vm6627_vm9 = vweird.f32 %v8886_v51  ;;  %8889 = vpow2.f32 %v6970_v20  ;;  %v6633_v60 = vor.u32 1.1754944e-38, %v6632_v27 }
0x1555   : > { %v7028_v50 = vmul.f32 %v7012_v19, %v6484_v18  ;;  %7126 = vmatmul.f32.gmra.mxu2 %v7075_v6  ;;  %v6901_v42 = vadd.f32 0.2548296, %v6885_v11  ;;  %v6623_v44 = vsub.f32 1.0, %v6622_v7  ;;  %vm6628_vm12 = vmor %vm6626_vm11, %vm6627_vm9  ;;  %vm6631_vm14 = vcmp.eq.f32.partialorder %v6630_v0, 8.507059e+37  ;;  %v5997_v11 = vpop.xlane.xlu2 %5996 }
0x1556   : > { %v6838_v5 = vadd.f32 1.4214138, %v6822_v13  ;;  %v8888_v37 = vpop.eup %8887  ;;  %v6485_v18 = vsel %vm6469_vm10, 1.0, %v9061_v53  ;;  %v6935_v55 = vsub.f32 0.0, %v13935_v9  ;;  %v6437_v13 = vmul.f32 0.5, %v13828_v8 }
0x1557   : > { %v7044_v57 = vadd.f32 1.0, %v7028_v50  ;;  %v6917_v3 = vmul.f32 %v6901_v42, %v13940_v46  ;;  %v6624_v2 = vmul.f32 %v8886_v51, %v6623_v44  ;;  %v6330_v46 = vpop.f32.mrf.mxu1  ;;  %vm6470_vm15 = vcmp.ge.f32.partialorder %v13890_v35, 0.0 }
0x1558   : > { %v6854_v31 = vmul.f32 %v6838_v5, %v6619_v16  ;;  %v6951_v42 = vmul.f32 %v6935_v55, %v13935_v9  ;;  %v6015_v0 = vmul.f32 %v5997_v11, %v14891_v24  ;;  %v6486_v8 = vsel %vm6470_vm15, 1.0, %v9061_v53 }
0x1559   : > { %v7060_v45 = vmul.f32 %v7044_v57, %v6436_v38  ;;  %v6997_v32 = vmul.f32 %v8888_v37, %v6917_v3  ;;  %v6625_v58 = vadd.f32 %v8886_v51, %v6624_v2  ;;  %v6438_v9 = vmul.f32 0.5, %v13874_v10 }
0x155a   : > { %v6870_v56 = vadd.f32 -0.28449672, %v6854_v31  ;;  %v8890_v57 = vpop.eup %8889  ;;  %v6972_v31 = vmul.f32 1.442695, %v6951_v42  ;;  %v6031_v37 = vadd.f32 1e-05, %v6015_v0 }
0x155b   : > { %v7076_v48 = vmul.f32 %v7060_v45, %v6328_v54  ;;  %v7013_v19 = vsub.f32 1.0, %v6997_v32  ;;  %v6629_v59 = vsel %vm6628_vm12, %v8886_v51, %v6625_v58  ;;  %v6331_v51 = vadd.f32 %v6330_v46, %v13842_v52 }
0x155c   : > { %v6886_v61 = vmul.f32 %v6870_v56, %v6619_v16  ;;  %v6634_v28 = vsel %vm6631_vm14, %v6633_v60, %v6629_v59  ;;  %8891 = vpow2.f32 %v6972_v31  ;;  %vm6471_vm0 = vcmp.ge.f32.partialorder %v13931_v34, 0.0 }
0x155d   : > { %7129 = vmatmul.f32.gmra.mxu2 %v7076_v48  ;;  %v7029_v15 = vmul.f32 %v7013_v19, %v6485_v18  ;;  %v6791_v50 = vmul.f32 1.0614054, %v6634_v28  ;;  %8893 = vrsqrt.f32 %v6031_v37  ;;  %vm6179_vm5 = vweird.f32 %v6031_v37 }
0x155e   : > { %v6902_v6 = vadd.f32 0.2548296, %v6886_v61 }
0x155f   : > { %v7045_v7 = vadd.f32 1.0, %v7029_v15  ;;  %v6807_v38 = vadd.f32 -1.4531521, %v6791_v50  ;;  %v6333_v32 = vpop.f32.mrf.mxu1  ;;  %v6487_v50 = vsel %vm6471_vm0, 1.0, %v9061_v53 }
0x1560   : > { %v6918_v54 = vmul.f32 %v6902_v6, %v6619_v16  ;;  %v6334_v35 = vadd.f32 %v6333_v32, %v13842_v52 }
0x1561   : > { %v7061_v5 = vmul.f32 %v7045_v7, %v6437_v13  ;;  %v6823_v20 = vmul.f32 %v6807_v38, %v6634_v28  ;;  %v6439_v38 = vmul.f32 0.5, %v13920_v17 }
0x1562   : > { %v6998_v44 = vmul.f32 %v8890_v57, %v6918_v54  ;;  %v8892_v46 = vpop.eup %8891 }
0x1563   : > { %v6839_v45 = vadd.f32 1.4214138, %v6823_v20  ;;  %v7077_v3 = vmul.f32 %v7061_v5, %v6331_v51  ;;  %v8894_v15 = vpop.eup %8893 }
0x1564   : > { %v7014_v27 = vsub.f32 1.0, %v6998_v44  ;;  %v6174_v13 = vmul.f32 %v8894_v15, %v6031_v37  ;;  %vm6180_vm3 = vweird.f32 %v8894_v15 }
0x1565   : > { %v6855_v2 = vmul.f32 %v6839_v45, %v6634_v28  ;;  %7132 = vmatmul.f32.gmra.mxu2 %v7077_v3  ;;  %vm6181_vm6 = vmor %vm6179_vm5, %vm6180_vm3 }
0x1566   : > { %v7030_v16 = vmul.f32 %v7014_v27, %v6486_v8  ;;  %v6175_v57 = vmul.f32 %v8894_v15, %v6174_v13 }
0x1567   : > { %v6871_v58 = vadd.f32 -0.28449672, %v6855_v2  ;;  %v6336_v54 = vpop.f32.mrf.mxu1  ;;  %v8937_v2 = vld [vmem:[%s14349_s3 + $0x7] ss:$0 sm:$0xff] }
0x1568   : > { %v7046_v56 = vadd.f32 1.0, %v7030_v16  ;;  %v6337_v51 = vadd.f32 %v6336_v54, %v13842_v52  ;;  %v6176_v44 = vmul.f32 0.5, %v6175_v57 }
0x1569   : > { %v6887_v60 = vmul.f32 %v6871_v58, %v6634_v28 }
0x156a   : > { %v7062_v48 = vmul.f32 %v7046_v56, %v6438_v9  ;;  %v6177_v0 = vsub.f32 1.5, %v6176_v44  ;;  %v8938_v56 = vld [vmem:[%s14349_s3 + $0x10] ss:$0 sm:$0xff] }
0x156b   : > { %v6903_v19 = vadd.f32 0.2548296, %v6887_v60 }
0x156c   : > { %v7078_v61 = vmul.f32 %v7062_v48, %v6334_v35  ;;  %v6178_v3 = vmul.f32 %v8894_v15, %v6177_v0 }
0x156d   : > { %v6919_v59 = vmul.f32 %v6903_v19, %v6634_v28 }
0x156e   : > { %7135 = vmatmul.f32.gmra.mxu2 %v7078_v61  ;;  %v6182_v16 = vsel %vm6181_vm6, %v8894_v15, %v6178_v3 }
0x156f   : > { %v6999_v18 = vmul.f32 %v8892_v46, %v6919_v59  ;;  %v6207_v9 = vmul.f32 %v6182_v16, %v13559_v4 }
0x1571   : > { %v5994_v55 = vpop.xlane.xlu0 %5993  ;;  %v7015_v6 = vsub.f32 1.0, %v6999_v18  ;;  %v6223_v35 = vmul.f32 %v8937_v2, %v6207_v9 }
0x1572   : > { %v6014_v10 = vmul.f32 %v5994_v55, %v14891_v24 }
0x1573   : > { %v7031_v7 = vmul.f32 %v7015_v6, %v6487_v50  ;;  %v6239_v19 = vadd.f32 %v8938_v56, %v6223_v35 }
0x1574   : > { %v6030_v11 = vadd.f32 1e-05, %v6014_v10 }
0x1575   : > { %v7047_v28 = vadd.f32 1.0, %v7031_v7 }
0x1576   : > { %8895 = vrsqrt.f32 %v6030_v11  ;;  %vm6169_vm4 = vweird.f32 %v6030_v11 }
0x1577   : > { %v7063_v34 = vmul.f32 %v7047_v28, %v6439_v38 }
0x1579   : > { %v7079_v42 = vmul.f32 %v7063_v34, %v6337_v51 }
0x157b   : > { %7138 = vmatmul.f32.gmra.mxu2 %v7079_v42 }
0x157c   : > { %v8896_v5 = vpop.eup %8895 }
0x157d   : > { %v6164_v20 = vmul.f32 %v8896_v5, %v6030_v11  ;;  %vm6170_vm1 = vweird.f32 %v8896_v5 }
0x157e   : > { %vm6171_vm2 = vmor %vm6169_vm4, %vm6170_vm1 }
0x157f   : > { %v6165_v24 = vmul.f32 %v8896_v5, %v6164_v20 }
0x1581   : > { %v6166_v27 = vmul.f32 0.5, %v6165_v24 }
0x1583   : > { %v6167_v45 = vsub.f32 1.5, %v6166_v27 }
0x1585   : > { %v6168_v8 = vmul.f32 %v8896_v5, %v6167_v45 }
0x1587   : > { %v6172_v17 = vsel %vm6171_vm2, %v8896_v5, %v6168_v8 }
0x1588   : > { %v6206_v31 = vmul.f32 %v6172_v17, %v13661_v39  ;;  %v6339_v17 = vpop.f32.mrf.mxu1 }
0x1589   : > { %v14046_v35 = vadd.f32 %v6339_v17, %v13842_v52 }
0x158a   : > { %v6222_v32 = vmul.f32 %v8937_v2, %v6206_v31 }
0x158c   : > { %v6238_v58 = vadd.f32 %v8938_v56, %v6222_v32 }
0x158e   : > { %7795 = vmatmul.msk.f32.gmra.mxu1 %vm409_vm13, %v6238_v58  ;;  %v6404_v37 = vpop.f32.mrf.mxu3  ;;  %7811 = vmatmul.msk.f32.gmra.mxu3 %vm409_vm13, %v6238_v58 }
0x158f   : > { %v6405_v39 = vadd.f32 %v6404_v37, %v13706_v30 }
0x1591   : > { %v14003_v48 = vmul.f32 0.70710677, %v6405_v39 }
0x1593   : > { %v6504_v60 = vand.u32 2147483647, %v14003_v48  ;;  %vm6472_vm1 = vcmp.ge.f32.partialorder %v14003_v48, 0.0 }
0x1595   : > { %v6520_v61 = vmul.f32 0.3275911, %v6504_v60  ;;  %v6936_v27 = vsub.f32 0.0, %v6504_v60 }
0x1596   : > { %7796 = vmatmul.msk.f32.gmra.mxu1 %vm409_vm13, %v6239_v19  ;;  %v6407_v4 = vpop.f32.mrf.mxu3  ;;  %7812 = vmatmul.msk.f32.gmra.mxu3 %vm409_vm13, %v6239_v19  ;;  %v14048_v19 = vmul.f32 0.5, %v6405_v39 }
0x1597   : > { %v6536_v59 = vadd.f32 1.0, %v6520_v61  ;;  %v14009_v46 = vadd.f32 %v6407_v4, %v13706_v30  ;;  %v6952_v32 = vmul.f32 %v6936_v27, %v6504_v60 }
0x1599   : > { %8897 = vrcp.f32 %v6536_v59  ;;  %v14012_v18 = vmul.f32 0.70710677, %v14009_v46  ;;  %v6647_v38 = vand.u32 2147483648, %v6536_v59  ;;  %v6645_v51 = vand.u32 2147483647, %v6536_v59 }
0x159a   : > { %vm6641_vm8 = vweird.f32 %v6536_v59 }
0x159b   : > { %v14015_v55 = vand.u32 2147483647, %v14012_v18  ;;  %v6648_v5 = vor.u32 1.1754944e-38, %v6647_v38  ;;  %vm6646_vm10 = vcmp.eq.f32.partialorder %v6645_v51, 8.507059e+37  ;;  %vm6473_vm2 = vcmp.ge.f32.partialorder %v14012_v18, 0.0 }
0x159c   : > { %v6489_v48 = vsel %vm6473_vm2, 1.0, %v9061_v53 }
0x159d   : > { %v6521_v15 = vmul.f32 0.3275911, %v14015_v55  ;;  %v6937_v39 = vsub.f32 0.0, %v14015_v55 }
0x159e   : > { %v6410_v10 = vpop.f32.mrf.mxu3  ;;  %7813 = vmatmul.msk.f32.gmra.mxu3 %vm409_vm13, %v13604_v22 }
0x159f   : > { %v8898_v6 = vpop.eup %8897  ;;  %v14021_v50 = vadd.f32 %v6410_v10, %v13706_v30  ;;  %v6537_v13 = vadd.f32 1.0, %v6521_v15 }
0x15a0   : > { %v6637_v11 = vmul.f32 %v8898_v6, %v6536_v59  ;;  %vm6642_vm7 = vweird.f32 %v8898_v6 }
0x15a1   : > { %v14024_v7 = vmul.f32 0.70710677, %v14021_v50  ;;  %8899 = vrcp.f32 %v6537_v13  ;;  %vm6643_vm9 = vmor %vm6641_vm8, %vm6642_vm7  ;;  %v6662_v9 = vand.u32 2147483648, %v6537_v13  ;;  %v6660_v58 = vand.u32 2147483647, %v6537_v13 }
0x15a2   : > { %v6638_v54 = vsub.f32 1.0, %v6637_v11  ;;  %vm6656_vm12 = vweird.f32 %v6537_v13  ;;  %v6974_v11 = vmul.f32 1.442695, %v6952_v32 }
0x15a3   : > { %v14027_v28 = vand.u32 2147483647, %v14024_v7  ;;  %vm6661_vm15 = vcmp.eq.f32.partialorder %v6660_v58, 8.507059e+37 }
0x15a4   : > { %v6639_v57 = vmul.f32 %v8898_v6, %v6638_v54  ;;  %v6663_v54 = vor.u32 1.1754944e-38, %v6662_v9 }
0x15a5   : > { %v6522_v22 = vmul.f32 0.3275911, %v14027_v28  ;;  %v6938_v27 = vsub.f32 0.0, %v14027_v28 }
0x15a6   : > { %v6640_v34 = vadd.f32 %v8898_v6, %v6639_v57  ;;  %v6413_v42 = vpop.f32.mrf.mxu3 }
0x15a7   : > { %v14030_v44 = vadd.f32 1.0, %v6522_v22  ;;  %v14033_v20 = vadd.f32 %v6413_v42, %v13706_v30  ;;  %v8900_v24 = vpop.eup %8899 }
0x15a8   : > { %v6644_v0 = vsel %vm6643_vm9, %v8898_v6, %v6640_v34  ;;  %v6652_v3 = vmul.f32 %v8900_v24, %v6537_v13  ;;  %vm6657_vm11 = vweird.f32 %v8900_v24 }
0x15a9   : > { %v14035_v45 = vsel %vm6646_vm10, %v6648_v5, %v6644_v0  ;;  %8901 = vrcp.f32 %v14030_v44  ;;  %v14040_v16 = vmul.f32 0.70710677, %v14033_v20  ;;  %vm6658_vm14 = vmor %vm6656_vm12, %vm6657_vm11  ;;  %v6677_v0 = vand.u32 2147483648, %v14030_v44 }
0x15aa   : > { %v6792_v8 = vmul.f32 1.0614054, %v14035_v45  ;;  %v6653_v31 = vsub.f32 1.0, %v6652_v3  ;;  %vm6671_vm3 = vweird.f32 %v14030_v44 }
0x15ab   : > { %v14043_v37 = vand.u32 2147483647, %v14040_v16  ;;  %v6678_v58 = vor.u32 1.1754944e-38, %v6677_v0 }
0x15ac   : > { %v6808_v2 = vadd.f32 -1.4531521, %v6792_v8  ;;  %v6654_v56 = vmul.f32 %v8900_v24, %v6653_v31  ;;  %v6675_v8 = vand.u32 2147483647, %v14030_v44  ;;  %v6953_v31 = vmul.f32 %v6937_v39, %v14015_v55 }
0x15ad   : > { %v6523_v60 = vmul.f32 0.3275911, %v14043_v37  ;;  %v6939_v18 = vsub.f32 0.0, %v14043_v37 }
0x15ae   : > { %v6824_v61 = vmul.f32 %v6808_v2, %v14035_v45  ;;  %v6416_v4 = vpop.f32.mrf.mxu3  ;;  %v6655_v15 = vadd.f32 %v8900_v24, %v6654_v56  ;;  %vm6676_vm5 = vcmp.eq.f32.partialorder %v6675_v8, 8.507059e+37 }
0x15af   : > { %v8902_v59 = vpop.eup %8901  ;;  %v14053_v10 = vadd.f32 %v6416_v4, %v13706_v30  ;;  %v14057_v51 = vadd.f32 1.0, %v6523_v60 }
0x15b0   : > { %v6840_v6 = vadd.f32 1.4214138, %v6824_v61  ;;  %v6667_v38 = vmul.f32 %v8902_v59, %v14030_v44  ;;  %v6659_v57 = vsel %vm6658_vm14, %v8900_v24, %v6655_v15  ;;  %vm6672_vm0 = vweird.f32 %v8902_v59 }
0x15b1   : > { %v14060_v13 = vsel %vm6661_vm15, %v6663_v54, %v6659_v57  ;;  %v14063_v42 = vmul.f32 0.70710677, %v14053_v10  ;;  %8903 = vrcp.f32 %v14057_v51  ;;  %vm6673_vm4 = vmor %vm6671_vm3, %vm6672_vm0  ;;  %v6954_v61 = vmul.f32 %v6938_v27, %v14027_v28  ;;  %v7191_v57 = vld [vmem:[#allocation2 + $0xf8] sm:$0xff] }
0x15b2   : > { %v6856_v22 = vmul.f32 %v6840_v6, %v14035_v45  ;;  %v6668_v34 = vsub.f32 1.0, %v6667_v38  ;;  %v6793_v5 = vmul.f32 1.0614054, %v14060_v13  ;;  %8905 = vpow2.f32 %v6974_v11  ;;  %7253 = vmatpush.msra.mxu0 %v7191_v57 }
0x15b3   : > { %v14072_v2 = vand.u32 2147483647, %v14063_v42  ;;  %v6976_v54 = vmul.f32 1.442695, %v6953_v31  ;;  %v6488_v28 = vsel %vm6472_vm1, 1.0, %v9061_v53  ;;  %vm6686_vm7 = vweird.f32 %v14057_v51 }
0x15b4   : > { %v6872_v24 = vadd.f32 -0.28449672, %v6856_v22  ;;  %v6669_v3 = vmul.f32 %v8902_v59, %v6668_v34  ;;  %v6809_v17 = vadd.f32 -1.4531521, %v6793_v5  ;;  %v6978_v0 = vmul.f32 1.442695, %v6954_v61 }
0x15b5   : > { %v6524_v4 = vmul.f32 0.3275911, %v14072_v2  ;;  %v6690_v31 = vand.u32 2147483647, %v14057_v51  ;;  %v7189_v61 = vld [vmem:[#allocation2 + $0x78] sm:$0xff]  ;;  %vm6474_vm15 = vcmp.ge.f32.partialorder %v14024_v7, 0.0 }
0x15b6   : > { %v6888_v32 = vmul.f32 %v6872_v24, %v14035_v45  ;;  %v6670_v9 = vadd.f32 %v8902_v59, %v6669_v3  ;;  %v6825_v56 = vmul.f32 %v6809_v17, %v14060_v13  ;;  %v6419_v60 = vpop.f32.mrf.mxu3  ;;  %v7190_v24 = vld [vmem:[#allocation2 + $0xb8] sm:$0xff]  ;;  %vm6475_vm1 = vcmp.ge.f32.partialorder %v14040_v16, 0.0 }
0x15b7   : > { %v8904_v6 = vpop.eup %8903  ;;  %v14083_v44 = vadd.f32 1.0, %v6524_v4  ;;  %v14094_v27 = vadd.f32 %v6419_v60, %v13706_v30  ;;  %7254 = vmatpush.msra.mxu0 %v7190_v24  ;;  %vm6691_vm9 = vcmp.eq.f32.partialorder %v6690_v31, 8.507059e+37 }
0x15b8   : > { %v6904_v15 = vadd.f32 0.2548296, %v6888_v32  ;;  %v6674_v55 = vsel %vm6673_vm4, %v8902_v59, %v6670_v9  ;;  %v6841_v11 = vadd.f32 1.4214138, %v6825_v56  ;;  %v6682_v59 = vmul.f32 %v8904_v6, %v14057_v51  ;;  %v8906_v34 = vpop.eup %8905 }
0x15b9   : > { %v14081_v38 = vsel %vm6676_vm5, %v6678_v58, %v6674_v55  ;;  %8907 = vrcp.f32 %v14083_v44  ;;  %v6692_v32 = vand.u32 2147483648, %v14057_v51  ;;  %vm6687_vm6 = vweird.f32 %v8904_v6  ;;  %7255 = vmatpush.msra.mxu0 %v7189_v61  ;;  %v7188_v55 = vld [vmem:[#allocation2 + $0x38] sm:$0xff] }
0x15ba   : > { %v6920_v39 = vmul.f32 %v6904_v15, %v14035_v45  ;;  %v6794_v22 = vmul.f32 1.0614054, %v14081_v38  ;;  %v6857_v5 = vmul.f32 %v6841_v11, %v14060_v13  ;;  %v6683_v8 = vsub.f32 1.0, %v6682_v59  ;;  %vm6688_vm8 = vmor %vm6686_vm7, %vm6687_vm6 }
0x15bb   : > { %8909 = vpow2.f32 %v6976_v54  ;;  %v14105_v15 = vmul.f32 0.70710677, %v14094_v27  ;;  %v6693_v59 = vor.u32 1.1754944e-38, %v6692_v32  ;;  %7256 = vmatpush.msra.mxu0 %v7188_v55  ;;  %v6705_v31 = vand.u32 2147483647, %v14083_v44 }
0x15bc   : > { %v7000_v3 = vmul.f32 %v8906_v34, %v6920_v39  ;;  %v6810_v45 = vadd.f32 -1.4531521, %v6794_v22  ;;  %v6873_v17 = vadd.f32 -0.28449672, %v6857_v5  ;;  %v6684_v58 = vmul.f32 %v8904_v6, %v6683_v8  ;;  %v6342_v39 = vpop.f32.mrf.mxu1 }
0x15bd   : > { %8911 = vpow2.f32 %v6978_v0  ;;  %v14110_v34 = vand.u32 2147483647, %v14105_v15  ;;  %vm6701_vm11 = vweird.f32 %v14083_v44  ;;  %vm6706_vm14 = vcmp.eq.f32.partialorder %v6705_v31, 8.507059e+37 }
0x15be   : > { %v7016_v9 = vsub.f32 1.0, %v7000_v3  ;;  %v6826_v56 = vmul.f32 %v6810_v45, %v14081_v38  ;;  %v6889_v4 = vmul.f32 %v6873_v17, %v14060_v13  ;;  %v6685_v54 = vadd.f32 %v8904_v6, %v6684_v58  ;;  %v6422_v3 = vpop.f32.mrf.mxu3 }
0x15bf   : > { %v8908_v57 = vpop.eup %8907  ;;  %v6955_v17 = vmul.f32 %v6939_v18, %v14043_v37  ;;  %v6525_v55 = vmul.f32 0.3275911, %v14110_v34  ;;  %vm6476_vm5 = vcmp.ge.f32.partialorder %v14063_v42, 0.0 }
0x15c0   : > { %v7032_v60 = vmul.f32 %v7016_v9, %v6488_v28  ;;  %v6842_v11 = vadd.f32 1.4214138, %v6826_v56  ;;  %v6905_v22 = vadd.f32 0.2548296, %v6889_v4  ;;  %v6689_v24 = vsel %vm6688_vm8, %v8904_v6, %v6685_v54 }
0x15c1   : > { %v6697_v28 = vmul.f32 %v8908_v57, %v14083_v44  ;;  %v8910_v45 = vpop.eup %8909  ;;  %v14115_v8 = vsel %vm6691_vm9, %v6693_v59, %v6689_v24  ;;  %v6707_v4 = vand.u32 2147483648, %v14083_v44  ;;  %vm6702_vm10 = vweird.f32 %v8908_v57 }
0x15c2   : > { %v7048_v5 = vadd.f32 1.0, %v7032_v60  ;;  %v6858_v0 = vmul.f32 %v6842_v11, %v14081_v38  ;;  %v6921_v51 = vmul.f32 %v6905_v22, %v14060_v13  ;;  %v6795_v56 = vmul.f32 1.0614054, %v14115_v8  ;;  %vm6703_vm12 = vmor %vm6701_vm11, %vm6702_vm10 }
0x15c3   : > { %v6698_v58 = vsub.f32 1.0, %v6697_v28  ;;  %v8912_v61 = vpop.eup %8911  ;;  %v14124_v13 = vadd.f32 %v6422_v3, %v13706_v30  ;;  %v14128_v54 = vadd.f32 1.0, %v6525_v55  ;;  %v6708_v28 = vor.u32 1.1754944e-38, %v6707_v4 }
0x15c4   : > { %v7064_v32 = vmul.f32 %v7048_v5, %v14048_v19  ;;  %v6874_v9 = vadd.f32 -0.28449672, %v6858_v0  ;;  %v7001_v6 = vmul.f32 %v8910_v45, %v6921_v51  ;;  %v6811_v37 = vadd.f32 -1.4531521, %v6795_v56  ;;  %v6345_v56 = vpop.f32.mrf.mxu1 }
0x15c5   : > { %v6699_v18 = vmul.f32 %v8908_v57, %v6698_v58  ;;  %v6940_v19 = vsub.f32 0.0, %v14072_v2  ;;  %8913 = vrcp.f32 %v14128_v54  ;;  %v14135_v3 = vmul.f32 0.70710677, %v14124_v13 }
0x15c6   : > { %v6890_v60 = vmul.f32 %v6874_v9, %v14081_v38  ;;  %v7017_v11 = vsub.f32 1.0, %v7001_v6  ;;  %v7080_v22 = vmul.f32 %v7064_v32, %v14046_v35  ;;  %v6827_v5 = vmul.f32 %v6811_v37, %v14115_v8 }
0x15c7   : > { %v6700_v0 = vadd.f32 %v8908_v57, %v6699_v18  ;;  %v6441_v35 = vmul.f32 0.5, %v14009_v46  ;;  %v6980_v58 = vmul.f32 1.442695, %v6955_v17  ;;  %v6343_v55 = vadd.f32 %v6342_v39, %v13842_v52  ;;  %v14152_v46 = vld [vmem:[%s14349_s3 + $0x12] ss:$0 sm:$0xff] }
0x15c8   : > { %v6906_v59 = vadd.f32 0.2548296, %v6890_v60  ;;  %v7033_v24 = vmul.f32 %v7017_v11, %v6489_v48  ;;  %7141 = vmatmul.f32.gmra.mxu2 %v7080_v22  ;;  %v6843_v51 = vadd.f32 1.4214138, %v6827_v5  ;;  %v14147_v31 = vand.u32 2147483647, %v14135_v3 }
0x15c9   : > { %v6704_v9 = vsel %vm6703_vm12, %v8908_v57, %v6700_v0  ;;  %v6956_v57 = vmul.f32 %v6940_v19, %v14072_v2  ;;  %v6346_v7 = vadd.f32 %v6345_v56, %v13842_v52  ;;  %v6490_v18 = vsel %vm6474_vm15, 1.0, %v9061_v53 }
0x15ca   : > { %v6922_v45 = vmul.f32 %v6906_v59, %v14081_v38  ;;  %v7049_v32 = vadd.f32 1.0, %v7033_v24  ;;  %v14139_v44 = vsel %vm6706_vm14, %v6708_v28, %v6704_v9  ;;  %v6859_v6 = vmul.f32 %v6843_v51, %v14115_v8 }
0x15cb   : > { %v6796_v4 = vmul.f32 1.0614054, %v14139_v44  ;;  %v8914_v37 = vpop.eup %8913  ;;  %8915 = vpow2.f32 %v6980_v58  ;;  %v6526_v39 = vmul.f32 0.3275911, %v14147_v31  ;;  %v6442_v0 = vmul.f32 0.5, %v14021_v50 }
0x15cc   : > { %v7002_v48 = vmul.f32 %v8912_v61, %v6922_v45  ;;  %v7065_v38 = vmul.f32 %v7049_v32, %v6441_v35  ;;  %v6875_v61 = vadd.f32 -0.28449672, %v6859_v6  ;;  %v6712_v59 = vmul.f32 %v8914_v37, %v14128_v54 }
0x15cd   : > { %v6812_v60 = vadd.f32 -1.4531521, %v6796_v4  ;;  %v6982_v24 = vmul.f32 1.442695, %v6956_v57  ;;  %v14161_v28 = vadd.f32 1.0, %v6526_v39  ;;  %vm6717_vm0 = vweird.f32 %v8914_v37  ;;  %v6348_v57 = vpop.f32.mrf.mxu1 }
0x15ce   : > { %v7018_v17 = vsub.f32 1.0, %v7002_v48  ;;  %v7081_v2 = vmul.f32 %v7065_v38, %v6343_v55  ;;  %v6891_v19 = vmul.f32 %v6875_v61, %v14115_v8  ;;  %v6713_v32 = vsub.f32 1.0, %v6712_v59 }
0x15cf   : > { %v6828_v22 = vmul.f32 %v6812_v60, %v14139_v44  ;;  %v6720_v56 = vand.u32 2147483647, %v14128_v54  ;;  %v6722_v58 = vand.u32 2147483648, %v14128_v54  ;;  %8917 = vrcp.f32 %v14161_v28 }
0x15d0   : > { %v7034_v11 = vmul.f32 %v7018_v17, %v6490_v18  ;;  %v7124_v5 = vpop.f32.mrf.mxu2  ;;  %7144 = vmatmul.f32.gmra.mxu2 %v7081_v2  ;;  %v6907_v9 = vadd.f32 0.2548296, %v6891_v19  ;;  %v6714_v4 = vmul.f32 %v8914_v37, %v6713_v32  ;;  %vm6716_vm3 = vweird.f32 %v14128_v54 }
0x15d1   : > { %v7125_v45 = vadd.f32 %v7124_v5, %v14152_v46  ;;  %v6844_v35 = vadd.f32 1.4214138, %v6828_v22  ;;  %v8916_v55 = vpop.eup %8915  ;;  %8919 = vpow2.f32 %v6982_v24  ;;  %vm6718_vm4 = vmor %vm6716_vm3, %vm6717_vm0  ;;  %v6723_v39 = vor.u32 1.1754944e-38, %v6722_v58 }
0x15d2   : > { %v7050_v51 = vadd.f32 1.0, %v7034_v11  ;;  %v6923_v50 = vmul.f32 %v6907_v9, %v14115_v8  ;;  %v6715_v60 = vadd.f32 %v8914_v37, %v6714_v4  ;;  %v6941_v8 = vsub.f32 0.0, %v14110_v34 }
0x15d3   : > { %v6860_v6 = vmul.f32 %v6844_v35, %v14139_v44  ;;  %v7172_v38 = vadd.f32 %v7125_v45, %v13330_v41  ;;  %vm6721_vm2 = vcmp.eq.f32.partialorder %v6720_v56, 8.507059e+37  ;;  %v6349_v41 = vadd.f32 %v6348_v57, %v13842_v52 }
0x15d4   : > { %v7066_v48 = vmul.f32 %v7050_v51, %v6442_v0  ;;  %v7003_v17 = vmul.f32 %v8916_v55, %v6923_v50  ;;  %v6719_v19 = vsel %vm6718_vm4, %v8914_v37, %v6715_v60  ;;  %v6443_v51 = vmul.f32 0.5, %v14033_v20 }
0x15d5   : > { %v6876_v61 = vadd.f32 -0.28449672, %v6860_v6  ;;  %7814 = vmatmul.msk.f32.vlgmr.msra.gmra.mxu0 %vm409_vm13, %v7172_v38  ;;  %v8918_v54 = vpop.eup %8917  ;;  %v6724_v22 = vsel %vm6721_vm2, %v6723_v39, %v6719_v19  ;;  %v6957_v37 = vmul.f32 %v6941_v8, %v14110_v34  ;;  %v6737_v50 = vand.u32 2147483648, %v14161_v28 }
0x15d6   : > { %v7082_v18 = vmul.f32 %v7066_v48, %v6346_v7  ;;  %v7019_v2 = vsub.f32 1.0, %v7003_v17  ;;  %v6491_v7 = vsel %vm6475_vm1, 1.0, %v9061_v53  ;;  %v6797_v24 = vmul.f32 1.0614054, %v6724_v22 }
0x15d7   : > { %v6892_v11 = vmul.f32 %v6876_v61, %v14139_v44  ;;  %v6727_v45 = vmul.f32 %v8918_v54, %v14161_v28  ;;  %v8920_v58 = vpop.eup %8919  ;;  %vm6732_vm6 = vweird.f32 %v8918_v54  ;;  %v6735_v48 = vand.u32 2147483647, %v14161_v28 }
0x15d8   : > { %v7127_v59 = vpop.f32.mrf.mxu2  ;;  %7147 = vmatmul.f32.gmra.mxu2 %v7082_v18  ;;  %v7035_v5 = vmul.f32 %v7019_v2, %v6491_v7  ;;  %v6813_v32 = vadd.f32 -1.4531521, %v6797_v24  ;;  %vm6731_vm7 = vweird.f32 %v14161_v28  ;;  %v6492_v61 = vsel %vm6476_vm5, 1.0, %v9061_v53 }
0x15d9   : > { %v6908_v0 = vadd.f32 0.2548296, %v6892_v11  ;;  %v7128_v9 = vadd.f32 %v7127_v59, %v14152_v46  ;;  %v6728_v56 = vsub.f32 1.0, %v6727_v45  ;;  %v6984_v60 = vmul.f32 1.442695, %v6957_v37  ;;  %vm6733_vm8 = vmor %vm6731_vm7, %vm6732_vm6  ;;  %v6351_v11 = vpop.f32.mrf.mxu1 }
0x15da   : > { %v7051_v35 = vadd.f32 1.0, %v7035_v5  ;;  %v6829_v55 = vmul.f32 %v6813_v32, %v6724_v22  ;;  %vm6736_vm9 = vcmp.eq.f32.partialorder %v6735_v48, 8.507059e+37  ;;  %v6444_v19 = vmul.f32 0.5, %v14053_v10 }
0x15db   : > { %v6924_v16 = vmul.f32 %v6908_v0, %v14139_v44  ;;  %v7173_v6 = vadd.f32 %v7128_v9, %v13336_v12  ;;  %v6729_v38 = vmul.f32 %v8918_v54, %v6728_v56  ;;  %v6738_v12 = vor.u32 1.1754944e-38, %v6737_v50 }
0x15dc   : > { %v7067_v20 = vmul.f32 %v7051_v35, %v6443_v51  ;;  %v6845_v44 = vadd.f32 1.4214138, %v6829_v55  ;;  %v6942_v7 = vsub.f32 0.0, %v14147_v31  ;;  %8921 = vpow2.f32 %v6984_v60 }
0x15dd   : > { %v7004_v4 = vmul.f32 %v8920_v58, %v6924_v16  ;;  %7815 = vmatmul.msk.f32.gmra.mxu0 %vm409_vm13, %v7173_v6  ;;  %v6730_v57 = vadd.f32 %v8918_v54, %v6729_v38  ;;  %v6352_v24 = vadd.f32 %v6351_v11, %v13842_v52  ;;  %vm6477_vm10 = vcmp.ge.f32.partialorder %v14105_v15, 0.0 }
0x15de   : > { %v7083_v17 = vmul.f32 %v7067_v20, %v6349_v41  ;;  %v6861_v8 = vmul.f32 %v6845_v44, %v6724_v22  ;;  %v6958_v37 = vmul.f32 %v6942_v7, %v14147_v31  ;;  %v6493_v55 = vsel %vm6477_vm10, 1.0, %v9061_v53 }
0x15df   : > { %v7020_v34 = vsub.f32 1.0, %v7004_v4  ;;  %v6734_v2 = vsel %vm6733_vm8, %v8918_v54, %v6730_v57  ;;  %v6445_v44 = vmul.f32 0.5, %v14094_v27  ;;  %vm6478_vm11 = vcmp.ge.f32.partialorder %v14135_v3, 0.0 }
0x15e0   : > { %v7130_v18 = vpop.f32.mrf.mxu2  ;;  %7150 = vmatmul.f32.gmra.mxu2 %v7083_v17  ;;  %v6739_v41 = vsel %vm6736_vm9, %v6738_v12, %v6734_v2  ;;  %v6877_v59 = vadd.f32 -0.28449672, %v6861_v8  ;;  %v6986_v48 = vmul.f32 1.442695, %v6958_v37  ;;  %v6494_v27 = vsel %vm6478_vm11, 1.0, %v9061_v53 }
0x15e1   : > { %v7036_v39 = vmul.f32 %v7020_v34, %v6492_v61  ;;  %v7131_v28 = vadd.f32 %v7130_v18, %v14152_v46  ;;  %v6798_v5 = vmul.f32 1.0614054, %v6739_v41  ;;  %v6354_v34 = vpop.f32.mrf.mxu1  ;;  %v6446_v7 = vmul.f32 0.5, %v14124_v13 }
0x15e2   : > { %v6893_v51 = vmul.f32 %v6877_v59, %v6724_v22  ;;  %v8922_v58 = vpop.eup %8921  ;;  %8923 = vpow2.f32 %v6986_v48  ;;  %v6355_v60 = vadd.f32 %v6354_v34, %v13842_v52 }
0x15e3   : > { %v7052_v42 = vadd.f32 1.0, %v7036_v39  ;;  %v7174_v0 = vadd.f32 %v7131_v28, %v13454_v23  ;;  %v6814_v54 = vadd.f32 -1.4531521, %v6798_v5 }
0x15e4   : > { %v6909_v9 = vadd.f32 0.2548296, %v6893_v51 }
0x15e5   : > { %v7068_v45 = vmul.f32 %v7052_v42, %v6444_v19  ;;  %7816 = vmatmul.msk.f32.gmra.mxu0 %vm409_vm13, %v7174_v0  ;;  %v6830_v10 = vmul.f32 %v6814_v54, %v6739_v41 }
0x15e6   : > { %v6925_v16 = vmul.f32 %v6909_v9, %v6724_v22 }
0x15e7   : > { %v7084_v35 = vmul.f32 %v7068_v45, %v6352_v24  ;;  %v6846_v32 = vadd.f32 1.4214138, %v6830_v10 }
0x15e8   : > { %v7133_v56 = vpop.f32.mrf.mxu2  ;;  %v7005_v50 = vmul.f32 %v8922_v58, %v6925_v16  ;;  %v8924_v18 = vpop.eup %8923 }
0x15e9   : > { %7153 = vmatmul.f32.gmra.mxu2 %v7084_v35  ;;  %v7134_v23 = vadd.f32 %v7133_v56, %v14152_v46  ;;  %v6862_v6 = vmul.f32 %v6846_v32, %v6739_v41  ;;  %v6357_v19 = vpop.f32.mrf.mxu1 }
0x15ea   : > { %v7021_v31 = vsub.f32 1.0, %v7005_v50 }
0x15eb   : > { %v7175_v20 = vadd.f32 %v7134_v23, %v13349_v40  ;;  %v6878_v4 = vadd.f32 -0.28449672, %v6862_v6 }
0x15ec   : > { %v7037_v22 = vmul.f32 %v7021_v31, %v6493_v55 }
0x15ed   : > { %7817 = vmatmul.msk.f32.gmra.mxu0 %vm409_vm13, %v7175_v20  ;;  %v6894_v38 = vmul.f32 %v6878_v4, %v6739_v41 }
0x15ee   : > { %v7053_v57 = vadd.f32 1.0, %v7037_v22 }
0x15ef   : > { %v6910_v17 = vadd.f32 0.2548296, %v6894_v38 }
0x15f0   : > { %v7069_v40 = vmul.f32 %v7053_v57, %v6445_v44 }
0x15f1   : > { %v7136_v61 = vpop.f32.mrf.mxu2  ;;  %v6926_v12 = vmul.f32 %v6910_v17, %v6739_v41  ;;  %v6358_v41 = vadd.f32 %v6357_v19, %v13842_v52 }
0x15f2   : > { %v7137_v15 = vadd.f32 %v7136_v61, %v14152_v46  ;;  %v7085_v2 = vmul.f32 %v7069_v40, %v6355_v60 }
0x15f3   : > { %v7006_v8 = vmul.f32 %v8924_v18, %v6926_v12 }
0x15f4   : > { %v7176_v39 = vadd.f32 %v7137_v15, %v13360_v63  ;;  %7156 = vmatmul.f32.gmra.mxu2 %v7085_v2 }
0x15f5   : > { %v7022_v28 = vsub.f32 1.0, %v7006_v8 }
0x15f6   : > { %7818 = vmatmul.msk.f32.gmra.mxu0 %vm409_vm13, %v7176_v39 }
0x15f7   : > { %v7038_v11 = vmul.f32 %v7022_v28, %v6494_v27 }
0x15f9   : > { %v7054_v42 = vadd.f32 1.0, %v7038_v11 }
0x15fb   : > { %v7070_v59 = vmul.f32 %v7054_v42, %v6446_v7 }
0x15fd   : > { %v7086_v63 = vmul.f32 %v7070_v59, %v6358_v41 }
0x15fe   : > { %v7139_v5 = vpop.f32.mrf.mxu2 }
0x15ff   : > { %v7140_v3 = vadd.f32 %v7139_v5, %v14152_v46  ;;  %7159 = vmatmul.f32.gmra.mxu2 %v7086_v63 }
0x1601   : > { %v7177_v0 = vadd.f32 %v7140_v3, %v13371_v29 }
0x1603   : > { %7819 = vmatmul.msk.f32.gmra.mxu0 %vm409_vm13, %v7177_v0 }
0x1611   : > { %v6425_v24 = vpop.f32.mrf.mxu3 }
0x1612   : > { %v14220_v45 = vadd.f32 %v6425_v24, %v13706_v30 }
0x1614   : > { %v14223_v51 = vmul.f32 0.70710677, %v14220_v45 }
0x1616   : > { %v6511_v13 = vand.u32 2147483647, %v14223_v51  ;;  %vm6479_vm9 = vcmp.ge.f32.partialorder %v14223_v51, 0.0 }
0x1618   : > { %v6527_v54 = vmul.f32 0.3275911, %v6511_v13  ;;  %v6943_v61 = vsub.f32 0.0, %v6511_v13 }
0x1619   : > { %v6428_v37 = vpop.f32.mrf.mxu3 }
0x161a   : > { %v6543_v9 = vadd.f32 1.0, %v6527_v54  ;;  %v14227_v10 = vadd.f32 %v6428_v37, %v13706_v30  ;;  %v6959_v39 = vmul.f32 %v6943_v61, %v6511_v13 }
0x161c   : > { %8925 = vrcp.f32 %v6543_v9  ;;  %v14230_v29 = vmul.f32 0.70710677, %v14227_v10  ;;  %v6752_v20 = vand.u32 2147483648, %v6543_v9  ;;  %v6750_v55 = vand.u32 2147483647, %v6543_v9 }
0x161d   : > { %vm6746_vm14 = vweird.f32 %v6543_v9  ;;  %v6988_v41 = vmul.f32 1.442695, %v6959_v39  ;;  %v6495_v39 = vsel %vm6479_vm9, 1.0, %v9061_v53 }
0x161e   : > { %v6512_v35 = vand.u32 2147483647, %v14230_v29  ;;  %vm6751_vm0 = vcmp.eq.f32.partialorder %v6750_v55, 8.507059e+37  ;;  %vm6480_vm10 = vcmp.ge.f32.partialorder %v14230_v29, 0.0 }
0x1620   : > { %v6528_v16 = vmul.f32 0.3275911, %v6512_v35  ;;  %v6944_v3 = vsub.f32 0.0, %v6512_v35 }
0x1621   : > { %v6431_v32 = vpop.f32.mrf.mxu3 }
0x1622   : > { %v8926_v56 = vpop.eup %8925  ;;  %v14234_v58 = vadd.f32 %v6431_v32, %v13706_v30  ;;  %v6544_v23 = vadd.f32 1.0, %v6528_v16  ;;  %v6753_v30 = vor.u32 1.1754944e-38, %v6752_v20 }
0x1623   : > { %v6742_v48 = vmul.f32 %v8926_v56, %v6543_v9  ;;  %vm6747_vm12 = vweird.f32 %v8926_v56 }
0x1624   : > { %v14237_v50 = vmul.f32 0.70710677, %v14234_v58  ;;  %8927 = vrcp.f32 %v6544_v23  ;;  %vm6748_vm15 = vmor %vm6746_vm14, %vm6747_vm12  ;;  %v6767_v18 = vand.u32 2147483648, %v6544_v23  ;;  %v6765_v2 = vand.u32 2147483647, %v6544_v23 }
0x1625   : > { %v6743_v6 = vsub.f32 1.0, %v6742_v48  ;;  %vm6761_vm3 = vweird.f32 %v6544_v23 }
0x1626   : > { %v14240_v31 = vand.u32 2147483647, %v14237_v50  ;;  %v6768_v7 = vor.u32 1.1754944e-38, %v6767_v18  ;;  %vm6766_vm2 = vcmp.eq.f32.partialorder %v6765_v2, 8.507059e+37  ;;  %v6360_v2 = vpop.f32.mrf.mxu1  ;;  %vm6481_vm11 = vcmp.ge.f32.partialorder %v14237_v50, 0.0 }
0x1627   : > { %v6744_v4 = vmul.f32 %v8926_v56, %v6743_v6 }
0x1628   : > { %v6529_v22 = vmul.f32 0.3275911, %v14240_v31 }
0x1629   : > { %v6745_v38 = vadd.f32 %v8926_v56, %v6744_v4 }
0x162a   : > { %v6545_v34 = vadd.f32 1.0, %v6529_v22  ;;  %v8928_v44 = vpop.eup %8927 }
0x162b   : > { %v6749_v57 = vsel %vm6748_vm15, %v8926_v56, %v6745_v38  ;;  %v6757_v15 = vmul.f32 %v8928_v44, %v6544_v23  ;;  %vm6762_vm1 = vweird.f32 %v8928_v44  ;;  %v6960_v56 = vmul.f32 %v6944_v3, %v6512_v35 }
0x162c   : > { %v6754_v17 = vsel %vm6751_vm0, %v6753_v30, %v6749_v57  ;;  %8929 = vrcp.f32 %v6545_v34  ;;  %vm6763_vm4 = vmor %vm6761_vm3, %vm6762_vm1  ;;  %v6782_v13 = vand.u32 2147483648, %v6545_v34  ;;  %v6780_v9 = vand.u32 2147483647, %v6545_v34 }
0x162d   : > { %v6799_v60 = vmul.f32 1.0614054, %v6754_v17  ;;  %v6758_v40 = vsub.f32 1.0, %v6757_v15  ;;  %8931 = vpow2.f32 %v6988_v41  ;;  %vm6776_vm6 = vweird.f32 %v6545_v34 }
0x162e   : > { %v6783_v6 = vor.u32 1.1754944e-38, %v6782_v13  ;;  %vm6781_vm8 = vcmp.eq.f32.partialorder %v6780_v9, 8.507059e+37  ;;  %v6945_v38 = vsub.f32 0.0, %v14240_v31 }
0x162f   : > { %v6815_v12 = vadd.f32 -1.4531521, %v6799_v60  ;;  %v6759_v8 = vmul.f32 %v8928_v44, %v6758_v40 }
0x1630   : > { %v6961_v40 = vmul.f32 %v6945_v38, %v14240_v31  ;;  %v6497_v38 = vsel %vm6481_vm11, 1.0, %v9061_v53 }
0x1631   : > { %v6831_v28 = vmul.f32 %v6815_v12, %v6754_v17  ;;  %v6760_v11 = vadd.f32 %v8928_v44, %v6759_v8 }
0x1632   : > { %v8930_v27 = vpop.eup %8929 }
0x1633   : > { %v6847_v19 = vadd.f32 1.4214138, %v6831_v28  ;;  %v6772_v42 = vmul.f32 %v8930_v27, %v6545_v34  ;;  %v6764_v59 = vsel %vm6763_vm4, %v8928_v44, %v6760_v11  ;;  %vm6777_vm5 = vweird.f32 %v8930_v27  ;;  %v8932_v61 = vpop.eup %8931 }
0x1634   : > { %v6769_v63 = vsel %vm6766_vm2, %v6768_v7, %v6764_v59  ;;  %vm6778_vm7 = vmor %vm6776_vm6, %vm6777_vm5  ;;  %v6990_v44 = vmul.f32 1.442695, %v6960_v56  ;;  %v6992_v11 = vmul.f32 1.442695, %v6961_v40  ;;  %v6361_v59 = vadd.f32 %v6360_v2, %v13842_v52 }
0x1635   : > { %v6863_v5 = vmul.f32 %v6847_v19, %v6754_v17  ;;  %v6773_v0 = vsub.f32 1.0, %v6772_v42  ;;  %v6800_v24 = vmul.f32 1.0614054, %v6769_v63  ;;  %v6447_v19 = vmul.f32 0.5, %v14220_v45 }
0x1636   : > { %8933 = vpow2.f32 %v6990_v44 }
0x1637   : > { %v6879_v54 = vadd.f32 -0.28449672, %v6863_v5  ;;  %v6774_v37 = vmul.f32 %v8930_v27, %v6773_v0  ;;  %v6816_v16 = vadd.f32 -1.4531521, %v6800_v24  ;;  %8935 = vpow2.f32 %v6992_v11 }
0x1639   : > { %v6895_v32 = vmul.f32 %v6879_v54, %v6754_v17  ;;  %v6775_v48 = vadd.f32 %v8930_v27, %v6774_v37  ;;  %v6832_v23 = vmul.f32 %v6816_v16, %v6769_v63  ;;  %v6496_v54 = vsel %vm6480_vm10, 1.0, %v9061_v53  ;;  %v6363_v16 = vpop.f32.mrf.mxu1 }
0x163a   : > { %v6367_v53 = vadd.f32 %v13688_v49, %v13842_v52 }
0x163b   : > { %v6911_v20 = vadd.f32 0.2548296, %v6895_v32  ;;  %v6779_v4 = vsel %vm6778_vm7, %v8930_v27, %v6775_v48  ;;  %v6848_v55 = vadd.f32 1.4214138, %v6832_v23  ;;  %v6448_v48 = vmul.f32 0.5, %v14227_v10 }
0x163c   : > { %v6784_v22 = vsel %vm6781_vm8, %v6783_v6, %v6779_v4  ;;  %v8934_v41 = vpop.eup %8933 }
0x163d   : > { %v6927_v30 = vmul.f32 %v6911_v20, %v6754_v17  ;;  %v6801_v57 = vmul.f32 1.0614054, %v6784_v22  ;;  %v6864_v15 = vmul.f32 %v6848_v55, %v6769_v63  ;;  %v8936_v56 = vpop.eup %8935  ;;  %v6364_v20 = vadd.f32 %v6363_v16, %v13842_v52 }
0x163f   : > { %v7007_v35 = vmul.f32 %v8932_v61, %v6927_v30  ;;  %v6817_v60 = vadd.f32 -1.4531521, %v6801_v57  ;;  %v6880_v34 = vadd.f32 -0.28449672, %v6864_v15 }
0x1641   : > { %v7023_v12 = vsub.f32 1.0, %v7007_v35  ;;  %v6833_v18 = vmul.f32 %v6817_v60, %v6784_v22  ;;  %v6896_v8 = vmul.f32 %v6880_v34, %v6769_v63 }
0x1643   : > { %v7039_v28 = vmul.f32 %v7023_v12, %v6495_v39  ;;  %v6849_v17 = vadd.f32 1.4214138, %v6833_v18  ;;  %v6912_v27 = vadd.f32 0.2548296, %v6896_v8 }
0x1645   : > { %v7055_v7 = vadd.f32 1.0, %v7039_v28  ;;  %v6865_v51 = vmul.f32 %v6849_v17, %v6784_v22  ;;  %v6928_v42 = vmul.f32 %v6912_v27, %v6769_v63 }
0x1647   : > { %v7071_v31 = vmul.f32 %v7055_v7, %v6447_v19  ;;  %v6881_v5 = vadd.f32 -0.28449672, %v6865_v51  ;;  %v7008_v3 = vmul.f32 %v8934_v41, %v6928_v42 }
0x1649   : > { %v6897_v0 = vmul.f32 %v6881_v5, %v6784_v22  ;;  %v7087_v24 = vmul.f32 %v7071_v31, %v6361_v59  ;;  %v7024_v13 = vsub.f32 1.0, %v7008_v3 }
0x164b   : > { %v6913_v37 = vadd.f32 0.2548296, %v6897_v0  ;;  %7162 = vmatmul.f32.gmra.mxu2 %v7087_v24  ;;  %v7040_v45 = vmul.f32 %v7024_v13, %v6496_v54  ;;  %v7142_v9 = vpop.f32.mrf.mxu2 }
0x164c   : > { %v7143_v32 = vadd.f32 %v7142_v9, %v14152_v46 }
0x164d   : > { %v6929_v63 = vmul.f32 %v6913_v37, %v6784_v22  ;;  %v7056_v23 = vadd.f32 1.0, %v7040_v45  ;;  %v14261_v22 = vld [vmem:[%s14349_s3 + $0x13] ss:$0 sm:$0xff] }
0x164e   : > { %v7178_v6 = vadd.f32 %v7143_v32, %v13518_v43  ;;  %v6449_v43 = vmul.f32 0.5, %v14234_v58 }
0x164f   : > { %v7009_v29 = vmul.f32 %v8936_v56, %v6929_v63  ;;  %v7072_v4 = vmul.f32 %v7056_v23, %v6448_v48 }
0x1650   : > { %7820 = vmatmul.msk.f32.gmra.mxu0 %vm409_vm13, %v7178_v6 }
0x1651   : > { %v7025_v55 = vsub.f32 1.0, %v7009_v29  ;;  %v7088_v10 = vmul.f32 %v7072_v4, %v6364_v20 }
0x1652   : > { %v7258_v44 = vpop.f32.mrf.mxu0 }
0x1653   : > { %v7041_v30 = vmul.f32 %v7025_v55, %v6497_v38  ;;  %v7145_v50 = vpop.f32.mrf.mxu2  ;;  %7165 = vmatmul.f32.gmra.mxu2 %v7088_v10  ;;  %v7259_v61 = vadd.f32 %v7258_v44, %v14261_v22 }
0x1654   : > { %v7146_v15 = vadd.f32 %v7145_v50, %v14152_v46 }
0x1655   : > { %v7057_v57 = vadd.f32 1.0, %v7041_v30  ;;  %7306 = vxpose.xlu1.b32.start [1/16] (narrow) %v7259_v61, 32 }
0x1656   : > { %v7179_v60 = vadd.f32 %v7146_v15, %v13396_v25  ;;  %v8940_v15 = vld [vmem:[%s9151_s12 + $0x8] sm:$0xff] }
0x1657   : > { %v7073_v35 = vmul.f32 %v7057_v57, %v6449_v43  ;;  %v8939_v43 = vld [vmem:[%s9151_s12] sm:$0xff] }
0x1658   : > { %7821 = vmatmul.msk.f32.gmra.mxu0 %vm409_vm13, %v7179_v60  ;;  %v8941_v60 = vld [vmem:[%s9151_s12 + $0x10] sm:$0xff] }
0x1659   : > { %v7089_v34 = vmul.f32 %v7073_v35, %v6367_v53 }
0x165a   : > { %v7261_v40 = vpop.f32.mrf.mxu0 }
0x165b   : > { %v7148_v12 = vpop.f32.mrf.mxu2  ;;  %7168 = vmatmul.f32.gmra.mxu2 %v7089_v34  ;;  %v7262_v58 = vadd.f32 %v7261_v40, %v14261_v22  ;;  %v8942_v40 = vld [vmem:[%s9151_s12 + $0x18] sm:$0xff] }
0x165c   : > { %v7149_v18 = vadd.f32 %v7148_v12, %v14152_v46 }
0x165d   : > { %7307 = vxpose.xlu1.b32.cont [2/16] (narrow) %v7262_v58, 32 }
0x165e   : > { %v7180_v39 = vadd.f32 %v7149_v18, %v13409_v36 }
0x1660   : > { %7822 = vmatmul.msk.f32.gmra.mxu0 %vm409_vm13, %v7180_v39 }
0x1662   : > { %v7264_v49 = vpop.f32.mrf.mxu0 }
0x1663   : > { %v7265_v52 = vadd.f32 %v7264_v49, %v14261_v22  ;;  %v7151_v25 = vpop.f32.mrf.mxu2 }
0x1664   : > { %v7152_v8 = vadd.f32 %v7151_v25, %v14152_v46 }
0x1665   : > { %7308 = vxpose.xlu1.b32.cont [3/16] (narrow) %v7265_v52, 32 }
0x1666   : > { %v7181_v2 = vadd.f32 %v7152_v8, %v13532_v14 }
0x1668   : > { %7823 = vmatmul.msk.f32.gmra.mxu0 %vm409_vm13, %v7181_v2 }
0x166a   : > { %v7267_v28 = vpop.f32.mrf.mxu0 }
0x166b   : > { %v7268_v17 = vadd.f32 %v7267_v28, %v14261_v22 }
0x166c   : > { %v7154_v27 = vpop.f32.mrf.mxu2 }
0x166d   : > { %v7155_v36 = vadd.f32 %v7154_v27, %v14152_v46  ;;  %7309 = vxpose.xlu1.b32.cont [4/16] (narrow) %v7268_v17, 32 }
0x166f   : > { %v7182_v11 = vadd.f32 %v7155_v36, %v13425_v62 }
0x1671   : > { %7824 = vmatmul.msk.f32.gmra.mxu0 %vm409_vm13, %v7182_v11 }
0x1673   : > { %v7270_v19 = vpop.f32.mrf.mxu0 }
0x1674   : > { %v7271_v7 = vadd.f32 %v7270_v19, %v14261_v22 }
0x1676   : > { %7310 = vxpose.xlu1.b32.cont [5/16] (narrow) %v7271_v7, 32 }
0x1677   : > { %v7157_v51 = vpop.f32.mrf.mxu2 }
0x1678   : > { %v7158_v14 = vadd.f32 %v7157_v51, %v14152_v46 }
0x167a   : > { %v7183_v42 = vadd.f32 %v7158_v14, %v13437_v26 }
0x167c   : > { %7825 = vmatmul.msk.f32.gmra.mxu0 %vm409_vm13, %v7183_v42 }
0x1680   : > { %v7273_v41 = vpop.f32.mrf.mxu0 }
0x1681   : > { %v7274_v59 = vadd.f32 %v7273_v41, %v14261_v22 }
0x1682   : > { %v7160_v31 = vpop.f32.mrf.mxu2 }
0x1683   : > { %7311 = vxpose.xlu1.b32.cont [6/16] (narrow) %v7274_v59, 32  ;;  %v7161_v62 = vadd.f32 %v7160_v31, %v14152_v46 }
0x1685   : > { %v7184_v5 = vadd.f32 %v7161_v62, %v13549_v47 }
0x1687   : > { %7826 = vmatmul.msk.f32.gmra.mxu0 %vm409_vm13, %v7184_v5 }
0x16cd   : > { %v7276_v3 = vpop.f32.mrf.mxu0 }
0x16ce   : > { %v7163_v0 = vpop.f32.mrf.mxu2  ;;  %v7277_v24 = vadd.f32 %v7276_v3, %v14261_v22 }
0x16cf   : > { %v7164_v13 = vadd.f32 %v7163_v0, %v14152_v46 }
0x16d0   : > { %7312 = vxpose.xlu1.b32.cont [7/16] (narrow) %v7277_v24, 32 }
0x16d1   : > { %v7185_v26 = vadd.f32 %v7164_v13, %v13594_v33 }
0x16d3   : > { %7827 = vmatmul.msk.f32.gmra.mxu0 %vm409_vm13, %v7185_v26 }
0x16d5   : > { %v7279_v54 = vpop.f32.mrf.mxu0 }
0x16d6   : > { %v7280_v37 = vadd.f32 %v7279_v54, %v14261_v22  ;;  %v7166_v45 = vpop.f32.mrf.mxu2 }
0x16d7   : > { %v7167_v9 = vadd.f32 %v7166_v45, %v14152_v46 }
0x16d8   : > { %7313 = vxpose.xlu1.b32.cont [8/16] (narrow) %v7280_v37, 32 }
0x16d9   : > { %v7186_v47 = vadd.f32 %v7167_v9, %v13471_v21 }
0x16db   : > { %7828 = vmatmul.msk.f32.gmra.mxu0 %vm409_vm13, %v7186_v47 }
0x16dd   : > { %v7282_v16 = vpop.f32.mrf.mxu0 }
0x16de   : > { %v7283_v63 = vadd.f32 %v7282_v16, %v14261_v22  ;;  %v7169_v32 = vpop.f32.mrf.mxu2 }
0x16df   : > { %v7170_v33 = vadd.f32 %v7169_v32, %v14152_v46 }
0x16e0   : > { %7314 = vxpose.xlu1.b32.cont [9/16] (narrow) %v7283_v63, 32 }
0x16e1   : > { %v7187_v56 = vadd.f32 %v7170_v33, %v13447_v1 }
0x16e3   : > { %7829 = vmatmul.msk.f32.gmra.mxu0 %vm409_vm13, %v7187_v56 }
0x16e5   : > { %v7285_v48 = vpop.f32.mrf.mxu0 }
0x16e6   : > { %v7286_v23 = vadd.f32 %v7285_v48, %v14261_v22 }
0x16e8   : > { %7315 = vxpose.xlu1.b32.cont [10/16] (narrow) %v7286_v23, 32 }
0x16ee   : > { %v7288_v29 = vpop.f32.mrf.mxu0 }
0x16ef   : > { %v7289_v21 = vadd.f32 %v7288_v29, %v14261_v22 }
0x16f1   : > { %7316 = vxpose.xlu1.b32.cont [11/16] (narrow) %v7289_v21, 32 }
0x16f9   : > { %v7291_v6 = vpop.f32.mrf.mxu0 }
0x16fa   : > { %v7292_v20 = vadd.f32 %v7291_v6, %v14261_v22 }
0x16fc   : > { %7317 = vxpose.xlu1.b32.cont [12/16] (narrow) %v7292_v20, 32 }
0x1704   : > { %v7294_v46 = vpop.f32.mrf.mxu0 }
0x1705   : > { %v7295_v4 = vadd.f32 %v7294_v46, %v14261_v22 }
0x1707   : > { %7318 = vxpose.xlu1.b32.cont [13/16] (narrow) %v7295_v4, 32 }
0x1750   : > { %v7297_v1 = vpop.f32.mrf.mxu0 }
0x1751   : > { %v7298_v55 = vadd.f32 %v7297_v1, %v14261_v22 }
0x1753   : > { %7319 = vxpose.xlu1.b32.cont [14/16] (narrow) %v7298_v55, 32 }
0x1758   : > { %v7300_v38 = vpop.f32.mrf.mxu0 }
0x1759   : > { %v7301_v10 = vadd.f32 %v7300_v38, %v14261_v22 }
0x175b   : > { %7320 = vxpose.xlu1.b32.cont [15/16] (narrow) %v7301_v10, 32 }
0x1760   : > { %v7303_v30 = vpop.f32.mrf.mxu0 }
0x1761   : > { %v7304_v44 = vadd.f32 %v7303_v30, %v14261_v22 }
0x1763   : > { %7321 = vxpose.xlu1.b32.end [16/16] (narrow) %v7304_v44, 32 }
0x178f   : > { %v7322_v50 = vpop.trf.xlu1 }
0x1790   : > { %v7338_v57 = vadd.f32 %v8939_v43, %v7322_v50 }
0x1792   : > { %7342 = vst [vmem:[%s207_s9] sm:$0xff] %v7338_v57 }
0x1797   : > { %v7323_v61 = vpop.trf.xlu1 }
0x1798   : > { %v7339_v53 = vadd.f32 %v8940_v15, %v7323_v61 }
0x179a   : > { %7343 = vst [vmem:[%s207_s9 + $0x8] sm:$0xff] %v7339_v53 }
0x179f   : > { %v7324_v35 = vpop.trf.xlu1 }
0x17a0   : > { %v7340_v34 = vadd.f32 %v8941_v60, %v7324_v35 }
0x17a2   : > { %7344 = vst [vmem:[%s207_s9 + $0x10] sm:$0xff] %v7340_v34 }
0x17a7   : > { %v7325_v22 = vpop.trf.xlu1 }
0x17a8   : > { %v7341_v12 = vadd.f32 %v8942_v40, %v7325_v22 }
0x17aa   : > { %7345 = vst [vmem:[%s207_s9 + $0x18] sm:$0xff] %v7341_v12 }
0x17ab   : > { %9000 = shalt.err (!%p8997_p8)
}
0x17ac   : > { %s9062_s12 = smov 128  }
0x17ad   : > { %7865 = dma.vmem_to_hbm [thread:$0]  (%p9126_p5), %s7360_s22, 512, %s7362_s23, %s7347_s27, %s9062_s12, %s9062_s12, %s9059_s20  }
0x17ae PF: > { %p7877_p9 = scmp.ge.s32.totalorder %s9039_s18, 2  ;;  %s7376_s7 = sand.u32 1, %s9027_s15  }
0x17af   : > { %s7377_s9 = scalar_lea.sflag [#allocation4], %s7376_s7 }
0x17b0   : > { %p7872_p10 = pnand %p7877_p9, %p9130_p6 }
0x17b2   : > { %p7873_p11 = pneg %p7872_p10 }
0x17b4   : > { %9022 = dma.done.wait (%p7873_p11), %s7377_s9, 512  }
0x17b5   : > { %9024 = vsyncadd (%p7873_p11), %s7377_s9, 4294966784  ;;  %p15_p12 = scmp.ge.s32.totalorder %s9113_s21, 4   ;;  %s14905_s15 = smov %s9031_s16 }
0x17b6   : > { %s14906_s16 = smov %s9035_s17  ;;  %s14907_s17 = smov %s9124_s24 }
0x17b7   : > { %s14908_s18 = smov %s9113_s21  ;;  %17 = sbr.rel (!%p15_p12) target bundleno = 4 (0x4), region = 77 }
0x17bc   :  { %7383 = vsyncpa [#allocation3], 1 }
0x17bd   :  { %7385 = vsyncpa [#allocation3 + $0x1], 1 }
0x17be   :  { %7386 = vsyncpa [#allocation4], 1 }
0x17bf   :  { %7388 = vsyncpa [#allocation4 + $0x1], 1 }

</bundles_post_ra>
